<compile_context>
chip_gen: v6e
topology: v6e:2x2x1
jax: 0.10.0
libtpu: 0.0.40
codegen_flags: <defaults>
</compile_context>

<pallas_src>
import jax
import jax.numpy as jnp
import numpy as np
from jax.experimental import pallas as pl
from jax.experimental.pallas import tpu as pltpu

_VMEM_LIMIT = 64 * 1024 * 1024      # explicit scoped-VMEM limit (fits v7x's 64 MiB)
_MAX_TILE_PIXELS = 2048             # rows of the (pixels, C) matmuls per grid step


# ----------------------------- small helpers ------------------------------

def _pick_pixel_tile(m, max_rows=1024):
    """Row tile for flat 1x1-conv matmuls; >=2 grid blocks when possible (v7x: 2 TCs)."""
    if m <= 8:
        return m
    if m <= max_rows:
        return m // 2 if m % 16 == 0 else m
    return max_rows


def _pick_row_tile(h, wd, upsampled_x1):
    """Largest divisor `th` of h whose (th*wd, C) pixel tile stays a reasonable size."""
    for th in range(h, 0, -1):
        if h % th:
            continue
        if th == h and th * wd <= _MAX_TILE_PIXELS:
            return th                       # whole image in one row block
        if th * wd > _MAX_TILE_PIXELS:
            continue
        if (th * wd) % 8:
            continue
        if upsampled_x1 and th % 2:
            continue
        return th
    return h


def _halo_rows(img, tile_rows):
    """For row-block tiling: rows just above / below each block, (N, HB, W, C)."""
    n, hh, wd, c = img.shape
    hb = hh // tile_rows
    z = jnp.zeros((n, 1, wd, c), img.dtype)
    top = jnp.concatenate([z, img[:, tile_rows - 1:hh - 1:tile_rows]], axis=1)
    bot = jnp.concatenate([img[:, tile_rows::tile_rows], z], axis=1)
    return top, bot


# ----------------------------- Pallas kernels -----------------------------

def _conv1x1_kernel(x_ref, w_ref, b_ref, o_ref):
    # 1x1 conv + folded BN:  o = x @ w + b
    o_ref[...] = (jnp.dot(x_ref[...], w_ref[...],
                          preferred_element_type=jnp.float32) + b_ref[...])


def _make_fusion_kernel(th, wd, c, hb, up1, with_epi):
    """Fully fused Fusion block on a (th rows, wd cols, c channels) tile."""
    npx = th * wd
    r1 = th // 2 if up1 else th          # x1 rows actually held in the block
    has_halo = hb > 1

    def kernel(*refs):
        it = iter(refs)
        x1_ref = next(it)
        x2_ref = next(it)
        if has_halo:
            x1t_ref = next(it); x1b_ref = next(it)
            x2t_ref = next(it); x2b_ref = next(it)
        ml_ref = next(it); mr_ref = next(it)          # column-edge masks
        if not has_halo:
            mt_ref = next(it); mb_ref = next(it)      # row-edge masks
        w1a_ref = next(it); w1b_ref = next(it); b1_ref = next(it)
        w2a_ref = next(it); w2b_ref = next(it); b2_ref = next(it)
        w3_ref = next(it); wr_ref = next(it); brep_ref = next(it)
        if with_epi:
            we_ref = next(it); be_ref = next(it)
        o_ref = next(it)

        # ---- x1 tile (nearest 2x row-upsample done on the VMEM tile) -------
        x1 = x1_ref[0]                                # (r1*wd, c)
        if up1:
            x1 = x1.reshape(r1, 1, wd, c)
            x1 = jnp.broadcast_to(x1, (r1, 2, wd, c)).reshape(npx, c)
        x2 = x2_ref[0]                                # (npx, c)

        # ---- Fusion.conv1 / conv2 on concat([x1, x2]) == split matmuls -----
        br1 = (jnp.dot(x1, w1a_ref[...], preferred_element_type=jnp.float32)
               + jnp.dot(x2, w1b_ref[...], preferred_element_type=jnp.float32)
               + b1_ref[...])
        pre = (jnp.dot(x1, w2a_ref[...], preferred_element_type=jnp.float32)
               + jnp.dot(x2, w2b_ref[...], preferred_element_type=jnp.float32)
               + b2_ref[...])

        # ---- `pre` one row above / below this tile (zero beyond the image) --
        if has_halo:
            i = pl.program_id(1)

            def halo_pre(a_ref, b_ref, valid):
                hp = (jnp.dot(a_ref[0, 0], w2a_ref[...],
                              preferred_element_type=jnp.float32)
                      + jnp.dot(b_ref[0, 0], w2b_ref[...],
                                preferred_element_type=jnp.float32)
                      + b2_ref[...])
                return jnp.where(valid, hp, 0.0)

            pre_top = halo_pre(x1t_ref, x2t_ref, i > 0)
            pre_bot = halo_pre(x1b_ref, x2b_ref, i < pl.num_programs(1) - 1)
            slab_up = jnp.concatenate([pre_top, pre[:npx - wd, :]], axis=0)
            slab_dn = jnp.concatenate([pre[wd:, :], pre_bot], axis=0)
        else:
            # single row block: vertical neighbours are the conv zero padding
            slab_up = pltpu.roll(pre, wd, axis=0) * mt_ref[...]
            slab_dn = pltpu.roll(pre, npx - wd, axis=0) * mb_ref[...]

        # ---- RepVggBlock: 3x3 conv as 9 shifted matmuls + 1x1 conv + ReLU ---
        ml = ml_ref[...]
        mr = mr_ref[...]
        acc = jnp.dot(pre, wr_ref[...], preferred_element_type=jnp.float32) + brep_ref[...]
        for dy, slab in enumerate((slab_up, pre, slab_dn)):
            for dx in range(3):
                if dx == 0:
                    tap = pltpu.roll(slab, 1, axis=0) * ml
                elif dx == 2:
                    tap = pltpu.roll(slab, npx - 1, axis=0) * mr
                else:
                    tap = slab
                t = dy * 3 + dx
                acc = acc + jnp.dot(tap, w3_ref[t * c:(t + 1) * c, :],
                                    preferred_element_type=jnp.float32)

        out = br1 + jnp.maximum(acc, 0.0)
        if with_epi:                        # fused trailing CCFM.conv1x1 (folded BN)
            out = jnp.dot(out, we_ref[...], preferred_element_type=jnp.float32) + be_ref[...]
        o_ref[0] = out

    return kernel


# --------------------------- pallas_call wrappers --------------------------

def conv1x1_bn(x_nhwc, w, b):
    """1x1 conv (folded BN) on NHWC data via a row-tiled matmul kernel."""
    n, h, wd, cin = x_nhwc.shape
    cout = w.shape[1]
    m = n * h * wd
    xf = x_nhwc.reshape(m, cin)
    b = b.reshape(1, cout)
    tm = _pick_pixel_tile(m)
    out = pl.pallas_call(
        _conv1x1_kernel,
        out_shape=jax.ShapeDtypeStruct((m, cout), jnp.float32),
        grid=(pl.cdiv(m, tm),),
        in_specs=[pl.BlockSpec((tm, cin), lambda i: (i, 0)),
                  pl.BlockSpec((cin, cout), lambda i: (0, 0)),
                  pl.BlockSpec((1, cout), lambda i: (0, 0))],
        out_specs=pl.BlockSpec((tm, cout), lambda i: (i, 0)),
        compiler_params=pltpu.CompilerParams(
            dimension_semantics=("parallel",),
            vmem_limit_bytes=_VMEM_LIMIT),
    )(xf, w, b)
    return out.reshape(n, h, wd, cout)


def down2x2(x_nhwc, wflat, b):
    """2x2 stride-2 conv (folded BN) == space-to-depth (XLA glue) + 1x1 Pallas matmul."""
    n, h, wd, c = x_nhwc.shape
    ho, wo = h // 2, wd // 2
    xs = (x_nhwc.reshape(n, ho, 2, wo, 2, c)
          .transpose(0, 1, 3, 2, 4, 5)          # (n, ho, wo, di, dj, c)
          .reshape(n, ho, wo, 4 * c))           # channel order (di, dj, ci)
    return conv1x1_bn(xs, wflat, b)


def upsample2_nearest(x_nhwc):
    # F.interpolate(scale_factor=2, mode='nearest') -- used by the reference only.
    return jnp.repeat(jnp.repeat(x_nhwc, 2, axis=1), 2, axis=2)


def fusion_block(x1, x2, fp, *, upsample_x1=False, epi=None):
    """Fused Fusion module.  If upsample_x1, x1 is the low-res tensor and the nearest
    2x upsample is folded in (wrapper width-doubles, kernel row-doubles).  `epi`
    optionally fuses a trailing 1x1 conv (CCFM.conv1x1) into the kernel epilogue."""
    n, h, wd, c = x2.shape
    if upsample_x1:
        x1 = jnp.repeat(x1, 2, axis=2)                 # width 2x on the small low-res tensor
    th = _pick_row_tile(h, wd, upsample_x1)
    hb = h // th
    up_in_k = upsample_x1 and th % 2 == 0 and wd % 8 == 0
    if upsample_x1 and not up_in_k:
        x1 = jnp.repeat(x1, 2, axis=1)                 # fallback: rows 2x in XLA
    r1 = th // 2 if up_in_k else th
    h1 = x1.shape[1]
    npx = th * wd

    x1f = x1.reshape(n, h1 * wd, c)
    x2f = x2.reshape(n, h * wd, c)

    # column / row edge masks (static, tiny) -- avoid in-kernel iota arithmetic
    col = np.arange(npx) % wd
    row = np.arange(npx) // wd
    ml = jnp.asarray((col != 0).astype(np.float32).reshape(npx, 1))
    mr = jnp.asarray((col != wd - 1).astype(np.float32).reshape(npx, 1))

    row_spec = lambda rows: pl.BlockSpec((1, rows, c), lambda b, i: (b, i, 0))
    halo_spec = pl.BlockSpec((1, 1, wd, c), lambda b, i: (b, i, 0, 0))
    full_spec = lambda shape: pl.BlockSpec(shape, lambda b, i: tuple(0 for _ in shape))

    in_specs = [row_spec(r1 * wd), row_spec(th * wd)]
    args = [x1f, x2f]
    if hb > 1:
        x1t, x1b = _halo_rows(x1, r1)
        x2t, x2b = _halo_rows(x2, th)
        in_specs += [halo_spec] * 4
        args += [x1t, x1b, x2t, x2b]
    in_specs += [full_spec((npx, 1)), full_spec((npx, 1))]
    args += [ml, mr]
    if hb == 1:
        mt = jnp.asarray((row >= 1).astype(np.float32).reshape(npx, 1))
        mb = jnp.asarray((row <= th - 2).astype(np.float32).reshape(npx, 1))
        in_specs += [full_spec((npx, 1)), full_spec((npx, 1))]
        args += [mt, mb]
    in_specs += [full_spec((c, c)), full_spec((c, c)), full_spec((1, c)),
                 full_spec((c, c)), full_spec((c, c)), full_spec((1, c)),
                 full_spec((9 * c, c)), full_spec((c, c)), full_spec((1, c))]
    args += [fp['w1a'], fp['w1b'], fp['b1'],
             fp['w2a'], fp['w2b'], fp['b2'],
             fp['w3'], fp['wr'], fp['brep']]
    with_epi = epi is not None
    if with_epi:
        we, be = epi
        in_specs += [full_spec((c, c)), full_spec((1, c))]
        args += [we, be.reshape(1, c)]

    kernel = _make_fusion_kernel(th, wd, c, hb, up_in_k, with_epi)
    out = pl.pallas_call(
        kernel,
        out_shape=jax.ShapeDtypeStruct((n, h * wd, c), jnp.float32),
        grid=(n, hb),
        in_specs=in_specs,
        out_specs=row_spec(th * wd),
        compiler_params=pltpu.CompilerParams(
            dimension_semantics=("parallel", "parallel"),
            vmem_limit_bytes=_VMEM_LIMIT),
    )(*args)
    return out.reshape(n, h, wd, c)


def ccfm_forward(params, s1_nchw, s2_nchw, s3_nchw):
    to_nhwc = lambda x: jnp.transpose(x, (0, 2, 3, 1))
    to_nchw = lambda x: jnp.transpose(x, (0, 3, 1, 2))
    s1, s2, s3 = to_nhwc(s1_nchw), to_nhwc(s2_nchw), to_nhwc(s3_nchw)
    fp = params['fusion']

    s3_conv1 = conv1x1_bn(s3, params['c1x1_w'], params['c1x1_b'])
    # fusion(upsample2(s3_conv1), s2) with the following CCFM.conv1x1 fused in as epilogue
    s3_s2 = fusion_block(s3_conv1, s2, fp, upsample_x1=True,
                         epi=(params['c1x1_w'], params['c1x1_b']))
    fusion1 = fusion_block(s3_s2, s1, fp, upsample_x1=True)
    fusion2 = fusion_block(s3_s2, down2x2(fusion1, params['down_w'], params['down_b']), fp)
    fusion3 = fusion_block(s3_conv1, down2x2(fusion2, params['down_w'], params['down_b']), fp)
    return to_nchw(fusion1), to_nchw(fusion2), to_nchw(fusion3)


# ----------------------------- parameters ---------------------------------

def _init_convnorm(key, cin, cout, k):
    """Conv2d(bias=False) + BatchNorm2d (inference), folded -> (OIHW weight, bias)."""
    kw, kg, kb, km, kv = jax.random.split(key, 5)
    w = jax.random.normal(kw, (cout, cin, k, k), jnp.float32) / np.sqrt(cin * k * k)
    gamma = 1.0 + 0.1 * jax.random.normal(kg, (cout,), jnp.float32)
    beta = 0.05 * jax.random.normal(kb, (cout,), jnp.float32)
    mean = 0.1 * jax.random.normal(km, (cout,), jnp.float32)
    var = 0.5 + jax.random.uniform(kv, (cout,), jnp.float32)
    scale = gamma / jnp.sqrt(var + 1e-5)
    return w * scale[:, None, None, None], beta - mean * scale


def init_params(key, c):
    keys = jax.random.split(key, 6)
    w_c, b_c = _init_convnorm(keys[0], c, c, 1)        # CCFM.conv1x1
    w_d, b_d = _init_convnorm(keys[1], c, c, 2)        # CCFM.down (2x2, stride 2)
    w_f1, b_f1 = _init_convnorm(keys[2], 2 * c, c, 1)  # Fusion.conv1
    w_f2, b_f2 = _init_convnorm(keys[3], 2 * c, c, 1)  # Fusion.conv2
    w_r3, b_r3 = _init_convnorm(keys[4], c, c, 3)      # RepVgg 3x3
    w_r1, b_r1 = _init_convnorm(keys[5], c, c, 1)      # RepVgg 1x1

    w_f1_2d = w_f1[:, :, 0, 0].T    # (2C, C)
    w_f2_2d = w_f2[:, :, 0, 0].T
    params = {
        'c1x1_w': w_c[:, :, 0, 0].T, 'c1x1_b': b_c.reshape(1, c),
        'down_w': w_d.transpose(2, 3, 1, 0).reshape(4 * c, c), 'down_b': b_d.reshape(1, c),
        'fusion': {
            'w1a': w_f1_2d[:c], 'w1b': w_f1_2d[c:], 'b1': b_f1.reshape(1, c),
            'w2a': w_f2_2d[:c], 'w2b': w_f2_2d[c:], 'b2': b_f2.reshape(1, c),
            'w3': w_r3.transpose(2, 3, 1, 0).reshape(9 * c, c),   # rows: (dy, dx, ci)
            'wr': w_r1[:, :, 0, 0].T,
            'brep': (b_r3 + b_r1).reshape(1, c),
        },
    }
    ref = {'c1x1': (w_c, b_c), 'down': (w_d, b_d), 'f1': (w_f1, b_f1),
           'f2': (w_f2, b_f2), 'r3': (w_r3, b_r3), 'r1': (w_r1, b_r1)}
    return params, ref


# ----------------------- pure-JAX reference (for checking) -----------------

def _ref_conv(x, w_oihw, b, stride=1, pad=0):
    y = jax.lax.conv_general_dilated(
        x, w_oihw, window_strides=(stride, stride),
        padding=[(pad, pad), (pad, pad)],
        dimension_numbers=('NHWC', 'OIHW', 'NHWC'))
    return y + b.reshape(1, 1, 1, -1)


def _ref_fusion(x1, x2, ref):
    x = jnp.concatenate([x1, x2], axis=-1)
    branch1 = _ref_conv(x, *ref['f1'])
    b2 = _ref_conv(x, *ref['f2'])
    y = _ref_conv(b2, *ref['r3'], pad=1) + _ref_conv(b2, *ref['r1'])
    return branch1 + jax.nn.relu(y)


def ccfm_reference(ref, s1_nchw, s2_nchw, s3_nchw):
    to_nhwc = lambda x: jnp.transpose(x, (0, 2, 3, 1))
    to_nchw = lambda x: jnp.transpose(x, (0, 3, 1, 2))
    s1, s2, s3 = to_nhwc(s1_nchw), to_nhwc(s2_nchw), to_nhwc(s3_nchw)
    s3_conv1 = _ref_conv(s3, *ref['c1x1'])
    s3_doubled = upsample2_nearest(s3_conv1)
    s3_s2 = _ref_fusion(s3_doubled, s2, ref)
    s3_s2 = _ref_conv(s3_s2, *ref['c1x1'])
    s3_s2_doubled = upsample2_nearest(s3_s2)
    f1 = _ref_fusion(s3_s2_doubled, s1, ref)
    f2 = _ref_fusion(s3_s2, _ref_conv(f1, *ref['down'], stride=2), ref)
    f3 = _ref_fusion(s3_conv1, _ref_conv(f2, *ref['down'], stride=2), ref)
    return to_nchw(f1), to_nchw(f2), to_nchw(f3)


# --------------------------------- main ------------------------------------

if __name__ == "__main__":
    N, C = 2, 8          # NOTE: use C as a multiple of 128 in production for lane-dense tiles
    H3 = W3 = 4          # s3 spatial; s2 = 2x, s1 = 4x
    key = jax.random.PRNGKey(0)
    k1, k2, k3, kp = jax.random.split(key, 4)
    s1 = jax.random.normal(k1, (N, C, 4 * H3, 4 * W3), jnp.float32)
    s2 = jax.random.normal(k2, (N, C, 2 * H3, 2 * W3), jnp.float32)
    s3 = jax.random.normal(k3, (N, C, H3, W3), jnp.float32)

    params, ref = init_params(kp, C)

    outs = jax.block_until_ready(jax.jit(ccfm_forward)(params, s1, s2, s3))
    ref_outs = jax.block_until_ready(jax.jit(ccfm_reference)(ref, s1, s2, s3))
    for o, r in zip(outs, ref_outs):
        assert o.shape == r.shape, (o.shape, r.shape)
        np.testing.assert_allclose(np.asarray(o), np.asarray(r), rtol=3e-2, atol=3e-2)

    print("KERNEL_OK")
</pallas_src>

<mosaic_0001>
module attributes {stable_mosaic.version = 11 : i64} {
  func.func @_conv1x1_kernel(%arg0: i32, %arg1: memref<16x8xf32, #tpu.memory_space<vmem>>, %arg2: memref<8x8xf32, #tpu.memory_space<vmem>>, %arg3: memref<1x8xf32, #tpu.memory_space<vmem>>, %arg4: memref<16x8xf32, #tpu.memory_space<vmem>>) attributes {dimension_semantics = [#tpu.dimension_semantics<parallel>], iteration_bounds = array<i64: 2>, scalar_prefetch = 0 : i64, scratch_operands = 0 : i64, tpu.core_type = #tpu.core_type<tc>, window_params = [{transform_indices = @transform_0, window_bounds = array<i64: 16, 8>}, {pipeline_mode = #tpu.pipeline_mode<synchronous>, transform_indices = @transform_1, window_bounds = array<i64: 8, 8>}, {pipeline_mode = #tpu.pipeline_mode<synchronous>, transform_indices = @transform_2, window_bounds = array<i64: 1, 8>}, {transform_indices = @transform_3, window_bounds = array<i64: 16, 8>}]} {
    %c0 = arith.constant 0 : index
    %c0_0 = arith.constant 0 : index
    %0 = vector.load %arg1[%c0, %c0_0] : memref<16x8xf32, #tpu.memory_space<vmem>>, vector<16x8xf32>
    %c0_1 = arith.constant 0 : index
    %c0_2 = arith.constant 0 : index
    %1 = vector.load %arg2[%c0_1, %c0_2] : memref<8x8xf32, #tpu.memory_space<vmem>>, vector<8x8xf32>
    %cst = arith.constant dense<0.000000e+00> : vector<16x8xf32>
    %2 = tpu.matmul %0, %1, %cst {dimension_numbers = #tpu.dot_dimension_numbers<[1], [0], [0], [1], [0, 0, 1, 1], [], []>} : vector<16x8xf32>, vector<8x8xf32>, vector<16x8xf32> -> vector<16x8xf32>
    %c0_3 = arith.constant 0 : index
    %c0_4 = arith.constant 0 : index
    %3 = vector.load %arg3[%c0_3, %c0_4] : memref<1x8xf32, #tpu.memory_space<vmem>>, vector<1x8xf32>
    %4 = vector.broadcast %3 : vector<1x8xf32> to vector<16x8xf32>
    %5 = arith.addf %2, %4 : vector<16x8xf32>
    %c0_5 = arith.constant 0 : index
    %c0_6 = arith.constant 0 : index
    %6 = vector.load %arg4[%c0_5, %c0_6] : memref<16x8xf32, #tpu.memory_space<vmem>>, vector<16x8xf32>
    tpu.vector_store %arg4[%c0_5, %c0_6], %5 {strides = array<i32>} : memref<16x8xf32, #tpu.memory_space<vmem>>, vector<16x8xf32>,
    return
  }
  func.func @transform_0(%arg0: i32) -> (i32, i32) {
    %c0_i32 = arith.constant 0 : i32
    %c0_i32_0 = arith.constant 0 : i32
    return %arg0, %c0_i32 : i32, i32
  }
  func.func @transform_1(%arg0: i32) -> (i32, i32) {
    %c0_i32 = arith.constant 0 : i32
    %c0_i32_0 = arith.constant 0 : i32
    %c0_i32_1 = arith.constant 0 : i32
    return %c0_i32, %c0_i32_0 : i32, i32
  }
  func.func @transform_2(%arg0: i32) -> (i32, i32) {
    %c0_i32 = arith.constant 0 : i32
    %c0_i32_0 = arith.constant 0 : i32
    %c0_i32_1 = arith.constant 0 : i32
    return %c0_i32, %c0_i32_0 : i32, i32
  }
  func.func @transform_3(%arg0: i32) -> (i32, i32) {
    %c0_i32 = arith.constant 0 : i32
    %c0_i32_0 = arith.constant 0 : i32
    return %arg0, %c0_i32 : i32, i32
  }
}

module attributes {stable_mosaic.version = 11 : i64} {
  func.func @kernel(%arg0: i32, %arg1: i32, %arg2: memref<1x32x8xf32, #tpu.memory_space<vmem>>, %arg3: memref<1x64x8xf32, #tpu.memory_space<vmem>>, %arg4: memref<64x1xf32, #tpu.memory_space<vmem>>, %arg5: memref<64x1xf32, #tpu.memory_space<vmem>>, %arg6: memref<64x1xf32, #tpu.memory_space<vmem>>, %arg7: memref<64x1xf32, #tpu.memory_space<vmem>>, %arg8: memref<8x8xf32, #tpu.memory_space<vmem>>, %arg9: memref<8x8xf32, #tpu.memory_space<vmem>>, %arg10: memref<1x8xf32, #tpu.memory_space<vmem>>, %arg11: memref<8x8xf32, #tpu.memory_space<vmem>>, %arg12: memref<8x8xf32, #tpu.memory_space<vmem>>, %arg13: memref<1x8xf32, #tpu.memory_space<vmem>>, %arg14: memref<72x8xf32, #tpu.memory_space<vmem>>, %arg15: memref<8x8xf32, #tpu.memory_space<vmem>>, %arg16: memref<1x8xf32, #tpu.memory_space<vmem>>, %arg17: memref<8x8xf32, #tpu.memory_space<vmem>>, %arg18: memref<1x8xf32, #tpu.memory_space<vmem>>, %arg19: memref<1x64x8xf32, #tpu.memory_space<vmem>>) attributes {dimension_semantics = [#tpu.dimension_semantics<parallel>, #tpu.dimension_semantics<parallel>], iteration_bounds = array<i64: 2, 1>, scalar_prefetch = 0 : i64, scratch_operands = 0 : i64, tpu.core_type = #tpu.core_type<tc>, window_params = [{transform_indices = @transform_0, window_bounds = array<i64: 1, 32, 8>}, {transform_indices = @transform_1, window_bounds = array<i64: 1, 64, 8>}, {pipeline_mode = #tpu.pipeline_mode<synchronous>, transform_indices = @transform_2, window_bounds = array<i64: 64, 1>}, {pipeline_mode = #tpu.pipeline_mode<synchronous>, transform_indices = @transform_3, window_bounds = array<i64: 64, 1>}, {pipeline_mode = #tpu.pipeline_mode<synchronous>, transform_indices = @transform_4, window_bounds = array<i64: 64, 1>}, {pipeline_mode = #tpu.pipeline_mode<synchronous>, transform_indices = @transform_5, window_bounds = array<i64: 64, 1>}, {pipeline_mode = #tpu.pipeline_mode<synchronous>, transform_indices = @transform_6, window_bounds = array<i64: 8, 8>}, {pipeline_mode = #tpu.pipeline_mode<synchronous>, transform_indices = @transform_7, window_bounds = array<i64: 8, 8>}, {pipeline_mode = #tpu.pipeline_mode<synchronous>, transform_indices = @transform_8, window_bounds = array<i64: 1, 8>}, {pipeline_mode = #tpu.pipeline_mode<synchronous>, transform_indices = @transform_9, window_bounds = array<i64: 8, 8>}, {pipeline_mode = #tpu.pipeline_mode<synchronous>, transform_indices = @transform_10, window_bounds = array<i64: 8, 8>}, {pipeline_mode = #tpu.pipeline_mode<synchronous>, transform_indices = @transform_11, window_bounds = array<i64: 1, 8>}, {pipeline_mode = #tpu.pipeline_mode<synchronous>, transform_indices = @transform_12, window_bounds = array<i64: 72, 8>}, {pipeline_mode = #tpu.pipeline_mode<synchronous>, transform_indices = @transform_13, window_bounds = array<i64: 8, 8>}, {pipeline_mode = #tpu.pipeline_mode<synchronous>, transform_indices = @transform_14, window_bounds = array<i64: 1, 8>}, {pipeline_mode = #tpu.pipeline_mode<synchronous>, transform_indices = @transform_15, window_bounds = array<i64: 8, 8>}, {pipeline_mode = #tpu.pipeline_mode<synchronous>, transform_indices = @transform_16, window_bounds = array<i64: 1, 8>}, {transform_indices = @transform_17, window_bounds = array<i64: 1, 64, 8>}]} {
    %c0 = arith.constant 0 : index
    %c0_0 = arith.constant 0 : index
    %c0_1 = arith.constant 0 : index
    %0 = vector.load %arg2[%c0, %c0_0, %c0_1] : memref<1x32x8xf32, #tpu.memory_space<vmem>>, vector<1x32x8xf32>
    %1 = vector.shape_cast %0 : vector<1x32x8xf32> to vector<32x8xf32>
    %2 = vector.shape_cast %1 : vector<32x8xf32> to vector<4x1x8x8xf32>
    %3 = vector.shape_cast %2 : vector<4x1x8x8xf32> to vector<4x1x8x8xf32>
    %4 = vector.broadcast %3 : vector<4x1x8x8xf32> to vector<4x2x8x8xf32>
    %5 = vector.shape_cast %4 : vector<4x2x8x8xf32> to vector<64x8xf32>
    %c0_2 = arith.constant 0 : index
    %c0_3 = arith.constant 0 : index
    %c0_4 = arith.constant 0 : index
    %6 = vector.load %arg3[%c0_2, %c0_3, %c0_4] : memref<1x64x8xf32, #tpu.memory_space<vmem>>, vector<1x64x8xf32>
    %7 = vector.shape_cast %6 : vector<1x64x8xf32> to vector<64x8xf32>
    %c0_5 = arith.constant 0 : index
    %c0_6 = arith.constant 0 : index
    %8 = vector.load %arg8[%c0_5, %c0_6] : memref<8x8xf32, #tpu.memory_space<vmem>>, vector<8x8xf32>
    %cst = arith.constant dense<0.000000e+00> : vector<64x8xf32>
    %9 = tpu.matmul %5, %8, %cst {dimension_numbers = #tpu.dot_dimension_numbers<[1], [0], [0], [1], [0, 0, 1, 1], [], []>} : vector<64x8xf32>, vector<8x8xf32>, vector<64x8xf32> -> vector<64x8xf32>
    %c0_7 = arith.constant 0 : index
    %c0_8 = arith.constant 0 : index
    %10 = vector.load %arg9[%c0_7, %c0_8] : memref<8x8xf32, #tpu.memory_space<vmem>>, vector<8x8xf32>
    %cst_9 = arith.constant dense<0.000000e+00> : vector<64x8xf32>
    %11 = tpu.matmul %7, %10, %cst_9 {dimension_numbers = #tpu.dot_dimension_numbers<[1], [0], [0], [1], [0, 0, 1, 1], [], []>} : vector<64x8xf32>, vector<8x8xf32>, vector<64x8xf32> -> vector<64x8xf32>
    %12 = arith.addf %9, %11 : vector<64x8xf32>
    %c0_10 = arith.constant 0 : index
    %c0_11 = arith.constant 0 : index
    %13 = vector.load %arg10[%c0_10, %c0_11] : memref<1x8xf32, #tpu.memory_space<vmem>>, vector<1x8xf32>
    %14 = vector.broadcast %13 : vector<1x8xf32> to vector<64x8xf32>
    %15 = arith.addf %12, %14 : vector<64x8xf32>
    %c0_12 = arith.constant 0 : index
    %c0_13 = arith.constant 0 : index
    %16 = vector.load %arg11[%c0_12, %c0_13] : memref<8x8xf32, #tpu.memory_space<vmem>>, vector<8x8xf32>
    %cst_14 = arith.constant dense<0.000000e+00> : vector<64x8xf32>
    %17 = tpu.matmul %5, %16, %cst_14 {dimension_numbers = #tpu.dot_dimension_numbers<[1], [0], [0], [1], [0, 0, 1, 1], [], []>} : vector<64x8xf32>, vector<8x8xf32>, vector<64x8xf32> -> vector<64x8xf32>
    %c0_15 = arith.constant 0 : index
    %c0_16 = arith.constant 0 : index
    %18 = vector.load %arg12[%c0_15, %c0_16] : memref<8x8xf32, #tpu.memory_space<vmem>>, vector<8x8xf32>
    %cst_17 = arith.constant dense<0.000000e+00> : vector<64x8xf32>
    %19 = tpu.matmul %7, %18, %cst_17 {dimension_numbers = #tpu.dot_dimension_numbers<[1], [0], [0], [1], [0, 0, 1, 1], [], []>} : vector<64x8xf32>, vector<8x8xf32>, vector<64x8xf32> -> vector<64x8xf32>
    %20 = arith.addf %17, %19 : vector<64x8xf32>
    %c0_18 = arith.constant 0 : index
    %c0_19 = arith.constant 0 : index
    %21 = vector.load %arg13[%c0_18, %c0_19] : memref<1x8xf32, #tpu.memory_space<vmem>>, vector<1x8xf32>
    %22 = vector.broadcast %21 : vector<1x8xf32> to vector<64x8xf32>
    %23 = arith.addf %20, %22 : vector<64x8xf32>
    %c8_i32 = arith.constant 8 : i32
    %24 = tpu.dynamic_rotate %23 by %c8_i32 dim 0 : vector<64x8xf32>, i32 -> vector<64x8xf32>
    %c0_20 = arith.constant 0 : index
    %c0_21 = arith.constant 0 : index
    %25 = vector.load %arg6[%c0_20, %c0_21] : memref<64x1xf32, #tpu.memory_space<vmem>>, vector<64x1xf32>
    %26 = vector.broadcast %25 : vector<64x1xf32> to vector<64x8xf32>
    %27 = arith.mulf %24, %26 : vector<64x8xf32>
    %c56_i32 = arith.constant 56 : i32
    %28 = tpu.dynamic_rotate %23 by %c56_i32 dim 0 : vector<64x8xf32>, i32 -> vector<64x8xf32>
    %c0_22 = arith.constant 0 : index
    %c0_23 = arith.constant 0 : index
    %29 = vector.load %arg7[%c0_22, %c0_23] : memref<64x1xf32, #tpu.memory_space<vmem>>, vector<64x1xf32>
    %30 = vector.broadcast %29 : vector<64x1xf32> to vector<64x8xf32>
    %31 = arith.mulf %28, %30 : vector<64x8xf32>
    %c0_24 = arith.constant 0 : index
    %c0_25 = arith.constant 0 : index
    %32 = vector.load %arg4[%c0_24, %c0_25] : memref<64x1xf32, #tpu.memory_space<vmem>>, vector<64x1xf32>
    %c0_26 = arith.constant 0 : index
    %c0_27 = arith.constant 0 : index
    %33 = vector.load %arg5[%c0_26, %c0_27] : memref<64x1xf32, #tpu.memory_space<vmem>>, vector<64x1xf32>
    %c0_28 = arith.constant 0 : index
    %c0_29 = arith.constant 0 : index
    %34 = vector.load %arg15[%c0_28, %c0_29] : memref<8x8xf32, #tpu.memory_space<vmem>>, vector<8x8xf32>
    %cst_30 = arith.constant dense<0.000000e+00> : vector<64x8xf32>
    %35 = tpu.matmul %23, %34, %cst_30 {dimension_numbers = #tpu.dot_dimension_numbers<[1], [0], [0], [1], [0, 0, 1, 1], [], []>} : vector<64x8xf32>, vector<8x8xf32>, vector<64x8xf32> -> vector<64x8xf32>
    %c0_31 = arith.constant 0 : index
    %c0_32 = arith.constant 0 : index
    %36 = vector.load %arg16[%c0_31, %c0_32] : memref<1x8xf32, #tpu.memory_space<vmem>>, vector<1x8xf32>
    %37 = vector.broadcast %36 : vector<1x8xf32> to vector<64x8xf32>
    %38 = arith.addf %35, %37 : vector<64x8xf32>
    %c1_i32 = arith.constant 1 : i32
    %39 = tpu.dynamic_rotate %27 by %c1_i32 dim 0 : vector<64x8xf32>, i32 -> vector<64x8xf32>
    %40 = vector.broadcast %32 : vector<64x1xf32> to vector<64x8xf32>
    %41 = arith.mulf %39, %40 : vector<64x8xf32>
    %c0_33 = arith.constant 0 : index
    %c0_34 = arith.constant 0 : index
    %42 = vector.load %arg14[%c0_33, %c0_34] : memref<72x8xf32, #tpu.memory_space<vmem>>, vector<8x8xf32>
    %cst_35 = arith.constant dense<0.000000e+00> : vector<64x8xf32>
    %43 = tpu.matmul %41, %42, %cst_35 {dimension_numbers = #tpu.dot_dimension_numbers<[1], [0], [0], [1], [0, 0, 1, 1], [], []>} : vector<64x8xf32>, vector<8x8xf32>, vector<64x8xf32> -> vector<64x8xf32>
    %44 = arith.addf %38, %43 : vector<64x8xf32>
    %c8 = arith.constant 8 : index
    %c0_36 = arith.constant 0 : index
    %45 = vector.load %arg14[%c8, %c0_36] : memref<72x8xf32, #tpu.memory_space<vmem>>, vector<8x8xf32>
    %cst_37 = arith.constant dense<0.000000e+00> : vector<64x8xf32>
    %46 = tpu.matmul %27, %45, %cst_37 {dimension_numbers = #tpu.dot_dimension_numbers<[1], [0], [0], [1], [0, 0, 1, 1], [], []>} : vector<64x8xf32>, vector<8x8xf32>, vector<64x8xf32> -> vector<64x8xf32>
    %47 = arith.addf %44, %46 : vector<64x8xf32>
    %c63_i32 = arith.constant 63 : i32
    %48 = tpu.dynamic_rotate %27 by %c63_i32 dim 0 : vector<64x8xf32>, i32 -> vector<64x8xf32>
    %49 = vector.broadcast %33 : vector<64x1xf32> to vector<64x8xf32>
    %50 = arith.mulf %48, %49 : vector<64x8xf32>
    %c16 = arith.constant 16 : index
    %c0_38 = arith.constant 0 : index
    %51 = vector.load %arg14[%c16, %c0_38] : memref<72x8xf32, #tpu.memory_space<vmem>>, vector<8x8xf32>
    %cst_39 = arith.constant dense<0.000000e+00> : vector<64x8xf32>
    %52 = tpu.matmul %50, %51, %cst_39 {dimension_numbers = #tpu.dot_dimension_numbers<[1], [0], [0], [1], [0, 0, 1, 1], [], []>} : vector<64x8xf32>, vector<8x8xf32>, vector<64x8xf32> -> vector<64x8xf32>
    %53 = arith.addf %47, %52 : vector<64x8xf32>
    %c1_i32_40 = arith.constant 1 : i32
    %54 = tpu.dynamic_rotate %23 by %c1_i32_40 dim 0 : vector<64x8xf32>, i32 -> vector<64x8xf32>
    %55 = vector.broadcast %32 : vector<64x1xf32> to vector<64x8xf32>
    %56 = arith.mulf %54, %55 : vector<64x8xf32>
    %c24 = arith.constant 24 : index
    %c0_41 = arith.constant 0 : index
    %57 = vector.load %arg14[%c24, %c0_41] : memref<72x8xf32, #tpu.memory_space<vmem>>, vector<8x8xf32>
    %cst_42 = arith.constant dense<0.000000e+00> : vector<64x8xf32>
    %58 = tpu.matmul %56, %57, %cst_42 {dimension_numbers = #tpu.dot_dimension_numbers<[1], [0], [0], [1], [0, 0, 1, 1], [], []>} : vector<64x8xf32>, vector<8x8xf32>, vector<64x8xf32> -> vector<64x8xf32>
    %59 = arith.addf %53, %58 : vector<64x8xf32>
    %c32 = arith.constant 32 : index
    %c0_43 = arith.constant 0 : index
    %60 = vector.load %arg14[%c32, %c0_43] : memref<72x8xf32, #tpu.memory_space<vmem>>, vector<8x8xf32>
    %cst_44 = arith.constant dense<0.000000e+00> : vector<64x8xf32>
    %61 = tpu.matmul %23, %60, %cst_44 {dimension_numbers = #tpu.dot_dimension_numbers<[1], [0], [0], [1], [0, 0, 1, 1], [], []>} : vector<64x8xf32>, vector<8x8xf32>, vector<64x8xf32> -> vector<64x8xf32>
    %62 = arith.addf %59, %61 : vector<64x8xf32>
    %c63_i32_45 = arith.constant 63 : i32
    %63 = tpu.dynamic_rotate %23 by %c63_i32_45 dim 0 : vector<64x8xf32>, i32 -> vector<64x8xf32>
    %64 = vector.broadcast %33 : vector<64x1xf32> to vector<64x8xf32>
    %65 = arith.mulf %63, %64 : vector<64x8xf32>
    %c40 = arith.constant 40 : index
    %c0_46 = arith.constant 0 : index
    %66 = vector.load %arg14[%c40, %c0_46] : memref<72x8xf32, #tpu.memory_space<vmem>>, vector<8x8xf32>
    %cst_47 = arith.constant dense<0.000000e+00> : vector<64x8xf32>
    %67 = tpu.matmul %65, %66, %cst_47 {dimension_numbers = #tpu.dot_dimension_numbers<[1], [0], [0], [1], [0, 0, 1, 1], [], []>} : vector<64x8xf32>, vector<8x8xf32>, vector<64x8xf32> -> vector<64x8xf32>
    %68 = arith.addf %62, %67 : vector<64x8xf32>
    %c1_i32_48 = arith.constant 1 : i32
    %69 = tpu.dynamic_rotate %31 by %c1_i32_48 dim 0 : vector<64x8xf32>, i32 -> vector<64x8xf32>
    %70 = vector.broadcast %32 : vector<64x1xf32> to vector<64x8xf32>
    %71 = arith.mulf %69, %70 : vector<64x8xf32>
    %c48 = arith.constant 48 : index
    %c0_49 = arith.constant 0 : index
    %72 = vector.load %arg14[%c48, %c0_49] : memref<72x8xf32, #tpu.memory_space<vmem>>, vector<8x8xf32>
    %cst_50 = arith.constant dense<0.000000e+00> : vector<64x8xf32>
    %73 = tpu.matmul %71, %72, %cst_50 {dimension_numbers = #tpu.dot_dimension_numbers<[1], [0], [0], [1], [0, 0, 1, 1], [], []>} : vector<64x8xf32>, vector<8x8xf32>, vector<64x8xf32> -> vector<64x8xf32>
    %74 = arith.addf %68, %73 : vector<64x8xf32>
    %c56 = arith.constant 56 : index
    %c0_51 = arith.constant 0 : index
    %75 = vector.load %arg14[%c56, %c0_51] : memref<72x8xf32, #tpu.memory_space<vmem>>, vector<8x8xf32>
    %cst_52 = arith.constant dense<0.000000e+00> : vector<64x8xf32>
    %76 = tpu.matmul %31, %75, %cst_52 {dimension_numbers = #tpu.dot_dimension_numbers<[1], [0], [0], [1], [0, 0, 1, 1], [], []>} : vector<64x8xf32>, vector<8x8xf32>, vector<64x8xf32> -> vector<64x8xf32>
    %77 = arith.addf %74, %76 : vector<64x8xf32>
    %c63_i32_53 = arith.constant 63 : i32
    %78 = tpu.dynamic_rotate %31 by %c63_i32_53 dim 0 : vector<64x8xf32>, i32 -> vector<64x8xf32>
    %79 = vector.broadcast %33 : vector<64x1xf32> to vector<64x8xf32>
    %80 = arith.mulf %78, %79 : vector<64x8xf32>
    %c64 = arith.constant 64 : index
    %c0_54 = arith.constant 0 : index
    %81 = vector.load %arg14[%c64, %c0_54] : memref<72x8xf32, #tpu.memory_space<vmem>>, vector<8x8xf32>
    %cst_55 = arith.constant dense<0.000000e+00> : vector<64x8xf32>
    %82 = tpu.matmul %80, %81, %cst_55 {dimension_numbers = #tpu.dot_dimension_numbers<[1], [0], [0], [1], [0, 0, 1, 1], [], []>} : vector<64x8xf32>, vector<8x8xf32>, vector<64x8xf32> -> vector<64x8xf32>
    %83 = arith.addf %77, %82 : vector<64x8xf32>
    %cst_56 = arith.constant 0.000000e+00 : f32
    %84 = vector.broadcast %cst_56 : f32 to vector<64x8xf32>
    %85 = arith.maximumf %83, %84 : vector<64x8xf32>
    %86 = arith.addf %15, %85 : vector<64x8xf32>
    %c0_57 = arith.constant 0 : index
    %c0_58 = arith.constant 0 : index
    %87 = vector.load %arg17[%c0_57, %c0_58] : memref<8x8xf32, #tpu.memory_space<vmem>>, vector<8x8xf32>
    %cst_59 = arith.constant dense<0.000000e+00> : vector<64x8xf32>
    %88 = tpu.matmul %86, %87, %cst_59 {dimension_numbers = #tpu.dot_dimension_numbers<[1], [0], [0], [1], [0, 0, 1, 1], [], []>} : vector<64x8xf32>, vector<8x8xf32>, vector<64x8xf32> -> vector<64x8xf32>
    %c0_60 = arith.constant 0 : index
    %c0_61 = arith.constant 0 : index
    %89 = vector.load %arg18[%c0_60, %c0_61] : memref<1x8xf32, #tpu.memory_space<vmem>>, vector<1x8xf32>
    %90 = vector.broadcast %89 : vector<1x8xf32> to vector<64x8xf32>
    %91 = arith.addf %88, %90 : vector<64x8xf32>
    %c0_62 = arith.constant 0 : index
    %c0_63 = arith.constant 0 : index
    %c0_64 = arith.constant 0 : index
    %92 = vector.load %arg19[%c0_62, %c0_63, %c0_64] : memref<1x64x8xf32, #tpu.memory_space<vmem>>, vector<1x64x8xf32>
    %93 = vector.shape_cast %92 : vector<1x64x8xf32> to vector<64x8xf32>
    %94 = vector.shape_cast %91 : vector<64x8xf32> to vector<1x64x8xf32>
    tpu.vector_store %arg19[%c0_62, %c0_63, %c0_64], %94 {strides = array<i32>} : memref<1x64x8xf32, #tpu.memory_space<vmem>>, vector<1x64x8xf32>,
    return
  }
  func.func @transform_0(%arg0: i32, %arg1: i32) -> (i32, i32, i32) {
    %c0_i32 = arith.constant 0 : i32
    %c0_i32_0 = arith.constant 0 : i32
    return %arg0, %arg1, %c0_i32 : i32, i32, i32
  }
  func.func @transform_1(%arg0: i32, %arg1: i32) -> (i32, i32, i32) {
    %c0_i32 = arith.constant 0 : i32
    %c0_i32_0 = arith.constant 0 : i32
    return %arg0, %arg1, %c0_i32 : i32, i32, i32
  }
  func.func @transform_2(%arg0: i32, %arg1: i32) -> (i32, i32) {
    %c0_i32 = arith.constant 0 : i32
    %c0_i32_0 = arith.constant 0 : i32
    %c0_i32_1 = arith.constant 0 : i32
    return %c0_i32, %c0_i32_0 : i32, i32
  }
  func.func @transform_3(%arg0: i32, %arg1: i32) -> (i32, i32) {
    %c0_i32 = arith.constant 0 : i32
    %c0_i32_0 = arith.constant 0 : i32
    %c0_i32_1 = arith.constant 0 : i32
    return %c0_i32, %c0_i32_0 : i32, i32
  }
  func.func @transform_4(%arg0: i32, %arg1: i32) -> (i32, i32) {
    %c0_i32 = arith.constant 0 : i32
    %c0_i32_0 = arith.constant 0 : i32
    %c0_i32_1 = arith.constant 0 : i32
    return %c0_i32, %c0_i32_0 : i32, i32
  }
  func.func @transform_5(%arg0: i32, %arg1: i32) -> (i32, i32) {
    %c0_i32 = arith.constant 0 : i32
    %c0_i32_0 = arith.constant 0 : i32
    %c0_i32_1 = arith.constant 0 : i32
    return %c0_i32, %c0_i32_0 : i32, i32
  }
  func.func @transform_6(%arg0: i32, %arg1: i32) -> (i32, i32) {
    %c0_i32 = arith.constant 0 : i32
    %c0_i32_0 = arith.constant 0 : i32
    %c0_i32_1 = arith.constant 0 : i32
    return %c0_i32, %c0_i32_0 : i32, i32
  }
  func.func @transform_7(%arg0: i32, %arg1: i32) -> (i32, i32) {
    %c0_i32 = arith.constant 0 : i32
    %c0_i32_0 = arith.constant 0 : i32
    %c0_i32_1 = arith.constant 0 : i32
    return %c0_i32, %c0_i32_0 : i32, i32
  }
  func.func @transform_8(%arg0: i32, %arg1: i32) -> (i32, i32) {
    %c0_i32 = arith.constant 0 : i32
    %c0_i32_0 = arith.constant 0 : i32
    %c0_i32_1 = arith.constant 0 : i32
    return %c0_i32, %c0_i32_0 : i32, i32
  }
  func.func @transform_9(%arg0: i32, %arg1: i32) -> (i32, i32) {
    %c0_i32 = arith.constant 0 : i32
    %c0_i32_0 = arith.constant 0 : i32
    %c0_i32_1 = arith.constant 0 : i32
    return %c0_i32, %c0_i32_0 : i32, i32
  }
  func.func @transform_10(%arg0: i32, %arg1: i32) -> (i32, i32) {
    %c0_i32 = arith.constant 0 : i32
    %c0_i32_0 = arith.constant 0 : i32
    %c0_i32_1 = arith.constant 0 : i32
    return %c0_i32, %c0_i32_0 : i32, i32
  }
  func.func @transform_11(%arg0: i32, %arg1: i32) -> (i32, i32) {
    %c0_i32 = arith.constant 0 : i32
    %c0_i32_0 = arith.constant 0 : i32
    %c0_i32_1 = arith.constant 0 : i32
    return %c0_i32, %c0_i32_0 : i32, i32
  }
  func.func @transform_12(%arg0: i32, %arg1: i32) -> (i32, i32) {
    %c0_i32 = arith.constant 0 : i32
    %c0_i32_0 = arith.constant 0 : i32
    %c0_i32_1 = arith.constant 0 : i32
    return %c0_i32, %c0_i32_0 : i32, i32
  }
  func.func @transform_13(%arg0: i32, %arg1: i32) -> (i32, i32) {
    %c0_i32 = arith.constant 0 : i32
    %c0_i32_0 = arith.constant 0 : i32
    %c0_i32_1 = arith.constant 0 : i32
    return %c0_i32, %c0_i32_0 : i32, i32
  }
  func.func @transform_14(%arg0: i32, %arg1: i32) -> (i32, i32) {
    %c0_i32 = arith.constant 0 : i32
    %c0_i32_0 = arith.constant 0 : i32
    %c0_i32_1 = arith.constant 0 : i32
    return %c0_i32, %c0_i32_0 : i32, i32
  }
  func.func @transform_15(%arg0: i32, %arg1: i32) -> (i32, i32) {
    %c0_i32 = arith.constant 0 : i32
    %c0_i32_0 = arith.constant 0 : i32
    %c0_i32_1 = arith.constant 0 : i32
    return %c0_i32, %c0_i32_0 : i32, i32
  }
  func.func @transform_16(%arg0: i32, %arg1: i32) -> (i32, i32) {
    %c0_i32 = arith.constant 0 : i32
    %c0_i32_0 = arith.constant 0 : i32
    %c0_i32_1 = arith.constant 0 : i32
    return %c0_i32, %c0_i32_0 : i32, i32
  }
  func.func @transform_17(%arg0: i32, %arg1: i32) -> (i32, i32, i32) {
    %c0_i32 = arith.constant 0 : i32
    %c0_i32_0 = arith.constant 0 : i32
    return %arg0, %arg1, %c0_i32 : i32, i32, i32
  }
}

module attributes {stable_mosaic.version = 11 : i64} {
  func.func @kernel(%arg0: i32, %arg1: i32, %arg2: memref<1x128x8xf32, #tpu.memory_space<vmem>>, %arg3: memref<1x256x8xf32, #tpu.memory_space<vmem>>, %arg4: memref<256x1xf32, #tpu.memory_space<vmem>>, %arg5: memref<256x1xf32, #tpu.memory_space<vmem>>, %arg6: memref<256x1xf32, #tpu.memory_space<vmem>>, %arg7: memref<256x1xf32, #tpu.memory_space<vmem>>, %arg8: memref<8x8xf32, #tpu.memory_space<vmem>>, %arg9: memref<8x8xf32, #tpu.memory_space<vmem>>, %arg10: memref<1x8xf32, #tpu.memory_space<vmem>>, %arg11: memref<8x8xf32, #tpu.memory_space<vmem>>, %arg12: memref<8x8xf32, #tpu.memory_space<vmem>>, %arg13: memref<1x8xf32, #tpu.memory_space<vmem>>, %arg14: memref<72x8xf32, #tpu.memory_space<vmem>>, %arg15: memref<8x8xf32, #tpu.memory_space<vmem>>, %arg16: memref<1x8xf32, #tpu.memory_space<vmem>>, %arg17: memref<1x256x8xf32, #tpu.memory_space<vmem>>) attributes {dimension_semantics = [#tpu.dimension_semantics<parallel>, #tpu.dimension_semantics<parallel>], iteration_bounds = array<i64: 2, 1>, scalar_prefetch = 0 : i64, scratch_operands = 0 : i64, tpu.core_type = #tpu.core_type<tc>, window_params = [{transform_indices = @transform_0, window_bounds = array<i64: 1, 128, 8>}, {transform_indices = @transform_1, window_bounds = array<i64: 1, 256, 8>}, {pipeline_mode = #tpu.pipeline_mode<synchronous>, transform_indices = @transform_2, window_bounds = array<i64: 256, 1>}, {pipeline_mode = #tpu.pipeline_mode<synchronous>, transform_indices = @transform_3, window_bounds = array<i64: 256, 1>}, {pipeline_mode = #tpu.pipeline_mode<synchronous>, transform_indices = @transform_4, window_bounds = array<i64: 256, 1>}, {pipeline_mode = #tpu.pipeline_mode<synchronous>, transform_indices = @transform_5, window_bounds = array<i64: 256, 1>}, {pipeline_mode = #tpu.pipeline_mode<synchronous>, transform_indices = @transform_6, window_bounds = array<i64: 8, 8>}, {pipeline_mode = #tpu.pipeline_mode<synchronous>, transform_indices = @transform_7, window_bounds = array<i64: 8, 8>}, {pipeline_mode = #tpu.pipeline_mode<synchronous>, transform_indices = @transform_8, window_bounds = array<i64: 1, 8>}, {pipeline_mode = #tpu.pipeline_mode<synchronous>, transform_indices = @transform_9, window_bounds = array<i64: 8, 8>}, {pipeline_mode = #tpu.pipeline_mode<synchronous>, transform_indices = @transform_10, window_bounds = array<i64: 8, 8>}, {pipeline_mode = #tpu.pipeline_mode<synchronous>, transform_indices = @transform_11, window_bounds = array<i64: 1, 8>}, {pipeline_mode = #tpu.pipeline_mode<synchronous>, transform_indices = @transform_12, window_bounds = array<i64: 72, 8>}, {pipeline_mode = #tpu.pipeline_mode<synchronous>, transform_indices = @transform_13, window_bounds = array<i64: 8, 8>}, {pipeline_mode = #tpu.pipeline_mode<synchronous>, transform_indices = @transform_14, window_bounds = array<i64: 1, 8>}, {transform_indices = @transform_15, window_bounds = array<i64: 1, 256, 8>}]} {
    %c0 = arith.constant 0 : index
    %c0_0 = arith.constant 0 : index
    %c0_1 = arith.constant 0 : index
    %0 = vector.load %arg2[%c0, %c0_0, %c0_1] : memref<1x128x8xf32, #tpu.memory_space<vmem>>, vector<1x128x8xf32>
    %1 = vector.shape_cast %0 : vector<1x128x8xf32> to vector<128x8xf32>
    %2 = vector.shape_cast %1 : vector<128x8xf32> to vector<8x1x16x8xf32>
    %3 = vector.shape_cast %2 : vector<8x1x16x8xf32> to vector<8x1x16x8xf32>
    %4 = vector.broadcast %3 : vector<8x1x16x8xf32> to vector<8x2x16x8xf32>
    %5 = vector.shape_cast %4 : vector<8x2x16x8xf32> to vector<256x8xf32>
    %c0_2 = arith.constant 0 : index
    %c0_3 = arith.constant 0 : index
    %c0_4 = arith.constant 0 : index
    %6 = vector.load %arg3[%c0_2, %c0_3, %c0_4] : memref<1x256x8xf32, #tpu.memory_space<vmem>>, vector<1x256x8xf32>
    %7 = vector.shape_cast %6 : vector<1x256x8xf32> to vector<256x8xf32>
    %c0_5 = arith.constant 0 : index
    %c0_6 = arith.constant 0 : index
    %8 = vector.load %arg8[%c0_5, %c0_6] : memref<8x8xf32, #tpu.memory_space<vmem>>, vector<8x8xf32>
    %cst = arith.constant dense<0.000000e+00> : vector<256x8xf32>
    %9 = tpu.matmul %5, %8, %cst {dimension_numbers = #tpu.dot_dimension_numbers<[1], [0], [0], [1], [0, 0, 1, 1], [], []>} : vector<256x8xf32>, vector<8x8xf32>, vector<256x8xf32> -> vector<256x8xf32>
    %c0_7 = arith.constant 0 : index
    %c0_8 = arith.constant 0 : index
    %10 = vector.load %arg9[%c0_7, %c0_8] : memref<8x8xf32, #tpu.memory_space<vmem>>, vector<8x8xf32>
    %cst_9 = arith.constant dense<0.000000e+00> : vector<256x8xf32>
    %11 = tpu.matmul %7, %10, %cst_9 {dimension_numbers = #tpu.dot_dimension_numbers<[1], [0], [0], [1], [0, 0, 1, 1], [], []>} : vector<256x8xf32>, vector<8x8xf32>, vector<256x8xf32> -> vector<256x8xf32>
    %12 = arith.addf %9, %11 : vector<256x8xf32>
    %c0_10 = arith.constant 0 : index
    %c0_11 = arith.constant 0 : index
    %13 = vector.load %arg10[%c0_10, %c0_11] : memref<1x8xf32, #tpu.memory_space<vmem>>, vector<1x8xf32>
    %14 = vector.broadcast %13 : vector<1x8xf32> to vector<256x8xf32>
    %15 = arith.addf %12, %14 : vector<256x8xf32>
    %c0_12 = arith.constant 0 : index
    %c0_13 = arith.constant 0 : index
    %16 = vector.load %arg11[%c0_12, %c0_13] : memref<8x8xf32, #tpu.memory_space<vmem>>, vector<8x8xf32>
    %cst_14 = arith.constant dense<0.000000e+00> : vector<256x8xf32>
    %17 = tpu.matmul %5, %16, %cst_14 {dimension_numbers = #tpu.dot_dimension_numbers<[1], [0], [0], [1], [0, 0, 1, 1], [], []>} : vector<256x8xf32>, vector<8x8xf32>, vector<256x8xf32> -> vector<256x8xf32>
    %c0_15 = arith.constant 0 : index
    %c0_16 = arith.constant 0 : index
    %18 = vector.load %arg12[%c0_15, %c0_16] : memref<8x8xf32, #tpu.memory_space<vmem>>, vector<8x8xf32>
    %cst_17 = arith.constant dense<0.000000e+00> : vector<256x8xf32>
    %19 = tpu.matmul %7, %18, %cst_17 {dimension_numbers = #tpu.dot_dimension_numbers<[1], [0], [0], [1], [0, 0, 1, 1], [], []>} : vector<256x8xf32>, vector<8x8xf32>, vector<256x8xf32> -> vector<256x8xf32>
    %20 = arith.addf %17, %19 : vector<256x8xf32>
    %c0_18 = arith.constant 0 : index
    %c0_19 = arith.constant 0 : index
    %21 = vector.load %arg13[%c0_18, %c0_19] : memref<1x8xf32, #tpu.memory_space<vmem>>, vector<1x8xf32>
    %22 = vector.broadcast %21 : vector<1x8xf32> to vector<256x8xf32>
    %23 = arith.addf %20, %22 : vector<256x8xf32>
    %c16_i32 = arith.constant 16 : i32
    %24 = tpu.dynamic_rotate %23 by %c16_i32 dim 0 : vector<256x8xf32>, i32 -> vector<256x8xf32>
    %c0_20 = arith.constant 0 : index
    %c0_21 = arith.constant 0 : index
    %25 = vector.load %arg6[%c0_20, %c0_21] : memref<256x1xf32, #tpu.memory_space<vmem>>, vector<256x1xf32>
    %26 = vector.broadcast %25 : vector<256x1xf32> to vector<256x8xf32>
    %27 = arith.mulf %24, %26 : vector<256x8xf32>
    %c240_i32 = arith.constant 240 : i32
    %28 = tpu.dynamic_rotate %23 by %c240_i32 dim 0 : vector<256x8xf32>, i32 -> vector<256x8xf32>
    %c0_22 = arith.constant 0 : index
    %c0_23 = arith.constant 0 : index
    %29 = vector.load %arg7[%c0_22, %c0_23] : memref<256x1xf32, #tpu.memory_space<vmem>>, vector<256x1xf32>
    %30 = vector.broadcast %29 : vector<256x1xf32> to vector<256x8xf32>
    %31 = arith.mulf %28, %30 : vector<256x8xf32>
    %c0_24 = arith.constant 0 : index
    %c0_25 = arith.constant 0 : index
    %32 = vector.load %arg4[%c0_24, %c0_25] : memref<256x1xf32, #tpu.memory_space<vmem>>, vector<256x1xf32>
    %c0_26 = arith.constant 0 : index
    %c0_27 = arith.constant 0 : index
    %33 = vector.load %arg5[%c0_26, %c0_27] : memref<256x1xf32, #tpu.memory_space<vmem>>, vector<256x1xf32>
    %c0_28 = arith.constant 0 : index
    %c0_29 = arith.constant 0 : index
    %34 = vector.load %arg15[%c0_28, %c0_29] : memref<8x8xf32, #tpu.memory_space<vmem>>, vector<8x8xf32>
    %cst_30 = arith.constant dense<0.000000e+00> : vector<256x8xf32>
    %35 = tpu.matmul %23, %34, %cst_30 {dimension_numbers = #tpu.dot_dimension_numbers<[1], [0], [0], [1], [0, 0, 1, 1], [], []>} : vector<256x8xf32>, vector<8x8xf32>, vector<256x8xf32> -> vector<256x8xf32>
    %c0_31 = arith.constant 0 : index
    %c0_32 = arith.constant 0 : index
    %36 = vector.load %arg16[%c0_31, %c0_32] : memref<1x8xf32, #tpu.memory_space<vmem>>, vector<1x8xf32>
    %37 = vector.broadcast %36 : vector<1x8xf32> to vector<256x8xf32>
    %38 = arith.addf %35, %37 : vector<256x8xf32>
    %c1_i32 = arith.constant 1 : i32
    %39 = tpu.dynamic_rotate %27 by %c1_i32 dim 0 : vector<256x8xf32>, i32 -> vector<256x8xf32>
    %40 = vector.broadcast %32 : vector<256x1xf32> to vector<256x8xf32>
    %41 = arith.mulf %39, %40 : vector<256x8xf32>
    %c0_33 = arith.constant 0 : index
    %c0_34 = arith.constant 0 : index
    %42 = vector.load %arg14[%c0_33, %c0_34] : memref<72x8xf32, #tpu.memory_space<vmem>>, vector<8x8xf32>
    %cst_35 = arith.constant dense<0.000000e+00> : vector<256x8xf32>
    %43 = tpu.matmul %41, %42, %cst_35 {dimension_numbers = #tpu.dot_dimension_numbers<[1], [0], [0], [1], [0, 0, 1, 1], [], []>} : vector<256x8xf32>, vector<8x8xf32>, vector<256x8xf32> -> vector<256x8xf32>
    %44 = arith.addf %38, %43 : vector<256x8xf32>
    %c8 = arith.constant 8 : index
    %c0_36 = arith.constant 0 : index
    %45 = vector.load %arg14[%c8, %c0_36] : memref<72x8xf32, #tpu.memory_space<vmem>>, vector<8x8xf32>
    %cst_37 = arith.constant dense<0.000000e+00> : vector<256x8xf32>
    %46 = tpu.matmul %27, %45, %cst_37 {dimension_numbers = #tpu.dot_dimension_numbers<[1], [0], [0], [1], [0, 0, 1, 1], [], []>} : vector<256x8xf32>, vector<8x8xf32>, vector<256x8xf32> -> vector<256x8xf32>
    %47 = arith.addf %44, %46 : vector<256x8xf32>
    %c255_i32 = arith.constant 255 : i32
    %48 = tpu.dynamic_rotate %27 by %c255_i32 dim 0 : vector<256x8xf32>, i32 -> vector<256x8xf32>
    %49 = vector.broadcast %33 : vector<256x1xf32> to vector<256x8xf32>
    %50 = arith.mulf %48, %49 : vector<256x8xf32>
    %c16 = arith.constant 16 : index
    %c0_38 = arith.constant 0 : index
    %51 = vector.load %arg14[%c16, %c0_38] : memref<72x8xf32, #tpu.memory_space<vmem>>, vector<8x8xf32>
    %cst_39 = arith.constant dense<0.000000e+00> : vector<256x8xf32>
    %52 = tpu.matmul %50, %51, %cst_39 {dimension_numbers = #tpu.dot_dimension_numbers<[1], [0], [0], [1], [0, 0, 1, 1], [], []>} : vector<256x8xf32>, vector<8x8xf32>, vector<256x8xf32> -> vector<256x8xf32>
    %53 = arith.addf %47, %52 : vector<256x8xf32>
    %c1_i32_40 = arith.constant 1 : i32
    %54 = tpu.dynamic_rotate %23 by %c1_i32_40 dim 0 : vector<256x8xf32>, i32 -> vector<256x8xf32>
    %55 = vector.broadcast %32 : vector<256x1xf32> to vector<256x8xf32>
    %56 = arith.mulf %54, %55 : vector<256x8xf32>
    %c24 = arith.constant 24 : index
    %c0_41 = arith.constant 0 : index
    %57 = vector.load %arg14[%c24, %c0_41] : memref<72x8xf32, #tpu.memory_space<vmem>>, vector<8x8xf32>
    %cst_42 = arith.constant dense<0.000000e+00> : vector<256x8xf32>
    %58 = tpu.matmul %56, %57, %cst_42 {dimension_numbers = #tpu.dot_dimension_numbers<[1], [0], [0], [1], [0, 0, 1, 1], [], []>} : vector<256x8xf32>, vector<8x8xf32>, vector<256x8xf32> -> vector<256x8xf32>
    %59 = arith.addf %53, %58 : vector<256x8xf32>
    %c32 = arith.constant 32 : index
    %c0_43 = arith.constant 0 : index
    %60 = vector.load %arg14[%c32, %c0_43] : memref<72x8xf32, #tpu.memory_space<vmem>>, vector<8x8xf32>
    %cst_44 = arith.constant dense<0.000000e+00> : vector<256x8xf32>
    %61 = tpu.matmul %23, %60, %cst_44 {dimension_numbers = #tpu.dot_dimension_numbers<[1], [0], [0], [1], [0, 0, 1, 1], [], []>} : vector<256x8xf32>, vector<8x8xf32>, vector<256x8xf32> -> vector<256x8xf32>
    %62 = arith.addf %59, %61 : vector<256x8xf32>
    %c255_i32_45 = arith.constant 255 : i32
    %63 = tpu.dynamic_rotate %23 by %c255_i32_45 dim 0 : vector<256x8xf32>, i32 -> vector<256x8xf32>
    %64 = vector.broadcast %33 : vector<256x1xf32> to vector<256x8xf32>
    %65 = arith.mulf %63, %64 : vector<256x8xf32>
    %c40 = arith.constant 40 : index
    %c0_46 = arith.constant 0 : index
    %66 = vector.load %arg14[%c40, %c0_46] : memref<72x8xf32, #tpu.memory_space<vmem>>, vector<8x8xf32>
    %cst_47 = arith.constant dense<0.000000e+00> : vector<256x8xf32>
    %67 = tpu.matmul %65, %66, %cst_47 {dimension_numbers = #tpu.dot_dimension_numbers<[1], [0], [0], [1], [0, 0, 1, 1], [], []>} : vector<256x8xf32>, vector<8x8xf32>, vector<256x8xf32> -> vector<256x8xf32>
    %68 = arith.addf %62, %67 : vector<256x8xf32>
    %c1_i32_48 = arith.constant 1 : i32
    %69 = tpu.dynamic_rotate %31 by %c1_i32_48 dim 0 : vector<256x8xf32>, i32 -> vector<256x8xf32>
    %70 = vector.broadcast %32 : vector<256x1xf32> to vector<256x8xf32>
    %71 = arith.mulf %69, %70 : vector<256x8xf32>
    %c48 = arith.constant 48 : index
    %c0_49 = arith.constant 0 : index
    %72 = vector.load %arg14[%c48, %c0_49] : memref<72x8xf32, #tpu.memory_space<vmem>>, vector<8x8xf32>
    %cst_50 = arith.constant dense<0.000000e+00> : vector<256x8xf32>
    %73 = tpu.matmul %71, %72, %cst_50 {dimension_numbers = #tpu.dot_dimension_numbers<[1], [0], [0], [1], [0, 0, 1, 1], [], []>} : vector<256x8xf32>, vector<8x8xf32>, vector<256x8xf32> -> vector<256x8xf32>
    %74 = arith.addf %68, %73 : vector<256x8xf32>
    %c56 = arith.constant 56 : index
    %c0_51 = arith.constant 0 : index
    %75 = vector.load %arg14[%c56, %c0_51] : memref<72x8xf32, #tpu.memory_space<vmem>>, vector<8x8xf32>
    %cst_52 = arith.constant dense<0.000000e+00> : vector<256x8xf32>
    %76 = tpu.matmul %31, %75, %cst_52 {dimension_numbers = #tpu.dot_dimension_numbers<[1], [0], [0], [1], [0, 0, 1, 1], [], []>} : vector<256x8xf32>, vector<8x8xf32>, vector<256x8xf32> -> vector<256x8xf32>
    %77 = arith.addf %74, %76 : vector<256x8xf32>
    %c255_i32_53 = arith.constant 255 : i32
    %78 = tpu.dynamic_rotate %31 by %c255_i32_53 dim 0 : vector<256x8xf32>, i32 -> vector<256x8xf32>
    %79 = vector.broadcast %33 : vector<256x1xf32> to vector<256x8xf32>
    %80 = arith.mulf %78, %79 : vector<256x8xf32>
    %c64 = arith.constant 64 : index
    %c0_54 = arith.constant 0 : index
    %81 = vector.load %arg14[%c64, %c0_54] : memref<72x8xf32, #tpu.memory_space<vmem>>, vector<8x8xf32>
    %cst_55 = arith.constant dense<0.000000e+00> : vector<256x8xf32>
    %82 = tpu.matmul %80, %81, %cst_55 {dimension_numbers = #tpu.dot_dimension_numbers<[1], [0], [0], [1], [0, 0, 1, 1], [], []>} : vector<256x8xf32>, vector<8x8xf32>, vector<256x8xf32> -> vector<256x8xf32>
    %83 = arith.addf %77, %82 : vector<256x8xf32>
    %cst_56 = arith.constant 0.000000e+00 : f32
    %84 = vector.broadcast %cst_56 : f32 to vector<256x8xf32>
    %85 = arith.maximumf %83, %84 : vector<256x8xf32>
    %86 = arith.addf %15, %85 : vector<256x8xf32>
    %c0_57 = arith.constant 0 : index
    %c0_58 = arith.constant 0 : index
    %c0_59 = arith.constant 0 : index
    %87 = vector.load %arg17[%c0_57, %c0_58, %c0_59] : memref<1x256x8xf32, #tpu.memory_space<vmem>>, vector<1x256x8xf32>
    %88 = vector.shape_cast %87 : vector<1x256x8xf32> to vector<256x8xf32>
    %89 = vector.shape_cast %86 : vector<256x8xf32> to vector<1x256x8xf32>
    tpu.vector_store %arg17[%c0_57, %c0_58, %c0_59], %89 {strides = array<i32>} : memref<1x256x8xf32, #tpu.memory_space<vmem>>, vector<1x256x8xf32>,
    return
  }
  func.func @transform_0(%arg0: i32, %arg1: i32) -> (i32, i32, i32) {
    %c0_i32 = arith.constant 0 : i32
    %c0_i32_0 = arith.constant 0 : i32
    return %arg0, %arg1, %c0_i32 : i32, i32, i32
  }
  func.func @transform_1(%arg0: i32, %arg1: i32) -> (i32, i32, i32) {
    %c0_i32 = arith.constant 0 : i32
    %c0_i32_0 = arith.constant 0 : i32
    return %arg0, %arg1, %c0_i32 : i32, i32, i32
  }
  func.func @transform_2(%arg0: i32, %arg1: i32) -> (i32, i32) {
    %c0_i32 = arith.constant 0 : i32
    %c0_i32_0 = arith.constant 0 : i32
    %c0_i32_1 = arith.constant 0 : i32
    return %c0_i32, %c0_i32_0 : i32, i32
  }
  func.func @transform_3(%arg0: i32, %arg1: i32) -> (i32, i32) {
    %c0_i32 = arith.constant 0 : i32
    %c0_i32_0 = arith.constant 0 : i32
    %c0_i32_1 = arith.constant 0 : i32
    return %c0_i32, %c0_i32_0 : i32, i32
  }
  func.func @transform_4(%arg0: i32, %arg1: i32) -> (i32, i32) {
    %c0_i32 = arith.constant 0 : i32
    %c0_i32_0 = arith.constant 0 : i32
    %c0_i32_1 = arith.constant 0 : i32
    return %c0_i32, %c0_i32_0 : i32, i32
  }
  func.func @transform_5(%arg0: i32, %arg1: i32) -> (i32, i32) {
    %c0_i32 = arith.constant 0 : i32
    %c0_i32_0 = arith.constant 0 : i32
    %c0_i32_1 = arith.constant 0 : i32
    return %c0_i32, %c0_i32_0 : i32, i32
  }
  func.func @transform_6(%arg0: i32, %arg1: i32) -> (i32, i32) {
    %c0_i32 = arith.constant 0 : i32
    %c0_i32_0 = arith.constant 0 : i32
    %c0_i32_1 = arith.constant 0 : i32
    return %c0_i32, %c0_i32_0 : i32, i32
  }
  func.func @transform_7(%arg0: i32, %arg1: i32) -> (i32, i32) {
    %c0_i32 = arith.constant 0 : i32
    %c0_i32_0 = arith.constant 0 : i32
    %c0_i32_1 = arith.constant 0 : i32
    return %c0_i32, %c0_i32_0 : i32, i32
  }
  func.func @transform_8(%arg0: i32, %arg1: i32) -> (i32, i32) {
    %c0_i32 = arith.constant 0 : i32
    %c0_i32_0 = arith.constant 0 : i32
    %c0_i32_1 = arith.constant 0 : i32
    return %c0_i32, %c0_i32_0 : i32, i32
  }
  func.func @transform_9(%arg0: i32, %arg1: i32) -> (i32, i32) {
    %c0_i32 = arith.constant 0 : i32
    %c0_i32_0 = arith.constant 0 : i32
    %c0_i32_1 = arith.constant 0 : i32
    return %c0_i32, %c0_i32_0 : i32, i32
  }
  func.func @transform_10(%arg0: i32, %arg1: i32) -> (i32, i32) {
    %c0_i32 = arith.constant 0 : i32
    %c0_i32_0 = arith.constant 0 : i32
    %c0_i32_1 = arith.constant 0 : i32
    return %c0_i32, %c0_i32_0 : i32, i32
  }
  func.func @transform_11(%arg0: i32, %arg1: i32) -> (i32, i32) {
    %c0_i32 = arith.constant 0 : i32
    %c0_i32_0 = arith.constant 0 : i32
    %c0_i32_1 = arith.constant 0 : i32
    return %c0_i32, %c0_i32_0 : i32, i32
  }
  func.func @transform_12(%arg0: i32, %arg1: i32) -> (i32, i32) {
    %c0_i32 = arith.constant 0 : i32
    %c0_i32_0 = arith.constant 0 : i32
    %c0_i32_1 = arith.constant 0 : i32
    return %c0_i32, %c0_i32_0 : i32, i32
  }
  func.func @transform_13(%arg0: i32, %arg1: i32) -> (i32, i32) {
    %c0_i32 = arith.constant 0 : i32
    %c0_i32_0 = arith.constant 0 : i32
    %c0_i32_1 = arith.constant 0 : i32
    return %c0_i32, %c0_i32_0 : i32, i32
  }
  func.func @transform_14(%arg0: i32, %arg1: i32) -> (i32, i32) {
    %c0_i32 = arith.constant 0 : i32
    %c0_i32_0 = arith.constant 0 : i32
    %c0_i32_1 = arith.constant 0 : i32
    return %c0_i32, %c0_i32_0 : i32, i32
  }
  func.func @transform_15(%arg0: i32, %arg1: i32) -> (i32, i32, i32) {
    %c0_i32 = arith.constant 0 : i32
    %c0_i32_0 = arith.constant 0 : i32
    return %arg0, %arg1, %c0_i32 : i32, i32, i32
  }
}

module attributes {stable_mosaic.version = 11 : i64} {
  func.func @_conv1x1_kernel(%arg0: i32, %arg1: memref<64x32xf32, #tpu.memory_space<vmem>>, %arg2: memref<32x8xf32, #tpu.memory_space<vmem>>, %arg3: memref<1x8xf32, #tpu.memory_space<vmem>>, %arg4: memref<64x8xf32, #tpu.memory_space<vmem>>) attributes {dimension_semantics = [#tpu.dimension_semantics<parallel>], iteration_bounds = array<i64: 2>, scalar_prefetch = 0 : i64, scratch_operands = 0 : i64, tpu.core_type = #tpu.core_type<tc>, window_params = [{transform_indices = @transform_0, window_bounds = array<i64: 64, 32>}, {pipeline_mode = #tpu.pipeline_mode<synchronous>, transform_indices = @transform_1, window_bounds = array<i64: 32, 8>}, {pipeline_mode = #tpu.pipeline_mode<synchronous>, transform_indices = @transform_2, window_bounds = array<i64: 1, 8>}, {transform_indices = @transform_3, window_bounds = array<i64: 64, 8>}]} {
    %c0 = arith.constant 0 : index
    %c0_0 = arith.constant 0 : index
    %0 = vector.load %arg1[%c0, %c0_0] : memref<64x32xf32, #tpu.memory_space<vmem>>, vector<64x32xf32>
    %c0_1 = arith.constant 0 : index
    %c0_2 = arith.constant 0 : index
    %1 = vector.load %arg2[%c0_1, %c0_2] : memref<32x8xf32, #tpu.memory_space<vmem>>, vector<32x8xf32>
    %cst = arith.constant dense<0.000000e+00> : vector<64x8xf32>
    %2 = tpu.matmul %0, %1, %cst {dimension_numbers = #tpu.dot_dimension_numbers<[1], [0], [0], [1], [0, 0, 1, 1], [], []>} : vector<64x32xf32>, vector<32x8xf32>, vector<64x8xf32> -> vector<64x8xf32>
    %c0_3 = arith.constant 0 : index
    %c0_4 = arith.constant 0 : index
    %3 = vector.load %arg3[%c0_3, %c0_4] : memref<1x8xf32, #tpu.memory_space<vmem>>, vector<1x8xf32>
    %4 = vector.broadcast %3 : vector<1x8xf32> to vector<64x8xf32>
    %5 = arith.addf %2, %4 : vector<64x8xf32>
    %c0_5 = arith.constant 0 : index
    %c0_6 = arith.constant 0 : index
    %6 = vector.load %arg4[%c0_5, %c0_6] : memref<64x8xf32, #tpu.memory_space<vmem>>, vector<64x8xf32>
    tpu.vector_store %arg4[%c0_5, %c0_6], %5 {strides = array<i32>} : memref<64x8xf32, #tpu.memory_space<vmem>>, vector<64x8xf32>,
    return
  }
  func.func @transform_0(%arg0: i32) -> (i32, i32) {
    %c0_i32 = arith.constant 0 : i32
    %c0_i32_0 = arith.constant 0 : i32
    return %arg0, %c0_i32 : i32, i32
  }
  func.func @transform_1(%arg0: i32) -> (i32, i32) {
    %c0_i32 = arith.constant 0 : i32
    %c0_i32_0 = arith.constant 0 : i32
    %c0_i32_1 = arith.constant 0 : i32
    return %c0_i32, %c0_i32_0 : i32, i32
  }
  func.func @transform_2(%arg0: i32) -> (i32, i32) {
    %c0_i32 = arith.constant 0 : i32
    %c0_i32_0 = arith.constant 0 : i32
    %c0_i32_1 = arith.constant 0 : i32
    return %c0_i32, %c0_i32_0 : i32, i32
  }
  func.func @transform_3(%arg0: i32) -> (i32, i32) {
    %c0_i32 = arith.constant 0 : i32
    %c0_i32_0 = arith.constant 0 : i32
    return %arg0, %c0_i32 : i32, i32
  }
}

module attributes {stable_mosaic.version = 11 : i64} {
  func.func @kernel(%arg0: i32, %arg1: i32, %arg2: memref<1x64x8xf32, #tpu.memory_space<vmem>>, %arg3: memref<1x64x8xf32, #tpu.memory_space<vmem>>, %arg4: memref<64x1xf32, #tpu.memory_space<vmem>>, %arg5: memref<64x1xf32, #tpu.memory_space<vmem>>, %arg6: memref<64x1xf32, #tpu.memory_space<vmem>>, %arg7: memref<64x1xf32, #tpu.memory_space<vmem>>, %arg8: memref<8x8xf32, #tpu.memory_space<vmem>>, %arg9: memref<8x8xf32, #tpu.memory_space<vmem>>, %arg10: memref<1x8xf32, #tpu.memory_space<vmem>>, %arg11: memref<8x8xf32, #tpu.memory_space<vmem>>, %arg12: memref<8x8xf32, #tpu.memory_space<vmem>>, %arg13: memref<1x8xf32, #tpu.memory_space<vmem>>, %arg14: memref<72x8xf32, #tpu.memory_space<vmem>>, %arg15: memref<8x8xf32, #tpu.memory_space<vmem>>, %arg16: memref<1x8xf32, #tpu.memory_space<vmem>>, %arg17: memref<1x64x8xf32, #tpu.memory_space<vmem>>) attributes {dimension_semantics = [#tpu.dimension_semantics<parallel>, #tpu.dimension_semantics<parallel>], iteration_bounds = array<i64: 2, 1>, scalar_prefetch = 0 : i64, scratch_operands = 0 : i64, tpu.core_type = #tpu.core_type<tc>, window_params = [{transform_indices = @transform_0, window_bounds = array<i64: 1, 64, 8>}, {transform_indices = @transform_1, window_bounds = array<i64: 1, 64, 8>}, {pipeline_mode = #tpu.pipeline_mode<synchronous>, transform_indices = @transform_2, window_bounds = array<i64: 64, 1>}, {pipeline_mode = #tpu.pipeline_mode<synchronous>, transform_indices = @transform_3, window_bounds = array<i64: 64, 1>}, {pipeline_mode = #tpu.pipeline_mode<synchronous>, transform_indices = @transform_4, window_bounds = array<i64: 64, 1>}, {pipeline_mode = #tpu.pipeline_mode<synchronous>, transform_indices = @transform_5, window_bounds = array<i64: 64, 1>}, {pipeline_mode = #tpu.pipeline_mode<synchronous>, transform_indices = @transform_6, window_bounds = array<i64: 8, 8>}, {pipeline_mode = #tpu.pipeline_mode<synchronous>, transform_indices = @transform_7, window_bounds = array<i64: 8, 8>}, {pipeline_mode = #tpu.pipeline_mode<synchronous>, transform_indices = @transform_8, window_bounds = array<i64: 1, 8>}, {pipeline_mode = #tpu.pipeline_mode<synchronous>, transform_indices = @transform_9, window_bounds = array<i64: 8, 8>}, {pipeline_mode = #tpu.pipeline_mode<synchronous>, transform_indices = @transform_10, window_bounds = array<i64: 8, 8>}, {pipeline_mode = #tpu.pipeline_mode<synchronous>, transform_indices = @transform_11, window_bounds = array<i64: 1, 8>}, {pipeline_mode = #tpu.pipeline_mode<synchronous>, transform_indices = @transform_12, window_bounds = array<i64: 72, 8>}, {pipeline_mode = #tpu.pipeline_mode<synchronous>, transform_indices = @transform_13, window_bounds = array<i64: 8, 8>}, {pipeline_mode = #tpu.pipeline_mode<synchronous>, transform_indices = @transform_14, window_bounds = array<i64: 1, 8>}, {transform_indices = @transform_15, window_bounds = array<i64: 1, 64, 8>}]} {
    %c0 = arith.constant 0 : index
    %c0_0 = arith.constant 0 : index
    %c0_1 = arith.constant 0 : index
    %0 = vector.load %arg2[%c0, %c0_0, %c0_1] : memref<1x64x8xf32, #tpu.memory_space<vmem>>, vector<1x64x8xf32>
    %1 = vector.shape_cast %0 : vector<1x64x8xf32> to vector<64x8xf32>
    %c0_2 = arith.constant 0 : index
    %c0_3 = arith.constant 0 : index
    %c0_4 = arith.constant 0 : index
    %2 = vector.load %arg3[%c0_2, %c0_3, %c0_4] : memref<1x64x8xf32, #tpu.memory_space<vmem>>, vector<1x64x8xf32>
    %3 = vector.shape_cast %2 : vector<1x64x8xf32> to vector<64x8xf32>
    %c0_5 = arith.constant 0 : index
    %c0_6 = arith.constant 0 : index
    %4 = vector.load %arg8[%c0_5, %c0_6] : memref<8x8xf32, #tpu.memory_space<vmem>>, vector<8x8xf32>
    %cst = arith.constant dense<0.000000e+00> : vector<64x8xf32>
    %5 = tpu.matmul %1, %4, %cst {dimension_numbers = #tpu.dot_dimension_numbers<[1], [0], [0], [1], [0, 0, 1, 1], [], []>} : vector<64x8xf32>, vector<8x8xf32>, vector<64x8xf32> -> vector<64x8xf32>
    %c0_7 = arith.constant 0 : index
    %c0_8 = arith.constant 0 : index
    %6 = vector.load %arg9[%c0_7, %c0_8] : memref<8x8xf32, #tpu.memory_space<vmem>>, vector<8x8xf32>
    %cst_9 = arith.constant dense<0.000000e+00> : vector<64x8xf32>
    %7 = tpu.matmul %3, %6, %cst_9 {dimension_numbers = #tpu.dot_dimension_numbers<[1], [0], [0], [1], [0, 0, 1, 1], [], []>} : vector<64x8xf32>, vector<8x8xf32>, vector<64x8xf32> -> vector<64x8xf32>
    %8 = arith.addf %5, %7 : vector<64x8xf32>
    %c0_10 = arith.constant 0 : index
    %c0_11 = arith.constant 0 : index
    %9 = vector.load %arg10[%c0_10, %c0_11] : memref<1x8xf32, #tpu.memory_space<vmem>>, vector<1x8xf32>
    %10 = vector.broadcast %9 : vector<1x8xf32> to vector<64x8xf32>
    %11 = arith.addf %8, %10 : vector<64x8xf32>
    %c0_12 = arith.constant 0 : index
    %c0_13 = arith.constant 0 : index
    %12 = vector.load %arg11[%c0_12, %c0_13] : memref<8x8xf32, #tpu.memory_space<vmem>>, vector<8x8xf32>
    %cst_14 = arith.constant dense<0.000000e+00> : vector<64x8xf32>
    %13 = tpu.matmul %1, %12, %cst_14 {dimension_numbers = #tpu.dot_dimension_numbers<[1], [0], [0], [1], [0, 0, 1, 1], [], []>} : vector<64x8xf32>, vector<8x8xf32>, vector<64x8xf32> -> vector<64x8xf32>
    %c0_15 = arith.constant 0 : index
    %c0_16 = arith.constant 0 : index
    %14 = vector.load %arg12[%c0_15, %c0_16] : memref<8x8xf32, #tpu.memory_space<vmem>>, vector<8x8xf32>
    %cst_17 = arith.constant dense<0.000000e+00> : vector<64x8xf32>
    %15 = tpu.matmul %3, %14, %cst_17 {dimension_numbers = #tpu.dot_dimension_numbers<[1], [0], [0], [1], [0, 0, 1, 1], [], []>} : vector<64x8xf32>, vector<8x8xf32>, vector<64x8xf32> -> vector<64x8xf32>
    %16 = arith.addf %13, %15 : vector<64x8xf32>
    %c0_18 = arith.constant 0 : index
    %c0_19 = arith.constant 0 : index
    %17 = vector.load %arg13[%c0_18, %c0_19] : memref<1x8xf32, #tpu.memory_space<vmem>>, vector<1x8xf32>
    %18 = vector.broadcast %17 : vector<1x8xf32> to vector<64x8xf32>
    %19 = arith.addf %16, %18 : vector<64x8xf32>
    %c8_i32 = arith.constant 8 : i32
    %20 = tpu.dynamic_rotate %19 by %c8_i32 dim 0 : vector<64x8xf32>, i32 -> vector<64x8xf32>
    %c0_20 = arith.constant 0 : index
    %c0_21 = arith.constant 0 : index
    %21 = vector.load %arg6[%c0_20, %c0_21] : memref<64x1xf32, #tpu.memory_space<vmem>>, vector<64x1xf32>
    %22 = vector.broadcast %21 : vector<64x1xf32> to vector<64x8xf32>
    %23 = arith.mulf %20, %22 : vector<64x8xf32>
    %c56_i32 = arith.constant 56 : i32
    %24 = tpu.dynamic_rotate %19 by %c56_i32 dim 0 : vector<64x8xf32>, i32 -> vector<64x8xf32>
    %c0_22 = arith.constant 0 : index
    %c0_23 = arith.constant 0 : index
    %25 = vector.load %arg7[%c0_22, %c0_23] : memref<64x1xf32, #tpu.memory_space<vmem>>, vector<64x1xf32>
    %26 = vector.broadcast %25 : vector<64x1xf32> to vector<64x8xf32>
    %27 = arith.mulf %24, %26 : vector<64x8xf32>
    %c0_24 = arith.constant 0 : index
    %c0_25 = arith.constant 0 : index
    %28 = vector.load %arg4[%c0_24, %c0_25] : memref<64x1xf32, #tpu.memory_space<vmem>>, vector<64x1xf32>
    %c0_26 = arith.constant 0 : index
    %c0_27 = arith.constant 0 : index
    %29 = vector.load %arg5[%c0_26, %c0_27] : memref<64x1xf32, #tpu.memory_space<vmem>>, vector<64x1xf32>
    %c0_28 = arith.constant 0 : index
    %c0_29 = arith.constant 0 : index
    %30 = vector.load %arg15[%c0_28, %c0_29] : memref<8x8xf32, #tpu.memory_space<vmem>>, vector<8x8xf32>
    %cst_30 = arith.constant dense<0.000000e+00> : vector<64x8xf32>
    %31 = tpu.matmul %19, %30, %cst_30 {dimension_numbers = #tpu.dot_dimension_numbers<[1], [0], [0], [1], [0, 0, 1, 1], [], []>} : vector<64x8xf32>, vector<8x8xf32>, vector<64x8xf32> -> vector<64x8xf32>
    %c0_31 = arith.constant 0 : index
    %c0_32 = arith.constant 0 : index
    %32 = vector.load %arg16[%c0_31, %c0_32] : memref<1x8xf32, #tpu.memory_space<vmem>>, vector<1x8xf32>
    %33 = vector.broadcast %32 : vector<1x8xf32> to vector<64x8xf32>
    %34 = arith.addf %31, %33 : vector<64x8xf32>
    %c1_i32 = arith.constant 1 : i32
    %35 = tpu.dynamic_rotate %23 by %c1_i32 dim 0 : vector<64x8xf32>, i32 -> vector<64x8xf32>
    %36 = vector.broadcast %28 : vector<64x1xf32> to vector<64x8xf32>
    %37 = arith.mulf %35, %36 : vector<64x8xf32>
    %c0_33 = arith.constant 0 : index
    %c0_34 = arith.constant 0 : index
    %38 = vector.load %arg14[%c0_33, %c0_34] : memref<72x8xf32, #tpu.memory_space<vmem>>, vector<8x8xf32>
    %cst_35 = arith.constant dense<0.000000e+00> : vector<64x8xf32>
    %39 = tpu.matmul %37, %38, %cst_35 {dimension_numbers = #tpu.dot_dimension_numbers<[1], [0], [0], [1], [0, 0, 1, 1], [], []>} : vector<64x8xf32>, vector<8x8xf32>, vector<64x8xf32> -> vector<64x8xf32>
    %40 = arith.addf %34, %39 : vector<64x8xf32>
    %c8 = arith.constant 8 : index
    %c0_36 = arith.constant 0 : index
    %41 = vector.load %arg14[%c8, %c0_36] : memref<72x8xf32, #tpu.memory_space<vmem>>, vector<8x8xf32>
    %cst_37 = arith.constant dense<0.000000e+00> : vector<64x8xf32>
    %42 = tpu.matmul %23, %41, %cst_37 {dimension_numbers = #tpu.dot_dimension_numbers<[1], [0], [0], [1], [0, 0, 1, 1], [], []>} : vector<64x8xf32>, vector<8x8xf32>, vector<64x8xf32> -> vector<64x8xf32>
    %43 = arith.addf %40, %42 : vector<64x8xf32>
    %c63_i32 = arith.constant 63 : i32
    %44 = tpu.dynamic_rotate %23 by %c63_i32 dim 0 : vector<64x8xf32>, i32 -> vector<64x8xf32>
    %45 = vector.broadcast %29 : vector<64x1xf32> to vector<64x8xf32>
    %46 = arith.mulf %44, %45 : vector<64x8xf32>
    %c16 = arith.constant 16 : index
    %c0_38 = arith.constant 0 : index
    %47 = vector.load %arg14[%c16, %c0_38] : memref<72x8xf32, #tpu.memory_space<vmem>>, vector<8x8xf32>
    %cst_39 = arith.constant dense<0.000000e+00> : vector<64x8xf32>
    %48 = tpu.matmul %46, %47, %cst_39 {dimension_numbers = #tpu.dot_dimension_numbers<[1], [0], [0], [1], [0, 0, 1, 1], [], []>} : vector<64x8xf32>, vector<8x8xf32>, vector<64x8xf32> -> vector<64x8xf32>
    %49 = arith.addf %43, %48 : vector<64x8xf32>
    %c1_i32_40 = arith.constant 1 : i32
    %50 = tpu.dynamic_rotate %19 by %c1_i32_40 dim 0 : vector<64x8xf32>, i32 -> vector<64x8xf32>
    %51 = vector.broadcast %28 : vector<64x1xf32> to vector<64x8xf32>
    %52 = arith.mulf %50, %51 : vector<64x8xf32>
    %c24 = arith.constant 24 : index
    %c0_41 = arith.constant 0 : index
    %53 = vector.load %arg14[%c24, %c0_41] : memref<72x8xf32, #tpu.memory_space<vmem>>, vector<8x8xf32>
    %cst_42 = arith.constant dense<0.000000e+00> : vector<64x8xf32>
    %54 = tpu.matmul %52, %53, %cst_42 {dimension_numbers = #tpu.dot_dimension_numbers<[1], [0], [0], [1], [0, 0, 1, 1], [], []>} : vector<64x8xf32>, vector<8x8xf32>, vector<64x8xf32> -> vector<64x8xf32>
    %55 = arith.addf %49, %54 : vector<64x8xf32>
    %c32 = arith.constant 32 : index
    %c0_43 = arith.constant 0 : index
    %56 = vector.load %arg14[%c32, %c0_43] : memref<72x8xf32, #tpu.memory_space<vmem>>, vector<8x8xf32>
    %cst_44 = arith.constant dense<0.000000e+00> : vector<64x8xf32>
    %57 = tpu.matmul %19, %56, %cst_44 {dimension_numbers = #tpu.dot_dimension_numbers<[1], [0], [0], [1], [0, 0, 1, 1], [], []>} : vector<64x8xf32>, vector<8x8xf32>, vector<64x8xf32> -> vector<64x8xf32>
    %58 = arith.addf %55, %57 : vector<64x8xf32>
    %c63_i32_45 = arith.constant 63 : i32
    %59 = tpu.dynamic_rotate %19 by %c63_i32_45 dim 0 : vector<64x8xf32>, i32 -> vector<64x8xf32>
    %60 = vector.broadcast %29 : vector<64x1xf32> to vector<64x8xf32>
    %61 = arith.mulf %59, %60 : vector<64x8xf32>
    %c40 = arith.constant 40 : index
    %c0_46 = arith.constant 0 : index
    %62 = vector.load %arg14[%c40, %c0_46] : memref<72x8xf32, #tpu.memory_space<vmem>>, vector<8x8xf32>
    %cst_47 = arith.constant dense<0.000000e+00> : vector<64x8xf32>
    %63 = tpu.matmul %61, %62, %cst_47 {dimension_numbers = #tpu.dot_dimension_numbers<[1], [0], [0], [1], [0, 0, 1, 1], [], []>} : vector<64x8xf32>, vector<8x8xf32>, vector<64x8xf32> -> vector<64x8xf32>
    %64 = arith.addf %58, %63 : vector<64x8xf32>
    %c1_i32_48 = arith.constant 1 : i32
    %65 = tpu.dynamic_rotate %27 by %c1_i32_48 dim 0 : vector<64x8xf32>, i32 -> vector<64x8xf32>
    %66 = vector.broadcast %28 : vector<64x1xf32> to vector<64x8xf32>
    %67 = arith.mulf %65, %66 : vector<64x8xf32>
    %c48 = arith.constant 48 : index
    %c0_49 = arith.constant 0 : index
    %68 = vector.load %arg14[%c48, %c0_49] : memref<72x8xf32, #tpu.memory_space<vmem>>, vector<8x8xf32>
    %cst_50 = arith.constant dense<0.000000e+00> : vector<64x8xf32>
    %69 = tpu.matmul %67, %68, %cst_50 {dimension_numbers = #tpu.dot_dimension_numbers<[1], [0], [0], [1], [0, 0, 1, 1], [], []>} : vector<64x8xf32>, vector<8x8xf32>, vector<64x8xf32> -> vector<64x8xf32>
    %70 = arith.addf %64, %69 : vector<64x8xf32>
    %c56 = arith.constant 56 : index
    %c0_51 = arith.constant 0 : index
    %71 = vector.load %arg14[%c56, %c0_51] : memref<72x8xf32, #tpu.memory_space<vmem>>, vector<8x8xf32>
    %cst_52 = arith.constant dense<0.000000e+00> : vector<64x8xf32>
    %72 = tpu.matmul %27, %71, %cst_52 {dimension_numbers = #tpu.dot_dimension_numbers<[1], [0], [0], [1], [0, 0, 1, 1], [], []>} : vector<64x8xf32>, vector<8x8xf32>, vector<64x8xf32> -> vector<64x8xf32>
    %73 = arith.addf %70, %72 : vector<64x8xf32>
    %c63_i32_53 = arith.constant 63 : i32
    %74 = tpu.dynamic_rotate %27 by %c63_i32_53 dim 0 : vector<64x8xf32>, i32 -> vector<64x8xf32>
    %75 = vector.broadcast %29 : vector<64x1xf32> to vector<64x8xf32>
    %76 = arith.mulf %74, %75 : vector<64x8xf32>
    %c64 = arith.constant 64 : index
    %c0_54 = arith.constant 0 : index
    %77 = vector.load %arg14[%c64, %c0_54] : memref<72x8xf32, #tpu.memory_space<vmem>>, vector<8x8xf32>
    %cst_55 = arith.constant dense<0.000000e+00> : vector<64x8xf32>
    %78 = tpu.matmul %76, %77, %cst_55 {dimension_numbers = #tpu.dot_dimension_numbers<[1], [0], [0], [1], [0, 0, 1, 1], [], []>} : vector<64x8xf32>, vector<8x8xf32>, vector<64x8xf32> -> vector<64x8xf32>
    %79 = arith.addf %73, %78 : vector<64x8xf32>
    %cst_56 = arith.constant 0.000000e+00 : f32
    %80 = vector.broadcast %cst_56 : f32 to vector<64x8xf32>
    %81 = arith.maximumf %79, %80 : vector<64x8xf32>
    %82 = arith.addf %11, %81 : vector<64x8xf32>
    %c0_57 = arith.constant 0 : index
    %c0_58 = arith.constant 0 : index
    %c0_59 = arith.constant 0 : index
    %83 = vector.load %arg17[%c0_57, %c0_58, %c0_59] : memref<1x64x8xf32, #tpu.memory_space<vmem>>, vector<1x64x8xf32>
    %84 = vector.shape_cast %83 : vector<1x64x8xf32> to vector<64x8xf32>
    %85 = vector.shape_cast %82 : vector<64x8xf32> to vector<1x64x8xf32>
    tpu.vector_store %arg17[%c0_57, %c0_58, %c0_59], %85 {strides = array<i32>} : memref<1x64x8xf32, #tpu.memory_space<vmem>>, vector<1x64x8xf32>,
    return
  }
  func.func @transform_0(%arg0: i32, %arg1: i32) -> (i32, i32, i32) {
    %c0_i32 = arith.constant 0 : i32
    %c0_i32_0 = arith.constant 0 : i32
    return %arg0, %arg1, %c0_i32 : i32, i32, i32
  }
  func.func @transform_1(%arg0: i32, %arg1: i32) -> (i32, i32, i32) {
    %c0_i32 = arith.constant 0 : i32
    %c0_i32_0 = arith.constant 0 : i32
    return %arg0, %arg1, %c0_i32 : i32, i32, i32
  }
  func.func @transform_2(%arg0: i32, %arg1: i32) -> (i32, i32) {
    %c0_i32 = arith.constant 0 : i32
    %c0_i32_0 = arith.constant 0 : i32
    %c0_i32_1 = arith.constant 0 : i32
    return %c0_i32, %c0_i32_0 : i32, i32
  }
  func.func @transform_3(%arg0: i32, %arg1: i32) -> (i32, i32) {
    %c0_i32 = arith.constant 0 : i32
    %c0_i32_0 = arith.constant 0 : i32
    %c0_i32_1 = arith.constant 0 : i32
    return %c0_i32, %c0_i32_0 : i32, i32
  }
  func.func @transform_4(%arg0: i32, %arg1: i32) -> (i32, i32) {
    %c0_i32 = arith.constant 0 : i32
    %c0_i32_0 = arith.constant 0 : i32
    %c0_i32_1 = arith.constant 0 : i32
    return %c0_i32, %c0_i32_0 : i32, i32
  }
  func.func @transform_5(%arg0: i32, %arg1: i32) -> (i32, i32) {
    %c0_i32 = arith.constant 0 : i32
    %c0_i32_0 = arith.constant 0 : i32
    %c0_i32_1 = arith.constant 0 : i32
    return %c0_i32, %c0_i32_0 : i32, i32
  }
  func.func @transform_6(%arg0: i32, %arg1: i32) -> (i32, i32) {
    %c0_i32 = arith.constant 0 : i32
    %c0_i32_0 = arith.constant 0 : i32
    %c0_i32_1 = arith.constant 0 : i32
    return %c0_i32, %c0_i32_0 : i32, i32
  }
  func.func @transform_7(%arg0: i32, %arg1: i32) -> (i32, i32) {
    %c0_i32 = arith.constant 0 : i32
    %c0_i32_0 = arith.constant 0 : i32
    %c0_i32_1 = arith.constant 0 : i32
    return %c0_i32, %c0_i32_0 : i32, i32
  }
  func.func @transform_8(%arg0: i32, %arg1: i32) -> (i32, i32) {
    %c0_i32 = arith.constant 0 : i32
    %c0_i32_0 = arith.constant 0 : i32
    %c0_i32_1 = arith.constant 0 : i32
    return %c0_i32, %c0_i32_0 : i32, i32
  }
  func.func @transform_9(%arg0: i32, %arg1: i32) -> (i32, i32) {
    %c0_i32 = arith.constant 0 : i32
    %c0_i32_0 = arith.constant 0 : i32
    %c0_i32_1 = arith.constant 0 : i32
    return %c0_i32, %c0_i32_0 : i32, i32
  }
  func.func @transform_10(%arg0: i32, %arg1: i32) -> (i32, i32) {
    %c0_i32 = arith.constant 0 : i32
    %c0_i32_0 = arith.constant 0 : i32
    %c0_i32_1 = arith.constant 0 : i32
    return %c0_i32, %c0_i32_0 : i32, i32
  }
  func.func @transform_11(%arg0: i32, %arg1: i32) -> (i32, i32) {
    %c0_i32 = arith.constant 0 : i32
    %c0_i32_0 = arith.constant 0 : i32
    %c0_i32_1 = arith.constant 0 : i32
    return %c0_i32, %c0_i32_0 : i32, i32
  }
  func.func @transform_12(%arg0: i32, %arg1: i32) -> (i32, i32) {
    %c0_i32 = arith.constant 0 : i32
    %c0_i32_0 = arith.constant 0 : i32
    %c0_i32_1 = arith.constant 0 : i32
    return %c0_i32, %c0_i32_0 : i32, i32
  }
  func.func @transform_13(%arg0: i32, %arg1: i32) -> (i32, i32) {
    %c0_i32 = arith.constant 0 : i32
    %c0_i32_0 = arith.constant 0 : i32
    %c0_i32_1 = arith.constant 0 : i32
    return %c0_i32, %c0_i32_0 : i32, i32
  }
  func.func @transform_14(%arg0: i32, %arg1: i32) -> (i32, i32) {
    %c0_i32 = arith.constant 0 : i32
    %c0_i32_0 = arith.constant 0 : i32
    %c0_i32_1 = arith.constant 0 : i32
    return %c0_i32, %c0_i32_0 : i32, i32
  }
  func.func @transform_15(%arg0: i32, %arg1: i32) -> (i32, i32, i32) {
    %c0_i32 = arith.constant 0 : i32
    %c0_i32_0 = arith.constant 0 : i32
    return %arg0, %arg1, %c0_i32 : i32, i32, i32
  }
}

module attributes {stable_mosaic.version = 11 : i64} {
  func.func @_conv1x1_kernel(%arg0: i32, %arg1: memref<16x32xf32, #tpu.memory_space<vmem>>, %arg2: memref<32x8xf32, #tpu.memory_space<vmem>>, %arg3: memref<1x8xf32, #tpu.memory_space<vmem>>, %arg4: memref<16x8xf32, #tpu.memory_space<vmem>>) attributes {dimension_semantics = [#tpu.dimension_semantics<parallel>], iteration_bounds = array<i64: 2>, scalar_prefetch = 0 : i64, scratch_operands = 0 : i64, tpu.core_type = #tpu.core_type<tc>, window_params = [{transform_indices = @transform_0, window_bounds = array<i64: 16, 32>}, {pipeline_mode = #tpu.pipeline_mode<synchronous>, transform_indices = @transform_1, window_bounds = array<i64: 32, 8>}, {pipeline_mode = #tpu.pipeline_mode<synchronous>, transform_indices = @transform_2, window_bounds = array<i64: 1, 8>}, {transform_indices = @transform_3, window_bounds = array<i64: 16, 8>}]} {
    %c0 = arith.constant 0 : index
    %c0_0 = arith.constant 0 : index
    %0 = vector.load %arg1[%c0, %c0_0] : memref<16x32xf32, #tpu.memory_space<vmem>>, vector<16x32xf32>
    %c0_1 = arith.constant 0 : index
    %c0_2 = arith.constant 0 : index
    %1 = vector.load %arg2[%c0_1, %c0_2] : memref<32x8xf32, #tpu.memory_space<vmem>>, vector<32x8xf32>
    %cst = arith.constant dense<0.000000e+00> : vector<16x8xf32>
    %2 = tpu.matmul %0, %1, %cst {dimension_numbers = #tpu.dot_dimension_numbers<[1], [0], [0], [1], [0, 0, 1, 1], [], []>} : vector<16x32xf32>, vector<32x8xf32>, vector<16x8xf32> -> vector<16x8xf32>
    %c0_3 = arith.constant 0 : index
    %c0_4 = arith.constant 0 : index
    %3 = vector.load %arg3[%c0_3, %c0_4] : memref<1x8xf32, #tpu.memory_space<vmem>>, vector<1x8xf32>
    %4 = vector.broadcast %3 : vector<1x8xf32> to vector<16x8xf32>
    %5 = arith.addf %2, %4 : vector<16x8xf32>
    %c0_5 = arith.constant 0 : index
    %c0_6 = arith.constant 0 : index
    %6 = vector.load %arg4[%c0_5, %c0_6] : memref<16x8xf32, #tpu.memory_space<vmem>>, vector<16x8xf32>
    tpu.vector_store %arg4[%c0_5, %c0_6], %5 {strides = array<i32>} : memref<16x8xf32, #tpu.memory_space<vmem>>, vector<16x8xf32>,
    return
  }
  func.func @transform_0(%arg0: i32) -> (i32, i32) {
    %c0_i32 = arith.constant 0 : i32
    %c0_i32_0 = arith.constant 0 : i32
    return %arg0, %c0_i32 : i32, i32
  }
  func.func @transform_1(%arg0: i32) -> (i32, i32) {
    %c0_i32 = arith.constant 0 : i32
    %c0_i32_0 = arith.constant 0 : i32
    %c0_i32_1 = arith.constant 0 : i32
    return %c0_i32, %c0_i32_0 : i32, i32
  }
  func.func @transform_2(%arg0: i32) -> (i32, i32) {
    %c0_i32 = arith.constant 0 : i32
    %c0_i32_0 = arith.constant 0 : i32
    %c0_i32_1 = arith.constant 0 : i32
    return %c0_i32, %c0_i32_0 : i32, i32
  }
  func.func @transform_3(%arg0: i32) -> (i32, i32) {
    %c0_i32 = arith.constant 0 : i32
    %c0_i32_0 = arith.constant 0 : i32
    return %arg0, %c0_i32 : i32, i32
  }
}

module attributes {stable_mosaic.version = 11 : i64} {
  func.func @kernel(%arg0: i32, %arg1: i32, %arg2: memref<1x16x8xf32, #tpu.memory_space<vmem>>, %arg3: memref<1x16x8xf32, #tpu.memory_space<vmem>>, %arg4: memref<16x1xf32, #tpu.memory_space<vmem>>, %arg5: memref<16x1xf32, #tpu.memory_space<vmem>>, %arg6: memref<16x1xf32, #tpu.memory_space<vmem>>, %arg7: memref<16x1xf32, #tpu.memory_space<vmem>>, %arg8: memref<8x8xf32, #tpu.memory_space<vmem>>, %arg9: memref<8x8xf32, #tpu.memory_space<vmem>>, %arg10: memref<1x8xf32, #tpu.memory_space<vmem>>, %arg11: memref<8x8xf32, #tpu.memory_space<vmem>>, %arg12: memref<8x8xf32, #tpu.memory_space<vmem>>, %arg13: memref<1x8xf32, #tpu.memory_space<vmem>>, %arg14: memref<72x8xf32, #tpu.memory_space<vmem>>, %arg15: memref<8x8xf32, #tpu.memory_space<vmem>>, %arg16: memref<1x8xf32, #tpu.memory_space<vmem>>, %arg17: memref<1x16x8xf32, #tpu.memory_space<vmem>>) attributes {dimension_semantics = [#tpu.dimension_semantics<parallel>, #tpu.dimension_semantics<parallel>], iteration_bounds = array<i64: 2, 1>, scalar_prefetch = 0 : i64, scratch_operands = 0 : i64, tpu.core_type = #tpu.core_type<tc>, window_params = [{transform_indices = @transform_0, window_bounds = array<i64: 1, 16, 8>}, {transform_indices = @transform_1, window_bounds = array<i64: 1, 16, 8>}, {pipeline_mode = #tpu.pipeline_mode<synchronous>, transform_indices = @transform_2, window_bounds = array<i64: 16, 1>}, {pipeline_mode = #tpu.pipeline_mode<synchronous>, transform_indices = @transform_3, window_bounds = array<i64: 16, 1>}, {pipeline_mode = #tpu.pipeline_mode<synchronous>, transform_indices = @transform_4, window_bounds = array<i64: 16, 1>}, {pipeline_mode = #tpu.pipeline_mode<synchronous>, transform_indices = @transform_5, window_bounds = array<i64: 16, 1>}, {pipeline_mode = #tpu.pipeline_mode<synchronous>, transform_indices = @transform_6, window_bounds = array<i64: 8, 8>}, {pipeline_mode = #tpu.pipeline_mode<synchronous>, transform_indices = @transform_7, window_bounds = array<i64: 8, 8>}, {pipeline_mode = #tpu.pipeline_mode<synchronous>, transform_indices = @transform_8, window_bounds = array<i64: 1, 8>}, {pipeline_mode = #tpu.pipeline_mode<synchronous>, transform_indices = @transform_9, window_bounds = array<i64: 8, 8>}, {pipeline_mode = #tpu.pipeline_mode<synchronous>, transform_indices = @transform_10, window_bounds = array<i64: 8, 8>}, {pipeline_mode = #tpu.pipeline_mode<synchronous>, transform_indices = @transform_11, window_bounds = array<i64: 1, 8>}, {pipeline_mode = #tpu.pipeline_mode<synchronous>, transform_indices = @transform_12, window_bounds = array<i64: 72, 8>}, {pipeline_mode = #tpu.pipeline_mode<synchronous>, transform_indices = @transform_13, window_bounds = array<i64: 8, 8>}, {pipeline_mode = #tpu.pipeline_mode<synchronous>, transform_indices = @transform_14, window_bounds = array<i64: 1, 8>}, {transform_indices = @transform_15, window_bounds = array<i64: 1, 16, 8>}]} {
    %c0 = arith.constant 0 : index
    %c0_0 = arith.constant 0 : index
    %c0_1 = arith.constant 0 : index
    %0 = vector.load %arg2[%c0, %c0_0, %c0_1] : memref<1x16x8xf32, #tpu.memory_space<vmem>>, vector<1x16x8xf32>
    %1 = vector.shape_cast %0 : vector<1x16x8xf32> to vector<16x8xf32>
    %c0_2 = arith.constant 0 : index
    %c0_3 = arith.constant 0 : index
    %c0_4 = arith.constant 0 : index
    %2 = vector.load %arg3[%c0_2, %c0_3, %c0_4] : memref<1x16x8xf32, #tpu.memory_space<vmem>>, vector<1x16x8xf32>
    %3 = vector.shape_cast %2 : vector<1x16x8xf32> to vector<16x8xf32>
    %c0_5 = arith.constant 0 : index
    %c0_6 = arith.constant 0 : index
    %4 = vector.load %arg8[%c0_5, %c0_6] : memref<8x8xf32, #tpu.memory_space<vmem>>, vector<8x8xf32>
    %cst = arith.constant dense<0.000000e+00> : vector<16x8xf32>
    %5 = tpu.matmul %1, %4, %cst {dimension_numbers = #tpu.dot_dimension_numbers<[1], [0], [0], [1], [0, 0, 1, 1], [], []>} : vector<16x8xf32>, vector<8x8xf32>, vector<16x8xf32> -> vector<16x8xf32>
    %c0_7 = arith.constant 0 : index
    %c0_8 = arith.constant 0 : index
    %6 = vector.load %arg9[%c0_7, %c0_8] : memref<8x8xf32, #tpu.memory_space<vmem>>, vector<8x8xf32>
    %cst_9 = arith.constant dense<0.000000e+00> : vector<16x8xf32>
    %7 = tpu.matmul %3, %6, %cst_9 {dimension_numbers = #tpu.dot_dimension_numbers<[1], [0], [0], [1], [0, 0, 1, 1], [], []>} : vector<16x8xf32>, vector<8x8xf32>, vector<16x8xf32> -> vector<16x8xf32>
    %8 = arith.addf %5, %7 : vector<16x8xf32>
    %c0_10 = arith.constant 0 : index
    %c0_11 = arith.constant 0 : index
    %9 = vector.load %arg10[%c0_10, %c0_11] : memref<1x8xf32, #tpu.memory_space<vmem>>, vector<1x8xf32>
    %10 = vector.broadcast %9 : vector<1x8xf32> to vector<16x8xf32>
    %11 = arith.addf %8, %10 : vector<16x8xf32>
    %c0_12 = arith.constant 0 : index
    %c0_13 = arith.constant 0 : index
    %12 = vector.load %arg11[%c0_12, %c0_13] : memref<8x8xf32, #tpu.memory_space<vmem>>, vector<8x8xf32>
    %cst_14 = arith.constant dense<0.000000e+00> : vector<16x8xf32>
    %13 = tpu.matmul %1, %12, %cst_14 {dimension_numbers = #tpu.dot_dimension_numbers<[1], [0], [0], [1], [0, 0, 1, 1], [], []>} : vector<16x8xf32>, vector<8x8xf32>, vector<16x8xf32> -> vector<16x8xf32>
    %c0_15 = arith.constant 0 : index
    %c0_16 = arith.constant 0 : index
    %14 = vector.load %arg12[%c0_15, %c0_16] : memref<8x8xf32, #tpu.memory_space<vmem>>, vector<8x8xf32>
    %cst_17 = arith.constant dense<0.000000e+00> : vector<16x8xf32>
    %15 = tpu.matmul %3, %14, %cst_17 {dimension_numbers = #tpu.dot_dimension_numbers<[1], [0], [0], [1], [0, 0, 1, 1], [], []>} : vector<16x8xf32>, vector<8x8xf32>, vector<16x8xf32> -> vector<16x8xf32>
    %16 = arith.addf %13, %15 : vector<16x8xf32>
    %c0_18 = arith.constant 0 : index
    %c0_19 = arith.constant 0 : index
    %17 = vector.load %arg13[%c0_18, %c0_19] : memref<1x8xf32, #tpu.memory_space<vmem>>, vector<1x8xf32>
    %18 = vector.broadcast %17 : vector<1x8xf32> to vector<16x8xf32>
    %19 = arith.addf %16, %18 : vector<16x8xf32>
    %c4_i32 = arith.constant 4 : i32
    %20 = tpu.dynamic_rotate %19 by %c4_i32 dim 0 : vector<16x8xf32>, i32 -> vector<16x8xf32>
    %c0_20 = arith.constant 0 : index
    %c0_21 = arith.constant 0 : index
    %21 = vector.load %arg6[%c0_20, %c0_21] : memref<16x1xf32, #tpu.memory_space<vmem>>, vector<16x1xf32>
    %22 = vector.broadcast %21 : vector<16x1xf32> to vector<16x8xf32>
    %23 = arith.mulf %20, %22 : vector<16x8xf32>
    %c12_i32 = arith.constant 12 : i32
    %24 = tpu.dynamic_rotate %19 by %c12_i32 dim 0 : vector<16x8xf32>, i32 -> vector<16x8xf32>
    %c0_22 = arith.constant 0 : index
    %c0_23 = arith.constant 0 : index
    %25 = vector.load %arg7[%c0_22, %c0_23] : memref<16x1xf32, #tpu.memory_space<vmem>>, vector<16x1xf32>
    %26 = vector.broadcast %25 : vector<16x1xf32> to vector<16x8xf32>
    %27 = arith.mulf %24, %26 : vector<16x8xf32>
    %c0_24 = arith.constant 0 : index
    %c0_25 = arith.constant 0 : index
    %28 = vector.load %arg4[%c0_24, %c0_25] : memref<16x1xf32, #tpu.memory_space<vmem>>, vector<16x1xf32>
    %c0_26 = arith.constant 0 : index
    %c0_27 = arith.constant 0 : index
    %29 = vector.load %arg5[%c0_26, %c0_27] : memref<16x1xf32, #tpu.memory_space<vmem>>, vector<16x1xf32>
    %c0_28 = arith.constant 0 : index
    %c0_29 = arith.constant 0 : index
    %30 = vector.load %arg15[%c0_28, %c0_29] : memref<8x8xf32, #tpu.memory_space<vmem>>, vector<8x8xf32>
    %cst_30 = arith.constant dense<0.000000e+00> : vector<16x8xf32>
    %31 = tpu.matmul %19, %30, %cst_30 {dimension_numbers = #tpu.dot_dimension_numbers<[1], [0], [0], [1], [0, 0, 1, 1], [], []>} : vector<16x8xf32>, vector<8x8xf32>, vector<16x8xf32> -> vector<16x8xf32>
    %c0_31 = arith.constant 0 : index
    %c0_32 = arith.constant 0 : index
    %32 = vector.load %arg16[%c0_31, %c0_32] : memref<1x8xf32, #tpu.memory_space<vmem>>, vector<1x8xf32>
    %33 = vector.broadcast %32 : vector<1x8xf32> to vector<16x8xf32>
    %34 = arith.addf %31, %33 : vector<16x8xf32>
    %c1_i32 = arith.constant 1 : i32
    %35 = tpu.dynamic_rotate %23 by %c1_i32 dim 0 : vector<16x8xf32>, i32 -> vector<16x8xf32>
    %36 = vector.broadcast %28 : vector<16x1xf32> to vector<16x8xf32>
    %37 = arith.mulf %35, %36 : vector<16x8xf32>
    %c0_33 = arith.constant 0 : index
    %c0_34 = arith.constant 0 : index
    %38 = vector.load %arg14[%c0_33, %c0_34] : memref<72x8xf32, #tpu.memory_space<vmem>>, vector<8x8xf32>
    %cst_35 = arith.constant dense<0.000000e+00> : vector<16x8xf32>
    %39 = tpu.matmul %37, %38, %cst_35 {dimension_numbers = #tpu.dot_dimension_numbers<[1], [0], [0], [1], [0, 0, 1, 1], [], []>} : vector<16x8xf32>, vector<8x8xf32>, vector<16x8xf32> -> vector<16x8xf32>
    %40 = arith.addf %34, %39 : vector<16x8xf32>
    %c8 = arith.constant 8 : index
    %c0_36 = arith.constant 0 : index
    %41 = vector.load %arg14[%c8, %c0_36] : memref<72x8xf32, #tpu.memory_space<vmem>>, vector<8x8xf32>
    %cst_37 = arith.constant dense<0.000000e+00> : vector<16x8xf32>
    %42 = tpu.matmul %23, %41, %cst_37 {dimension_numbers = #tpu.dot_dimension_numbers<[1], [0], [0], [1], [0, 0, 1, 1], [], []>} : vector<16x8xf32>, vector<8x8xf32>, vector<16x8xf32> -> vector<16x8xf32>
    %43 = arith.addf %40, %42 : vector<16x8xf32>
    %c15_i32 = arith.constant 15 : i32
    %44 = tpu.dynamic_rotate %23 by %c15_i32 dim 0 : vector<16x8xf32>, i32 -> vector<16x8xf32>
    %45 = vector.broadcast %29 : vector<16x1xf32> to vector<16x8xf32>
    %46 = arith.mulf %44, %45 : vector<16x8xf32>
    %c16 = arith.constant 16 : index
    %c0_38 = arith.constant 0 : index
    %47 = vector.load %arg14[%c16, %c0_38] : memref<72x8xf32, #tpu.memory_space<vmem>>, vector<8x8xf32>
    %cst_39 = arith.constant dense<0.000000e+00> : vector<16x8xf32>
    %48 = tpu.matmul %46, %47, %cst_39 {dimension_numbers = #tpu.dot_dimension_numbers<[1], [0], [0], [1], [0, 0, 1, 1], [], []>} : vector<16x8xf32>, vector<8x8xf32>, vector<16x8xf32> -> vector<16x8xf32>
    %49 = arith.addf %43, %48 : vector<16x8xf32>
    %c1_i32_40 = arith.constant 1 : i32
    %50 = tpu.dynamic_rotate %19 by %c1_i32_40 dim 0 : vector<16x8xf32>, i32 -> vector<16x8xf32>
    %51 = vector.broadcast %28 : vector<16x1xf32> to vector<16x8xf32>
    %52 = arith.mulf %50, %51 : vector<16x8xf32>
    %c24 = arith.constant 24 : index
    %c0_41 = arith.constant 0 : index
    %53 = vector.load %arg14[%c24, %c0_41] : memref<72x8xf32, #tpu.memory_space<vmem>>, vector<8x8xf32>
    %cst_42 = arith.constant dense<0.000000e+00> : vector<16x8xf32>
    %54 = tpu.matmul %52, %53, %cst_42 {dimension_numbers = #tpu.dot_dimension_numbers<[1], [0], [0], [1], [0, 0, 1, 1], [], []>} : vector<16x8xf32>, vector<8x8xf32>, vector<16x8xf32> -> vector<16x8xf32>
    %55 = arith.addf %49, %54 : vector<16x8xf32>
    %c32 = arith.constant 32 : index
    %c0_43 = arith.constant 0 : index
    %56 = vector.load %arg14[%c32, %c0_43] : memref<72x8xf32, #tpu.memory_space<vmem>>, vector<8x8xf32>
    %cst_44 = arith.constant dense<0.000000e+00> : vector<16x8xf32>
    %57 = tpu.matmul %19, %56, %cst_44 {dimension_numbers = #tpu.dot_dimension_numbers<[1], [0], [0], [1], [0, 0, 1, 1], [], []>} : vector<16x8xf32>, vector<8x8xf32>, vector<16x8xf32> -> vector<16x8xf32>
    %58 = arith.addf %55, %57 : vector<16x8xf32>
    %c15_i32_45 = arith.constant 15 : i32
    %59 = tpu.dynamic_rotate %19 by %c15_i32_45 dim 0 : vector<16x8xf32>, i32 -> vector<16x8xf32>
    %60 = vector.broadcast %29 : vector<16x1xf32> to vector<16x8xf32>
    %61 = arith.mulf %59, %60 : vector<16x8xf32>
    %c40 = arith.constant 40 : index
    %c0_46 = arith.constant 0 : index
    %62 = vector.load %arg14[%c40, %c0_46] : memref<72x8xf32, #tpu.memory_space<vmem>>, vector<8x8xf32>
    %cst_47 = arith.constant dense<0.000000e+00> : vector<16x8xf32>
    %63 = tpu.matmul %61, %62, %cst_47 {dimension_numbers = #tpu.dot_dimension_numbers<[1], [0], [0], [1], [0, 0, 1, 1], [], []>} : vector<16x8xf32>, vector<8x8xf32>, vector<16x8xf32> -> vector<16x8xf32>
    %64 = arith.addf %58, %63 : vector<16x8xf32>
    %c1_i32_48 = arith.constant 1 : i32
    %65 = tpu.dynamic_rotate %27 by %c1_i32_48 dim 0 : vector<16x8xf32>, i32 -> vector<16x8xf32>
    %66 = vector.broadcast %28 : vector<16x1xf32> to vector<16x8xf32>
    %67 = arith.mulf %65, %66 : vector<16x8xf32>
    %c48 = arith.constant 48 : index
    %c0_49 = arith.constant 0 : index
    %68 = vector.load %arg14[%c48, %c0_49] : memref<72x8xf32, #tpu.memory_space<vmem>>, vector<8x8xf32>
    %cst_50 = arith.constant dense<0.000000e+00> : vector<16x8xf32>
    %69 = tpu.matmul %67, %68, %cst_50 {dimension_numbers = #tpu.dot_dimension_numbers<[1], [0], [0], [1], [0, 0, 1, 1], [], []>} : vector<16x8xf32>, vector<8x8xf32>, vector<16x8xf32> -> vector<16x8xf32>
    %70 = arith.addf %64, %69 : vector<16x8xf32>
    %c56 = arith.constant 56 : index
    %c0_51 = arith.constant 0 : index
    %71 = vector.load %arg14[%c56, %c0_51] : memref<72x8xf32, #tpu.memory_space<vmem>>, vector<8x8xf32>
    %cst_52 = arith.constant dense<0.000000e+00> : vector<16x8xf32>
    %72 = tpu.matmul %27, %71, %cst_52 {dimension_numbers = #tpu.dot_dimension_numbers<[1], [0], [0], [1], [0, 0, 1, 1], [], []>} : vector<16x8xf32>, vector<8x8xf32>, vector<16x8xf32> -> vector<16x8xf32>
    %73 = arith.addf %70, %72 : vector<16x8xf32>
    %c15_i32_53 = arith.constant 15 : i32
    %74 = tpu.dynamic_rotate %27 by %c15_i32_53 dim 0 : vector<16x8xf32>, i32 -> vector<16x8xf32>
    %75 = vector.broadcast %29 : vector<16x1xf32> to vector<16x8xf32>
    %76 = arith.mulf %74, %75 : vector<16x8xf32>
    %c64 = arith.constant 64 : index
    %c0_54 = arith.constant 0 : index
    %77 = vector.load %arg14[%c64, %c0_54] : memref<72x8xf32, #tpu.memory_space<vmem>>, vector<8x8xf32>
    %cst_55 = arith.constant dense<0.000000e+00> : vector<16x8xf32>
    %78 = tpu.matmul %76, %77, %cst_55 {dimension_numbers = #tpu.dot_dimension_numbers<[1], [0], [0], [1], [0, 0, 1, 1], [], []>} : vector<16x8xf32>, vector<8x8xf32>, vector<16x8xf32> -> vector<16x8xf32>
    %79 = arith.addf %73, %78 : vector<16x8xf32>
    %cst_56 = arith.constant 0.000000e+00 : f32
    %80 = vector.broadcast %cst_56 : f32 to vector<16x8xf32>
    %81 = arith.maximumf %79, %80 : vector<16x8xf32>
    %82 = arith.addf %11, %81 : vector<16x8xf32>
    %c0_57 = arith.constant 0 : index
    %c0_58 = arith.constant 0 : index
    %c0_59 = arith.constant 0 : index
    %83 = vector.load %arg17[%c0_57, %c0_58, %c0_59] : memref<1x16x8xf32, #tpu.memory_space<vmem>>, vector<1x16x8xf32>
    %84 = vector.shape_cast %83 : vector<1x16x8xf32> to vector<16x8xf32>
    %85 = vector.shape_cast %82 : vector<16x8xf32> to vector<1x16x8xf32>
    tpu.vector_store %arg17[%c0_57, %c0_58, %c0_59], %85 {strides = array<i32>} : memref<1x16x8xf32, #tpu.memory_space<vmem>>, vector<1x16x8xf32>,
    return
  }
  func.func @transform_0(%arg0: i32, %arg1: i32) -> (i32, i32, i32) {
    %c0_i32 = arith.constant 0 : i32
    %c0_i32_0 = arith.constant 0 : i32
    return %arg0, %arg1, %c0_i32 : i32, i32, i32
  }
  func.func @transform_1(%arg0: i32, %arg1: i32) -> (i32, i32, i32) {
    %c0_i32 = arith.constant 0 : i32
    %c0_i32_0 = arith.constant 0 : i32
    return %arg0, %arg1, %c0_i32 : i32, i32, i32
  }
  func.func @transform_2(%arg0: i32, %arg1: i32) -> (i32, i32) {
    %c0_i32 = arith.constant 0 : i32
    %c0_i32_0 = arith.constant 0 : i32
    %c0_i32_1 = arith.constant 0 : i32
    return %c0_i32, %c0_i32_0 : i32, i32
  }
  func.func @transform_3(%arg0: i32, %arg1: i32) -> (i32, i32) {
    %c0_i32 = arith.constant 0 : i32
    %c0_i32_0 = arith.constant 0 : i32
    %c0_i32_1 = arith.constant 0 : i32
    return %c0_i32, %c0_i32_0 : i32, i32
  }
  func.func @transform_4(%arg0: i32, %arg1: i32) -> (i32, i32) {
    %c0_i32 = arith.constant 0 : i32
    %c0_i32_0 = arith.constant 0 : i32
    %c0_i32_1 = arith.constant 0 : i32
    return %c0_i32, %c0_i32_0 : i32, i32
  }
  func.func @transform_5(%arg0: i32, %arg1: i32) -> (i32, i32) {
    %c0_i32 = arith.constant 0 : i32
    %c0_i32_0 = arith.constant 0 : i32
    %c0_i32_1 = arith.constant 0 : i32
    return %c0_i32, %c0_i32_0 : i32, i32
  }
  func.func @transform_6(%arg0: i32, %arg1: i32) -> (i32, i32) {
    %c0_i32 = arith.constant 0 : i32
    %c0_i32_0 = arith.constant 0 : i32
    %c0_i32_1 = arith.constant 0 : i32
    return %c0_i32, %c0_i32_0 : i32, i32
  }
  func.func @transform_7(%arg0: i32, %arg1: i32) -> (i32, i32) {
    %c0_i32 = arith.constant 0 : i32
    %c0_i32_0 = arith.constant 0 : i32
    %c0_i32_1 = arith.constant 0 : i32
    return %c0_i32, %c0_i32_0 : i32, i32
  }
  func.func @transform_8(%arg0: i32, %arg1: i32) -> (i32, i32) {
    %c0_i32 = arith.constant 0 : i32
    %c0_i32_0 = arith.constant 0 : i32
    %c0_i32_1 = arith.constant 0 : i32
    return %c0_i32, %c0_i32_0 : i32, i32
  }
  func.func @transform_9(%arg0: i32, %arg1: i32) -> (i32, i32) {
    %c0_i32 = arith.constant 0 : i32
    %c0_i32_0 = arith.constant 0 : i32
    %c0_i32_1 = arith.constant 0 : i32
    return %c0_i32, %c0_i32_0 : i32, i32
  }
  func.func @transform_10(%arg0: i32, %arg1: i32) -> (i32, i32) {
    %c0_i32 = arith.constant 0 : i32
    %c0_i32_0 = arith.constant 0 : i32
    %c0_i32_1 = arith.constant 0 : i32
    return %c0_i32, %c0_i32_0 : i32, i32
  }
  func.func @transform_11(%arg0: i32, %arg1: i32) -> (i32, i32) {
    %c0_i32 = arith.constant 0 : i32
    %c0_i32_0 = arith.constant 0 : i32
    %c0_i32_1 = arith.constant 0 : i32
    return %c0_i32, %c0_i32_0 : i32, i32
  }
  func.func @transform_12(%arg0: i32, %arg1: i32) -> (i32, i32) {
    %c0_i32 = arith.constant 0 : i32
    %c0_i32_0 = arith.constant 0 : i32
    %c0_i32_1 = arith.constant 0 : i32
    return %c0_i32, %c0_i32_0 : i32, i32
  }
  func.func @transform_13(%arg0: i32, %arg1: i32) -> (i32, i32) {
    %c0_i32 = arith.constant 0 : i32
    %c0_i32_0 = arith.constant 0 : i32
    %c0_i32_1 = arith.constant 0 : i32
    return %c0_i32, %c0_i32_0 : i32, i32
  }
  func.func @transform_14(%arg0: i32, %arg1: i32) -> (i32, i32) {
    %c0_i32 = arith.constant 0 : i32
    %c0_i32_0 = arith.constant 0 : i32
    %c0_i32_1 = arith.constant 0 : i32
    return %c0_i32, %c0_i32_0 : i32, i32
  }
  func.func @transform_15(%arg0: i32, %arg1: i32) -> (i32, i32, i32) {
    %c0_i32 = arith.constant 0 : i32
    %c0_i32_0 = arith.constant 0 : i32
    return %arg0, %arg1, %c0_i32 : i32, i32, i32
  }
}

</mosaic_0001>

<bundles_post_ra>
// kernel: ccfm_forward.7
= control target key start
LH: loop header
LB: loop body
LE: loop exit
PB: predicated region body
PF: predicated region fallthrough
CT: control target
= control target key end

     0   :  { %s382_s12 = smov 0   ;;  %s405_s0 = inlined_call_operand.vmem [shape: f32[32,8], index: 0, kind: input, shape index: {}]   ;;  %s406_s1 = inlined_call_operand.vmem [shape: f32[8,8], index: 1, kind: input, shape index: {}]   ;;  %s407_s2 = inlined_call_operand.vmem [shape: f32[1,8], index: 2, kind: input, shape index: {}]   ;;  %s408_s3 = inlined_call_operand.vmem [shape: f32[32,8], index: 3, kind: output, shape index: {}]  }
   0x1 LB: > { %s324_s13 = sadd.s32 4294967295, %s360_s12   ;;  %p328_p0 = scmp.ge.s32.totalorder %s360_s12, 1  ;;  %s360_s12 = sphi %s382_s12, %s13_s12  }
   0x2   : > { %p138_p1 = scmp.lt.s32.totalorder %s360_s12, 3 }
   0x4   : > { %p139_p2 = pnand %p328_p0, %p138_p1 }
   0x5   : > { %s329_s16 = sshll.u32 (!%p139_p2), %s324_s13, 1 }
   0x6   : > { %142 = sbr.rel (%p139_p2) target bundleno = 214 (0xd6), region = 32  ;;  %p163_p3 = scmp.lt.s32.totalorder (!%p139_p2), %s329_s16, 3 }
   0xb   : > { %v176_v0 = vld [vmem:[%s406_s1] sm:$0xff]  ;;  %s410_s16 = smov (!%p163_p3, %s329_s16), 3  ;;  %vm184_vm0 = vcmask 64512  }
   0xc   : > { %341 = vmatprep.subr.mxu0 %v176_v0  ;;  %s330_s17 = sshll.u32 %s410_s16, 3  ;;  %v333_v4 = vld [vmem:[%s407_s2] ss:$0 sm:$0xff] }
   0xd   : > { %342 = vmatpush3.msra.mxu0 %v176_v0  ;;  %s166_s20 = scalar_lea.vmem %s405_s0, %s330_s17  ;;  %s172_s25 = scalar_lea.vmem %s408_s3, %s330_s17 }
   0xe   : > { %v174_v1 = vld [vmem:[%s166_s20] sm:$0xff]  ;;  %v175_v2 = vld [vmem:[%s166_s20 + $0x8] sm:$0xff] }
   0xf   : > { %343 = vmatprep.mubr.msk.f32.mxu0 %vm184_vm0, %v174_v1 }
  0x10   : > { %344 = vmatmul.mubr.msk.f32.vlgmr.msra.gmra.mxu0 %vm184_vm0, %v175_v2 }
  0xd0   : > { %v345_v3 = vpop.f32.mrf.mxu0 }
  0xd1   : > { %v263_v7 = vadd.f32 %v345_v3, %v333_v4 }
  0xd2   : > { %v257_v5 = vpop.f32.mrf.mxu0 }
  0xd3   : > { %v258_v6 = vadd.f32 %v333_v4, %v257_v5  ;;  %267 = vst.msk [vmem:[%s172_s25 + $0x8] sm:$0xff] %vm184_vm0, %v263_v7 }
  0xd5   : > { %266 = vst.msk [vmem:[%s172_s25] sm:$0xff] %vm184_vm0, %v258_v6 }
  0xd6 PF: > { %s13_s12 = sadd.s32 1, %s360_s12  }
  0xd7   : > { %p10_p4 = scmp.ge.s32.totalorder %s13_s12, 4  }
  0xd9   :  { %12 = sbr.rel (!%p10_p4) target bundleno = 1 (0x1), region = 62 }

// kernel: ccfm_forward.10
= control target key start
LH: loop header
LB: loop body
LE: loop exit
PB: predicated region body
PF: predicated region fallthrough
CT: control target
= control target key end

     0   :  { %s484_s12 = smov 0   ;;  %s535_s0 = inlined_call_operand.vmem [shape: f32[128,32], index: 0, kind: input, shape index: {}]   ;;  %s536_s1 = inlined_call_operand.vmem [shape: f32[32,8], index: 1, kind: input, shape index: {}]   ;;  %s537_s2 = inlined_call_operand.vmem [shape: f32[1,8], index: 2, kind: input, shape index: {}]   ;;  %s538_s3 = inlined_call_operand.vmem [shape: f32[128,8], index: 3, kind: output, shape index: {}]  }
   0x1 LB: > { %s388_s13 = sadd.s32 4294967295, %s462_s12   ;;  %p392_p0 = scmp.ge.s32.totalorder %s462_s12, 1  ;;  %s462_s12 = sphi %s484_s12, %s13_s12  }
   0x2   : > { %p138_p1 = scmp.lt.s32.totalorder %s462_s12, 3 }
   0x4   : > { %p139_p2 = pnand %p392_p0, %p138_p1 }
   0x5   : > { %s393_s18 = sshll.u32 (!%p139_p2), %s388_s13, 3 }
   0x6   : > { %142 = sbr.rel (%p139_p2) target bundleno = 223 (0xdf), region = 32  ;;  %p163_p3 = scmp.lt.s32.totalorder (!%p139_p2), %s393_s18, 15 }
   0xb   : > { %v185_v0 = vld [vmem:[%s536_s1 + $0x18] sm:$0xff]  ;;  %v184_v1 = vld [vmem:[%s536_s1 + $0x10] sm:$0xff]  ;;  %v183_v2 = vld [vmem:[%s536_s1 + $0x8] sm:$0xff]  ;;  %s540_s18 = smov (!%p163_p3, %s393_s18), 15  ;;  %vm193_vm0 = vcmask 261120   ;;  %vm323_vm1 = vcmask 64512  }
   0xc   : > { %420 = vmatprep.subr.mxu0 %v185_v0  ;;  %440 = vmatprep.subr.mxu1 %v185_v0  ;;  %v182_v3 = vld [vmem:[%s536_s1] sm:$0xff]  ;;  %s394_s23 = sshll.u32 %s540_s18, 3 }
   0xd   : > { %421 = vmatpush3.msra.mxu0 %v185_v0  ;;  %444 = vmatpush3.msra.mxu1 %v185_v0  ;;  %s166_s26 = scalar_lea.vmem %s535_s0, %s394_s23  ;;  %v397_v12 = vld [vmem:[%s537_s2] ss:$0 sm:$0xff]  ;;  %s172_s4 = scalar_lea.vmem %s538_s3, %s394_s23 }
   0xe   : > { %422 = vmatprep.subr.mxu0 %v184_v1  ;;  %441 = vmatprep.subr.mxu1 %v184_v1  ;;  %v174_v4 = vld [vmem:[%s166_s26] sm:$0xff]  ;;  %v175_v6 = vld [vmem:[%s166_s26 + $0x8] sm:$0xff]  ;;  %v176_v8 = vld [vmem:[%s166_s26 + $0x10] sm:$0xff] }
   0xf   : > { %423 = vmatpush3.msra.mxu0 %v184_v1  ;;  %445 = vmatpush3.msra.mxu1 %v184_v1  ;;  %v178_v5 = vld [vmem:[%s166_s26 + $0x20] sm:$0xff]  ;;  %v179_v7 = vld [vmem:[%s166_s26 + $0x28] sm:$0xff]  ;;  %v180_v9 = vld [vmem:[%s166_s26 + $0x30] sm:$0xff] }
  0x10   : > { %424 = vmatprep.subr.mxu0 %v183_v2  ;;  %442 = vmatprep.subr.mxu1 %v183_v2  ;;  %v177_v10 = vld [vmem:[%s166_s26 + $0x18] sm:$0xff] }
  0x11   : > { %425 = vmatpush3.msra.mxu0 %v183_v2  ;;  %446 = vmatpush3.msra.mxu1 %v183_v2  ;;  %v181_v11 = vld [vmem:[%s166_s26 + $0x38] sm:$0xff] }
  0x12   : > { %426 = vmatprep.subr.mxu0 %v182_v3  ;;  %443 = vmatprep.subr.mxu1 %v182_v3 }
  0x13   : > { %427 = vmatpush3.msra.mxu0 %v182_v3  ;;  %447 = vmatpush3.msra.mxu1 %v182_v3 }
  0x14   : > { %428 = vmatprep.mubr.msk.f32.mxu0 %vm193_vm0, %v174_v4  ;;  %434 = vmatprep.mubr.msk.f32.mxu1 %vm193_vm0, %v178_v5 }
  0x15   : > { %429 = vmatmul.mubr.msk.f32.vlgmr.msra.gmra.mxu0 %vm193_vm0, %v175_v6  ;;  %435 = vmatmul.mubr.msk.f32.vlgmr.msra.gmra.mxu1 %vm193_vm0, %v179_v7 }
  0x16   : > { %431 = vmatprep.mubr.msk.f32.mxu0 %vm193_vm0, %v176_v8  ;;  %437 = vmatprep.mubr.msk.f32.mxu1 %vm193_vm0, %v180_v9 }
  0x19   : > { %432 = vmatmul.mubr.msk.f32.gmra.mxu0 %vm193_vm0, %v177_v10  ;;  %438 = vmatmul.mubr.msk.f32.gmra.mxu1 %vm193_vm0, %v181_v11 }
  0xd5   : > { %v430_v13 = vpop.f32.mrf.mxu0  ;;  %v436_v14 = vpop.f32.mrf.mxu1 }
  0xd6   : > { %v290_v15 = vadd.f32 %v430_v13, %v397_v12  ;;  %v310_v16 = vadd.f32 %v436_v14, %v397_v12 }
  0xd7   : > { %v284_v17 = vpop.f32.mrf.mxu0  ;;  %v304_v18 = vpop.f32.mrf.mxu1 }
  0xd8   : > { %325 = vst.msk [vmem:[%s172_s4 + $0x8] sm:$0xff] %vm323_vm1, %v290_v15  ;;  %329 = vst.msk [vmem:[%s172_s4 + $0x28] sm:$0xff] %vm323_vm1, %v310_v16  ;;  %v285_v19 = vadd.f32 %v397_v12, %v284_v17  ;;  %v305_v20 = vadd.f32 %v397_v12, %v304_v18 }
  0xd9   : > { %v433_v21 = vpop.f32.mrf.mxu0  ;;  %v439_v22 = vpop.f32.mrf.mxu1 }
  0xda   : > { %324 = vst.msk [vmem:[%s172_s4] sm:$0xff] %vm323_vm1, %v285_v19  ;;  %328 = vst.msk [vmem:[%s172_s4 + $0x20] sm:$0xff] %vm323_vm1, %v305_v20  ;;  %v300_v23 = vadd.f32 %v433_v21, %v397_v12  ;;  %v320_v24 = vadd.f32 %v439_v22, %v397_v12 }
  0xdb   : > { %v294_v25 = vpop.f32.mrf.mxu0  ;;  %v314_v26 = vpop.f32.mrf.mxu1 }
  0xdc   : > { %327 = vst.msk [vmem:[%s172_s4 + $0x18] sm:$0xff] %vm323_vm1, %v300_v23  ;;  %331 = vst.msk [vmem:[%s172_s4 + $0x38] sm:$0xff] %vm323_vm1, %v320_v24  ;;  %v295_v27 = vadd.f32 %v397_v12, %v294_v25  ;;  %v315_v28 = vadd.f32 %v397_v12, %v314_v26 }
  0xde   : > { %326 = vst.msk [vmem:[%s172_s4 + $0x10] sm:$0xff] %vm323_vm1, %v295_v27  ;;  %330 = vst.msk [vmem:[%s172_s4 + $0x30] sm:$0xff] %vm323_vm1, %v315_v28 }
  0xdf PF: > { %s13_s12 = sadd.s32 1, %s462_s12  }
  0xe0   : > { %p10_p4 = scmp.ge.s32.totalorder %s13_s12, 4  }
  0xe2   :  { %12 = sbr.rel (!%p10_p4) target bundleno = 1 (0x1), region = 62 }

// kernel: ccfm_forward.8
= control target key start
LH: loop header
LB: loop body
LE: loop exit
PB: predicated region body
PF: predicated region fallthrough
CT: control target
= control target key end

     0   :  { %s3733_s24 = smov 0   ;;  %s3735_s25 = smov 0   ;;  %s4525_s0 = inlined_call_operand.vmem [shape: f32[2,32,8], index: 0, kind: input, shape index: {}]   ;;  %s4526_s1 = inlined_call_operand.vmem [shape: f32[2,64,8], index: 1, kind: input, shape index: {}]   ;;  %s4527_s2 = inlined_call_operand.vmem [shape: f32[64,1], index: 2, kind: input, shape index: {}]   ;;  %s4528_s3 = inlined_call_operand.vmem [shape: f32[64,1], index: 3, kind: input, shape index: {}]   ;;  %s4529_s4 = inlined_call_operand.vmem [shape: f32[64,1], index: 4, kind: input, shape index: {}]   ;;  %s4530_s5 = inlined_call_operand.vmem [shape: f32[64,1], index: 5, kind: input, shape index: {}]   ;;  %s4531_s6 = inlined_call_operand.vmem [shape: f32[8,8], index: 6, kind: input, shape index: {}]   ;;  %s4532_s7 = inlined_call_operand.vmem [shape: f32[8,8], index: 7, kind: input, shape index: {}]   ;;  %s4533_s8 = inlined_call_operand.vmem [shape: f32[1,8], index: 8, kind: input, shape index: {}]   ;;  %s4534_s9 = inlined_call_operand.vmem [shape: f32[8,8], index: 9, kind: input, shape index: {}]   ;;  %s4535_s10 = inlined_call_operand.vmem [shape: f32[8,8], index: 10, kind: input, shape index: {}]   ;;  %s4536_s11 = inlined_call_operand.vmem [shape: f32[1,8], index: 11, kind: input, shape index: {}]   ;;  %s4537_s12 = inlined_call_operand.vmem [shape: f32[72,8], index: 12, kind: input, shape index: {}]   ;;  %s4538_s13 = inlined_call_operand.vmem [shape: f32[8,8], index: 13, kind: input, shape index: {}]   ;;  %s4539_s14 = inlined_call_operand.vmem [shape: f32[1,8], index: 14, kind: input, shape index: {}]   ;;  %s4540_s15 = inlined_call_operand.vmem [shape: f32[8,8], index: 15, kind: input, shape index: {}]   ;;  %s4541_s16 = inlined_call_operand.vmem [shape: f32[1,8], index: 16, kind: input, shape index: {}]   ;;  %s4542_s17 = inlined_call_operand.vmem [shape: f32[2,64,8], index: 17, kind: output, shape index: {}]  }
   0x1   :  { %4543 = sst [smem:[#allocation16_spill]] %s4525_s0  ;;  %s3737_s26 = smov 0  }
   0x2   :  { %4544 = sst [smem:[#allocation17_spill]] %s4526_s1 }
   0x3   :  { %4545 = sst [smem:[#allocation18_spill]] %s4531_s6 }
   0x4 LB: > { %s39_s27 = sadd.s32 1, %s3636_s25  ;;  %p3108_p0 = scmp.ge.s32.totalorder %s3640_s26, 1  ;;  %s3640_s26 = sphi %s3737_s26, %s27_s26   ;;  %s3636_s25 = sphi %s3735_s25, %s4578_s25   ;;  %s3632_s24 = sphi %s3733_s24, %s4577_s24  }
   0x5   : > { %p41_p1 = scmp.ge.s32.totalorder %s39_s27, 2  ;;  %p525_p2 = scmp.lt.s32.totalorder %s3640_s26, 3 }
   0x7   : > { %s4580_s27 = smov (%p41_p1, %s39_s27), 0  ;;  %p526_p3 = pnand %p3108_p0, %p525_p2 }
   0x9   : > { %529 = sbr.rel (%p526_p3) target bundleno = 743 (0x2e7), region = 88 }
   0xe   : > { %v637_v0 = vld [vmem:[%s4532_s7] sm:$0xff]  ;;  %p595_p4 = scmp.lt.s32.totalorder %s3632_s24, 1  ;;  %s4546_s6 = sld [smem:[#allocation18_spill]]  ;;  %v1128_v4 = vld [vmem:[%s4529_s4 + $0x8] sm:$0xff]  ;;  %vm638_vm0 = vcmask 64512   ;;  %v3642_v5 = vmov 0  }
   0xf   : > { %3589 = vmatprep.subr.mxu1 %v637_v0  ;;  %3379 = vmatprep.subr.mxu0 %v637_v0  ;;  %v901_v2 = vld [vmem:[%s4535_s10] sm:$0xff]  ;;  %s4547_s30 = sld [smem:[#allocation17_spill]]  ;;  %v1134_v14 = vld [vmem:[%s4529_s4 + $0x38] sm:$0xff]  ;;  %v1129_v16 = vld [vmem:[%s4529_s4 + $0x10] sm:$0xff] }
  0x10   : > { %3590 = vmatpush3.msra.mxu1 %v637_v0  ;;  %s4582_s24 = smov (!%p595_p4, %s3632_s24), 1  ;;  %3380 = vmatpush3.msra.mxu0 %v637_v0  ;;  %v1127_v3 = vld [vmem:[%s4529_s4] sm:$0xff]  ;;  %s4548_s20 = sld [smem:[#allocation16_spill]]  ;;  %v1130_v18 = vld [vmem:[%s4529_s4 + $0x18] sm:$0xff]  ;;  %v1240_v21 = vld [vmem:[%s4527_s2 + $0x8] sm:$0xff] }
  0x11   : > { %3407 = vmatprep.subr.mxu0 %v901_v2  ;;  %s3242_s23 = sshll.u32 %s4582_s24, 6  ;;  %s3241_s28 = sshll.u32 %s4582_s24, 5  ;;  %3616 = vset.pattern.permute.xlu0 %v3642_v5  ;;  %v900_v10 = vld [vmem:[%s4534_s9] sm:$0xff]  ;;  %v1132_v24 = vld [vmem:[%s4529_s4 + $0x28] sm:$0xff]  ;;  %v1241_v26 = vld [vmem:[%s4527_s2 + $0x10] sm:$0xff] }
  0x12   : > { %3617 = vset.pattern.permute.xlu1 %v3642_v5  ;;  %1137 = vperm.xlu0 %3616, %v1127_v3   ;;  %v1239_v20 = vld [vmem:[%s4527_s2] sm:$0xff]  ;;  %v1242_v27 = vld [vmem:[%s4527_s2 + $0x18] sm:$0xff]  ;;  %v1133_v28 = vld [vmem:[%s4529_s4 + $0x30] sm:$0xff]  ;;  %s622_s19 = scalar_lea.vmem %s4542_s17, %s3242_s23 }
  0x13   : > { %1142 = vperm.xlu1 %3617, %v1128_v4   ;;  %v1131_v23 = vld [vmem:[%s4529_s4 + $0x20] sm:$0xff]  ;;  %v1244_v30 = vld [vmem:[%s4527_s2 + $0x28] sm:$0xff]  ;;  %v1245_v31 = vld [vmem:[%s4527_s2 + $0x30] sm:$0xff] }
  0x14   : > { %v636_v1 = vld [vmem:[%s4546_s6] sm:$0xff]  ;;  %v1246_v32 = vld [vmem:[%s4527_s2 + $0x38] sm:$0xff]  ;;  %v1248_v34 = vld [vmem:[%s4528_s3 + $0x8] sm:$0xff] }
  0x15   : > { %3393 = vmatprep.subr.mxu1 %v636_v1  ;;  %s612_s18 = scalar_lea.vmem %s4547_s30, %s3242_s23  ;;  %v1243_v29 = vld [vmem:[%s4527_s2 + $0x20] sm:$0xff]  ;;  %v1249_v35 = vld [vmem:[%s4528_s3 + $0x10] sm:$0xff]  ;;  %v1250_v36 = vld [vmem:[%s4528_s3 + $0x18] sm:$0xff] }
  0x16   : > { %v632_v6 = vld [vmem:[%s612_s18 + $0x20] sm:$0xff]  ;;  %v633_v7 = vld [vmem:[%s612_s18 + $0x28] sm:$0xff]  ;;  %v634_v8 = vld [vmem:[%s612_s18 + $0x30] sm:$0xff]  ;;  %s3779_s21 = scalar_lea.vmem %s4548_s20, %s3241_s28  ;;  %1172 = vperm.xlu0 %3616, %v1134_v14  }
  0x17   : > { %3387 = vmatprep.mubr.msk.f32.mxu1 %vm638_vm0, %v632_v6  ;;  %v628_v9 = vld [vmem:[%s612_s18] sm:$0xff]  ;;  %v629_v11 = vld [vmem:[%s612_s18 + $0x8] sm:$0xff]  ;;  %v630_v12 = vld [vmem:[%s612_s18 + $0x10] sm:$0xff]  ;;  %1147 = vperm.xlu1 %3617, %v1129_v16  }
  0x18   : > { %3388 = vmatmul.mubr.msk.f32.vlgmr.msra.gmra.mxu1 %vm638_vm0, %v633_v7  ;;  %3381 = vmatprep.mubr.msk.f32.mxu0 %vm638_vm0, %v628_v9  ;;  %v635_v13 = vld [vmem:[%s612_s18 + $0x38] sm:$0xff]  ;;  %v624_v15 = vld [vmem:[%s3779_s21] sm:$0xff]  ;;  %v625_v19 = vld [vmem:[%s3779_s21 + $0x8] sm:$0xff] }
  0x19   : > { %3394 = vmatpush3.msra.mxu1 %v636_v1  ;;  %3390 = vmatprep.mubr.msk.f32.mxu1 %vm638_vm0, %v634_v8  ;;  %v631_v17 = vld [vmem:[%s612_s18 + $0x18] sm:$0xff]  ;;  %v626_v22 = vld [vmem:[%s3779_s21 + $0x10] sm:$0xff]  ;;  %v1247_v33 = vld [vmem:[%s4528_s3] sm:$0xff] }
  0x1a   : > { %3421 = vmatprep.subr.mxu1 %v900_v10  ;;  %3382 = vmatmul.mubr.msk.f32.vlgmr.msra.gmra.mxu0 %vm638_vm0, %v629_v11  ;;  %v627_v25 = vld [vmem:[%s3779_s21 + $0x18] sm:$0xff]  ;;  %v1251_v37 = vld [vmem:[%s4528_s3 + $0x20] sm:$0xff]  ;;  %v1252_v38 = vld [vmem:[%s4528_s3 + $0x28] sm:$0xff] }
  0x1b   : > { %3384 = vmatprep.mubr.msk.f32.mxu0 %vm638_vm0, %v630_v12  ;;  %3408 = vmatpush3.msra.mxu0 %v901_v2  ;;  %v1253_v39 = vld [vmem:[%s4528_s3 + $0x30] sm:$0xff]  ;;  %v1254_v40 = vld [vmem:[%s4528_s3 + $0x38] sm:$0xff]  ;;  %v1183_v41 = vld [vmem:[%s4530_s5] sm:$0xff] }
  0x1c   : > { %3391 = vmatmul.mubr.msk.f32.gmra.mxu1 %vm638_vm0, %v635_v13  ;;  %1152 = vperm.xlu0 %3616, %v1130_v18   ;;  %v1190_v42 = vld [vmem:[%s4530_s5 + $0x38] sm:$0xff]  ;;  %v1184_v43 = vld [vmem:[%s4530_s5 + $0x8] sm:$0xff]  ;;  %v1185_v44 = vld [vmem:[%s4530_s5 + $0x10] sm:$0xff] }
  0x1d   : > { %3395 = vmatprep.mubr.msk.f32.mxu1 %vm638_vm0, %v624_v15  ;;  %1413 = vperm.xlu1 %3617, %v1239_v20   ;;  %v1186_v45 = vld [vmem:[%s4530_s5 + $0x18] sm:$0xff]  ;;  %v1187_v46 = vld [vmem:[%s4530_s5 + $0x20] sm:$0xff]  ;;  %v1188_v47 = vld [vmem:[%s4530_s5 + $0x28] sm:$0xff] }
  0x1e   : > { %3385 = vmatmul.mubr.msk.f32.gmra.mxu0 %vm638_vm0, %v631_v17  ;;  %v1189_v48 = vld [vmem:[%s4530_s5 + $0x30] sm:$0xff]  ;;  %v1255_v49 = vld [vmem:[%s4538_s13] sm:$0xff]  ;;  %v1597_v51 = vld [vmem:[%s4537_s12 + $0x8] sm:$0xff] }
  0x1f   : > { %3409 = vmatprep.mubr.msk.f32.mxu0 %vm638_vm0, %v628_v9  ;;  %3435 = vmatprep.subr.mxu0 %v1255_v49  ;;  %v1459_v50 = vld [vmem:[%s4537_s12] sm:$0xff]  ;;  %v3921_v52 = vld [vmem:[%s4537_s12 + $0x10] sm:$0xff] }
  0x20   : > { %3396 = vmatmul.mubr.msk.f32.vlgmr.msra.gmra.mxu1 %vm638_vm0, %v624_v15  ;;  %1418 = vperm.xlu0 %3616, %v1240_v21  }
  0x21   : > { %3422 = vmatpush3.msra.mxu1 %v900_v10  ;;  %3398 = vmatprep.mubr.msk.f32.mxu1 %vm638_vm0, %v625_v19 }
  0x22   : > { %3410 = vmatmul.mubr.msk.f32.vlgmr.msra.gmra.mxu0 %vm638_vm0, %v629_v11  ;;  %1157 = vperm.xlu1 %3617, %v1131_v23  }
  0x23   : > { %3412 = vmatprep.mubr.msk.f32.mxu0 %vm638_vm0, %v630_v12  ;;  %3436 = vmatpush3.msra.mxu0 %v1255_v49 }
  0x24   : > { %3399 = vmatmul.mubr.msk.f32.gmra.mxu1 %vm638_vm0, %v625_v19  ;;  %1162 = vperm.xlu0 %3616, %v1132_v24  }
  0x25   : > { %3401 = vmatprep.mubr.msk.f32.mxu1 %vm638_vm0, %v626_v22  ;;  %3449 = vmatprep.subr.mxu1 %v1459_v50 }
  0x26   : > { %3413 = vmatmul.mubr.msk.f32.gmra.mxu0 %vm638_vm0, %v631_v17  ;;  %1423 = vperm.xlu1 %3617, %v1241_v26  }
  0x27   : > { %3415 = vmatprep.mubr.msk.f32.mxu0 %vm638_vm0, %v632_v6  ;;  %3463 = vmatprep.subr.mxu0 %v1597_v51 }
  0x28   : > { %3402 = vmatmul.mubr.msk.f32.gmra.mxu1 %vm638_vm0, %v626_v22  ;;  %1428 = vperm.xlu0 %3616, %v1242_v27  }
  0x29   : > { %3404 = vmatprep.mubr.msk.f32.mxu1 %vm638_vm0, %v627_v25 }
  0x2a   : > { %3416 = vmatmul.mubr.msk.f32.gmra.mxu0 %vm638_vm0, %v633_v7  ;;  %1167 = vperm.xlu1 %3617, %v1133_v28  }
  0x2b   : > { %3418 = vmatprep.mubr.msk.f32.mxu0 %vm638_vm0, %v634_v8 }
  0x2c   : > { %3405 = vmatmul.mubr.msk.f32.gmra.mxu1 %vm638_vm0, %v627_v25  ;;  %1433 = vperm.xlu0 %3616, %v1243_v29  }
  0x2d   : > { %3423 = vmatprep.mubr.msk.f32.mxu1 %vm638_vm0, %v624_v15 }
  0x2e   : > { %3419 = vmatmul.mubr.msk.f32.gmra.mxu0 %vm638_vm0, %v635_v13  ;;  %1438 = vperm.xlu1 %3617, %v1244_v30   ;;  %v3148_v30 = vld [vmem:[%s4536_s11] ss:$0 sm:$0xff] }
  0x30   : > { %3424 = vmatmul.mubr.msk.f32.vlgmr.msra.gmra.mxu1 %vm638_vm0, %v624_v15  ;;  %1443 = vperm.xlu0 %3616, %v1245_v31  }
  0x31   : > { %3426 = vmatprep.mubr.msk.f32.mxu1 %vm638_vm0, %v625_v19  ;;  %3450 = vmatpush3.msra.mxu1 %v1459_v50 }
  0x32   : > { %1448 = vperm.xlu1 %3617, %v1246_v32   ;;  %3477 = vmatprep.subr.mxu1 %v3921_v52 }
  0x34   : > { %3427 = vmatmul.mubr.msk.f32.gmra.mxu1 %vm638_vm0, %v625_v19  ;;  %1754 = vperm.xlu0 %3616, %v1247_v33  }
  0x35   : > { %3429 = vmatprep.mubr.msk.f32.mxu1 %vm638_vm0, %v626_v22 }
  0x36   : > { %1759 = vperm.xlu1 %3617, %v1248_v34  }
  0x38   : > { %3430 = vmatmul.mubr.msk.f32.gmra.mxu1 %vm638_vm0, %v626_v22  ;;  %1764 = vperm.xlu0 %3616, %v1249_v35  }
  0x39   : > { %3432 = vmatprep.mubr.msk.f32.mxu1 %vm638_vm0, %v627_v25 }
  0x3a   : > { %1769 = vperm.xlu1 %3617, %v1250_v36  }
  0x3c   : > { %3433 = vmatmul.mubr.msk.f32.gmra.mxu1 %vm638_vm0, %v627_v25  ;;  %1774 = vperm.xlu0 %3616, %v1251_v37  }
  0x3e   : > { %1779 = vperm.xlu1 %3617, %v1252_v38  }
  0x40   : > { %1784 = vperm.xlu0 %3616, %v1253_v39  }
  0x42   : > { %1789 = vperm.xlu1 %3617, %v1254_v40   ;;  %v1962_v40 = vld [vmem:[%s4537_s12 + $0x18] sm:$0xff] }
  0x44   : > { %1193 = vperm.xlu0 %3616, %v1183_v41  }
  0x46   : > { %1228 = vperm.xlu1 %3617, %v1190_v42  }
  0x48   : > { %1198 = vperm.xlu0 %3616, %v1184_v43  }
  0x4a   : > { %1203 = vperm.xlu1 %3617, %v1185_v44  }
  0x4c   : > { %1208 = vperm.xlu0 %3616, %v1186_v45  }
  0x4e   : > { %1213 = vperm.xlu1 %3617, %v1187_v46  }
  0x50   : > { %1218 = vperm.xlu0 %3616, %v1188_v47  }
  0x52   : > { %1223 = vperm.xlu1 %3617, %v1189_v48  }
  0x8d   : > { %v3924_v56 = vpop.permute.xlu0 %1137 }
  0x8e   : > { %v3926_v59 = vpop.permute.xlu1 %1142 }
  0x91   : > { %v3928_v0 = vpop.permute.xlu0 %1172 }
  0x92   : > { %v3932_v4 = vpop.permute.xlu1 %1147 }
  0x97   : > { %v3938_v10 = vpop.permute.xlu0 %1152 }
  0x98   : > { %v3942_v13 = vpop.permute.xlu1 %1413 }
  0x9b   : > { %v3948_v19 = vpop.permute.xlu0 %1418 }
  0x9d   : > { %v1158_v23 = vpop.permute.xlu1 %1157 }
  0x9f   : > { %v1163_v29 = vpop.permute.xlu0 %1162 }
  0xa1   : > { %v3957_v33 = vpop.permute.xlu1 %1423 }
  0xa3   : > { %v3970_v42 = vpop.permute.xlu0 %1428 }
  0xa5   : > { %v1168_v49 = vpop.permute.xlu1 %1167 }
  0xd8   : > { %v3389_v53 = vpop.f32.mrf.mxu1 }
  0xda   : > { %v749_v54 = vpop.f32.mrf.mxu1  ;;  %v3383_v55 = vpop.f32.mrf.mxu0 }
  0xdc   : > { %v3392_v57 = vpop.f32.mrf.mxu1  ;;  %v729_v58 = vpop.f32.mrf.mxu0 }
  0xde   : > { %v759_v60 = vpop.f32.mrf.mxu1  ;;  %v3386_v61 = vpop.f32.mrf.mxu0 }
  0xe0   : > { %v3397_v62 = vpop.f32.mrf.mxu1  ;;  %v739_v63 = vpop.f32.mrf.mxu0 }
  0xe1   : > { %v3930_v1 = vadd.f32 %v3397_v62, %v3383_v55  ;;  %v1400_v55 = vlaneseq }
  0xe2   : > { %v846_v2 = vpop.f32.mrf.mxu1  ;;  %v3411_v3 = vpop.f32.mrf.mxu0 }
  0xe3   : > { %4549 = vst [vmem:[#allocation2_spill] sm:$0xff] %v3930_v1  ;;  %v3934_v5 = vadd.f32 %v846_v2, %v729_v58 }
  0xe4   : > { %v3400_v6 = vpop.f32.mrf.mxu1  ;;  %v968_v9 = vpop.f32.mrf.mxu0 }
  0xe5   : > { %4550 = vst [vmem:[#allocation3_spill] sm:$0xff] %v3934_v5  ;;  %v3936_v7 = vadd.f32 %v3400_v6, %v3386_v61  ;;  %v4002_v6 = vshrl.u32 %v1400_v55, 7 }
  0xe6   : > { %v856_v8 = vpop.f32.mrf.mxu1  ;;  %v3414_v16 = vpop.f32.mrf.mxu0 }
  0xe7   : > { %4551 = vst [vmem:[#allocation4_spill] sm:$0xff] %v3936_v7  ;;  %v3940_v11 = vadd.f32 %v856_v8, %v739_v63  ;;  %v4008_v8 = vpop.permute.xlu1 %1438  ;;  %vm1402_vm1 = vcmp.lt.s32.totalorder %v4002_v6, 1  ;;  %vm1743_vm2 = vcmp.lt.s32.totalorder %v4002_v6, 7 }
  0xe8   : > { %v3403_v12 = vpop.f32.mrf.mxu1  ;;  %v978_v22 = vpop.f32.mrf.mxu0 }
  0xe9   : > { %4552 = vst [vmem:[#allocation5_spill] sm:$0xff] %v3940_v11  ;;  %v3944_v14 = vadd.f32 %v3403_v12, %v3389_v53 }
  0xea   : > { %v866_v15 = vpop.f32.mrf.mxu1  ;;  %v3417_v28 = vpop.f32.mrf.mxu0 }
  0xeb   : > { %4553 = vst [vmem:[#allocation6_spill] sm:$0xff] %v3944_v14  ;;  %v3946_v17 = vadd.f32 %v866_v15, %v749_v54 }
  0xec   : > { %v3406_v18 = vpop.f32.mrf.mxu1  ;;  %v988_v38 = vpop.f32.mrf.mxu0 }
  0xed   : > { %4554 = vst [vmem:[#allocation7_spill] sm:$0xff] %v3946_v17  ;;  %v3950_v20 = vadd.f32 %v3406_v18, %v3392_v57 }
  0xee   : > { %v876_v21 = vpop.f32.mrf.mxu1  ;;  %v3420_v46 = vpop.f32.mrf.mxu0 }
  0xef   : > { %4555 = vst [vmem:[#allocation8_spill] sm:$0xff] %v3950_v20  ;;  %v3952_v24 = vadd.f32 %v876_v21, %v759_v60  ;;  %v3984_v60 = vpop.permute.xlu0 %1433 }
  0xf0   : > { %v3425_v25 = vpop.f32.mrf.mxu1  ;;  %v998_v57 = vpop.f32.mrf.mxu0 }
  0xf1   : > { %4556 = vst [vmem:[#allocation9_spill] sm:$0xff] %v3952_v24  ;;  %v1079_v26 = vadd.f32 %v3425_v25, %v3411_v3 }
  0xf2   : > { %v1073_v27 = vpop.f32.mrf.mxu1 }
  0xf3   : > { %v1074_v31 = vadd.f32 %v1073_v27, %v968_v9  ;;  %v3961_v35 = vadd.f32 %v3148_v30, %v1079_v26  ;;  %v4047_v27 = vld [vmem:[%s4537_s12 + $0x28] sm:$0xff] }
  0xf4   : > { %v3428_v32 = vpop.f32.mrf.mxu1 }
  0xf5   : > { %v3959_v34 = vadd.f32 %v3148_v30, %v1074_v31  ;;  %v1089_v36 = vadd.f32 %v3428_v32, %v3414_v16 }
  0xf6   : > { %v1083_v37 = vpop.f32.mrf.mxu1 }
  0xf7   : > { %v1084_v39 = vadd.f32 %v1083_v37, %v978_v22  ;;  %3437 = vmatprep.mubr.msk.f32.mxu0 %vm638_vm0, %v3959_v34  ;;  %v3974_v44 = vadd.f32 %v3148_v30, %v1089_v36  ;;  %v3988_v61 = vmul.f32 %v3926_v59, %v3959_v34  ;;  %v4006_v59 = vmul.f32 %v3932_v4, %v3961_v35  ;;  %v4024_v4 = vpop.permute.xlu0 %1443 }
  0xf8   : > { %v3431_v41 = vpop.f32.mrf.mxu1  ;;  %3438 = vmatmul.mubr.msk.f32.vlgmr.msra.gmra.mxu0 %vm638_vm0, %v3961_v35 }
  0xf9   : > { %v3972_v43 = vadd.f32 %v3148_v30, %v1084_v39  ;;  %3464 = vmatpush3.msra.mxu0 %v1597_v51  ;;  %v1099_v45 = vadd.f32 %v3431_v41, %v3417_v28  ;;  %v4032_v18 = vmul.f32 %v1158_v23, %v3974_v44  ;;  %v4049_v23 = vpop.permute.xlu1 %1448 }
  0xfa   : > { %v1093_v47 = vpop.f32.mrf.mxu1  ;;  %3491 = vmatprep.subr.mxu0 %v1962_v40 }
  0xfb   : > { %v1094_v48 = vadd.f32 %v1093_v47, %v988_v38  ;;  %3440 = vmatprep.mubr.msk.f32.mxu0 %vm638_vm0, %v3972_v43  ;;  %v3982_v51 = vadd.f32 %v3148_v30, %v1099_v45  ;;  %v4012_v9 = vmul.f32 %v3938_v10, %v3972_v43  ;;  %v1394_v10 = vrot.slane %v4006_v59, 7  ;;  %v4069_v38 = vld [vmem:[%s4537_s12 + $0x20] sm:$0xff]  ;;  %v4072_v39 = vpop.permute.xlu0 %1754 }
  0xfc   : > { %v3434_v50 = vpop.f32.mrf.mxu1  ;;  %3441 = vmatmul.mubr.msk.f32.gmra.mxu0 %vm638_vm0, %v3974_v44 }
  0xfd   : > { %v3980_v53 = vadd.f32 %v3148_v30, %v1094_v48  ;;  %v1109_v54 = vadd.f32 %v3434_v50, %v3420_v46  ;;  %v1395_v21 = vrot.slane %v4012_v9, 7  ;;  %v4059_v31 = vmul.f32 %v1168_v49, %v3982_v51  ;;  %v4085_v47 = vpop.permute.xlu1 %1759 }
  0xfe   : > { %v1103_v58 = vpop.f32.mrf.mxu1 }
  0xff   : > { %v3990_v62 = vadd.f32 %v3148_v30, %v1109_v54  ;;  %v1104_v63 = vadd.f32 %v1103_v58, %v998_v57  ;;  %3443 = vmatprep.mubr.msk.f32.mxu0 %vm638_vm0, %v3980_v53  ;;  %v4038_v22 = vmul.f32 %v1163_v29, %v3980_v53  ;;  %v1407_v36 = vsel %vm1402_vm1, %v1394_v10, %v1395_v21  ;;  %v4098_v55 = vpop.permute.xlu0 %1764 }
 0x100   : > { %3444 = vmatmul.mubr.msk.f32.gmra.mxu0 %vm638_vm0, %v3982_v51  ;;  %v1454_v41 = vmul.f32 %v3970_v42, %v1407_v36  ;;  %v1398_v45 = vrot.slane %v4059_v31, 7  ;;  %v1938_v54 = vrot.slane %v3959_v34, 7  ;;  %v1941_v36 = vrot.slane %v3974_v44, 7 }
 0x101   : > { %v3996_v2 = vadd.f32 %v3148_v30, %v1104_v63  ;;  %v4000_v3 = vmul.f32 %v3924_v56, %v3990_v62  ;;  %v1393_v56 = vrot.slane %v3988_v61, 7  ;;  %v1396_v30 = vrot.slane %v4032_v18, 7 }
 0x102   : > { %v1397_v37 = vrot.slane %v4038_v22, 7  ;;  %v1945_v46 = vrot.slane %v3990_v62, 7  ;;  %v1736_v63 = vrot.slane %v3988_v61, 1 }
 0x103   : > { %3446 = vmatprep.mubr.msk.f32.mxu0 %vm638_vm0, %v3996_v2  ;;  %v1392_v12 = vrot.slane %v4000_v3, 7  ;;  %v4020_v15 = vmul.f32 %v3928_v0, %v3996_v2  ;;  %v1408_v26 = vsel %vm1402_vm1, %v1393_v56, %v1394_v10  ;;  %v1735_v49 = vrot.slane %v4000_v3, 1 }
 0x104   : > { %3447 = vmatmul.mubr.msk.f32.gmra.mxu0 %vm638_vm0, %v3990_v62  ;;  %v1453_v32 = vmul.f32 %v3957_v33, %v1408_v26  ;;  %v1405_v48 = vsel %vm1402_vm1, %v1396_v30, %v1397_v37  ;;  %v1404_v50 = vsel %vm1402_vm1, %v1397_v37, %v1398_v45  ;;  %v1953_v58 = vsel %vm1402_vm1, %v1945_v46, %v1938_v54  ;;  %v4140_v37 = vpop.permute.xlu0 %1774 }
 0x105   : > { %3465 = vmatprep.mubr.msk.f32.mxu0 %vm638_vm0, %v4000_v3  ;;  %v1399_v16 = vrot.slane %v4020_v15, 7  ;;  %v1409_v0 = vsel %vm1402_vm1, %v1392_v12, %v1393_v56  ;;  %v1456_v57 = vmul.f32 %v4008_v8, %v1405_v48  ;;  %v1939_v56 = vrot.slane %v3961_v35, 7 }
 0x106   : > { %v1452_v29 = vmul.f32 %v3948_v19, %v1409_v0  ;;  %v1457_v10 = vmul.f32 %v4024_v4, %v1404_v50  ;;  %v1737_v26 = vrot.slane %v4006_v59, 1 }
 0x107   : > { %v1410_v25 = vsel %vm1402_vm1, %v1399_v16, %v1392_v12  ;;  %v1940_v12 = vrot.slane %v3972_v43, 7  ;;  %v1403_v0 = vsel %vm1402_vm1, %v1398_v45, %v1399_v16  ;;  %v1952_v16 = vsel %vm1402_vm1, %v1938_v54, %v1939_v56 }
 0x108   : > { %3466 = vmatmul.mubr.msk.f32.vlgmr.msra.gmra.mxu0 %vm638_vm0, %v3988_v61  ;;  %v1451_v28 = vmul.f32 %v3942_v13, %v1410_v25  ;;  %v1750_v61 = vsel %vm1743_vm2, %v1735_v49, %v1736_v63  ;;  %v4122_v25 = vpop.permute.xlu1 %1769 }
 0x109   : > { %3468 = vmatprep.mubr.msk.f32.mxu0 %vm638_vm0, %v4006_v59  ;;  %3492 = vmatpush3.msra.mxu0 %v1962_v40  ;;  %v1406_v40 = vsel %vm1402_vm1, %v1395_v21, %v1396_v30  ;;  %v1738_v21 = vrot.slane %v4012_v9, 1  ;;  %v1942_v30 = vrot.slane %v3980_v53, 7  ;;  %v1749_v59 = vsel %vm1743_vm2, %v1736_v63, %v1737_v26 }
 0x10a   : > { %3451 = vmatprep.mubr.msk.f32.mxu1 %vm638_vm0, %v1451_v28  ;;  %3519 = vmatprep.subr.mxu0 %v4047_v27  ;;  %v1954_v28 = vmul.f32 %v1953_v58, %v3942_v13  ;;  %v1950_v50 = vsel %vm1402_vm1, %v1940_v12, %v1941_v36  ;;  %v1793_v54 = vmul.f32 %v4085_v47, %v1749_v59 }
 0x10b   : > { %3452 = vmatmul.mubr.msk.f32.vlgmr.msra.gmra.mxu1 %vm638_vm0, %v1452_v29  ;;  %v1951_v29 = vsel %vm1402_vm1, %v1939_v56, %v1940_v12  ;;  %v1748_v45 = vsel %vm1743_vm2, %v1737_v26, %v1738_v21  ;;  %v1943_v56 = vrot.slane %v3982_v51, 7  ;;  %v1742_v26 = vrot.slane %v4020_v15, 1 }
 0x10c   : > { %3478 = vmatpush3.msra.mxu1 %v3921_v52  ;;  %3454 = vmatprep.mubr.msk.f32.mxu1 %vm638_vm0, %v1453_v32  ;;  %v1455_v52 = vmul.f32 %v3984_v60, %v1406_v40  ;;  %v1792_v32 = vmul.f32 %v4072_v39, %v1750_v61  ;;  %v1740_v40 = vrot.slane %v4038_v22, 1  ;;  %v1956_v48 = vmul.f32 %v1951_v29, %v3957_v33  ;;  %v4162_v58 = vpop.permute.xlu1 %1779 }
 0x10d   : > { %3469 = vmatmul.mubr.msk.f32.gmra.mxu0 %vm638_vm0, %v4012_v9  ;;  %3505 = vmatprep.subr.mxu1 %v4069_v38  ;;  %v1458_v9 = vmul.f32 %v4049_v23, %v1403_v0  ;;  %v1794_v63 = vmul.f32 %v4098_v55, %v1748_v45  ;;  %v1957_v0 = vmul.f32 %v1950_v50, %v3970_v42 }
 0x10e   : > { %3471 = vmatprep.mubr.msk.f32.mxu0 %vm638_vm0, %v4032_v18 }
 0x10f   : > { %3455 = vmatmul.mubr.msk.f32.gmra.mxu1 %vm638_vm0, %v1454_v41  ;;  %v1955_v41 = vmul.f32 %v1952_v16, %v3948_v19  ;;  %v1948_v16 = vsel %vm1402_vm1, %v1942_v30, %v1943_v56 }
 0x110   : > { %3457 = vmatprep.mubr.msk.f32.mxu1 %vm638_vm0, %v1455_v52  ;;  %v1739_v52 = vrot.slane %v4032_v18, 1  ;;  %v1944_v18 = vrot.slane %v3996_v2, 7 }
 0x111   : > { %3472 = vmatmul.mubr.msk.f32.gmra.mxu0 %vm638_vm0, %v4038_v22  ;;  %v4155_v22 = vld [vmem:[%s4537_s12 + $0x38] sm:$0xff] }
 0x112   : > { %3474 = vmatprep.mubr.msk.f32.mxu0 %vm638_vm0, %v4059_v31  ;;  %v1747_v12 = vsel %vm1743_vm2, %v1738_v21, %v1739_v52  ;;  %v1746_v61 = vsel %vm1743_vm2, %v1739_v52, %v1740_v40  ;;  %v1741_v21 = vrot.slane %v4059_v31, 1  ;;  %v2214_v31 = vrot.slane %v3959_v34, 1 }
 0x113   : > { %3458 = vmatmul.mubr.msk.f32.gmra.mxu1 %vm638_vm0, %v1456_v57  ;;  %v1949_v57 = vsel %vm1402_vm1, %v1941_v36, %v1942_v30  ;;  %v1959_v30 = vmul.f32 %v1948_v16, %v4008_v8  ;;  %v4204_v36 = vpop.permute.xlu1 %1789  ;;  %v2220_v16 = vrot.slane %v3996_v2, 1 }
 0x114   : > { %3460 = vmatprep.mubr.msk.f32.mxu1 %vm638_vm0, %v1457_v10  ;;  %v4173_v10 = vld [vmem:[%s4537_s12 + $0x30] sm:$0xff]  ;;  %v1745_v29 = vsel %vm1743_vm2, %v1740_v40, %v1741_v21  ;;  %v1744_v59 = vsel %vm1743_vm2, %v1741_v21, %v1742_v26  ;;  %v1946_v40 = vsel %vm1402_vm1, %v1944_v18, %v1945_v46 }
 0x115   : > { %3475 = vmatmul.mubr.msk.f32.gmra.mxu0 %vm638_vm0, %v4020_v15  ;;  %v1947_v15 = vsel %vm1402_vm1, %v1943_v56, %v1944_v18  ;;  %v1797_v52 = vmul.f32 %v4162_v58, %v1745_v29  ;;  %v1961_v46 = vmul.f32 %v1946_v40, %v4049_v23  ;;  %v2217_v18 = vrot.slane %v3974_v44, 1 }
 0x116   : > { %3493 = vmatprep.mubr.msk.f32.mxu0 %vm638_vm0, %v1954_v28  ;;  %v4187_v28 = vpop.permute.xlu0 %1784  ;;  %v1960_v45 = vmul.f32 %v1947_v15, %v4024_v4  ;;  %v2218_v56 = vrot.slane %v3980_v53, 1 }
 0x117   : > { %3461 = vmatmul.mubr.msk.f32.gmra.mxu1 %vm638_vm0, %v1458_v9  ;;  %v1795_v9 = vmul.f32 %v4122_v25, %v1747_v12  ;;  %v1798_v50 = vmul.f32 %v4187_v28, %v1744_v59 }
 0x118   : > { %3479 = vmatprep.mubr.msk.f32.mxu1 %vm638_vm0, %v1792_v32  ;;  %v2215_v32 = vrot.slane %v3961_v35, 1 }
 0x119   : > { %3494 = vmatmul.mubr.msk.f32.vlgmr.msra.gmra.mxu0 %vm638_vm0, %v1955_v41  ;;  %v2216_v41 = vrot.slane %v3972_v43, 1 }
 0x11a   : > { %3496 = vmatprep.mubr.msk.f32.mxu0 %vm638_vm0, %v1956_v48  ;;  %3520 = vmatpush3.msra.mxu0 %v4047_v27  ;;  %v1958_v27 = vmul.f32 %v1949_v57, %v3984_v60  ;;  %v2228_v48 = vsel %vm1743_vm2, %v2214_v31, %v2215_v32  ;;  %v1194_v57 = vpop.permute.xlu0 %1193 }
 0x11b   : > { %3480 = vmatmul.mubr.msk.f32.vlgmr.msra.gmra.mxu1 %vm638_vm0, %v1793_v54  ;;  %3547 = vmatprep.subr.mxu0 %v4155_v22  ;;  %v1751_v54 = vsel %vm1743_vm2, %v1742_v26, %v1735_v49  ;;  %v2230_v12 = vmul.f32 %v2228_v48, %v4072_v39  ;;  %v2226_v49 = vsel %vm1743_vm2, %v2216_v41, %v2217_v18  ;;  %v2219_v26 = vrot.slane %v3982_v51, 1 }
 0x11c   : > { %3506 = vmatpush3.msra.mxu1 %v4069_v38  ;;  %3482 = vmatprep.mubr.msk.f32.mxu1 %vm638_vm0, %v1794_v63  ;;  %v1796_v38 = vmul.f32 %v4140_v37, %v1746_v61  ;;  %v2227_v63 = vsel %vm1743_vm2, %v2215_v32, %v2216_v41  ;;  %v1799_v3 = vmul.f32 %v4204_v36, %v1751_v54 }
 0x11d   : > { %3497 = vmatmul.mubr.msk.f32.gmra.mxu0 %vm638_vm0, %v1957_v0  ;;  %3533 = vmatprep.subr.mxu1 %v4173_v10  ;;  %v1229_v0 = vpop.permute.xlu1 %1228  ;;  %v2231_v61 = vmul.f32 %v2227_v63, %v4085_v47  ;;  %v2232_v21 = vmul.f32 %v2226_v49, %v4098_v55  ;;  %v2224_v15 = vsel %vm1743_vm2, %v2218_v56, %v2219_v26 }
 0x11e   : > { %3499 = vmatprep.mubr.msk.f32.mxu0 %vm638_vm0, %v1958_v27  ;;  %v2225_v27 = vsel %vm1743_vm2, %v2217_v18, %v2218_v56  ;;  %v4260_v59 = vmul.f32 %v1229_v0, %v3959_v34  ;;  %v2223_v41 = vsel %vm1743_vm2, %v2219_v26, %v2220_v16  ;;  %v4272_v40 = vmul.f32 %v1194_v57, %v3961_v35 }
 0x11f   : > { %3483 = vmatmul.mubr.msk.f32.gmra.mxu1 %vm638_vm0, %v1795_v9  ;;  %v1199_v9 = vpop.permute.xlu0 %1198  ;;  %v2233_v29 = vmul.f32 %v2225_v27, %v4122_v25  ;;  %v2235_v48 = vmul.f32 %v2223_v41, %v4162_v58 }
 0x120   : > { %3485 = vmatprep.mubr.msk.f32.mxu1 %vm638_vm0, %v1796_v38  ;;  %v2700_v38 = vld [vmem:[%s4537_s12 + $0x40] sm:$0xff]  ;;  %v2376_v54 = vrot.slane %v4272_v40, 7 }
 0x121   : > { %3500 = vmatmul.mubr.msk.f32.gmra.mxu0 %vm638_vm0, %v1959_v30  ;;  %v2221_v30 = vrot.slane %v3990_v62, 1  ;;  %v1204_v32 = vpop.permute.xlu1 %1203 }
 0x122   : > { %3502 = vmatprep.mubr.msk.f32.mxu0 %vm638_vm0, %v1960_v45  ;;  %v4292_v57 = vmul.f32 %v1204_v32, %v3974_v44 }
 0x123   : > { %3486 = vmatmul.mubr.msk.f32.gmra.mxu1 %vm638_vm0, %v1797_v52  ;;  %v2222_v45 = vsel %vm1743_vm2, %v2220_v16, %v2221_v30  ;;  %v4275_v52 = vmul.f32 %v1199_v9, %v3972_v43 }
 0x124   : > { %3488 = vmatprep.mubr.msk.f32.mxu1 %vm638_vm0, %v1798_v50  ;;  %v2383_v50 = vrot.slane %v4260_v59, 7 }
 0x125   : > { %3503 = vmatmul.mubr.msk.f32.gmra.mxu0 %vm638_vm0, %v1961_v46  ;;  %v1214_v46 = vpop.permute.xlu1 %1213  ;;  %v2377_v18 = vrot.slane %v4275_v52, 7 }
 0x126   : > { %3521 = vmatprep.mubr.msk.f32.mxu0 %vm638_vm0, %v2230_v12  ;;  %v2378_v12 = vrot.slane %v4292_v57, 7  ;;  %v1235_v56 = vmul.f32 %v1214_v46, %v3982_v51 }
 0x127   : > { %3489 = vmatmul.mubr.msk.f32.gmra.mxu1 %vm638_vm0, %v1799_v3 }
 0x128   : > { %3507 = vmatprep.mubr.msk.f32.mxu1 %vm638_vm0, %v3959_v34 }
 0x129   : > { %3522 = vmatmul.mubr.msk.f32.vlgmr.msra.gmra.mxu0 %vm638_vm0, %v2231_v61  ;;  %v2389_v61 = vsel %vm1402_vm1, %v2377_v18, %v2378_v12  ;;  %v1224_v26 = vpop.permute.xlu1 %1223 }
 0x12a   : > { %3524 = vmatprep.mubr.msk.f32.mxu0 %vm638_vm0, %v2232_v21  ;;  %3548 = vmatpush3.msra.mxu0 %v4155_v22  ;;  %v2234_v22 = vmul.f32 %v2224_v15, %v4140_v37  ;;  %v2380_v21 = vrot.slane %v1235_v56, 7 }
 0x12b   : > { %3508 = vmatmul.mubr.msk.f32.vlgmr.msra.gmra.mxu1 %vm638_vm0, %v3961_v35  ;;  %v2236_v35 = vmul.f32 %v2222_v45, %v4187_v28  ;;  %v2678_v45 = vrot.slane %v4292_v57, 1 }
 0x12c   : > { %3534 = vmatpush3.msra.mxu1 %v4173_v10  ;;  %3510 = vmatprep.mubr.msk.f32.mxu1 %vm638_vm0, %v3972_v43  ;;  %v1209_v10 = vpop.permute.xlu0 %1208  ;;  %v2229_v43 = vsel %vm1743_vm2, %v2221_v30, %v2214_v31  ;;  %v2391_v31 = vsel %vm1402_vm1, %v2383_v50, %v2376_v54  ;;  %v2676_v30 = vrot.slane %v4272_v40, 1 }
 0x12d   : > { %3525 = vmatmul.mubr.msk.f32.gmra.mxu0 %vm638_vm0, %v2233_v29  ;;  %3561 = vmatprep.subr.mxu1 %v2700_v38  ;;  %v4297_v63 = vmul.f32 %v1209_v10, %v3980_v53  ;;  %v2237_v34 = vmul.f32 %v2229_v43, %v4204_v36  ;;  %v2392_v3 = vmul.f32 %v2391_v31, %v3942_v13  ;;  %v2677_v29 = vrot.slane %v4275_v52, 1 }
 0x12e   : > { %3527 = vmatprep.mubr.msk.f32.mxu0 %vm638_vm0, %v2234_v22  ;;  %v1237_v13 = vmul.f32 %v1224_v26, %v3990_v62 }
 0x12f   : > { %3511 = vmatmul.mubr.msk.f32.gmra.mxu1 %vm638_vm0, %v3974_v44  ;;  %v2379_v49 = vrot.slane %v4297_v63, 7  ;;  %v2679_v22 = vrot.slane %v4297_v63, 1  ;;  %v2690_v41 = vsel %vm1743_vm2, %v2676_v30, %v2677_v29 }
 0x130   : > { %3513 = vmatprep.mubr.msk.f32.mxu1 %vm638_vm0, %v3980_v53  ;;  %v1219_v44 = vpop.permute.xlu0 %1218  ;;  %v2390_v53 = vsel %vm1402_vm1, %v2376_v54, %v2377_v18  ;;  %v2682_v43 = vrot.slane %v1237_v13, 1 }
 0x131   : > { %3528 = vmatmul.mubr.msk.f32.gmra.mxu0 %vm638_vm0, %v2235_v48  ;;  %v1236_v0 = vmul.f32 %v1219_v44, %v3996_v2  ;;  %v2388_v27 = vsel %vm1402_vm1, %v2378_v12, %v2379_v49  ;;  %v2387_v9 = vsel %vm1402_vm1, %v2379_v49, %v2380_v21  ;;  %v2688_v10 = vsel %vm1743_vm2, %v2678_v45, %v2679_v22 }
 0x132   : > { %3530 = vmatprep.mubr.msk.f32.mxu0 %vm638_vm0, %v2236_v35  ;;  %v2680_v48 = vrot.slane %v1235_v56, 1  ;;  %v2694_v35 = vmul.f32 %v2688_v10, %v4098_v55 }
 0x133   : > { %3514 = vmatmul.mubr.msk.f32.gmra.mxu1 %vm638_vm0, %v3982_v51  ;;  %v2393_v51 = vmul.f32 %v2390_v53, %v3948_v19  ;;  %v2381_v16 = vrot.slane %v1236_v0, 7  ;;  %v2395_v19 = vmul.f32 %v2388_v27, %v3970_v42 }
 0x134   : > { %3516 = vmatprep.mubr.msk.f32.mxu1 %vm638_vm0, %v3996_v2  ;;  %v2394_v2 = vmul.f32 %v2389_v61, %v3957_v33  ;;  %v2396_v33 = vmul.f32 %v2387_v9, %v3984_v60 }
 0x135   : > { %3531 = vmatmul.mubr.msk.f32.gmra.mxu0 %vm638_vm0, %v2237_v34  ;;  %v2386_v15 = vsel %vm1402_vm1, %v2380_v21, %v2381_v16 }
 0x136   : > { %3549 = vmatprep.mubr.msk.f32.mxu0 %vm638_vm0, %v4272_v40  ;;  %v2397_v42 = vmul.f32 %v2386_v15, %v4008_v8  ;;  %v2692_v40 = vmul.f32 %v2690_v41, %v4072_v39 }
 0x137   : > { %3517 = vmatmul.mubr.msk.f32.gmra.mxu1 %vm638_vm0, %v3990_v62  ;;  %v2382_v62 = vrot.slane %v1237_v13, 7 }
 0x138   : > { %3535 = vmatprep.mubr.msk.f32.mxu1 %vm638_vm0, %v2392_v3 }
 0x139   : > { %3550 = vmatmul.mubr.msk.f32.vlgmr.msra.gmra.mxu0 %vm638_vm0, %v4275_v52  ;;  %v2384_v32 = vsel %vm1402_vm1, %v2382_v62, %v2383_v50  ;;  %v2681_v52 = vrot.slane %v1236_v0, 1 }
 0x13a   : > { %3552 = vmatprep.mubr.msk.f32.mxu0 %vm638_vm0, %v4292_v57  ;;  %v2399_v8 = vmul.f32 %v2384_v32, %v4049_v23  ;;  %v2687_v23 = vsel %vm1743_vm2, %v2679_v22, %v2680_v48  ;;  %v2683_v57 = vrot.slane %v4260_v59, 1 }
 0x13b   : > { %3536 = vmatmul.mubr.msk.f32.vlgmr.msra.gmra.mxu1 %vm638_vm0, %v2393_v51  ;;  %v2686_v39 = vsel %vm1743_vm2, %v2680_v48, %v2681_v52  ;;  %v2695_v54 = vmul.f32 %v2687_v23, %v4122_v25 }
 0x13c   : > { %3562 = vmatpush3.msra.mxu1 %v2700_v38  ;;  %3538 = vmatprep.mubr.msk.f32.mxu1 %vm638_vm0, %v2394_v2  ;;  %v2385_v38 = vsel %vm1402_vm1, %v2381_v16, %v2382_v62  ;;  %v2696_v46 = vmul.f32 %v2686_v39, %v4140_v37  ;;  %v2684_v55 = vsel %vm1743_vm2, %v2682_v43, %v2683_v57  ;;  %v3149_v39 = vld [vmem:[%s4539_s14] ss:$0 sm:$0xff] }
 0x13d   : > { %3553 = vmatmul.mubr.msk.f32.gmra.mxu0 %vm638_vm0, %v4297_v63  ;;  %v2398_v60 = vmul.f32 %v2385_v38, %v4024_v4  ;;  %v2689_v4 = vsel %vm1743_vm2, %v2677_v29, %v2678_v45  ;;  %v2698_v63 = vmul.f32 %v2684_v55, %v4187_v28  ;;  %v2691_v25 = vsel %vm1743_vm2, %v2683_v57, %v2676_v30 }
 0x13e   : > { %3555 = vmatprep.mubr.msk.f32.mxu0 %vm638_vm0, %v1235_v56  ;;  %v2693_v50 = vmul.f32 %v2689_v4, %v4085_v47  ;;  %v2685_v47 = vsel %vm1743_vm2, %v2681_v52, %v2682_v43  ;;  %v2699_v37 = vmul.f32 %v2691_v25, %v4204_v36 }
 0x13f   : > { %3539 = vmatmul.mubr.msk.f32.gmra.mxu1 %vm638_vm0, %v2395_v19  ;;  %v2697_v18 = vmul.f32 %v2685_v47, %v4162_v58 }
 0x140   : > { %3541 = vmatprep.mubr.msk.f32.mxu1 %vm638_vm0, %v2396_v33 }
 0x141   : > { %3556 = vmatmul.mubr.msk.f32.gmra.mxu0 %vm638_vm0, %v1236_v0 }
 0x142   : > { %3558 = vmatprep.mubr.msk.f32.mxu0 %vm638_vm0, %v1237_v13 }
 0x143   : > { %3542 = vmatmul.mubr.msk.f32.gmra.mxu1 %vm638_vm0, %v2397_v42 }
 0x144   : > { %3544 = vmatprep.mubr.msk.f32.mxu1 %vm638_vm0, %v2398_v60 }
 0x145   : > { %3559 = vmatmul.mubr.msk.f32.gmra.mxu0 %vm638_vm0, %v4260_v59  ;;  %v2854_v59 = vld [vmem:[%s4540_s15] sm:$0xff] }
 0x146   : > { %3575 = vmatprep.subr.mxu0 %v2854_v59 }
 0x147   : > { %3545 = vmatmul.mubr.msk.f32.gmra.mxu1 %vm638_vm0, %v2399_v8  ;;  %3576 = vmatpush3.msra.mxu0 %v2854_v59 }
 0x148   : > { %3563 = vmatprep.mubr.msk.f32.mxu1 %vm638_vm0, %v2692_v40 }
 0x14b   : > { %3564 = vmatmul.mubr.msk.f32.vlgmr.msra.gmra.mxu1 %vm638_vm0, %v2693_v50 }
 0x14c   : > { %3566 = vmatprep.mubr.msk.f32.mxu1 %vm638_vm0, %v2694_v35 }
 0x14f   : > { %3567 = vmatmul.mubr.msk.f32.gmra.mxu1 %vm638_vm0, %v2695_v54 }
 0x150   : > { %3569 = vmatprep.mubr.msk.f32.mxu1 %vm638_vm0, %v2696_v46 }
 0x153   : > { %3570 = vmatmul.mubr.msk.f32.gmra.mxu1 %vm638_vm0, %v2697_v18 }
 0x154   : > { %3572 = vmatprep.mubr.msk.f32.mxu1 %vm638_vm0, %v2698_v63 }
 0x157   : > { %3573 = vmatmul.mubr.msk.f32.gmra.mxu1 %vm638_vm0, %v2699_v37 }
 0x1b8   : > { %v3439_v58 = vpop.f32.mrf.mxu0 }
 0x1b9   : > { %v1359_v55 = vadd.f32 %v3439_v58, %v3149_v39 }
 0x1ba   : > { %v1353_v34 = vpop.f32.mrf.mxu0 }
 0x1bb   : > { %v1354_v25 = vadd.f32 %v3149_v39, %v1353_v34 }
 0x1bc   : > { %v3442_v28 = vpop.f32.mrf.mxu0 }
 0x1bd   : > { %v1369_v24 = vadd.f32 %v3442_v28, %v3149_v39 }
 0x1be   : > { %v1363_v31 = vpop.f32.mrf.mxu0 }
 0x1bf   : > { %v1364_v11 = vadd.f32 %v3149_v39, %v1363_v31 }
 0x1c0   : > { %v3445_v6 = vpop.f32.mrf.mxu0 }
 0x1c2   : > { %v4397_v44 = vpop.f32.mrf.mxu0 }
 0x1c4   : > { %v4399_v12 = vpop.f32.mrf.mxu0 }
 0x1c6   : > { %v4401_v56 = vpop.f32.mrf.mxu0 }
 0x1c8   : > { %v3467_v36 = vpop.f32.mrf.mxu0 }
 0x1ca   : > { %v1688_v53 = vpop.f32.mrf.mxu0 }
 0x1cb   : > { %v3453_v3 = vpop.f32.mrf.mxu1 }
 0x1cc   : > { %v1590_v37 = vadd.f32 %v3453_v3, %v1359_v55  ;;  %v1374_v3 = vadd.f32 %v3149_v39, %v4397_v44 }
 0x1cd   : > { %v4403_v49 = vpop.f32.mrf.mxu0  ;;  %v1550_v0 = vpop.f32.mrf.mxu1 }
 0x1ce   : > { %v1589_v14 = vadd.f32 %v1550_v0, %v1354_v25  ;;  %v1728_v5 = vadd.f32 %v3467_v36, %v1590_v37  ;;  %v1389_v0 = vadd.f32 %v4399_v12, %v3149_v39 }
 0x1cf   : > { %v4405_v61 = vpop.f32.mrf.mxu0  ;;  %v3456_v26 = vpop.f32.mrf.mxu1 }
 0x1d0   : > { %v1592_v1 = vadd.f32 %v3456_v26, %v1369_v24 }
 0x1d1   : > { %v4407_v51 = vpop.f32.mrf.mxu0  ;;  %v1560_v21 = vpop.f32.mrf.mxu1 }
 0x1d2   : > { %v1591_v58 = vadd.f32 %v1560_v21, %v1364_v11  ;;  %v1730_v28 = vadd.f32 %v4403_v49, %v1592_v1  ;;  %v1384_v11 = vadd.f32 %v3149_v39, %v4401_v56 }
 0x1d3   : > { %v4409_v13 = vpop.f32.mrf.mxu0  ;;  %v3459_v2 = vpop.f32.mrf.mxu1 }
 0x1d4   : > { %v1729_v36 = vadd.f32 %v4405_v61, %v1591_v58 }
 0x1d5   : > { %v4411_v27 = vpop.f32.mrf.mxu0  ;;  %v1570_v16 = vpop.f32.mrf.mxu1 }
 0x1d6   : > { %v1593_v31 = vadd.f32 %v1570_v16, %v1374_v3 }
 0x1d7   : > { %v4413_v9 = vpop.f32.mrf.mxu0  ;;  %v3462_v19 = vpop.f32.mrf.mxu1 }
 0x1d8   : > { %v1731_v16 = vadd.f32 %v4409_v13, %v1593_v31 }
 0x1d9   : > { %v3495_v62 = vpop.f32.mrf.mxu0  ;;  %v4415_v33 = vpop.f32.mrf.mxu1 }
 0x1da   : > { %v1595_v1 = vadd.f32 %v4415_v33, %v1384_v11 }
 0x1db   : > { %v4417_v15 = vpop.f32.mrf.mxu0  ;;  %v3481_v38 = vpop.f32.mrf.mxu1 }
 0x1dc   : > { %v1733_v33 = vadd.f32 %v4413_v9, %v1595_v1 }
 0x1dd   : > { %v4419_v29 = vpop.f32.mrf.mxu0  ;;  %v1891_v30 = vpop.f32.mrf.mxu1 }
 0x1df   : > { %v4421_v42 = vpop.f32.mrf.mxu0  ;;  %v3484_v60 = vpop.f32.mrf.mxu1 }
 0x1e0   : > { %v1933_v24 = vadd.f32 %v3484_v60, %v1730_v28 }
 0x1e1   : > { %v4423_v32 = vpop.f32.mrf.mxu0  ;;  %v1901_v22 = vpop.f32.mrf.mxu1 }
 0x1e2   : > { %v2095_v61 = vadd.f32 %v4419_v29, %v1933_v24 }
 0x1e3   : > { %v4425_v41 = vpop.f32.mrf.mxu0  ;;  %v3487_v45 = vpop.f32.mrf.mxu1 }
 0x1e5   : > { %v4427_v8 = vpop.f32.mrf.mxu0  ;;  %v1911_v4 = vpop.f32.mrf.mxu1 }
 0x1e6   : > { %4557 = vst [vmem:[#allocation10_spill] sm:$0xff] %v4427_v8 }
 0x1e7   : > { %v4429_v40 = vpop.f32.mrf.mxu0  ;;  %v4431_v52 = vpop.f32.mrf.mxu1 }
 0x1e8   : > { %4558 = vst [vmem:[#allocation11_spill] sm:$0xff] %v4429_v40 }
 0x1e9   : > { %v3523_v10 = vpop.f32.mrf.mxu0  ;;  %v4433_v48 = vpop.f32.mrf.mxu1 }
 0x1eb   : > { %v4435_v50 = vpop.f32.mrf.mxu0  ;;  %v3509_v35 = vpop.f32.mrf.mxu1 }
 0x1ed   : > { %v4437_v23 = vpop.f32.mrf.mxu0  ;;  %v2167_v43 = vpop.f32.mrf.mxu1 }
 0x1ef   : > { %v4442_v54 = vpop.f32.mrf.mxu0  ;;  %v3512_v57 = vpop.f32.mrf.mxu1 }
 0x1f0   : > { %4559 = vst [vmem:[#allocation12_spill] sm:$0xff] %v4442_v54  ;;  %v1931_v54 = vadd.f32 %v3481_v38, %v1728_v5  ;;  %v1596_v5 = vadd.f32 %v3462_v19, %v1389_v0  ;;  %v2209_v60 = vadd.f32 %v3512_v57, %v2095_v61 }
 0x1f1   : > { %v4444_v46 = vpop.f32.mrf.mxu0  ;;  %v2177_v47 = vpop.f32.mrf.mxu1 }
 0x1f2   : > { %4560 = vst [vmem:[#allocation13_spill] sm:$0xff] %v4444_v46  ;;  %v1379_v46 = vadd.f32 %v3445_v6, %v3149_v39  ;;  %v2093_v26 = vadd.f32 %v3495_v62, %v1931_v54  ;;  %v1734_v56 = vadd.f32 %v4411_v27, %v1596_v5  ;;  %v1936_v27 = vadd.f32 %v4433_v48, %v1733_v33 }
 0x1f3   : > { %v4446_v18 = vpop.f32.mrf.mxu0  ;;  %v3515_v63 = vpop.f32.mrf.mxu1 }
 0x1f4   : > { %4561 = vst [vmem:[#allocation14_spill] sm:$0xff] %v4446_v18  ;;  %v1727_v18 = vadd.f32 %v1688_v53, %v1589_v14  ;;  %v1594_v55 = vadd.f32 %v3459_v2, %v1379_v46  ;;  %v1932_v53 = vadd.f32 %v1901_v22, %v1729_v36  ;;  %v2207_v21 = vadd.f32 %v3509_v35, %v2093_v26  ;;  %v4568_v26 = vld [vmem:[#allocation3_spill] sm:$0xff] }
 0x1f5   : > { %v4448_v59 = vpop.f32.mrf.mxu0  ;;  %v2187_v20 = vpop.f32.mrf.mxu1 }
 0x1f6   : > { %4562 = vst [vmem:[#allocation15_spill] sm:$0xff] %v4448_v59  ;;  %v1930_v59 = vadd.f32 %v1891_v30, %v1727_v18  ;;  %v1732_v44 = vadd.f32 %v4407_v51, %v1594_v55  ;;  %v1934_v30 = vadd.f32 %v1911_v4, %v1731_v16  ;;  %v2094_v51 = vadd.f32 %v4421_v42, %v1932_v53 }
 0x1f7   : > { %v4450_v17 = vpop.f32.mrf.mxu0  ;;  %v3518_v7 = vpop.f32.mrf.mxu1  ;;  %v2369_v22 = vadd.f32 %v3523_v10, %v2207_v21  ;;  %v2371_v10 = vadd.f32 %v4437_v23, %v2209_v60  ;;  %v4564_v37 = vld [vmem:[#allocation12_spill] sm:$0xff] }
 0x1f8   : > { %v2092_v2 = vadd.f32 %v4417_v15, %v1930_v59  ;;  %v1935_v49 = vadd.f32 %v3487_v45, %v1732_v44  ;;  %v1937_v15 = vadd.f32 %v4431_v52, %v1734_v56  ;;  %v2208_v45 = vadd.f32 %v2177_v47, %v2094_v51  ;;  %v4563_v52 = vld [vmem:[#allocation10_spill] sm:$0xff] }
 0x1f9   : > { %v4452_v40 = vpop.f32.mrf.mxu1  ;;  %v3551_v8 = vpop.f32.mrf.mxu0  ;;  %v2096_v57 = vadd.f32 %v4425_v41, %v1934_v30  ;;  %v4571_v30 = vld [vmem:[#allocation5_spill] sm:$0xff] }
 0x1fa   : > { %v2206_v38 = vadd.f32 %v2167_v43, %v2092_v2  ;;  %v2097_v13 = vadd.f32 %v4423_v32, %v1935_v49  ;;  %v2099_v46 = vadd.f32 %v4563_v52, %v1937_v15  ;;  %v2370_v32 = vadd.f32 %v4564_v37, %v2208_v45 }
 0x1fb   : > { %v3537_v34 = vpop.f32.mrf.mxu1  ;;  %v2629_v14 = vpop.f32.mrf.mxu0  ;;  %v2210_v18 = vadd.f32 %v2187_v20, %v2096_v57  ;;  %v3131_v20 = vld [vmem:[%s4533_s8] ss:$0 sm:$0xff] }
 0x1fc   : > { %v2531_v43 = vadd.f32 %v3537_v34, %v2369_v22  ;;  %v2368_v29 = vadd.f32 %v4435_v50, %v2206_v38  ;;  %v2211_v4 = vadd.f32 %v3515_v63, %v2097_v13  ;;  %v2213_v58 = vadd.f32 %v3518_v7, %v2099_v46  ;;  %v4565_v50 = vld [vmem:[#allocation11_spill] sm:$0xff]  ;;  %v4566_v63 = vld [vmem:[#allocation13_spill] sm:$0xff]  ;;  %v4567_v24 = vld [vmem:[#allocation14_spill] sm:$0xff] }
 0x1fd   : > { %v2491_v25 = vpop.f32.mrf.mxu1  ;;  %v3554_v19 = vpop.f32.mrf.mxu0  ;;  %v2098_v34 = vadd.f32 %v4565_v50, %v1936_v27  ;;  %v892_v11 = vadd.f32 %v3131_v20, %v4568_v26  ;;  %v894_v60 = vadd.f32 %v3131_v20, %v4571_v30  ;;  %v4573_v46 = vld [vmem:[#allocation7_spill] sm:$0xff] }
 0x1fe   : > { %v2530_v42 = vadd.f32 %v2491_v25, %v2368_v29  ;;  %v2669_v59 = vadd.f32 %v3551_v8, %v2531_v43  ;;  %v2373_v28 = vadd.f32 %v4566_v63, %v2211_v4  ;;  %v2372_v8 = vadd.f32 %v4567_v24, %v2210_v18  ;;  %v4572_v29 = vld [vmem:[#allocation4_spill] sm:$0xff] }
 0x1ff   : > { %v3540_v6 = vpop.f32.mrf.mxu1  ;;  %v2639_v39 = vpop.f32.mrf.mxu0  ;;  %v2212_v23 = vadd.f32 %v4452_v40, %v2098_v34  ;;  %v895_v27 = vadd.f32 %v3131_v20, %v4572_v29  ;;  %v896_v18 = vadd.f32 %v3131_v20, %v4573_v46 }
 0x200   : > { %v2533_v47 = vadd.f32 %v3540_v6, %v2371_v10  ;;  %v2668_v0 = vadd.f32 %v2629_v14, %v2530_v42  ;;  %v4569_v6 = vld [vmem:[#allocation15_spill] sm:$0xff] }
 0x201   : > { %v2501_v12 = vpop.f32.mrf.mxu1  ;;  %v3557_v48 = vpop.f32.mrf.mxu0  ;;  %v2375_v53 = vadd.f32 %v4569_v6, %v2213_v58  ;;  %v2374_v16 = vadd.f32 %v4450_v17, %v2212_v23 }
 0x202   : > { %v2532_v55 = vadd.f32 %v2501_v12, %v2370_v32  ;;  %v2671_v36 = vadd.f32 %v3554_v19, %v2533_v47  ;;  %v4570_v12 = vld [vmem:[#allocation2_spill] sm:$0xff] }
 0x203   : > { %v3543_v62 = vpop.f32.mrf.mxu1  ;;  %v2649_v5 = vpop.f32.mrf.mxu0  ;;  %v893_v49 = vadd.f32 %v3131_v20, %v4570_v12  ;;  %v4574_v32 = vld [vmem:[#allocation6_spill] sm:$0xff] }
 0x204   : > { %v2535_v31 = vadd.f32 %v3543_v62, %v2373_v28  ;;  %v2670_v1 = vadd.f32 %v2639_v39, %v2532_v55  ;;  %v4575_v55 = vld [vmem:[#allocation9_spill] sm:$0xff] }
 0x205   : > { %v2511_v35 = vpop.f32.mrf.mxu1  ;;  %v3560_v51 = vpop.f32.mrf.mxu0  ;;  %v898_v63 = vadd.f32 %v3131_v20, %v4575_v55 }
 0x206   : > { %v2534_v14 = vadd.f32 %v2511_v35, %v2372_v8  ;;  %v2673_v19 = vadd.f32 %v3557_v48, %v2535_v31  ;;  %v3230_v31 = vld [vmem:[%s4541_s16] ss:$0 sm:$0xff] }
 0x207   : > { %v3546_v54 = vpop.f32.mrf.mxu1  ;;  %v2659_v57 = vpop.f32.mrf.mxu0 }
 0x208   : > { %v2537_v61 = vadd.f32 %v3546_v54, %v2375_v53  ;;  %v2672_v43 = vadd.f32 %v2649_v5, %v2534_v14 }
 0x209   : > { %v2521_v9 = vpop.f32.mrf.mxu1 }
 0x20a   : > { %v2536_v45 = vadd.f32 %v2521_v9, %v2374_v16  ;;  %v2675_v4 = vadd.f32 %v3560_v51, %v2537_v61 }
 0x20b   : > { %v3565_v3 = vpop.f32.mrf.mxu1 }
 0x20c   : > { %v2831_v41 = vadd.f32 %v3565_v3, %v2669_v59  ;;  %v2674_v37 = vadd.f32 %v2659_v57, %v2536_v45  ;;  %v897_v59 = vadd.f32 %v3131_v20, %v4574_v32 }
 0x20d   : > { %v2791_v25 = vpop.f32.mrf.mxu1 }
 0x20e   : > { %v2830_v7 = vadd.f32 %v2791_v25, %v2668_v0  ;;  %v2839_v44 = vmax.f32 %v2831_v41, 0.0  ;;  %v4576_v41 = vld [vmem:[#allocation8_spill] sm:$0xff] }
 0x20f   : > { %v3568_v21 = vpop.f32.mrf.mxu1  ;;  %v899_v0 = vadd.f32 %v3131_v20, %v4576_v41 }
 0x210   : > { %v2838_v2 = vmax.f32 %v2830_v7, 0.0  ;;  %v2833_v40 = vadd.f32 %v3568_v21, %v2671_v36  ;;  %v2847_v22 = vadd.f32 %v2839_v44, %v893_v49 }
 0x211   : > { %v2801_v38 = vpop.f32.mrf.mxu1 }
 0x212   : > { %v2846_v56 = vadd.f32 %v2838_v2, %v892_v11  ;;  %v2832_v62 = vadd.f32 %v2801_v38, %v2670_v1  ;;  %v2841_v15 = vmax.f32 %v2833_v40, 0.0 }
 0x213   : > { %v3571_v33 = vpop.f32.mrf.mxu1 }
 0x214   : > { %v2840_v35 = vmax.f32 %v2832_v62, 0.0  ;;  %v2835_v13 = vadd.f32 %v3571_v33, %v2673_v19  ;;  %3577 = vmatprep.mubr.msk.f32.mxu0 %vm638_vm0, %v2846_v56  ;;  %v2849_v42 = vadd.f32 %v2841_v15, %v895_v27 }
 0x215   : > { %v2811_v17 = vpop.f32.mrf.mxu1  ;;  %3578 = vmatmul.mubr.msk.f32.vlgmr.msra.gmra.mxu0 %vm638_vm0, %v2847_v22 }
 0x216   : > { %v2848_v39 = vadd.f32 %v2840_v35, %v894_v60  ;;  %v2834_v54 = vadd.f32 %v2811_v17, %v2672_v43  ;;  %v2843_v10 = vmax.f32 %v2835_v13, 0.0 }
 0x217   : > { %v3574_v52 = vpop.f32.mrf.mxu1 }
 0x218   : > { %v2842_v9 = vmax.f32 %v2834_v54, 0.0  ;;  %v2837_v47 = vadd.f32 %v3574_v52, %v2675_v4  ;;  %3580 = vmatprep.mubr.msk.f32.mxu0 %vm638_vm0, %v2848_v39  ;;  %v2851_v48 = vadd.f32 %v2843_v10, %v897_v59 }
 0x219   : > { %v2821_v58 = vpop.f32.mrf.mxu1  ;;  %3581 = vmatmul.mubr.msk.f32.gmra.mxu0 %vm638_vm0, %v2849_v42 }
 0x21a   : > { %v2850_v50 = vadd.f32 %v2842_v9, %v896_v18  ;;  %v2836_v34 = vadd.f32 %v2821_v58, %v2674_v37  ;;  %v2845_v3 = vmax.f32 %v2837_v47, 0.0 }
 0x21c   : > { %v2844_v28 = vmax.f32 %v2836_v34, 0.0  ;;  %3583 = vmatprep.mubr.msk.f32.mxu0 %vm638_vm0, %v2850_v50  ;;  %v2853_v25 = vadd.f32 %v2845_v3, %v899_v0 }
 0x21d   : > { %3584 = vmatmul.mubr.msk.f32.gmra.mxu0 %vm638_vm0, %v2851_v48 }
 0x21e   : > { %v2852_v23 = vadd.f32 %v2844_v28, %v898_v63 }
 0x220   : > { %3586 = vmatprep.mubr.msk.f32.mxu0 %vm638_vm0, %v2852_v23 }
 0x221   : > { %3587 = vmatmul.mubr.msk.f32.gmra.mxu0 %vm638_vm0, %v2853_v25 }
 0x2d5   : > { %v3579_v24 = vpop.f32.mrf.mxu0 }
 0x2d6   : > { %v2958_v8 = vadd.f32 %v3579_v24, %v3230_v31 }
 0x2d7   : > { %v2952_v20 = vpop.f32.mrf.mxu0 }
 0x2d8   : > { %2992 = vst.msk [vmem:[%s622_s19 + $0x8] sm:$0xff] %vm638_vm0, %v2958_v8  ;;  %v2953_v7 = vadd.f32 %v3230_v31, %v2952_v20 }
 0x2d9   : > { %v3582_v36 = vpop.f32.mrf.mxu0 }
 0x2da   : > { %2991 = vst.msk [vmem:[%s622_s19] sm:$0xff] %vm638_vm0, %v2953_v7  ;;  %v2968_v26 = vadd.f32 %v3582_v36, %v3230_v31 }
 0x2db   : > { %v2962_v11 = vpop.f32.mrf.mxu0 }
 0x2dc   : > { %2994 = vst.msk [vmem:[%s622_s19 + $0x18] sm:$0xff] %vm638_vm0, %v2968_v26  ;;  %v2963_v5 = vadd.f32 %v3230_v31, %v2962_v11 }
 0x2dd   : > { %v3585_v6 = vpop.f32.mrf.mxu0 }
 0x2de   : > { %2993 = vst.msk [vmem:[%s622_s19 + $0x10] sm:$0xff] %vm638_vm0, %v2963_v5  ;;  %v2978_v53 = vadd.f32 %v3585_v6, %v3230_v31 }
 0x2df   : > { %v2972_v44 = vpop.f32.mrf.mxu0 }
 0x2e0   : > { %2996 = vst.msk [vmem:[%s622_s19 + $0x28] sm:$0xff] %vm638_vm0, %v2978_v53  ;;  %v2973_v21 = vadd.f32 %v3230_v31, %v2972_v44 }
 0x2e1   : > { %v3588_v14 = vpop.f32.mrf.mxu0 }
 0x2e2   : > { %2995 = vst.msk [vmem:[%s622_s19 + $0x20] sm:$0xff] %vm638_vm0, %v2973_v21  ;;  %v2988_v2 = vadd.f32 %v3588_v14, %v3230_v31 }
 0x2e3   : > { %v2982_v40 = vpop.f32.mrf.mxu0 }
 0x2e4   : > { %2998 = vst.msk [vmem:[%s622_s19 + $0x38] sm:$0xff] %vm638_vm0, %v2988_v2  ;;  %v2983_v1 = vadd.f32 %v3230_v31, %v2982_v40 }
 0x2e6   : > { %2997 = vst.msk [vmem:[%s622_s19 + $0x30] sm:$0xff] %vm638_vm0, %v2983_v1 }
 0x2e7 PF: > { %s27_s26 = sadd.s32 1, %s3640_s26   ;;  %s4577_s24 = smov %s3636_s25 }
 0x2e8   : > { %p24_p5 = scmp.ge.s32.totalorder %s27_s26, 4   ;;  %s4578_s25 = smov %s4580_s27 }
 0x2ea   :  { %26 = sbr.rel (!%p24_p5) target bundleno = 4 (0x4), region = 121 }

// kernel: ccfm_forward.12
= control target key start
LH: loop header
LB: loop body
LE: loop exit
PB: predicated region body
PF: predicated region fallthrough
CT: control target
= control target key end

     0   :  { %s395_s12 = smov 0   ;;  %s427_s0 = inlined_call_operand.vmem [shape: f32[32,32], index: 0, kind: input, shape index: {}]   ;;  %s428_s1 = inlined_call_operand.vmem [shape: f32[32,8], index: 1, kind: input, shape index: {}]   ;;  %s429_s2 = inlined_call_operand.vmem [shape: f32[1,8], index: 2, kind: input, shape index: {}]   ;;  %s430_s3 = inlined_call_operand.vmem [shape: f32[32,8], index: 3, kind: output, shape index: {}]  }
   0x1 LB: > { %s328_s13 = sadd.s32 4294967295, %s373_s12   ;;  %p332_p0 = scmp.ge.s32.totalorder %s373_s12, 1  ;;  %s373_s12 = sphi %s395_s12, %s13_s12  }
   0x2   : > { %p138_p1 = scmp.lt.s32.totalorder %s373_s12, 3 }
   0x4   : > { %p139_p2 = pnand %p332_p0, %p138_p1 }
   0x5   : > { %s333_s18 = sshll.u32 (!%p139_p2), %s328_s13, 1 }
   0x6   : > { %142 = sbr.rel (%p139_p2) target bundleno = 218 (0xda), region = 32  ;;  %p163_p3 = scmp.lt.s32.totalorder (!%p139_p2), %s333_s18, 3 }
   0xb   : > { %v179_v0 = vld [vmem:[%s428_s1 + $0x18] sm:$0xff]  ;;  %v178_v1 = vld [vmem:[%s428_s1 + $0x10] sm:$0xff]  ;;  %v177_v2 = vld [vmem:[%s428_s1 + $0x8] sm:$0xff]  ;;  %s432_s18 = smov (!%p163_p3, %s333_s18), 3  ;;  %vm187_vm0 = vcmask 261120   ;;  %vm269_vm1 = vcmask 64512  }
   0xc   : > { %348 = vmatprep.subr.mxu0 %v179_v0  ;;  %v176_v3 = vld [vmem:[%s428_s1] sm:$0xff]  ;;  %s334_s23 = sshll.u32 %s432_s18, 3 }
   0xd   : > { %349 = vmatpush3.msra.mxu0 %v179_v0  ;;  %s166_s26 = scalar_lea.vmem %s427_s0, %s334_s23  ;;  %v337_v7 = vld [vmem:[%s429_s2] ss:$0 sm:$0xff]  ;;  %s172_s4 = scalar_lea.vmem %s430_s3, %s334_s23 }
   0xe   : > { %350 = vmatprep.subr.mxu0 %v178_v1  ;;  %v174_v4 = vld [vmem:[%s166_s26] sm:$0xff]  ;;  %v175_v5 = vld [vmem:[%s166_s26 + $0x8] sm:$0xff] }
   0xf   : > { %351 = vmatpush3.msra.mxu0 %v178_v1  ;;  %356 = vmatprep.mubr.msk.f32.mxu0 %vm187_vm0, %v174_v4 }
  0x10   : > { %352 = vmatprep.subr.mxu0 %v177_v2 }
  0x11   : > { %353 = vmatpush3.msra.mxu0 %v177_v2 }
  0x12   : > { %354 = vmatprep.subr.mxu0 %v176_v3 }
  0x13   : > { %355 = vmatpush3.msra.mxu0 %v176_v3 }
  0x14   : > { %357 = vmatmul.mubr.msk.f32.vlgmr.msra.gmra.mxu0 %vm187_vm0, %v175_v5 }
  0xd4   : > { %v358_v6 = vpop.f32.mrf.mxu0 }
  0xd5   : > { %v266_v10 = vadd.f32 %v358_v6, %v337_v7 }
  0xd6   : > { %v260_v8 = vpop.f32.mrf.mxu0 }
  0xd7   : > { %v261_v9 = vadd.f32 %v337_v7, %v260_v8  ;;  %271 = vst.msk [vmem:[%s172_s4 + $0x8] sm:$0xff] %vm269_vm1, %v266_v10 }
  0xd9   : > { %270 = vst.msk [vmem:[%s172_s4] sm:$0xff] %vm269_vm1, %v261_v9 }
  0xda PF: > { %s13_s12 = sadd.s32 1, %s373_s12  }
  0xdb   : > { %p10_p4 = scmp.ge.s32.totalorder %s13_s12, 4  }
  0xdd   :  { %12 = sbr.rel (!%p10_p4) target bundleno = 1 (0x1), region = 62 }

// kernel: ccfm_forward.11
= control target key start
LH: loop header
LB: loop body
LE: loop exit
PB: predicated region body
PF: predicated region fallthrough
CT: control target
= control target key end

     0   :  { %s3514_s18 = smov 0   ;;  %s3516_s19 = smov 0   ;;  %s4329_s0 = inlined_call_operand.vmem [shape: f32[2,64,8], index: 0, kind: input, shape index: {}]   ;;  %s4330_s1 = inlined_call_operand.vmem [shape: f32[2,64,8], index: 1, kind: input, shape index: {}]   ;;  %s4331_s2 = inlined_call_operand.vmem [shape: f32[64,1], index: 2, kind: input, shape index: {}]   ;;  %s4332_s3 = inlined_call_operand.vmem [shape: f32[64,1], index: 3, kind: input, shape index: {}]   ;;  %s4333_s4 = inlined_call_operand.vmem [shape: f32[64,1], index: 4, kind: input, shape index: {}]   ;;  %s4334_s5 = inlined_call_operand.vmem [shape: f32[64,1], index: 5, kind: input, shape index: {}]   ;;  %s4335_s6 = inlined_call_operand.vmem [shape: f32[8,8], index: 6, kind: input, shape index: {}]   ;;  %s4336_s7 = inlined_call_operand.vmem [shape: f32[8,8], index: 7, kind: input, shape index: {}]   ;;  %s4337_s8 = inlined_call_operand.vmem [shape: f32[1,8], index: 8, kind: input, shape index: {}]   ;;  %s4338_s9 = inlined_call_operand.vmem [shape: f32[8,8], index: 9, kind: input, shape index: {}]   ;;  %s4339_s10 = inlined_call_operand.vmem [shape: f32[8,8], index: 10, kind: input, shape index: {}]   ;;  %s4340_s11 = inlined_call_operand.vmem [shape: f32[1,8], index: 11, kind: input, shape index: {}]   ;;  %s4341_s12 = inlined_call_operand.vmem [shape: f32[72,8], index: 12, kind: input, shape index: {}]   ;;  %s4342_s13 = inlined_call_operand.vmem [shape: f32[8,8], index: 13, kind: input, shape index: {}]   ;;  %s4343_s14 = inlined_call_operand.vmem [shape: f32[1,8], index: 14, kind: input, shape index: {}]   ;;  %s4344_s15 = inlined_call_operand.vmem [shape: f32[2,64,8], index: 15, kind: output, shape index: {}]  }
   0x1   :  { %s3518_s20 = smov 0  }
   0x2 LB: > { %s37_s21 = sadd.s32 1, %s3427_s19  ;;  %p2933_p0 = scmp.ge.s32.totalorder %s3431_s20, 1  ;;  %s3431_s20 = sphi %s3518_s20, %s25_s20   ;;  %s3427_s19 = sphi %s3516_s19, %s4374_s19   ;;  %s3423_s18 = sphi %s3514_s18, %s4373_s18  }
   0x3   : > { %p39_p1 = scmp.ge.s32.totalorder %s37_s21, 2  ;;  %p475_p2 = scmp.lt.s32.totalorder %s3431_s20, 3 }
   0x5   : > { %s4376_s21 = smov (%p39_p1, %s37_s21), 0  ;;  %p476_p3 = pnand %p2933_p0, %p475_p2 }
   0x7   : > { %479 = sbr.rel (%p476_p3) target bundleno = 533 (0x215), region = 80 }
   0xc   : > { %v587_v0 = vld [vmem:[%s4336_s7] sm:$0xff]  ;;  %p541_p4 = scmp.lt.s32.totalorder %s3423_s18, 1  ;;  %v1090_v5 = vld [vmem:[%s4333_s4 + $0x8] sm:$0xff]  ;;  %vm588_vm0 = vcmask 64512   ;;  %v3433_v6 = vmov 0   ;;  %v1096_v13 = vld [vmem:[%s4333_s4 + $0x38] sm:$0xff] }
   0xd   : > { %v586_v1 = vld [vmem:[%s4335_s6] sm:$0xff]  ;;  %3186 = vmatprep.subr.mxu0 %v587_v0  ;;  %3407 = vset.pattern.permute.xlu0 %v3433_v6  ;;  %v1091_v15 = vld [vmem:[%s4333_s4 + $0x10] sm:$0xff]  ;;  %v1092_v19 = vld [vmem:[%s4333_s4 + $0x18] sm:$0xff] }
   0xe   : > { %v863_v2 = vld [vmem:[%s4339_s10] sm:$0xff]  ;;  %3200 = vmatprep.subr.mxu1 %v586_v1  ;;  %3187 = vmatpush3.msra.mxu0 %v587_v0  ;;  %s4378_s18 = smov (!%p541_p4, %s3423_s18), 1  ;;  %v1202_v25 = vld [vmem:[%s4331_s2 + $0x8] sm:$0xff]  ;;  %v1203_v30 = vld [vmem:[%s4331_s2 + $0x10] sm:$0xff] }
   0xf   : > { %v862_v3 = vld [vmem:[%s4338_s9] sm:$0xff]  ;;  %3201 = vmatpush3.msra.mxu1 %v586_v1  ;;  %3214 = vmatprep.subr.mxu0 %v863_v2  ;;  %s3550_s23 = sshll.u32 %s4378_s18, 6  ;;  %v1094_v29 = vld [vmem:[%s4333_s4 + $0x28] sm:$0xff]  ;;  %v1204_v31 = vld [vmem:[%s4331_s2 + $0x18] sm:$0xff] }
  0x10   : > { %v1089_v4 = vld [vmem:[%s4333_s4] sm:$0xff]  ;;  %3228 = vmatprep.subr.mxu1 %v862_v3  ;;  %3408 = vset.pattern.permute.xlu1 %v3433_v6  ;;  %s3556_s26 = scalar_lea.vmem %s4330_s1, %s3550_s23  ;;  %s3563_s28 = scalar_lea.vmem %s4329_s0, %s3550_s23  ;;  %v1095_v32 = vld [vmem:[%s4333_s4 + $0x30] sm:$0xff]  ;;  %v1206_v34 = vld [vmem:[%s4331_s2 + $0x28] sm:$0xff] }
  0x11   : > { %1099 = vperm.xlu0 %3407, %v1089_v4   ;;  %1104 = vperm.xlu1 %3408, %v1090_v5   ;;  %v578_v7 = vld [vmem:[%s3556_s26] sm:$0xff]  ;;  %v579_v8 = vld [vmem:[%s3556_s26 + $0x8] sm:$0xff]  ;;  %v580_v11 = vld [vmem:[%s3556_s26 + $0x10] sm:$0xff]  ;;  %s4286_s16 = scalar_lea.vmem %s4344_s15, %s3550_s23 }
  0x12   : > { %3188 = vmatprep.mubr.msk.f32.mxu0 %vm588_vm0, %v578_v7  ;;  %v570_v9 = vld [vmem:[%s3563_s28] sm:$0xff]  ;;  %v571_v10 = vld [vmem:[%s3563_s28 + $0x8] sm:$0xff]  ;;  %v572_v12 = vld [vmem:[%s3563_s28 + $0x10] sm:$0xff] }
  0x13   : > { %3202 = vmatprep.mubr.msk.f32.mxu1 %vm588_vm0, %v570_v9  ;;  %3189 = vmatmul.mubr.msk.f32.vlgmr.msra.gmra.mxu0 %vm588_vm0, %v579_v8  ;;  %v581_v14 = vld [vmem:[%s3556_s26 + $0x18] sm:$0xff]  ;;  %v582_v17 = vld [vmem:[%s3556_s26 + $0x20] sm:$0xff]  ;;  %v583_v20 = vld [vmem:[%s3556_s26 + $0x28] sm:$0xff] }
  0x14   : > { %3203 = vmatmul.mubr.msk.f32.vlgmr.msra.gmra.mxu1 %vm588_vm0, %v571_v10  ;;  %3215 = vmatpush3.msra.mxu0 %v863_v2  ;;  %v573_v16 = vld [vmem:[%s3563_s28 + $0x18] sm:$0xff]  ;;  %v574_v18 = vld [vmem:[%s3563_s28 + $0x20] sm:$0xff]  ;;  %v575_v22 = vld [vmem:[%s3563_s28 + $0x28] sm:$0xff] }
  0x15   : > { %3229 = vmatpush3.msra.mxu1 %v862_v3  ;;  %3191 = vmatprep.mubr.msk.f32.mxu0 %vm588_vm0, %v580_v11  ;;  %v1201_v21 = vld [vmem:[%s4331_s2] sm:$0xff]  ;;  %v584_v23 = vld [vmem:[%s3556_s26 + $0x30] sm:$0xff]  ;;  %v585_v26 = vld [vmem:[%s3556_s26 + $0x38] sm:$0xff] }
  0x16   : > { %3205 = vmatprep.mubr.msk.f32.mxu1 %vm588_vm0, %v572_v12  ;;  %1134 = vperm.xlu0 %3407, %v1096_v13   ;;  %v576_v24 = vld [vmem:[%s3563_s28 + $0x30] sm:$0xff]  ;;  %v1093_v27 = vld [vmem:[%s4333_s4 + $0x20] sm:$0xff]  ;;  %v577_v28 = vld [vmem:[%s3563_s28 + $0x38] sm:$0xff] }
  0x17   : > { %3192 = vmatmul.mubr.msk.f32.gmra.mxu0 %vm588_vm0, %v581_v14  ;;  %1109 = vperm.xlu1 %3408, %v1091_v15   ;;  %v1205_v33 = vld [vmem:[%s4331_s2 + $0x20] sm:$0xff]  ;;  %v1207_v35 = vld [vmem:[%s4331_s2 + $0x30] sm:$0xff]  ;;  %v1208_v36 = vld [vmem:[%s4331_s2 + $0x38] sm:$0xff] }
  0x18   : > { %3206 = vmatmul.mubr.msk.f32.gmra.mxu1 %vm588_vm0, %v573_v16  ;;  %3194 = vmatprep.mubr.msk.f32.mxu0 %vm588_vm0, %v582_v17  ;;  %v1209_v37 = vld [vmem:[%s4332_s3] sm:$0xff]  ;;  %v1210_v38 = vld [vmem:[%s4332_s3 + $0x8] sm:$0xff]  ;;  %v1211_v39 = vld [vmem:[%s4332_s3 + $0x10] sm:$0xff] }
  0x19   : > { %3208 = vmatprep.mubr.msk.f32.mxu1 %vm588_vm0, %v574_v18  ;;  %v1212_v40 = vld [vmem:[%s4332_s3 + $0x18] sm:$0xff]  ;;  %v1213_v41 = vld [vmem:[%s4332_s3 + $0x20] sm:$0xff]  ;;  %v1214_v42 = vld [vmem:[%s4332_s3 + $0x28] sm:$0xff] }
  0x1a   : > { %1114 = vperm.xlu0 %3407, %v1092_v19   ;;  %v1215_v43 = vld [vmem:[%s4332_s3 + $0x30] sm:$0xff]  ;;  %v1216_v44 = vld [vmem:[%s4332_s3 + $0x38] sm:$0xff]  ;;  %v1145_v45 = vld [vmem:[%s4334_s5] sm:$0xff] }
  0x1b   : > { %3195 = vmatmul.mubr.msk.f32.gmra.mxu0 %vm588_vm0, %v583_v20  ;;  %1375 = vperm.xlu1 %3408, %v1201_v21   ;;  %v1152_v46 = vld [vmem:[%s4334_s5 + $0x38] sm:$0xff]  ;;  %v1146_v47 = vld [vmem:[%s4334_s5 + $0x8] sm:$0xff]  ;;  %v1147_v48 = vld [vmem:[%s4334_s5 + $0x10] sm:$0xff] }
  0x1c   : > { %3209 = vmatmul.mubr.msk.f32.gmra.mxu1 %vm588_vm0, %v575_v22  ;;  %3197 = vmatprep.mubr.msk.f32.mxu0 %vm588_vm0, %v584_v23  ;;  %v1148_v49 = vld [vmem:[%s4334_s5 + $0x18] sm:$0xff]  ;;  %v1149_v50 = vld [vmem:[%s4334_s5 + $0x20] sm:$0xff]  ;;  %v1150_v51 = vld [vmem:[%s4334_s5 + $0x28] sm:$0xff] }
  0x1d   : > { %3211 = vmatprep.mubr.msk.f32.mxu1 %vm588_vm0, %v576_v24  ;;  %v1151_v52 = vld [vmem:[%s4334_s5 + $0x30] sm:$0xff]  ;;  %v1217_v53 = vld [vmem:[%s4342_s13] sm:$0xff]  ;;  %v1559_v55 = vld [vmem:[%s4341_s12 + $0x8] sm:$0xff] }
  0x1e   : > { %1380 = vperm.xlu0 %3407, %v1202_v25   ;;  %3242 = vmatprep.subr.mxu0 %v1217_v53  ;;  %v1421_v54 = vld [vmem:[%s4341_s12] sm:$0xff]  ;;  %v3714_v56 = vld [vmem:[%s4341_s12 + $0x10] sm:$0xff] }
  0x1f   : > { %3198 = vmatmul.mubr.msk.f32.gmra.mxu0 %vm588_vm0, %v585_v26  ;;  %1119 = vperm.xlu1 %3408, %v1093_v27  }
  0x20   : > { %3212 = vmatmul.mubr.msk.f32.gmra.mxu1 %vm588_vm0, %v577_v28  ;;  %3216 = vmatprep.mubr.msk.f32.mxu0 %vm588_vm0, %v578_v7 }
  0x21   : > { %3230 = vmatprep.mubr.msk.f32.mxu1 %vm588_vm0, %v570_v9  ;;  %3256 = vmatprep.subr.mxu1 %v1421_v54 }
  0x22   : > { %1124 = vperm.xlu0 %3407, %v1094_v29  }
  0x23   : > { %3217 = vmatmul.mubr.msk.f32.vlgmr.msra.gmra.mxu0 %vm588_vm0, %v579_v8  ;;  %1385 = vperm.xlu1 %3408, %v1203_v30  }
  0x24   : > { %3231 = vmatmul.mubr.msk.f32.vlgmr.msra.gmra.mxu1 %vm588_vm0, %v571_v10  ;;  %3219 = vmatprep.mubr.msk.f32.mxu0 %vm588_vm0, %v580_v11 }
  0x25   : > { %3233 = vmatprep.mubr.msk.f32.mxu1 %vm588_vm0, %v572_v12  ;;  %3243 = vmatpush3.msra.mxu0 %v1217_v53 }
  0x26   : > { %1390 = vperm.xlu0 %3407, %v1204_v31   ;;  %3257 = vmatpush3.msra.mxu1 %v1421_v54  ;;  %v2973_v31 = vld [vmem:[%s4340_s11] ss:$0 sm:$0xff] }
  0x27   : > { %3220 = vmatmul.mubr.msk.f32.gmra.mxu0 %vm588_vm0, %v581_v14  ;;  %1129 = vperm.xlu1 %3408, %v1095_v32  }
  0x28   : > { %3234 = vmatmul.mubr.msk.f32.gmra.mxu1 %vm588_vm0, %v573_v16  ;;  %3222 = vmatprep.mubr.msk.f32.mxu0 %vm588_vm0, %v582_v17 }
  0x29   : > { %3236 = vmatprep.mubr.msk.f32.mxu1 %vm588_vm0, %v574_v18  ;;  %3270 = vmatprep.subr.mxu0 %v1559_v55 }
  0x2a   : > { %1395 = vperm.xlu0 %3407, %v1205_v33   ;;  %3284 = vmatprep.subr.mxu1 %v3714_v56 }
  0x2b   : > { %3223 = vmatmul.mubr.msk.f32.gmra.mxu0 %vm588_vm0, %v583_v20  ;;  %1400 = vperm.xlu1 %3408, %v1206_v34  }
  0x2c   : > { %3237 = vmatmul.mubr.msk.f32.gmra.mxu1 %vm588_vm0, %v575_v22  ;;  %3225 = vmatprep.mubr.msk.f32.mxu0 %vm588_vm0, %v584_v23 }
  0x2d   : > { %3239 = vmatprep.mubr.msk.f32.mxu1 %vm588_vm0, %v576_v24 }
  0x2e   : > { %1405 = vperm.xlu0 %3407, %v1207_v35  }
  0x2f   : > { %3226 = vmatmul.mubr.msk.f32.gmra.mxu0 %vm588_vm0, %v585_v26  ;;  %1410 = vperm.xlu1 %3408, %v1208_v36  }
  0x30   : > { %3240 = vmatmul.mubr.msk.f32.gmra.mxu1 %vm588_vm0, %v577_v28 }
  0x32   : > { %1716 = vperm.xlu0 %3407, %v1209_v37  }
  0x33   : > { %1721 = vperm.xlu1 %3408, %v1210_v38  }
  0x36   : > { %1726 = vperm.xlu0 %3407, %v1211_v39  }
  0x37   : > { %1731 = vperm.xlu1 %3408, %v1212_v40  }
  0x3a   : > { %1736 = vperm.xlu0 %3407, %v1213_v41  }
  0x3b   : > { %1741 = vperm.xlu1 %3408, %v1214_v42  }
  0x3e   : > { %1746 = vperm.xlu0 %3407, %v1215_v43   ;;  %v1924_v43 = vld [vmem:[%s4341_s12 + $0x18] sm:$0xff] }
  0x3f   : > { %1751 = vperm.xlu1 %3408, %v1216_v44  }
  0x42   : > { %1155 = vperm.xlu0 %3407, %v1145_v45  }
  0x43   : > { %1190 = vperm.xlu1 %3408, %v1152_v46  }
  0x46   : > { %1160 = vperm.xlu0 %3407, %v1146_v47  }
  0x47   : > { %1165 = vperm.xlu1 %3408, %v1147_v48  }
  0x4a   : > { %1170 = vperm.xlu0 %3407, %v1148_v49  }
  0x4b   : > { %1175 = vperm.xlu1 %3408, %v1149_v50  }
  0x4e   : > { %1180 = vperm.xlu0 %3407, %v1150_v51  }
  0x4f   : > { %1185 = vperm.xlu1 %3408, %v1151_v52  }
  0x8c   : > { %v3717_v57 = vpop.permute.xlu0 %1099  ;;  %v3719_v58 = vpop.permute.xlu1 %1104 }
  0x91   : > { %v3721_v61 = vpop.permute.xlu0 %1134 }
  0x92   : > { %v3727_v3 = vpop.permute.xlu1 %1109 }
  0x95   : > { %v3731_v8 = vpop.permute.xlu0 %1114 }
  0x96   : > { %v3737_v14 = vpop.permute.xlu1 %1375 }
  0x99   : > { %v3741_v19 = vpop.permute.xlu0 %1380 }
  0x9a   : > { %v3747_v25 = vpop.permute.xlu1 %1119 }
  0x9d   : > { %v1125_v30 = vpop.permute.xlu0 %1124 }
  0x9e   : > { %v3754_v37 = vpop.permute.xlu1 %1385 }
  0xa1   : > { %v3765_v45 = vpop.permute.xlu0 %1390 }
  0xa2   : > { %v1130_v53 = vpop.permute.xlu1 %1129 }
  0xd3   : > { %v3190_v59 = vpop.f32.mrf.mxu0 }
  0xd4   : > { %v3204_v60 = vpop.f32.mrf.mxu1 }
  0xd5   : > { %v3723_v62 = vadd.f32 %v3204_v60, %v3190_v59  ;;  %v679_v63 = vpop.f32.mrf.mxu0 }
  0xd6   : > { %v808_v0 = vpop.f32.mrf.mxu1 }
  0xd7   : > { %4345 = vst [vmem:[#allocation2_spill] sm:$0xff] %v3723_v62  ;;  %v3725_v1 = vadd.f32 %v808_v0, %v679_v63  ;;  %v3193_v2 = vpop.f32.mrf.mxu0 }
  0xd8   : > { %v3207_v4 = vpop.f32.mrf.mxu1 }
  0xd9   : > { %4346 = vst [vmem:[#allocation3_spill] sm:$0xff] %v3725_v1  ;;  %v3729_v5 = vadd.f32 %v3207_v4, %v3193_v2  ;;  %v689_v6 = vpop.f32.mrf.mxu0  ;;  %v3779_v4 = vpop.permute.xlu0 %1395 }
  0xda   : > { %v818_v7 = vpop.f32.mrf.mxu1 }
  0xdb   : > { %4347 = vst [vmem:[#allocation4_spill] sm:$0xff] %v3729_v5  ;;  %v3733_v9 = vadd.f32 %v818_v7, %v689_v6  ;;  %v3196_v10 = vpop.f32.mrf.mxu0 }
  0xdc   : > { %v3210_v11 = vpop.f32.mrf.mxu1 }
  0xdd   : > { %4348 = vst [vmem:[#allocation5_spill] sm:$0xff] %v3733_v9  ;;  %v3735_v12 = vadd.f32 %v3210_v11, %v3196_v10  ;;  %v699_v13 = vpop.f32.mrf.mxu0 }
  0xde   : > { %v828_v15 = vpop.f32.mrf.mxu1 }
  0xdf   : > { %4349 = vst [vmem:[#allocation6_spill] sm:$0xff] %v3735_v12  ;;  %v3739_v16 = vadd.f32 %v828_v15, %v699_v13  ;;  %v3199_v17 = vpop.f32.mrf.mxu0 }
  0xe0   : > { %v3213_v18 = vpop.f32.mrf.mxu1 }
  0xe1   : > { %4350 = vst [vmem:[#allocation7_spill] sm:$0xff] %v3739_v16  ;;  %v3743_v20 = vadd.f32 %v3213_v18, %v3199_v17  ;;  %v709_v21 = vpop.f32.mrf.mxu0  ;;  %v3803_v17 = vpop.permute.xlu1 %1400 }
  0xe2   : > { %v838_v22 = vpop.f32.mrf.mxu1 }
  0xe3   : > { %4351 = vst [vmem:[#allocation8_spill] sm:$0xff] %v3743_v20  ;;  %v3745_v23 = vadd.f32 %v838_v22, %v709_v21  ;;  %v3218_v24 = vpop.f32.mrf.mxu0 }
  0xe4   : > { %v3232_v26 = vpop.f32.mrf.mxu1 }
  0xe5   : > { %4352 = vst [vmem:[#allocation9_spill] sm:$0xff] %v3745_v23  ;;  %v930_v27 = vpop.f32.mrf.mxu0  ;;  %v1041_v28 = vadd.f32 %v3232_v26, %v3218_v24 }
  0xe6   : > { %v1035_v29 = vpop.f32.mrf.mxu1 }
  0xe7   : > { %v1036_v32 = vadd.f32 %v1035_v29, %v930_v27  ;;  %v3221_v33 = vpop.f32.mrf.mxu0  ;;  %v3756_v38 = vadd.f32 %v2973_v31, %v1041_v28 }
  0xe8   : > { %v3235_v34 = vpop.f32.mrf.mxu1 }
  0xe9   : > { %v3752_v35 = vadd.f32 %v2973_v31, %v1036_v32  ;;  %v940_v36 = vpop.f32.mrf.mxu0  ;;  %v1051_v39 = vadd.f32 %v3235_v34, %v3221_v33  ;;  %v3843_v32 = vld [vmem:[%s4341_s12 + $0x28] sm:$0xff] }
  0xea   : > { %v1045_v40 = vpop.f32.mrf.mxu1 }
  0xeb   : > { %v1046_v41 = vadd.f32 %v1045_v40, %v940_v36  ;;  %3244 = vmatprep.mubr.msk.f32.mxu0 %vm588_vm0, %v3752_v35  ;;  %v3224_v42 = vpop.f32.mrf.mxu0  ;;  %v3769_v48 = vadd.f32 %v2973_v31, %v1051_v39  ;;  %v3783_v6 = vmul.f32 %v3719_v58, %v3752_v35  ;;  %v3801_v58 = vmul.f32 %v3727_v3, %v3756_v38  ;;  %v3819_v3 = vpop.permute.xlu0 %1405 }
  0xec   : > { %v3238_v44 = vpop.f32.mrf.mxu1  ;;  %3245 = vmatmul.mubr.msk.f32.vlgmr.msra.gmra.mxu0 %vm588_vm0, %v3756_v38 }
  0xed   : > { %v3767_v46 = vadd.f32 %v2973_v31, %v1046_v41  ;;  %v950_v47 = vpop.f32.mrf.mxu0  ;;  %3271 = vmatpush3.msra.mxu0 %v1559_v55  ;;  %v1061_v49 = vadd.f32 %v3238_v44, %v3224_v42  ;;  %v1362_v55 = vlaneseq  ;;  %v3828_v26 = vmul.f32 %v3747_v25, %v3769_v48  ;;  %v3845_v25 = vpop.permute.xlu1 %1410  ;;  %v3865_v42 = vld [vmem:[%s4341_s12 + $0x20] sm:$0xff] }
  0xee   : > { %v1055_v50 = vpop.f32.mrf.mxu1  ;;  %3298 = vmatprep.subr.mxu0 %v1924_v43 }
  0xef   : > { %v1056_v51 = vadd.f32 %v1055_v50, %v950_v47  ;;  %3247 = vmatprep.mubr.msk.f32.mxu0 %vm588_vm0, %v3767_v46  ;;  %v3227_v52 = vpop.f32.mrf.mxu0  ;;  %v3777_v0 = vadd.f32 %v2973_v31, %v1061_v49  ;;  %v3797_v15 = vshrl.u32 %v1362_v55, 7  ;;  %v3807_v18 = vmul.f32 %v3731_v8, %v3767_v46  ;;  %v3868_v44 = vpop.permute.xlu0 %1716 }
  0xf0   : > { %v3241_v54 = vpop.f32.mrf.mxu1  ;;  %3248 = vmatmul.mubr.msk.f32.gmra.mxu0 %vm588_vm0, %v3769_v48  ;;  %v1356_v8 = vrot.slane %v3801_v58, 7  ;;  %v1358_v34 = vrot.slane %v3828_v26, 7 }
  0xf1   : > { %v3775_v59 = vadd.f32 %v2973_v31, %v1056_v51  ;;  %v1071_v60 = vadd.f32 %v3241_v54, %v3227_v52  ;;  %v960_v63 = vpop.f32.mrf.mxu0  ;;  %vm1364_vm1 = vcmp.lt.s32.totalorder %v3797_v15, 1  ;;  %v1357_v27 = vrot.slane %v3807_v18, 7  ;;  %v3881_v51 = vpop.permute.xlu1 %1721 }
  0xf2   : > { %v1065_v2 = vpop.f32.mrf.mxu1  ;;  %v3855_v36 = vmul.f32 %v1130_v53, %v3777_v0  ;;  %vm1705_vm2 = vcmp.lt.s32.totalorder %v3797_v15, 7 }
  0xf3   : > { %v3785_v7 = vadd.f32 %v2973_v31, %v1071_v60  ;;  %v1066_v10 = vadd.f32 %v1065_v2, %v960_v63  ;;  %3250 = vmatprep.mubr.msk.f32.mxu0 %vm588_vm0, %v3775_v59  ;;  %v3834_v28 = vmul.f32 %v1125_v30, %v3775_v59  ;;  %v1369_v40 = vsel %vm1364_vm1, %v1356_v8, %v1357_v27  ;;  %v3894_v63 = vpop.permute.xlu0 %1726 }
  0xf4   : > { %3251 = vmatmul.mubr.msk.f32.gmra.mxu0 %vm588_vm0, %v3777_v0  ;;  %v1416_v47 = vmul.f32 %v3765_v45, %v1369_v40  ;;  %v1360_v49 = vrot.slane %v3855_v36, 7  ;;  %v1900_v60 = vrot.slane %v3752_v35, 7  ;;  %v1903_v40 = vrot.slane %v3769_v48, 7 }
  0xf5   : > { %v3791_v11 = vadd.f32 %v2973_v31, %v1066_v10  ;;  %v3795_v13 = vmul.f32 %v3717_v57, %v3785_v7  ;;  %v1355_v57 = vrot.slane %v3783_v6, 7  ;;  %v1359_v41 = vrot.slane %v3834_v28, 7 }
  0xf6   : > { %v1907_v50 = vrot.slane %v3785_v7, 7  ;;  %v1698_v10 = vrot.slane %v3783_v6, 1 }
  0xf7   : > { %3253 = vmatprep.mubr.msk.f32.mxu0 %vm588_vm0, %v3791_v11  ;;  %v1354_v21 = vrot.slane %v3795_v13, 7  ;;  %v3815_v22 = vmul.f32 %v3721_v61, %v3791_v11  ;;  %v1370_v31 = vsel %vm1364_vm1, %v1355_v57, %v1356_v8  ;;  %v1367_v52 = vsel %vm1364_vm1, %v1358_v34, %v1359_v41 }
  0xf8   : > { %3254 = vmatmul.mubr.msk.f32.gmra.mxu0 %vm588_vm0, %v3785_v7  ;;  %v1415_v39 = vmul.f32 %v3754_v37, %v1370_v31  ;;  %v1697_v53 = vrot.slane %v3795_v13, 1  ;;  %v1366_v54 = vsel %vm1364_vm1, %v1359_v41, %v1360_v49  ;;  %v1418_v55 = vmul.f32 %v3803_v17, %v1367_v52  ;;  %v3936_v41 = vpop.permute.xlu0 %1736 }
  0xf9   : > { %3272 = vmatprep.mubr.msk.f32.mxu0 %vm588_vm0, %v3795_v13  ;;  %v1361_v24 = vrot.slane %v3815_v22, 7  ;;  %v1371_v61 = vsel %vm1364_vm1, %v1354_v21, %v1355_v57  ;;  %v1915_v2 = vsel %vm1364_vm1, %v1907_v50, %v1900_v60  ;;  %v1901_v57 = vrot.slane %v3756_v38, 7 }
  0xfa   : > { %v1414_v30 = vmul.f32 %v3741_v19, %v1371_v61  ;;  %v1419_v8 = vmul.f32 %v3819_v3, %v1366_v54  ;;  %v1699_v31 = vrot.slane %v3801_v58, 1 }
  0xfb   : > { %v1372_v29 = vsel %vm1364_vm1, %v1361_v24, %v1354_v21  ;;  %v1902_v21 = vrot.slane %v3767_v46, 7  ;;  %v1365_v61 = vsel %vm1364_vm1, %v1360_v49, %v1361_v24  ;;  %v1914_v24 = vsel %vm1364_vm1, %v1900_v60, %v1901_v57 }
  0xfc   : > { %3273 = vmatmul.mubr.msk.f32.vlgmr.msra.gmra.mxu0 %vm588_vm0, %v3783_v6  ;;  %v1413_v33 = vmul.f32 %v3737_v14, %v1372_v29  ;;  %v1712_v6 = vsel %vm1705_vm2, %v1697_v53, %v1698_v10  ;;  %v3918_v29 = vpop.permute.xlu1 %1731 }
  0xfd   : > { %3275 = vmatprep.mubr.msk.f32.mxu0 %vm588_vm0, %v3801_v58  ;;  %3299 = vmatpush3.msra.mxu0 %v1924_v43  ;;  %v1368_v43 = vsel %vm1364_vm1, %v1357_v27, %v1358_v34  ;;  %v1700_v27 = vrot.slane %v3807_v18, 1  ;;  %v1904_v34 = vrot.slane %v3775_v59, 7  ;;  %v1711_v58 = vsel %vm1705_vm2, %v1698_v10, %v1699_v31 }
  0xfe   : > { %3258 = vmatprep.mubr.msk.f32.mxu1 %vm588_vm0, %v1413_v33  ;;  %3326 = vmatprep.subr.mxu0 %v3843_v32  ;;  %v1916_v33 = vmul.f32 %v1915_v2, %v3737_v14  ;;  %v1912_v54 = vsel %vm1364_vm1, %v1902_v21, %v1903_v40  ;;  %v1755_v60 = vmul.f32 %v3881_v51, %v1711_v58 }
  0xff   : > { %3259 = vmatmul.mubr.msk.f32.vlgmr.msra.gmra.mxu1 %vm588_vm0, %v1414_v30  ;;  %v1913_v30 = vsel %vm1364_vm1, %v1901_v57, %v1902_v21  ;;  %v1710_v49 = vsel %vm1705_vm2, %v1699_v31, %v1700_v27  ;;  %v1905_v57 = vrot.slane %v3777_v0, 7  ;;  %v1704_v31 = vrot.slane %v3815_v22, 1 }
 0x100   : > { %3285 = vmatpush3.msra.mxu1 %v3714_v56  ;;  %3261 = vmatprep.mubr.msk.f32.mxu1 %vm588_vm0, %v1415_v39  ;;  %v1417_v56 = vmul.f32 %v3779_v4, %v1368_v43  ;;  %v1754_v39 = vmul.f32 %v3868_v44, %v1712_v6  ;;  %v1702_v43 = vrot.slane %v3834_v28, 1  ;;  %v1918_v52 = vmul.f32 %v1913_v30, %v3754_v37  ;;  %v3958_v2 = vpop.permute.xlu1 %1741 }
 0x101   : > { %3276 = vmatmul.mubr.msk.f32.gmra.mxu0 %vm588_vm0, %v3807_v18  ;;  %3312 = vmatprep.subr.mxu1 %v3865_v42  ;;  %v1420_v18 = vmul.f32 %v3845_v25, %v1365_v61  ;;  %v1756_v10 = vmul.f32 %v3894_v63, %v1710_v49  ;;  %v1919_v61 = vmul.f32 %v1912_v54, %v3765_v45 }
 0x102   : > { %3278 = vmatprep.mubr.msk.f32.mxu0 %vm588_vm0, %v3828_v26 }
 0x103   : > { %3262 = vmatmul.mubr.msk.f32.gmra.mxu1 %vm588_vm0, %v1416_v47  ;;  %v1917_v47 = vmul.f32 %v1914_v24, %v3741_v19  ;;  %v1910_v24 = vsel %vm1364_vm1, %v1904_v34, %v1905_v57 }
 0x104   : > { %3264 = vmatprep.mubr.msk.f32.mxu1 %vm588_vm0, %v1417_v56  ;;  %v1701_v56 = vrot.slane %v3828_v26, 1  ;;  %v1906_v26 = vrot.slane %v3791_v11, 7 }
 0x105   : > { %3279 = vmatmul.mubr.msk.f32.gmra.mxu0 %vm588_vm0, %v3834_v28  ;;  %v3951_v28 = vld [vmem:[%s4341_s12 + $0x38] sm:$0xff] }
 0x106   : > { %3281 = vmatprep.mubr.msk.f32.mxu0 %vm588_vm0, %v3855_v36  ;;  %v1709_v21 = vsel %vm1705_vm2, %v1700_v27, %v1701_v56  ;;  %v1708_v6 = vsel %vm1705_vm2, %v1701_v56, %v1702_v43  ;;  %v1703_v27 = vrot.slane %v3855_v36, 1  ;;  %v2176_v36 = vrot.slane %v3752_v35, 1 }
 0x107   : > { %3265 = vmatmul.mubr.msk.f32.gmra.mxu1 %vm588_vm0, %v1418_v55  ;;  %v1911_v55 = vsel %vm1364_vm1, %v1903_v40, %v1904_v34  ;;  %v1921_v34 = vmul.f32 %v1910_v24, %v3803_v17  ;;  %v4000_v40 = vpop.permute.xlu1 %1751  ;;  %v2182_v24 = vrot.slane %v3791_v11, 1 }
 0x108   : > { %3267 = vmatprep.mubr.msk.f32.mxu1 %vm588_vm0, %v1419_v8  ;;  %v3969_v8 = vld [vmem:[%s4341_s12 + $0x30] sm:$0xff]  ;;  %v1707_v30 = vsel %vm1705_vm2, %v1702_v43, %v1703_v27  ;;  %v1706_v58 = vsel %vm1705_vm2, %v1703_v27, %v1704_v31  ;;  %v1908_v43 = vsel %vm1364_vm1, %v1906_v26, %v1907_v50 }
 0x109   : > { %3282 = vmatmul.mubr.msk.f32.gmra.mxu0 %vm588_vm0, %v3815_v22  ;;  %v1909_v22 = vsel %vm1364_vm1, %v1905_v57, %v1906_v26  ;;  %v1759_v56 = vmul.f32 %v3958_v2, %v1707_v30  ;;  %v1923_v50 = vmul.f32 %v1908_v43, %v3845_v25  ;;  %v2179_v26 = vrot.slane %v3769_v48, 1 }
 0x10a   : > { %3300 = vmatprep.mubr.msk.f32.mxu0 %vm588_vm0, %v1916_v33  ;;  %v3983_v33 = vpop.permute.xlu0 %1746  ;;  %v1922_v49 = vmul.f32 %v1909_v22, %v3819_v3  ;;  %v2180_v57 = vrot.slane %v3775_v59, 1 }
 0x10b   : > { %3268 = vmatmul.mubr.msk.f32.gmra.mxu1 %vm588_vm0, %v1420_v18  ;;  %v1757_v18 = vmul.f32 %v3918_v29, %v1709_v21  ;;  %v1760_v54 = vmul.f32 %v3983_v33, %v1706_v58 }
 0x10c   : > { %3286 = vmatprep.mubr.msk.f32.mxu1 %vm588_vm0, %v1754_v39  ;;  %v2177_v39 = vrot.slane %v3756_v38, 1 }
 0x10d   : > { %3301 = vmatmul.mubr.msk.f32.vlgmr.msra.gmra.mxu0 %vm588_vm0, %v1917_v47  ;;  %v2178_v47 = vrot.slane %v3767_v46, 1 }
 0x10e   : > { %3303 = vmatprep.mubr.msk.f32.mxu0 %vm588_vm0, %v1918_v52  ;;  %3327 = vmatpush3.msra.mxu0 %v3843_v32  ;;  %v1920_v32 = vmul.f32 %v1911_v55, %v3779_v4  ;;  %v2190_v52 = vsel %vm1705_vm2, %v2176_v36, %v2177_v39  ;;  %v1156_v55 = vpop.permute.xlu0 %1155 }
 0x10f   : > { %3287 = vmatmul.mubr.msk.f32.vlgmr.msra.gmra.mxu1 %vm588_vm0, %v1755_v60  ;;  %3354 = vmatprep.subr.mxu0 %v3951_v28  ;;  %v1713_v60 = vsel %vm1705_vm2, %v1704_v31, %v1697_v53  ;;  %v2192_v21 = vmul.f32 %v2190_v52, %v3868_v44  ;;  %v2188_v53 = vsel %vm1705_vm2, %v2178_v47, %v2179_v26  ;;  %v2181_v31 = vrot.slane %v3777_v0, 1 }
 0x110   : > { %3313 = vmatpush3.msra.mxu1 %v3865_v42  ;;  %3289 = vmatprep.mubr.msk.f32.mxu1 %vm588_vm0, %v1756_v10  ;;  %v1758_v42 = vmul.f32 %v3936_v41, %v1708_v6  ;;  %v2189_v10 = vsel %vm1705_vm2, %v2177_v39, %v2178_v47  ;;  %v1761_v13 = vmul.f32 %v4000_v40, %v1713_v60 }
 0x111   : > { %3304 = vmatmul.mubr.msk.f32.gmra.mxu0 %vm588_vm0, %v1919_v61  ;;  %3340 = vmatprep.subr.mxu1 %v3969_v8  ;;  %v1191_v61 = vpop.permute.xlu1 %1190  ;;  %v2193_v6 = vmul.f32 %v2189_v10, %v3881_v51  ;;  %v2194_v27 = vmul.f32 %v2188_v53, %v3894_v63  ;;  %v2186_v22 = vsel %vm1705_vm2, %v2180_v57, %v2181_v31 }
 0x112   : > { %3306 = vmatprep.mubr.msk.f32.mxu0 %vm588_vm0, %v1920_v32  ;;  %v2187_v32 = vsel %vm1705_vm2, %v2179_v26, %v2180_v57  ;;  %v4056_v58 = vmul.f32 %v1191_v61, %v3752_v35  ;;  %v2185_v47 = vsel %vm1705_vm2, %v2181_v31, %v2182_v24  ;;  %v4068_v43 = vmul.f32 %v1156_v55, %v3756_v38 }
 0x113   : > { %3290 = vmatmul.mubr.msk.f32.gmra.mxu1 %vm588_vm0, %v1757_v18  ;;  %v1161_v18 = vpop.permute.xlu0 %1160  ;;  %v2195_v30 = vmul.f32 %v2187_v32, %v3918_v29  ;;  %v2197_v52 = vmul.f32 %v2185_v47, %v3958_v2 }
 0x114   : > { %3292 = vmatprep.mubr.msk.f32.mxu1 %vm588_vm0, %v1758_v42  ;;  %v2662_v42 = vld [vmem:[%s4341_s12 + $0x40] sm:$0xff]  ;;  %v2338_v60 = vrot.slane %v4068_v43, 7 }
 0x115   : > { %3307 = vmatmul.mubr.msk.f32.gmra.mxu0 %vm588_vm0, %v1921_v34  ;;  %v2183_v34 = vrot.slane %v3785_v7, 1  ;;  %v1166_v39 = vpop.permute.xlu1 %1165 }
 0x116   : > { %3309 = vmatprep.mubr.msk.f32.mxu0 %vm588_vm0, %v1922_v49  ;;  %v4088_v55 = vmul.f32 %v1166_v39, %v3769_v48 }
 0x117   : > { %3293 = vmatmul.mubr.msk.f32.gmra.mxu1 %vm588_vm0, %v1759_v56  ;;  %v2184_v49 = vsel %vm1705_vm2, %v2182_v24, %v2183_v34  ;;  %v4071_v56 = vmul.f32 %v1161_v18, %v3767_v46 }
 0x118   : > { %3295 = vmatprep.mubr.msk.f32.mxu1 %vm588_vm0, %v1760_v54  ;;  %v2345_v54 = vrot.slane %v4056_v58, 7 }
 0x119   : > { %3310 = vmatmul.mubr.msk.f32.gmra.mxu0 %vm588_vm0, %v1923_v50  ;;  %v1176_v50 = vpop.permute.xlu1 %1175  ;;  %v2339_v26 = vrot.slane %v4071_v56, 7 }
 0x11a   : > { %3328 = vmatprep.mubr.msk.f32.mxu0 %vm588_vm0, %v2192_v21  ;;  %v2340_v21 = vrot.slane %v4088_v55, 7  ;;  %v1197_v57 = vmul.f32 %v1176_v50, %v3777_v0 }
 0x11b   : > { %3296 = vmatmul.mubr.msk.f32.gmra.mxu1 %vm588_vm0, %v1761_v13 }
 0x11c   : > { %3314 = vmatprep.mubr.msk.f32.mxu1 %vm588_vm0, %v3752_v35 }
 0x11d   : > { %3329 = vmatmul.mubr.msk.f32.vlgmr.msra.gmra.mxu0 %vm588_vm0, %v2193_v6  ;;  %v2351_v6 = vsel %vm1364_vm1, %v2339_v26, %v2340_v21  ;;  %v1186_v31 = vpop.permute.xlu1 %1185 }
 0x11e   : > { %3331 = vmatprep.mubr.msk.f32.mxu0 %vm588_vm0, %v2194_v27  ;;  %3355 = vmatpush3.msra.mxu0 %v3951_v28  ;;  %v2196_v28 = vmul.f32 %v2186_v22, %v3936_v41  ;;  %v2342_v27 = vrot.slane %v1197_v57, 7 }
 0x11f   : > { %3315 = vmatmul.mubr.msk.f32.vlgmr.msra.gmra.mxu1 %vm588_vm0, %v3756_v38  ;;  %v2198_v38 = vmul.f32 %v2184_v49, %v3983_v33  ;;  %v2640_v49 = vrot.slane %v4088_v55, 1 }
 0x120   : > { %3341 = vmatpush3.msra.mxu1 %v3969_v8  ;;  %3317 = vmatprep.mubr.msk.f32.mxu1 %vm588_vm0, %v3767_v46  ;;  %v1171_v8 = vpop.permute.xlu0 %1170  ;;  %v2191_v46 = vsel %vm1705_vm2, %v2183_v34, %v2176_v36  ;;  %v2353_v36 = vsel %vm1364_vm1, %v2345_v54, %v2338_v60  ;;  %v2638_v34 = vrot.slane %v4068_v43, 1 }
 0x121   : > { %3332 = vmatmul.mubr.msk.f32.gmra.mxu0 %vm588_vm0, %v2195_v30  ;;  %3368 = vmatprep.subr.mxu1 %v2662_v42  ;;  %v4093_v10 = vmul.f32 %v1171_v8, %v3775_v59  ;;  %v2199_v35 = vmul.f32 %v2191_v46, %v4000_v40  ;;  %v2354_v13 = vmul.f32 %v2353_v36, %v3737_v14  ;;  %v2639_v30 = vrot.slane %v4071_v56, 1 }
 0x122   : > { %3334 = vmatprep.mubr.msk.f32.mxu0 %vm588_vm0, %v2196_v28  ;;  %v1199_v14 = vmul.f32 %v1186_v31, %v3785_v7 }
 0x123   : > { %3318 = vmatmul.mubr.msk.f32.gmra.mxu1 %vm588_vm0, %v3769_v48  ;;  %v2341_v53 = vrot.slane %v4093_v10, 7  ;;  %v2641_v28 = vrot.slane %v4093_v10, 1  ;;  %v2652_v47 = vsel %vm1705_vm2, %v2638_v34, %v2639_v30 }
 0x124   : > { %3320 = vmatprep.mubr.msk.f32.mxu1 %vm588_vm0, %v3775_v59  ;;  %v1181_v48 = vpop.permute.xlu0 %1180  ;;  %v2352_v59 = vsel %vm1364_vm1, %v2338_v60, %v2339_v26  ;;  %v2644_v46 = vrot.slane %v1199_v14, 1 }
 0x125   : > { %3335 = vmatmul.mubr.msk.f32.gmra.mxu0 %vm588_vm0, %v2197_v52  ;;  %v1198_v61 = vmul.f32 %v1181_v48, %v3791_v11  ;;  %v2350_v32 = vsel %vm1364_vm1, %v2340_v21, %v2341_v53  ;;  %v2349_v18 = vsel %vm1364_vm1, %v2341_v53, %v2342_v27  ;;  %v2650_v8 = vsel %vm1705_vm2, %v2640_v49, %v2641_v28 }
 0x126   : > { %3337 = vmatprep.mubr.msk.f32.mxu0 %vm588_vm0, %v2198_v38  ;;  %v2642_v52 = vrot.slane %v1197_v57, 1  ;;  %v2656_v38 = vmul.f32 %v2650_v8, %v3894_v63 }
 0x127   : > { %3321 = vmatmul.mubr.msk.f32.gmra.mxu1 %vm588_vm0, %v3777_v0  ;;  %v2355_v0 = vmul.f32 %v2352_v59, %v3741_v19  ;;  %v2343_v24 = vrot.slane %v1198_v61, 7  ;;  %v2357_v19 = vmul.f32 %v2350_v32, %v3765_v45 }
 0x128   : > { %3323 = vmatprep.mubr.msk.f32.mxu1 %vm588_vm0, %v3791_v11  ;;  %v2356_v11 = vmul.f32 %v2351_v6, %v3754_v37  ;;  %v2358_v37 = vmul.f32 %v2349_v18, %v3779_v4 }
 0x129   : > { %3338 = vmatmul.mubr.msk.f32.gmra.mxu0 %vm588_vm0, %v2199_v35  ;;  %v2348_v22 = vsel %vm1364_vm1, %v2342_v27, %v2343_v24 }
 0x12a   : > { %3356 = vmatprep.mubr.msk.f32.mxu0 %vm588_vm0, %v4068_v43  ;;  %v2359_v45 = vmul.f32 %v2348_v22, %v3803_v17  ;;  %v2654_v43 = vmul.f32 %v2652_v47, %v3868_v44 }
 0x12b   : > { %3324 = vmatmul.mubr.msk.f32.gmra.mxu1 %vm588_vm0, %v3785_v7  ;;  %v2344_v7 = vrot.slane %v1199_v14, 7 }
 0x12c   : > { %3342 = vmatprep.mubr.msk.f32.mxu1 %vm588_vm0, %v2354_v13 }
 0x12d   : > { %3357 = vmatmul.mubr.msk.f32.vlgmr.msra.gmra.mxu0 %vm588_vm0, %v4071_v56  ;;  %v2346_v39 = vsel %vm1364_vm1, %v2344_v7, %v2345_v54  ;;  %v2643_v56 = vrot.slane %v1198_v61, 1 }
 0x12e   : > { %3359 = vmatprep.mubr.msk.f32.mxu0 %vm588_vm0, %v4088_v55  ;;  %v2361_v17 = vmul.f32 %v2346_v39, %v3845_v25  ;;  %v2649_v25 = vsel %vm1705_vm2, %v2641_v28, %v2642_v52  ;;  %v2645_v55 = vrot.slane %v4056_v58, 1 }
 0x12f   : > { %3343 = vmatmul.mubr.msk.f32.vlgmr.msra.gmra.mxu1 %vm588_vm0, %v2355_v0  ;;  %v2648_v44 = vsel %vm1705_vm2, %v2642_v52, %v2643_v56  ;;  %v2657_v60 = vmul.f32 %v2649_v25, %v3918_v29 }
 0x130   : > { %3369 = vmatpush3.msra.mxu1 %v2662_v42  ;;  %3345 = vmatprep.mubr.msk.f32.mxu1 %vm588_vm0, %v2356_v11  ;;  %v2347_v42 = vsel %vm1364_vm1, %v2343_v24, %v2344_v7  ;;  %v2658_v50 = vmul.f32 %v2648_v44, %v3936_v41  ;;  %v2646_v63 = vsel %vm1705_vm2, %v2644_v46, %v2645_v55 }
 0x131   : > { %3360 = vmatmul.mubr.msk.f32.gmra.mxu0 %vm588_vm0, %v4093_v10  ;;  %v2360_v4 = vmul.f32 %v2347_v42, %v3819_v3  ;;  %v2651_v3 = vsel %vm1705_vm2, %v2639_v30, %v2640_v49  ;;  %v2660_v10 = vmul.f32 %v2646_v63, %v3983_v33  ;;  %v2653_v29 = vsel %vm1705_vm2, %v2645_v55, %v2638_v34 }
 0x132   : > { %3362 = vmatprep.mubr.msk.f32.mxu0 %vm588_vm0, %v1197_v57  ;;  %v2655_v54 = vmul.f32 %v2651_v3, %v3881_v51  ;;  %v2647_v51 = vsel %vm1705_vm2, %v2643_v56, %v2644_v46  ;;  %v2661_v41 = vmul.f32 %v2653_v29, %v4000_v40  ;;  %v2974_v46 = vld [vmem:[%s4343_s14] ss:$0 sm:$0xff] }
 0x133   : > { %3346 = vmatmul.mubr.msk.f32.gmra.mxu1 %vm588_vm0, %v2357_v19  ;;  %v2659_v26 = vmul.f32 %v2647_v51, %v3958_v2 }
 0x134   : > { %3348 = vmatprep.mubr.msk.f32.mxu1 %vm588_vm0, %v2358_v37 }
 0x135   : > { %3363 = vmatmul.mubr.msk.f32.gmra.mxu0 %vm588_vm0, %v1198_v61 }
 0x136   : > { %3365 = vmatprep.mubr.msk.f32.mxu0 %vm588_vm0, %v1199_v14 }
 0x137   : > { %3349 = vmatmul.mubr.msk.f32.gmra.mxu1 %vm588_vm0, %v2359_v45 }
 0x138   : > { %3351 = vmatprep.mubr.msk.f32.mxu1 %vm588_vm0, %v2360_v4 }
 0x139   : > { %3366 = vmatmul.mubr.msk.f32.gmra.mxu0 %vm588_vm0, %v4056_v58 }
 0x13b   : > { %3352 = vmatmul.mubr.msk.f32.gmra.mxu1 %vm588_vm0, %v2361_v17 }
 0x13c   : > { %3370 = vmatprep.mubr.msk.f32.mxu1 %vm588_vm0, %v2654_v43 }
 0x13f   : > { %3371 = vmatmul.mubr.msk.f32.vlgmr.msra.gmra.mxu1 %vm588_vm0, %v2655_v54 }
 0x140   : > { %3373 = vmatprep.mubr.msk.f32.mxu1 %vm588_vm0, %v2656_v38 }
 0x143   : > { %3374 = vmatmul.mubr.msk.f32.gmra.mxu1 %vm588_vm0, %v2657_v60 }
 0x144   : > { %3376 = vmatprep.mubr.msk.f32.mxu1 %vm588_vm0, %v2658_v50 }
 0x147   : > { %3377 = vmatmul.mubr.msk.f32.gmra.mxu1 %vm588_vm0, %v2659_v26 }
 0x148   : > { %3379 = vmatprep.mubr.msk.f32.mxu1 %vm588_vm0, %v2660_v10 }
 0x14b   : > { %3380 = vmatmul.mubr.msk.f32.gmra.mxu1 %vm588_vm0, %v2661_v41 }
 0x1ac   : > { %v3246_v58 = vpop.f32.mrf.mxu0 }
 0x1ad   : > { %v1321_v51 = vadd.f32 %v3246_v58, %v2974_v46 }
 0x1ae   : > { %v1315_v35 = vpop.f32.mrf.mxu0 }
 0x1af   : > { %v1316_v10 = vadd.f32 %v2974_v46, %v1315_v35 }
 0x1b0   : > { %v3249_v36 = vpop.f32.mrf.mxu0 }
 0x1b1   : > { %v1331_v20 = vadd.f32 %v3249_v36, %v2974_v46 }
 0x1b2   : > { %v1325_v48 = vpop.f32.mrf.mxu0 }
 0x1b3   : > { %v1326_v5 = vadd.f32 %v2974_v46, %v1325_v48 }
 0x1b4   : > { %v3252_v21 = vpop.f32.mrf.mxu0 }
 0x1b6   : > { %v4190_v57 = vpop.f32.mrf.mxu0 }
 0x1b7   : > { %v1336_v35 = vadd.f32 %v2974_v46, %v4190_v57 }
 0x1b8   : > { %v4192_v2 = vpop.f32.mrf.mxu0 }
 0x1ba   : > { %v4194_v33 = vpop.f32.mrf.mxu0 }
 0x1bc   : > { %v3274_v15 = vpop.f32.mrf.mxu0 }
 0x1be   : > { %v1650_v59 = vpop.f32.mrf.mxu0 }
 0x1bf   : > { %v3260_v13 = vpop.f32.mrf.mxu1 }
 0x1c0   : > { %v1552_v29 = vadd.f32 %v3260_v13, %v1321_v51 }
 0x1c1   : > { %v4196_v53 = vpop.f32.mrf.mxu0  ;;  %v1512_v61 = vpop.f32.mrf.mxu1 }
 0x1c2   : > { %v1551_v16 = vadd.f32 %v1512_v61, %v1316_v10  ;;  %v1690_v62 = vadd.f32 %v3274_v15, %v1552_v29  ;;  %v1351_v10 = vadd.f32 %v4192_v2, %v2974_v46 }
 0x1c3   : > { %v4198_v40 = vpop.f32.mrf.mxu0  ;;  %v3263_v6 = vpop.f32.mrf.mxu1 }
 0x1c4   : > { %v1554_v1 = vadd.f32 %v3263_v6, %v1331_v20 }
 0x1c5   : > { %v4200_v31 = vpop.f32.mrf.mxu0  ;;  %v1522_v0 = vpop.f32.mrf.mxu1 }
 0x1c6   : > { %v1553_v58 = vadd.f32 %v1522_v0, %v1326_v5  ;;  %v1692_v61 = vadd.f32 %v4196_v53, %v1554_v1  ;;  %v1346_v5 = vadd.f32 %v2974_v46, %v4194_v33 }
 0x1c7   : > { %v4202_v27 = vpop.f32.mrf.mxu0  ;;  %v3266_v14 = vpop.f32.mrf.mxu1 }
 0x1c9   : > { %v4204_v11 = vpop.f32.mrf.mxu0  ;;  %v1532_v32 = vpop.f32.mrf.mxu1 }
 0x1cb   : > { %v4206_v24 = vpop.f32.mrf.mxu0  ;;  %v3269_v18 = vpop.f32.mrf.mxu1 }
 0x1cd   : > { %v3302_v19 = vpop.f32.mrf.mxu0  ;;  %v4208_v7 = vpop.f32.mrf.mxu1 }
 0x1ce   : > { %v1557_v1 = vadd.f32 %v4208_v7, %v1346_v5  ;;  %v4364_v5 = vld [vmem:[#allocation3_spill] sm:$0xff] }
 0x1cf   : > { %v4210_v37 = vpop.f32.mrf.mxu0  ;;  %v3288_v22 = vpop.f32.mrf.mxu1 }
 0x1d0   : > { %v1695_v7 = vadd.f32 %v4206_v24, %v1557_v1 }
 0x1d1   : > { %v4212_v42 = vpop.f32.mrf.mxu0  ;;  %v1853_v30 = vpop.f32.mrf.mxu1 }
 0x1d3   : > { %v4214_v34 = vpop.f32.mrf.mxu0  ;;  %v3291_v45 = vpop.f32.mrf.mxu1 }
 0x1d4   : > { %v1895_v20 = vadd.f32 %v3291_v45, %v1692_v61 }
 0x1d5   : > { %v4216_v4 = vpop.f32.mrf.mxu0  ;;  %v1863_v39 = vpop.f32.mrf.mxu1 }
 0x1d7   : > { %v4218_v28 = vpop.f32.mrf.mxu0  ;;  %v3294_v47 = vpop.f32.mrf.mxu1 }
 0x1d9   : > { %v4220_v49 = vpop.f32.mrf.mxu0  ;;  %v1873_v17 = vpop.f32.mrf.mxu1 }
 0x1db   : > { %v4222_v3 = vpop.f32.mrf.mxu0  ;;  %v4224_v43 = vpop.f32.mrf.mxu1 }
 0x1dc   : > { %4353 = vst [vmem:[#allocation10_spill] sm:$0xff] %v4222_v3 }
 0x1dd   : > { %v3330_v56 = vpop.f32.mrf.mxu0  ;;  %v4226_v8 = vpop.f32.mrf.mxu1 }
 0x1df   : > { %v4228_v52 = vpop.f32.mrf.mxu0  ;;  %v3316_v54 = vpop.f32.mrf.mxu1 }
 0x1e1   : > { %v4230_v38 = vpop.f32.mrf.mxu0  ;;  %v2129_v25 = vpop.f32.mrf.mxu1 }
 0x1e3   : > { %v4235_v44 = vpop.f32.mrf.mxu0  ;;  %v3319_v60 = vpop.f32.mrf.mxu1 }
 0x1e4   : > { %4354 = vst [vmem:[#allocation11_spill] sm:$0xff] %v4235_v44  ;;  %v1689_v44 = vadd.f32 %v1650_v59, %v1551_v16 }
 0x1e5   : > { %v4237_v55 = vpop.f32.mrf.mxu0  ;;  %v2139_v50 = vpop.f32.mrf.mxu1 }
 0x1e6   : > { %4355 = vst [vmem:[#allocation12_spill] sm:$0xff] %v4237_v55  ;;  %v1341_v55 = vadd.f32 %v3252_v21, %v2974_v46  ;;  %v1892_v36 = vadd.f32 %v1853_v30, %v1689_v44  ;;  %v1691_v21 = vadd.f32 %v4198_v40, %v1553_v58  ;;  %v2057_v40 = vadd.f32 %v4212_v42, %v1895_v20 }
 0x1e7   : > { %v4239_v63 = vpop.f32.mrf.mxu0  ;;  %v3322_v26 = vpop.f32.mrf.mxu1 }
 0x1e8   : > { %4356 = vst [vmem:[#allocation13_spill] sm:$0xff] %v4239_v63  ;;  %v1893_v63 = vadd.f32 %v3288_v22, %v1690_v62  ;;  %v1556_v13 = vadd.f32 %v3266_v14, %v1341_v55  ;;  %v1558_v62 = vadd.f32 %v3269_v18, %v1351_v10  ;;  %v1894_v6 = vadd.f32 %v1863_v39, %v1691_v21 }
 0x1e9   : > { %v4241_v41 = vpop.f32.mrf.mxu0  ;;  %v2149_v23 = vpop.f32.mrf.mxu1  ;;  %v2054_v14 = vadd.f32 %v4210_v37, %v1892_v36  ;;  %v2171_v30 = vadd.f32 %v3319_v60, %v2057_v40 }
 0x1ea   : > { %4357 = vst [vmem:[#allocation14_spill] sm:$0xff] %v4241_v41  ;;  %v2055_v15 = vadd.f32 %v3302_v19, %v1893_v63  ;;  %v1694_v16 = vadd.f32 %v4200_v31, %v1556_v13  ;;  %v1696_v33 = vadd.f32 %v4204_v11, %v1558_v62  ;;  %v2056_v45 = vadd.f32 %v4214_v34, %v1894_v6 }
 0x1eb   : > { %v4243_v12 = vpop.f32.mrf.mxu0  ;;  %v4245_v9 = vpop.f32.mrf.mxu1  ;;  %v2168_v22 = vadd.f32 %v2129_v25, %v2054_v14  ;;  %v4359_v55 = vld [vmem:[#allocation11_spill] sm:$0xff] }
 0x1ec   : > { %4358 = vst [vmem:[#allocation15_spill] sm:$0xff] %v4243_v12  ;;  %v1555_v12 = vadd.f32 %v1532_v32, %v1336_v35  ;;  %v2169_v0 = vadd.f32 %v3316_v54, %v2055_v15  ;;  %v1897_v2 = vadd.f32 %v3294_v47, %v1694_v16  ;;  %v1899_v37 = vadd.f32 %v4224_v43, %v1696_v33 }
 0x1ed   : > { %v4247_v3 = vpop.f32.mrf.mxu1  ;;  %v3358_v51 = vpop.f32.mrf.mxu0  ;;  %v2330_v42 = vadd.f32 %v4228_v52, %v2168_v22  ;;  %v4360_v52 = vld [vmem:[#allocation10_spill] sm:$0xff] }
 0x1ee   : > { %v1693_v53 = vadd.f32 %v4202_v27, %v1555_v12  ;;  %v2331_v39 = vadd.f32 %v3330_v56, %v2169_v0  ;;  %v2059_v47 = vadd.f32 %v4216_v4, %v1897_v2  ;;  %v2170_v27 = vadd.f32 %v2139_v50, %v2056_v45 }
 0x1ef   : > { %v3344_v41 = vpop.f32.mrf.mxu1  ;;  %v2591_v57 = vpop.f32.mrf.mxu0  ;;  %v2333_v56 = vadd.f32 %v4230_v38, %v2171_v30  ;;  %v2061_v24 = vadd.f32 %v4220_v49, %v1899_v37  ;;  %v4361_v38 = vld [vmem:[#allocation12_spill] sm:$0xff]  ;;  %v4362_v36 = vld [vmem:[#allocation13_spill] sm:$0xff] }
 0x1f0   : > { %v1896_v19 = vadd.f32 %v1873_v17, %v1693_v53  ;;  %v2493_v54 = vadd.f32 %v3344_v41, %v2331_v39  ;;  %v1898_v17 = vadd.f32 %v4226_v8, %v1695_v7  ;;  %v2173_v11 = vadd.f32 %v3322_v26, %v2059_v47  ;;  %v4273_v8 = vld [vmem:[%s4337_s8] ss:$0 sm:$0xff]  ;;  %v4366_v53 = vld [vmem:[#allocation4_spill] sm:$0xff]  ;;  %v4368_v39 = vld [vmem:[#allocation5_spill] sm:$0xff] }
 0x1f1   : > { %v2453_v48 = vpop.f32.mrf.mxu1  ;;  %v3361_v18 = vpop.f32.mrf.mxu0  ;;  %v2332_v50 = vadd.f32 %v4359_v55, %v2170_v27  ;;  %v854_v62 = vadd.f32 %v4273_v8, %v4364_v5  ;;  %v856_v37 = vadd.f32 %v4273_v8, %v4368_v39 }
 0x1f2   : > { %v2058_v25 = vadd.f32 %v4218_v28, %v1896_v19  ;;  %v2492_v34 = vadd.f32 %v2453_v48, %v2330_v42  ;;  %v2631_v63 = vadd.f32 %v3358_v51, %v2493_v54  ;;  %v2175_v28 = vadd.f32 %v4245_v9, %v2061_v24  ;;  %v4363_v48 = vld [vmem:[#allocation2_spill] sm:$0xff]  ;;  %v4370_v24 = vld [vmem:[#allocation7_spill] sm:$0xff] }
 0x1f3   : > { %v3347_v59 = vpop.f32.mrf.mxu1  ;;  %v2601_v46 = vpop.f32.mrf.mxu0  ;;  %v2060_v26 = vadd.f32 %v4360_v52, %v1898_v17  ;;  %v855_v20 = vadd.f32 %v4273_v8, %v4363_v48  ;;  %v4367_v22 = vld [vmem:[#allocation15_spill] sm:$0xff] }
 0x1f4   : > { %v2172_v43 = vadd.f32 %v2149_v23, %v2058_v25  ;;  %v2495_v4 = vadd.f32 %v3347_v59, %v2333_v56  ;;  %v2335_v23 = vadd.f32 %v4361_v38, %v2173_v11  ;;  %v2630_v35 = vadd.f32 %v2591_v57, %v2492_v34  ;;  %v4365_v57 = vld [vmem:[#allocation14_spill] sm:$0xff] }
 0x1f5   : > { %v2463_v32 = vpop.f32.mrf.mxu1  ;;  %v3364_v29 = vpop.f32.mrf.mxu0  ;;  %v2174_v13 = vadd.f32 %v4247_v3, %v2060_v26  ;;  %v2337_v59 = vadd.f32 %v4365_v57, %v2175_v28  ;;  %v4369_v11 = vld [vmem:[#allocation6_spill] sm:$0xff] }
 0x1f6   : > { %v2494_v49 = vadd.f32 %v2463_v32, %v2332_v50  ;;  %v2334_v61 = vadd.f32 %v4362_v36, %v2172_v43  ;;  %v2633_v15 = vadd.f32 %v3361_v18, %v2495_v4  ;;  %v857_v32 = vadd.f32 %v4273_v8, %v4366_v53 }
 0x1f7   : > { %v3350_v31 = vpop.f32.mrf.mxu1  ;;  %v2611_v3 = vpop.f32.mrf.mxu0  ;;  %v2336_v40 = vadd.f32 %v4367_v22, %v2174_v13  ;;  %v859_v25 = vadd.f32 %v4273_v8, %v4369_v11 }
 0x1f8   : > { %v2497_v51 = vadd.f32 %v3350_v31, %v2335_v23  ;;  %v2632_v2 = vadd.f32 %v2601_v46, %v2494_v49 }
 0x1f9   : > { %v2473_v12 = vpop.f32.mrf.mxu1  ;;  %v3367_v7 = vpop.f32.mrf.mxu0 }
 0x1fa   : > { %v2496_v16 = vadd.f32 %v2473_v12, %v2334_v61  ;;  %v2635_v33 = vadd.f32 %v3364_v29, %v2497_v51  ;;  %v4371_v29 = vld [vmem:[#allocation8_spill] sm:$0xff] }
 0x1fb   : > { %v3353_v44 = vpop.f32.mrf.mxu1  ;;  %v2621_v4 = vpop.f32.mrf.mxu0  ;;  %v861_v38 = vadd.f32 %v4273_v8, %v4371_v29 }
 0x1fc   : > { %v2499_v18 = vadd.f32 %v3353_v44, %v2337_v59  ;;  %v2634_v12 = vadd.f32 %v2611_v3, %v2496_v16 }
 0x1fd   : > { %v2483_v60 = vpop.f32.mrf.mxu1 }
 0x1fe   : > { %v2498_v27 = vadd.f32 %v2483_v60, %v2336_v40  ;;  %v2637_v43 = vadd.f32 %v3367_v7, %v2499_v18  ;;  %v858_v60 = vadd.f32 %v4273_v8, %v4370_v24 }
 0x1ff   : > { %v3372_v41 = vpop.f32.mrf.mxu1 }
 0x200   : > { %v2793_v58 = vadd.f32 %v3372_v41, %v2631_v63  ;;  %v2636_v52 = vadd.f32 %v2621_v4, %v2498_v27 }
 0x201   : > { %v2753_v10 = vpop.f32.mrf.mxu1 }
 0x202   : > { %v2801_v9 = vmax.f32 %v2793_v58, 0.0  ;;  %v2792_v21 = vadd.f32 %v2753_v10, %v2630_v35  ;;  %v4372_v58 = vld [vmem:[#allocation9_spill] sm:$0xff] }
 0x203   : > { %v3375_v6 = vpop.f32.mrf.mxu1  ;;  %v860_v35 = vadd.f32 %v4273_v8, %v4372_v58 }
 0x204   : > { %v2809_v0 = vadd.f32 %v2801_v9, %v855_v20  ;;  %v2800_v14 = vmax.f32 %v2792_v21, 0.0  ;;  %v2795_v1 = vadd.f32 %v3375_v6, %v2633_v15 }
 0x205   : > { %v2763_v19 = vpop.f32.mrf.mxu1 }
 0x206   : > { %2817 = vst.msk [vmem:[%s4286_s16 + $0x8] sm:$0xff] %vm588_vm0, %v2809_v0  ;;  %v2808_v31 = vadd.f32 %v2800_v14, %v854_v62  ;;  %v2803_v30 = vmax.f32 %v2795_v1, 0.0  ;;  %v2794_v45 = vadd.f32 %v2763_v19, %v2632_v2 }
 0x207   : > { %v3378_v47 = vpop.f32.mrf.mxu1 }
 0x208   : > { %2816 = vst.msk [vmem:[%s4286_s16] sm:$0xff] %vm588_vm0, %v2808_v31  ;;  %v2811_v54 = vadd.f32 %v2803_v30, %v857_v32  ;;  %v2802_v42 = vmax.f32 %v2794_v45, 0.0  ;;  %v2797_v17 = vadd.f32 %v3378_v47, %v2635_v33 }
 0x209   : > { %v2773_v46 = vpop.f32.mrf.mxu1 }
 0x20a   : > { %2819 = vst.msk [vmem:[%s4286_s16 + $0x18] sm:$0xff] %vm588_vm0, %v2811_v54  ;;  %v2810_v44 = vadd.f32 %v2802_v42, %v856_v37  ;;  %v2805_v34 = vmax.f32 %v2797_v17, 0.0  ;;  %v2796_v56 = vadd.f32 %v2773_v46, %v2634_v12 }
 0x20b   : > { %v3381_v55 = vpop.f32.mrf.mxu1 }
 0x20c   : > { %2818 = vst.msk [vmem:[%s4286_s16 + $0x10] sm:$0xff] %vm588_vm0, %v2810_v44  ;;  %v2813_v50 = vadd.f32 %v2805_v34, %v859_v25  ;;  %v2804_v63 = vmax.f32 %v2796_v56, 0.0  ;;  %v2799_v28 = vadd.f32 %v3381_v55, %v2637_v43 }
 0x20d   : > { %v2783_v26 = vpop.f32.mrf.mxu1 }
 0x20e   : > { %2821 = vst.msk [vmem:[%s4286_s16 + $0x28] sm:$0xff] %vm588_vm0, %v2813_v50  ;;  %v2812_v23 = vadd.f32 %v2804_v63, %v858_v60  ;;  %v2807_v41 = vmax.f32 %v2799_v28, 0.0  ;;  %v2798_v49 = vadd.f32 %v2783_v26, %v2636_v52 }
 0x210   : > { %2820 = vst.msk [vmem:[%s4286_s16 + $0x20] sm:$0xff] %vm588_vm0, %v2812_v23  ;;  %v2815_v13 = vadd.f32 %v2807_v41, %v861_v38  ;;  %v2806_v51 = vmax.f32 %v2798_v49, 0.0 }
 0x212   : > { %2823 = vst.msk [vmem:[%s4286_s16 + $0x38] sm:$0xff] %vm588_vm0, %v2815_v13  ;;  %v2814_v36 = vadd.f32 %v2806_v51, %v860_v35 }
 0x214   : > { %2822 = vst.msk [vmem:[%s4286_s16 + $0x30] sm:$0xff] %vm588_vm0, %v2814_v36 }
 0x215 PF: > { %s25_s20 = sadd.s32 1, %s3431_s20   ;;  %s4373_s18 = smov %s3427_s19 }
 0x216   : > { %p22_p5 = scmp.ge.s32.totalorder %s25_s20, 4   ;;  %s4374_s19 = smov %s4376_s21 }
 0x218   :  { %24 = sbr.rel (!%p22_p5) target bundleno = 2 (0x2), region = 113 }

// kernel: ccfm_forward.9
= control target key start
LH: loop header
LB: loop body
LE: loop exit
PB: predicated region body
PF: predicated region fallthrough
CT: control target
= control target key end

     0   :  { %s8538_s18 = smov 0   ;;  %s8540_s19 = smov 0   ;;  %s12191_s0 = inlined_call_operand.vmem [shape: f32[2,128,8], index: 0, kind: input, shape index: {}]   ;;  %s12192_s1 = inlined_call_operand.vmem [shape: f32[2,256,8], index: 1, kind: input, shape index: {}]   ;;  %s12193_s2 = inlined_call_operand.vmem [shape: f32[256,1], index: 2, kind: input, shape index: {}]   ;;  %s12194_s3 = inlined_call_operand.vmem [shape: f32[256,1], index: 3, kind: input, shape index: {}]   ;;  %s12195_s4 = inlined_call_operand.vmem [shape: f32[256,1], index: 4, kind: input, shape index: {}]   ;;  %s12196_s5 = inlined_call_operand.vmem [shape: f32[256,1], index: 5, kind: input, shape index: {}]   ;;  %s12197_s6 = inlined_call_operand.vmem [shape: f32[8,8], index: 6, kind: input, shape index: {}]   ;;  %s12198_s7 = inlined_call_operand.vmem [shape: f32[8,8], index: 7, kind: input, shape index: {}]   ;;  %s12199_s8 = inlined_call_operand.vmem [shape: f32[1,8], index: 8, kind: input, shape index: {}]   ;;  %s12200_s9 = inlined_call_operand.vmem [shape: f32[8,8], index: 9, kind: input, shape index: {}]   ;;  %s12201_s10 = inlined_call_operand.vmem [shape: f32[8,8], index: 10, kind: input, shape index: {}]   ;;  %s12202_s11 = inlined_call_operand.vmem [shape: f32[1,8], index: 11, kind: input, shape index: {}]   ;;  %s12203_s12 = inlined_call_operand.vmem [shape: f32[72,8], index: 12, kind: input, shape index: {}]   ;;  %s12204_s13 = inlined_call_operand.vmem [shape: f32[8,8], index: 13, kind: input, shape index: {}]   ;;  %s12205_s14 = inlined_call_operand.vmem [shape: f32[1,8], index: 14, kind: input, shape index: {}]   ;;  %s12206_s15 = inlined_call_operand.vmem [shape: f32[2,256,8], index: 15, kind: output, shape index: {}]  }
   0x1   :  { %s8542_s20 = smov 0  }
   0x2 LB: > { %s37_s21 = sadd.s32 1, %s8451_s19  ;;  %p6781_p0 = scmp.ge.s32.totalorder %s8455_s20, 1  ;;  %s8455_s20 = sphi %s8542_s20, %s25_s20   ;;  %s8451_s19 = sphi %s8540_s19, %s13003_s19   ;;  %s8447_s18 = sphi %s8538_s18, %s13002_s18  }
   0x3   : > { %p39_p1 = scmp.ge.s32.totalorder %s37_s21, 2  ;;  %p475_p2 = scmp.lt.s32.totalorder %s8455_s20, 3 }
   0x5   : > { %s13005_s21 = smov (%p39_p1, %s37_s21), 0  ;;  %p476_p3 = pnand %p6781_p0, %p475_p2 }
   0x7   : > { %479 = sbr.rel (%p476_p3) target bundleno = 869 (0x365), region = 80 }
   0xc   : > { %v1746_v0 = vld [vmem:[%s12195_s4 + $0x8] sm:$0xff]  ;;  %v1745_v1 = vld [vmem:[%s12195_s4] sm:$0xff]  ;;  %p541_p4 = scmp.lt.s32.totalorder %s8447_s18, 1  ;;  %v8457_v3 = vmov 0   ;;  %v1747_v7 = vld [vmem:[%s12195_s4 + $0x10] sm:$0xff]  ;;  %vm620_vm0 = vcmask 64512  }
   0xd   : > { %v619_v2 = vld [vmem:[%s12198_s7] sm:$0xff]  ;;  %8432 = vset.pattern.permute.xlu1 %v8457_v3  ;;  %8431 = vset.pattern.permute.xlu0 %v8457_v3  ;;  %v1776_v8 = vld [vmem:[%s12195_s4 + $0xf8] sm:$0xff]  ;;  %v2194_v20 = vld [vmem:[%s12193_s2 + $0x8] sm:$0xff] }
   0xe   : > { %v618_v4 = vld [vmem:[%s12197_s6] sm:$0xff]  ;;  %1784 = vperm.xlu1 %8432, %v1746_v0   ;;  %1779 = vperm.xlu0 %8431, %v1745_v1   ;;  %s13007_s18 = smov (!%p541_p4, %s8447_s18), 1  ;;  %v1748_v14 = vld [vmem:[%s12195_s4 + $0x18] sm:$0xff]  ;;  %v2195_v24 = vld [vmem:[%s12193_s2 + $0x10] sm:$0xff] }
   0xf   : > { %v1255_v5 = vld [vmem:[%s12201_s10] sm:$0xff]  ;;  %7706 = vmatprep.subr.mxu0 %v619_v2  ;;  %7756 = vmatprep.subr.mxu1 %v618_v4  ;;  %s7242_s27 = sshll.u32 %s13007_s18, 8  ;;  %s7241_s28 = sshll.u32 %s13007_s18, 7  ;;  %v1750_v25 = vld [vmem:[%s12195_s4 + $0x28] sm:$0xff]  ;;  %v1751_v28 = vld [vmem:[%s12195_s4 + $0x30] sm:$0xff] }
  0x10   : > { %v1254_v6 = vld [vmem:[%s12200_s9] sm:$0xff]  ;;  %7707 = vmatpush3.msra.mxu0 %v619_v2  ;;  %7757 = vmatpush3.msra.mxu1 %v618_v4  ;;  %s8589_s16 = scalar_lea.vmem %s12192_s1, %s7242_s27  ;;  %s8597_s23 = scalar_lea.vmem %s12191_s0, %s7241_s28  ;;  %v2196_v30 = vld [vmem:[%s12193_s2 + $0x18] sm:$0xff]  ;;  %v2198_v40 = vld [vmem:[%s12193_s2 + $0x28] sm:$0xff] }
  0x11   : > { %7806 = vmatprep.subr.mxu0 %v1255_v5  ;;  %7856 = vmatprep.subr.mxu1 %v1254_v6  ;;  %v8592_v9 = vld [vmem:[%s8589_s16] sm:$0xff]  ;;  %v8600_v10 = vld [vmem:[%s8589_s16 + $0x8] sm:$0xff]  ;;  %v8621_v15 = vld [vmem:[%s8589_s16 + $0x10] sm:$0xff]  ;;  %s11923_s24 = scalar_lea.vmem %s12206_s15, %s7242_s27 }
  0x12   : > { %1789 = vperm.xlu1 %8432, %v1747_v7   ;;  %1934 = vperm.xlu0 %8431, %v1776_v8   ;;  %v8605_v11 = vld [vmem:[%s8597_s23] sm:$0xff]  ;;  %v8608_v12 = vld [vmem:[%s8597_s23 + $0x8] sm:$0xff]  ;;  %v8626_v16 = vld [vmem:[%s8589_s16 + $0x18] sm:$0xff] }
  0x13   : > { %7708 = vmatprep.mubr.msk.f32.mxu0 %vm620_vm0, %v8592_v9  ;;  %v2193_v13 = vld [vmem:[%s12193_s2] sm:$0xff]  ;;  %7758 = vmatprep.mubr.msk.f32.mxu1 %vm620_vm0, %v8605_v11  ;;  %v8637_v19 = vld [vmem:[%s8597_s23 + $0x10] sm:$0xff]  ;;  %v8651_v21 = vld [vmem:[%s8589_s16 + $0x28] sm:$0xff] }
  0x14   : > { %7709 = vmatmul.mubr.msk.f32.vlgmr.msra.gmra.mxu0 %vm620_vm0, %v8600_v10  ;;  %7759 = vmatmul.mubr.msk.f32.vlgmr.msra.gmra.mxu1 %vm620_vm0, %v8608_v12  ;;  %v8629_v17 = vld [vmem:[%s8589_s16 + $0x20] sm:$0xff]  ;;  %v8656_v22 = vld [vmem:[%s8597_s23 + $0x18] sm:$0xff]  ;;  %v8659_v23 = vld [vmem:[%s8589_s16 + $0x30] sm:$0xff] }
  0x15   : > { %7807 = vmatpush3.msra.mxu0 %v1255_v5  ;;  %7857 = vmatpush3.msra.mxu1 %v1254_v6  ;;  %v1749_v18 = vld [vmem:[%s12195_s4 + $0x20] sm:$0xff]  ;;  %v8674_v26 = vld [vmem:[%s8589_s16 + $0x38] sm:$0xff]  ;;  %v8697_v31 = vld [vmem:[%s8589_s16 + $0x48] sm:$0xff] }
  0x16   : > { %2655 = vperm.xlu1 %8432, %v2193_v13   ;;  %1794 = vperm.xlu0 %8431, %v1748_v14   ;;  %v8679_v27 = vld [vmem:[%s8589_s16 + $0x40] sm:$0xff]  ;;  %v8702_v32 = vld [vmem:[%s8597_s23 + $0x28] sm:$0xff]  ;;  %v8705_v33 = vld [vmem:[%s8589_s16 + $0x50] sm:$0xff] }
  0x17   : > { %7711 = vmatprep.mubr.msk.f32.mxu0 %vm620_vm0, %v8621_v15  ;;  %7761 = vmatprep.mubr.msk.f32.mxu1 %vm620_vm0, %v8605_v11  ;;  %v8685_v29 = vld [vmem:[%s8597_s23 + $0x20] sm:$0xff]  ;;  %v1752_v35 = vld [vmem:[%s12195_s4 + $0x38] sm:$0xff]  ;;  %v8731_v39 = vld [vmem:[%s8597_s23 + $0x30] sm:$0xff] }
  0x18   : > { %7712 = vmatmul.mubr.msk.f32.gmra.mxu0 %vm620_vm0, %v8626_v16  ;;  %7762 = vmatmul.mubr.msk.f32.gmra.mxu1 %vm620_vm0, %v8608_v12  ;;  %v2197_v34 = vld [vmem:[%s12193_s2 + $0x20] sm:$0xff]  ;;  %v8720_v36 = vld [vmem:[%s8589_s16 + $0x58] sm:$0xff]  ;;  %v8743_v41 = vld [vmem:[%s8589_s16 + $0x68] sm:$0xff] }
  0x19   : > { %7714 = vmatprep.mubr.msk.f32.mxu0 %vm620_vm0, %v8629_v17  ;;  %7764 = vmatprep.mubr.msk.f32.mxu1 %vm620_vm0, %v8637_v19  ;;  %v8725_v37 = vld [vmem:[%s8589_s16 + $0x60] sm:$0xff]  ;;  %v8748_v42 = vld [vmem:[%s8597_s23 + $0x38] sm:$0xff]  ;;  %v8751_v43 = vld [vmem:[%s8589_s16 + $0x70] sm:$0xff] }
  0x1a   : > { %1799 = vperm.xlu1 %8432, %v1749_v18   ;;  %2660 = vperm.xlu0 %8431, %v2194_v20   ;;  %v1753_v38 = vld [vmem:[%s12195_s4 + $0x40] sm:$0xff]  ;;  %v2199_v44 = vld [vmem:[%s12193_s2 + $0x30] sm:$0xff]  ;;  %v1754_v45 = vld [vmem:[%s12195_s4 + $0x48] sm:$0xff] }
  0x1b   : > { %v8766_v46 = vld [vmem:[%s8589_s16 + $0x78] sm:$0xff]  ;;  %v8771_v47 = vld [vmem:[%s8589_s16 + $0x80] sm:$0xff]  ;;  %v1755_v48 = vld [vmem:[%s12195_s4 + $0x50] sm:$0xff] }
  0x1c   : > { %7715 = vmatmul.mubr.msk.f32.gmra.mxu0 %vm620_vm0, %v8651_v21  ;;  %7765 = vmatmul.mubr.msk.f32.gmra.mxu1 %vm620_vm0, %v8656_v22  ;;  %v8777_v49 = vld [vmem:[%s8597_s23 + $0x40] sm:$0xff]  ;;  %v2200_v50 = vld [vmem:[%s12193_s2 + $0x38] sm:$0xff]  ;;  %v8789_v51 = vld [vmem:[%s8589_s16 + $0x88] sm:$0xff] }
  0x1d   : > { %7717 = vmatprep.mubr.msk.f32.mxu0 %vm620_vm0, %v8659_v23  ;;  %7767 = vmatprep.mubr.msk.f32.mxu1 %vm620_vm0, %v8637_v19  ;;  %v8794_v52 = vld [vmem:[%s8597_s23 + $0x48] sm:$0xff]  ;;  %v8797_v53 = vld [vmem:[%s8589_s16 + $0x90] sm:$0xff]  ;;  %v2201_v54 = vld [vmem:[%s12193_s2 + $0x40] sm:$0xff] }
  0x1e   : > { %2665 = vperm.xlu1 %8432, %v2195_v24   ;;  %1804 = vperm.xlu0 %8431, %v1750_v25   ;;  %v1756_v55 = vld [vmem:[%s12195_s4 + $0x58] sm:$0xff]  ;;  %v8817_v57 = vld [vmem:[%s8589_s16 + $0xa0] sm:$0xff]  ;;  %v8823_v59 = vld [vmem:[%s8597_s23 + $0x50] sm:$0xff] }
  0x1f   : > { %v8812_v56 = vld [vmem:[%s8589_s16 + $0x98] sm:$0xff]  ;;  %v1757_v58 = vld [vmem:[%s12195_s4 + $0x60] sm:$0xff]  ;;  %v2202_v60 = vld [vmem:[%s12193_s2 + $0x48] sm:$0xff] }
  0x20   : > { %7718 = vmatmul.mubr.msk.f32.gmra.mxu0 %vm620_vm0, %v8674_v26  ;;  %7768 = vmatmul.mubr.msk.f32.gmra.mxu1 %vm620_vm0, %v8656_v22  ;;  %v8835_v61 = vld [vmem:[%s8589_s16 + $0xa8] sm:$0xff]  ;;  %v8840_v62 = vld [vmem:[%s8597_s23 + $0x58] sm:$0xff]  ;;  %v8843_v63 = vld [vmem:[%s8589_s16 + $0xb0] sm:$0xff] }
  0x21   : > { %7720 = vmatprep.mubr.msk.f32.mxu0 %vm620_vm0, %v8679_v27  ;;  %7770 = vmatprep.mubr.msk.f32.mxu1 %vm620_vm0, %v8685_v29  ;;  %v2203_v0 = vld [vmem:[%s12193_s2 + $0x50] sm:$0xff]  ;;  %v1758_v1 = vld [vmem:[%s12195_s4 + $0x68] sm:$0xff]  ;;  %v8858_v2 = vld [vmem:[%s8589_s16 + $0xb8] sm:$0xff] }
  0x22   : > { %1809 = vperm.xlu1 %8432, %v1751_v28   ;;  %2670 = vperm.xlu0 %8431, %v2196_v30   ;;  %v8863_v3 = vld [vmem:[%s8589_s16 + $0xc0] sm:$0xff]  ;;  %v1759_v4 = vld [vmem:[%s12195_s4 + $0x70] sm:$0xff]  ;;  %v2204_v6 = vld [vmem:[%s12193_s2 + $0x58] sm:$0xff] }
  0x23   : > { %v8869_v5 = vld [vmem:[%s8597_s23 + $0x60] sm:$0xff]  ;;  %v8881_v7 = vld [vmem:[%s8589_s16 + $0xc8] sm:$0xff]  ;;  %v8889_v13 = vld [vmem:[%s8589_s16 + $0xd0] sm:$0xff] }
  0x24   : > { %7721 = vmatmul.mubr.msk.f32.gmra.mxu0 %vm620_vm0, %v8697_v31  ;;  %7771 = vmatmul.mubr.msk.f32.gmra.mxu1 %vm620_vm0, %v8702_v32  ;;  %v8886_v8 = vld [vmem:[%s8597_s23 + $0x68] sm:$0xff]  ;;  %v2205_v14 = vld [vmem:[%s12193_s2 + $0x60] sm:$0xff]  ;;  %v1760_v18 = vld [vmem:[%s12195_s4 + $0x78] sm:$0xff] }
  0x25   : > { %7723 = vmatprep.mubr.msk.f32.mxu0 %vm620_vm0, %v8705_v33  ;;  %7773 = vmatprep.mubr.msk.f32.mxu1 %vm620_vm0, %v8685_v29  ;;  %v8904_v20 = vld [vmem:[%s8589_s16 + $0xd8] sm:$0xff]  ;;  %v8909_v24 = vld [vmem:[%s8589_s16 + $0xe0] sm:$0xff]  ;;  %v8915_v28 = vld [vmem:[%s8597_s23 + $0x70] sm:$0xff] }
  0x26   : > { %2675 = vperm.xlu1 %8432, %v2197_v34   ;;  %1814 = vperm.xlu0 %8431, %v1752_v35   ;;  %v1761_v25 = vld [vmem:[%s12195_s4 + $0x80] sm:$0xff]  ;;  %v2206_v30 = vld [vmem:[%s12193_s2 + $0x68] sm:$0xff]  ;;  %v8932_v35 = vld [vmem:[%s8597_s23 + $0x78] sm:$0xff] }
  0x27   : > { %v8927_v34 = vld [vmem:[%s8589_s16 + $0xe8] sm:$0xff] }
  0x28   : > { %7724 = vmatmul.mubr.msk.f32.gmra.mxu0 %vm620_vm0, %v8720_v36  ;;  %7774 = vmatmul.mubr.msk.f32.gmra.mxu1 %vm620_vm0, %v8702_v32 }
  0x29   : > { %7726 = vmatprep.mubr.msk.f32.mxu0 %vm620_vm0, %v8725_v37  ;;  %7776 = vmatprep.mubr.msk.f32.mxu1 %vm620_vm0, %v8731_v39 }
  0x2a   : > { %1819 = vperm.xlu1 %8432, %v1753_v38   ;;  %2680 = vperm.xlu0 %8431, %v2198_v40   ;;  %v8935_v38 = vld [vmem:[%s8589_s16 + $0xf0] sm:$0xff] }
  0x2b   : > { %v2207_v40 = vld [vmem:[%s12193_s2 + $0x70] sm:$0xff] }
  0x2c   : > { %7727 = vmatmul.mubr.msk.f32.gmra.mxu0 %vm620_vm0, %v8743_v41  ;;  %7777 = vmatmul.mubr.msk.f32.gmra.mxu1 %vm620_vm0, %v8748_v42 }
  0x2d   : > { %7729 = vmatprep.mubr.msk.f32.mxu0 %vm620_vm0, %v8751_v43  ;;  %7779 = vmatprep.mubr.msk.f32.mxu1 %vm620_vm0, %v8731_v39 }
  0x2e   : > { %2685 = vperm.xlu1 %8432, %v2199_v44   ;;  %1824 = vperm.xlu0 %8431, %v1754_v45   ;;  %v1762_v44 = vld [vmem:[%s12195_s4 + $0x88] sm:$0xff]  ;;  %v8950_v45 = vld [vmem:[%s8589_s16 + $0xf8] sm:$0xff] }
  0x30   : > { %7730 = vmatmul.mubr.msk.f32.gmra.mxu0 %vm620_vm0, %v8766_v46  ;;  %7780 = vmatmul.mubr.msk.f32.gmra.mxu1 %vm620_vm0, %v8748_v42 }
  0x31   : > { %7732 = vmatprep.mubr.msk.f32.mxu0 %vm620_vm0, %v8771_v47  ;;  %7782 = vmatprep.mubr.msk.f32.mxu1 %vm620_vm0, %v8777_v49 }
  0x32   : > { %1829 = vperm.xlu1 %8432, %v1755_v48   ;;  %2690 = vperm.xlu0 %8431, %v2200_v50   ;;  %v1763_v48 = vld [vmem:[%s12195_s4 + $0x90] sm:$0xff]  ;;  %v2208_v50 = vld [vmem:[%s12193_s2 + $0x78] sm:$0xff] }
  0x34   : > { %7733 = vmatmul.mubr.msk.f32.gmra.mxu0 %vm620_vm0, %v8789_v51  ;;  %7783 = vmatmul.mubr.msk.f32.gmra.mxu1 %vm620_vm0, %v8794_v52 }
  0x35   : > { %7735 = vmatprep.mubr.msk.f32.mxu0 %vm620_vm0, %v8797_v53  ;;  %7785 = vmatprep.mubr.msk.f32.mxu1 %vm620_vm0, %v8777_v49 }
  0x36   : > { %2695 = vperm.xlu1 %8432, %v2201_v54   ;;  %1834 = vperm.xlu0 %8431, %v1756_v55   ;;  %v2209_v54 = vld [vmem:[%s12193_s2 + $0x80] sm:$0xff]  ;;  %v1764_v55 = vld [vmem:[%s12195_s4 + $0x98] sm:$0xff] }
  0x38   : > { %7736 = vmatmul.mubr.msk.f32.gmra.mxu0 %vm620_vm0, %v8812_v56  ;;  %7786 = vmatmul.mubr.msk.f32.gmra.mxu1 %vm620_vm0, %v8794_v52 }
  0x39   : > { %7738 = vmatprep.mubr.msk.f32.mxu0 %vm620_vm0, %v8817_v57  ;;  %7788 = vmatprep.mubr.msk.f32.mxu1 %vm620_vm0, %v8823_v59 }
  0x3a   : > { %1839 = vperm.xlu1 %8432, %v1757_v58   ;;  %2700 = vperm.xlu0 %8431, %v2202_v60   ;;  %v2229_v58 = vld [vmem:[%s12194_s3 + $0x20] sm:$0xff]  ;;  %v2231_v60 = vld [vmem:[%s12194_s3 + $0x30] sm:$0xff] }
  0x3c   : > { %7739 = vmatmul.mubr.msk.f32.gmra.mxu0 %vm620_vm0, %v8835_v61  ;;  %7789 = vmatmul.mubr.msk.f32.gmra.mxu1 %vm620_vm0, %v8840_v62 }
  0x3d   : > { %7741 = vmatprep.mubr.msk.f32.mxu0 %vm620_vm0, %v8843_v63  ;;  %7791 = vmatprep.mubr.msk.f32.mxu1 %vm620_vm0, %v8823_v59 }
  0x3e   : > { %2705 = vperm.xlu1 %8432, %v2203_v0   ;;  %1844 = vperm.xlu0 %8431, %v1758_v1   ;;  %v2236_v0 = vld [vmem:[%s12194_s3 + $0x58] sm:$0xff]  ;;  %v2235_v1 = vld [vmem:[%s12194_s3 + $0x50] sm:$0xff] }
  0x40   : > { %7742 = vmatmul.mubr.msk.f32.gmra.mxu0 %vm620_vm0, %v8858_v2  ;;  %7792 = vmatmul.mubr.msk.f32.gmra.mxu1 %vm620_vm0, %v8840_v62 }
  0x41   : > { %7744 = vmatprep.mubr.msk.f32.mxu0 %vm620_vm0, %v8863_v3  ;;  %7794 = vmatprep.mubr.msk.f32.mxu1 %vm620_vm0, %v8869_v5 }
  0x42   : > { %1849 = vperm.xlu1 %8432, %v1759_v4   ;;  %2710 = vperm.xlu0 %8431, %v2204_v6   ;;  %v2237_v4 = vld [vmem:[%s12194_s3 + $0x60] sm:$0xff]  ;;  %v2239_v6 = vld [vmem:[%s12194_s3 + $0x70] sm:$0xff] }
  0x44   : > { %7745 = vmatmul.mubr.msk.f32.gmra.mxu0 %vm620_vm0, %v8881_v7  ;;  %7795 = vmatmul.mubr.msk.f32.gmra.mxu1 %vm620_vm0, %v8886_v8 }
  0x45   : > { %7747 = vmatprep.mubr.msk.f32.mxu0 %vm620_vm0, %v8889_v13  ;;  %7797 = vmatprep.mubr.msk.f32.mxu1 %vm620_vm0, %v8869_v5 }
  0x46   : > { %2715 = vperm.xlu1 %8432, %v2205_v14   ;;  %1854 = vperm.xlu0 %8431, %v1760_v18   ;;  %v2243_v14 = vld [vmem:[%s12194_s3 + $0x90] sm:$0xff]  ;;  %v2246_v18 = vld [vmem:[%s12194_s3 + $0xa8] sm:$0xff] }
  0x48   : > { %7748 = vmatmul.mubr.msk.f32.gmra.mxu0 %vm620_vm0, %v8904_v20  ;;  %7798 = vmatmul.mubr.msk.f32.gmra.mxu1 %vm620_vm0, %v8886_v8 }
  0x49   : > { %7750 = vmatprep.mubr.msk.f32.mxu0 %vm620_vm0, %v8909_v24  ;;  %7800 = vmatprep.mubr.msk.f32.mxu1 %vm620_vm0, %v8915_v28 }
  0x4a   : > { %1859 = vperm.xlu1 %8432, %v1761_v25   ;;  %2720 = vperm.xlu0 %8431, %v2206_v30   ;;  %v2247_v30 = vld [vmem:[%s12194_s3 + $0xb0] sm:$0xff] }
  0x4c   : > { %7751 = vmatmul.mubr.msk.f32.gmra.mxu0 %vm620_vm0, %v8927_v34  ;;  %7801 = vmatmul.mubr.msk.f32.gmra.mxu1 %vm620_vm0, %v8932_v35 }
  0x4d   : > { %7753 = vmatprep.mubr.msk.f32.mxu0 %vm620_vm0, %v8935_v38  ;;  %7803 = vmatprep.mubr.msk.f32.mxu1 %vm620_vm0, %v8915_v28 }
  0x4e   : > { %2725 = vperm.xlu1 %8432, %v2207_v40   ;;  %1864 = vperm.xlu0 %8431, %v1762_v44   ;;  %v2252_v44 = vld [vmem:[%s12194_s3 + $0xd8] sm:$0xff] }
  0x50   : > { %7754 = vmatmul.mubr.msk.f32.gmra.mxu0 %vm620_vm0, %v8950_v45  ;;  %7804 = vmatmul.mubr.msk.f32.gmra.mxu1 %vm620_vm0, %v8932_v35 }
  0x51   : > { %7808 = vmatprep.mubr.msk.f32.mxu0 %vm620_vm0, %v8592_v9  ;;  %7858 = vmatprep.mubr.msk.f32.mxu1 %vm620_vm0, %v8605_v11  ;;  %v1765_v9 = vld [vmem:[%s12195_s4 + $0xa0] sm:$0xff] }
  0x52   : > { %1869 = vperm.xlu1 %8432, %v1763_v48   ;;  %2730 = vperm.xlu0 %8431, %v2208_v50  }
  0x54   : > { %7809 = vmatmul.mubr.msk.f32.vlgmr.msra.gmra.mxu0 %vm620_vm0, %v8600_v10  ;;  %7859 = vmatmul.mubr.msk.f32.vlgmr.msra.gmra.mxu1 %vm620_vm0, %v8608_v12  ;;  %v2210_v10 = vld [vmem:[%s12193_s2 + $0x88] sm:$0xff] }
  0x55   : > { %7811 = vmatprep.mubr.msk.f32.mxu0 %vm620_vm0, %v8621_v15  ;;  %7861 = vmatprep.mubr.msk.f32.mxu1 %vm620_vm0, %v8605_v11  ;;  %v2211_v11 = vld [vmem:[%s12193_s2 + $0x90] sm:$0xff]  ;;  %v1766_v15 = vld [vmem:[%s12195_s4 + $0xa8] sm:$0xff] }
  0x56   : > { %2735 = vperm.xlu1 %8432, %v2209_v54   ;;  %1874 = vperm.xlu0 %8431, %v1764_v55   ;;  %v2254_v54 = vld [vmem:[%s12194_s3 + $0xe8] sm:$0xff]  ;;  %v2253_v55 = vld [vmem:[%s12194_s3 + $0xe0] sm:$0xff] }
  0x58   : > { %7812 = vmatmul.mubr.msk.f32.gmra.mxu0 %vm620_vm0, %v8626_v16  ;;  %7862 = vmatmul.mubr.msk.f32.gmra.mxu1 %vm620_vm0, %v8608_v12  ;;  %v1767_v12 = vld [vmem:[%s12195_s4 + $0xb0] sm:$0xff]  ;;  %v2212_v16 = vld [vmem:[%s12193_s2 + $0x98] sm:$0xff] }
  0x59   : > { %7814 = vmatprep.mubr.msk.f32.mxu0 %vm620_vm0, %v8629_v17  ;;  %7864 = vmatprep.mubr.msk.f32.mxu1 %vm620_vm0, %v8637_v19  ;;  %v2213_v17 = vld [vmem:[%s12193_s2 + $0xa0] sm:$0xff] }
  0x5a   : > { %1879 = vperm.xlu1 %8432, %v1765_v9   ;;  %2740 = vperm.xlu0 %8431, %v2210_v10   ;;  %v2256_v9 = vld [vmem:[%s12194_s3 + $0xf8] sm:$0xff] }
  0x5c   : > { %7815 = vmatmul.mubr.msk.f32.gmra.mxu0 %vm620_vm0, %v8651_v21  ;;  %7865 = vmatmul.mubr.msk.f32.gmra.mxu1 %vm620_vm0, %v8656_v22  ;;  %v1769_v21 = vld [vmem:[%s12195_s4 + $0xc0] sm:$0xff] }
  0x5d   : > { %7817 = vmatprep.mubr.msk.f32.mxu0 %vm620_vm0, %v8659_v23  ;;  %7867 = vmatprep.mubr.msk.f32.mxu1 %vm620_vm0, %v8637_v19  ;;  %v1768_v19 = vld [vmem:[%s12195_s4 + $0xb8] sm:$0xff]  ;;  %v2215_v23 = vld [vmem:[%s12193_s2 + $0xb0] sm:$0xff] }
  0x5e   : > { %2745 = vperm.xlu1 %8432, %v2211_v11   ;;  %1884 = vperm.xlu0 %8431, %v1766_v15   ;;  %v2255_v11 = vld [vmem:[%s12194_s3 + $0xf0] sm:$0xff] }
  0x60   : > { %7818 = vmatmul.mubr.msk.f32.gmra.mxu0 %vm620_vm0, %v8674_v26  ;;  %7868 = vmatmul.mubr.msk.f32.gmra.mxu1 %vm620_vm0, %v8656_v22  ;;  %v2214_v22 = vld [vmem:[%s12193_s2 + $0xa8] sm:$0xff] }
  0x61   : > { %7820 = vmatprep.mubr.msk.f32.mxu0 %vm620_vm0, %v8679_v27  ;;  %7870 = vmatprep.mubr.msk.f32.mxu1 %vm620_vm0, %v8685_v29  ;;  %v1770_v26 = vld [vmem:[%s12195_s4 + $0xc8] sm:$0xff]  ;;  %v1771_v27 = vld [vmem:[%s12195_s4 + $0xd0] sm:$0xff] }
  0x62   : > { %1889 = vperm.xlu1 %8432, %v1767_v12   ;;  %2750 = vperm.xlu0 %8431, %v2212_v16   ;;  %v2000_v12 = vld [vmem:[%s12196_s5 + $0xf8] sm:$0xff]  ;;  %v1969_v16 = vld [vmem:[%s12196_s5] sm:$0xff] }
  0x64   : > { %7821 = vmatmul.mubr.msk.f32.gmra.mxu0 %vm620_vm0, %v8697_v31  ;;  %7871 = vmatmul.mubr.msk.f32.gmra.mxu1 %vm620_vm0, %v8702_v32  ;;  %v2217_v31 = vld [vmem:[%s12193_s2 + $0xc0] sm:$0xff] }
  0x65   : > { %7823 = vmatprep.mubr.msk.f32.mxu0 %vm620_vm0, %v8705_v33  ;;  %7873 = vmatprep.mubr.msk.f32.mxu1 %vm620_vm0, %v8685_v29  ;;  %v2216_v29 = vld [vmem:[%s12193_s2 + $0xb8] sm:$0xff]  ;;  %v1773_v33 = vld [vmem:[%s12195_s4 + $0xe0] sm:$0xff] }
  0x66   : > { %2755 = vperm.xlu1 %8432, %v2213_v17   ;;  %1894 = vperm.xlu0 %8431, %v1768_v19  }
  0x68   : > { %7824 = vmatmul.mubr.msk.f32.gmra.mxu0 %vm620_vm0, %v8720_v36  ;;  %7874 = vmatmul.mubr.msk.f32.gmra.mxu1 %vm620_vm0, %v8702_v32  ;;  %v1772_v32 = vld [vmem:[%s12195_s4 + $0xd8] sm:$0xff]  ;;  %v2218_v36 = vld [vmem:[%s12193_s2 + $0xc8] sm:$0xff] }
  0x69   : > { %7826 = vmatprep.mubr.msk.f32.mxu0 %vm620_vm0, %v8725_v37  ;;  %7876 = vmatprep.mubr.msk.f32.mxu1 %vm620_vm0, %v8731_v39  ;;  %v2219_v37 = vld [vmem:[%s12193_s2 + $0xd0] sm:$0xff] }
  0x6a   : > { %1899 = vperm.xlu1 %8432, %v1769_v21   ;;  %2760 = vperm.xlu0 %8431, %v2214_v22   ;;  %v1971_v21 = vld [vmem:[%s12196_s5 + $0x10] sm:$0xff]  ;;  %v1970_v22 = vld [vmem:[%s12196_s5 + $0x8] sm:$0xff] }
  0x6c   : > { %7827 = vmatmul.mubr.msk.f32.gmra.mxu0 %vm620_vm0, %v8743_v41  ;;  %7877 = vmatmul.mubr.msk.f32.gmra.mxu1 %vm620_vm0, %v8748_v42  ;;  %v1775_v41 = vld [vmem:[%s12195_s4 + $0xf0] sm:$0xff] }
  0x6d   : > { %7829 = vmatprep.mubr.msk.f32.mxu0 %vm620_vm0, %v8751_v43  ;;  %7879 = vmatprep.mubr.msk.f32.mxu1 %vm620_vm0, %v8731_v39  ;;  %v1774_v39 = vld [vmem:[%s12195_s4 + $0xe8] sm:$0xff] }
  0x6e   : > { %2765 = vperm.xlu1 %8432, %v2215_v23   ;;  %1904 = vperm.xlu0 %8431, %v1770_v26   ;;  %v2222_v43 = vld [vmem:[%s12193_s2 + $0xe8] sm:$0xff]  ;;  %v1973_v23 = vld [vmem:[%s12196_s5 + $0x20] sm:$0xff] }
  0x70   : > { %7830 = vmatmul.mubr.msk.f32.gmra.mxu0 %vm620_vm0, %v8766_v46  ;;  %7880 = vmatmul.mubr.msk.f32.gmra.mxu1 %vm620_vm0, %v8748_v42  ;;  %v2220_v42 = vld [vmem:[%s12193_s2 + $0xd8] sm:$0xff]  ;;  %v2221_v46 = vld [vmem:[%s12193_s2 + $0xe0] sm:$0xff] }
  0x71   : > { %7832 = vmatprep.mubr.msk.f32.mxu0 %vm620_vm0, %v8771_v47  ;;  %7882 = vmatprep.mubr.msk.f32.mxu1 %vm620_vm0, %v8777_v49  ;;  %v2224_v47 = vld [vmem:[%s12193_s2 + $0xf8] sm:$0xff] }
  0x72   : > { %1909 = vperm.xlu1 %8432, %v1771_v27   ;;  %2770 = vperm.xlu0 %8431, %v2216_v29   ;;  %v1972_v29 = vld [vmem:[%s12196_s5 + $0x18] sm:$0xff] }
  0x74   : > { %7833 = vmatmul.mubr.msk.f32.gmra.mxu0 %vm620_vm0, %v8789_v51  ;;  %7883 = vmatmul.mubr.msk.f32.gmra.mxu1 %vm620_vm0, %v8794_v52  ;;  %v2226_v51 = vld [vmem:[%s12194_s3 + $0x8] sm:$0xff] }
  0x75   : > { %7835 = vmatprep.mubr.msk.f32.mxu0 %vm620_vm0, %v8797_v53  ;;  %7885 = vmatprep.mubr.msk.f32.mxu1 %vm620_vm0, %v8777_v49  ;;  %v2223_v49 = vld [vmem:[%s12193_s2 + $0xf0] sm:$0xff]  ;;  %v2228_v53 = vld [vmem:[%s12194_s3 + $0x18] sm:$0xff] }
  0x76   : > { %2775 = vperm.xlu1 %8432, %v2217_v31   ;;  %1914 = vperm.xlu0 %8431, %v1772_v32  }
  0x78   : > { %7836 = vmatmul.mubr.msk.f32.gmra.mxu0 %vm620_vm0, %v8812_v56  ;;  %7886 = vmatmul.mubr.msk.f32.gmra.mxu1 %vm620_vm0, %v8794_v52  ;;  %v2225_v52 = vld [vmem:[%s12194_s3] sm:$0xff]  ;;  %v2227_v56 = vld [vmem:[%s12194_s3 + $0x10] sm:$0xff] }
  0x79   : > { %7838 = vmatprep.mubr.msk.f32.mxu0 %vm620_vm0, %v8817_v57  ;;  %7888 = vmatprep.mubr.msk.f32.mxu1 %vm620_vm0, %v8823_v59  ;;  %v2230_v57 = vld [vmem:[%s12194_s3 + $0x28] sm:$0xff] }
  0x7a   : > { %1919 = vperm.xlu1 %8432, %v1773_v33   ;;  %2780 = vperm.xlu0 %8431, %v2218_v36  }
  0x7c   : > { %7839 = vmatmul.mubr.msk.f32.gmra.mxu0 %vm620_vm0, %v8835_v61  ;;  %7889 = vmatmul.mubr.msk.f32.gmra.mxu1 %vm620_vm0, %v8840_v62  ;;  %v2257_v61 = vld [vmem:[%s12204_s13] sm:$0xff] }
  0x7d   : > { %7841 = vmatprep.mubr.msk.f32.mxu0 %vm620_vm0, %v8843_v63  ;;  %7891 = vmatprep.mubr.msk.f32.mxu1 %vm620_vm0, %v8823_v59  ;;  %v2232_v59 = vld [vmem:[%s12194_s3 + $0x38] sm:$0xff]  ;;  %v2233_v63 = vld [vmem:[%s12194_s3 + $0x40] sm:$0xff] }
  0x7e   : > { %2785 = vperm.xlu1 %8432, %v2219_v37   ;;  %1924 = vperm.xlu0 %8431, %v1774_v39   ;;  %v1975_v39 = vld [vmem:[%s12196_s5 + $0x30] sm:$0xff] }
  0x7f   : > { %7906 = vmatprep.subr.mxu0 %v2257_v61 }
  0x80   : > { %7842 = vmatmul.mubr.msk.f32.gmra.mxu0 %vm620_vm0, %v8858_v2  ;;  %7892 = vmatmul.mubr.msk.f32.gmra.mxu1 %vm620_vm0, %v8840_v62  ;;  %v2234_v62 = vld [vmem:[%s12194_s3 + $0x48] sm:$0xff]  ;;  %v2845_v2 = vld [vmem:[%s12203_s12] sm:$0xff] }
  0x81   : > { %7844 = vmatprep.mubr.msk.f32.mxu0 %vm620_vm0, %v8863_v3  ;;  %7894 = vmatprep.mubr.msk.f32.mxu1 %vm620_vm0, %v8869_v5  ;;  %v2238_v3 = vld [vmem:[%s12194_s3 + $0x68] sm:$0xff] }
  0x82   : > { %1929 = vperm.xlu1 %8432, %v1775_v41   ;;  %2790 = vperm.xlu0 %8431, %v2220_v42   ;;  %v1974_v42 = vld [vmem:[%s12196_s5 + $0x28] sm:$0xff] }
  0x83   : > { %7907 = vmatpush3.msra.mxu0 %v2257_v61  ;;  %7956 = vmatprep.subr.mxu1 %v2845_v2 }
  0x84   : > { %7845 = vmatmul.mubr.msk.f32.gmra.mxu0 %vm620_vm0, %v8881_v7  ;;  %7895 = vmatmul.mubr.msk.f32.gmra.mxu1 %vm620_vm0, %v8886_v8  ;;  %v2242_v7 = vld [vmem:[%s12194_s3 + $0x88] sm:$0xff] }
  0x85   : > { %7847 = vmatprep.mubr.msk.f32.mxu0 %vm620_vm0, %v8889_v13  ;;  %7897 = vmatprep.mubr.msk.f32.mxu1 %vm620_vm0, %v8869_v5  ;;  %v2240_v5 = vld [vmem:[%s12194_s3 + $0x78] sm:$0xff] }
  0x86   : > { %2800 = vperm.xlu1 %8432, %v2222_v43   ;;  %2795 = vperm.xlu0 %8431, %v2221_v46   ;;  %v2244_v13 = vld [vmem:[%s12194_s3 + $0x98] sm:$0xff] }
  0x87   : > { %7957 = vmatpush3.msra.mxu1 %v2845_v2  ;;  %v1978_v2 = vld [vmem:[%s12196_s5 + $0x48] sm:$0xff] }
  0x88   : > { %7848 = vmatmul.mubr.msk.f32.gmra.mxu0 %vm620_vm0, %v8904_v20  ;;  %7898 = vmatmul.mubr.msk.f32.gmra.mxu1 %vm620_vm0, %v8886_v8  ;;  %v2241_v8 = vld [vmem:[%s12194_s3 + $0x80] sm:$0xff] }
  0x89   : > { %7850 = vmatprep.mubr.msk.f32.mxu0 %vm620_vm0, %v8909_v24  ;;  %7900 = vmatprep.mubr.msk.f32.mxu1 %vm620_vm0, %v8915_v28  ;;  %v2245_v20 = vld [vmem:[%s12194_s3 + $0xa0] sm:$0xff]  ;;  %v9248_v24 = vpop.permute.xlu1 %1784  ;;  %v9250_v25 = vpop.permute.xlu0 %1779 }
  0x8a   : > { %2810 = vperm.xlu1 %8432, %v2224_v47   ;;  %2805 = vperm.xlu0 %8431, %v2223_v49  }
  0x8c   : > { %7851 = vmatmul.mubr.msk.f32.gmra.mxu0 %vm620_vm0, %v8927_v34  ;;  %7901 = vmatmul.mubr.msk.f32.gmra.mxu1 %vm620_vm0, %v8932_v35  ;;  %v2250_v34 = vld [vmem:[%s12194_s3 + $0xc8] sm:$0xff] }
  0x8d   : > { %7853 = vmatprep.mubr.msk.f32.mxu0 %vm620_vm0, %v8935_v38  ;;  %7903 = vmatprep.mubr.msk.f32.mxu1 %vm620_vm0, %v8915_v28  ;;  %v2248_v28 = vld [vmem:[%s12194_s3 + $0xb8] sm:$0xff]  ;;  %v2249_v38 = vld [vmem:[%s12194_s3 + $0xc0] sm:$0xff]  ;;  %v9266_v40 = vpop.permute.xlu0 %1934 }
  0x8e   : > { %3625 = vperm.xlu1 %8432, %v2226_v51   ;;  %3620 = vperm.xlu0 %8431, %v2225_v52  }
  0x90   : > { %7854 = vmatmul.mubr.msk.f32.gmra.mxu0 %vm620_vm0, %v8950_v45  ;;  %7904 = vmatmul.mubr.msk.f32.gmra.mxu1 %vm620_vm0, %v8932_v35  ;;  %v9261_v35 = vpop.permute.xlu1 %1789  ;;  %v2251_v45 = vld [vmem:[%s12194_s3 + $0xd0] sm:$0xff] }
  0x91   : > { %v9276_v50 = vpop.permute.xlu0 %1794 }
  0x92   : > { %3635 = vperm.xlu1 %8432, %v2228_v53   ;;  %3630 = vperm.xlu0 %8431, %v2227_v56   ;;  %v1977_v53 = vld [vmem:[%s12196_s5 + $0x40] sm:$0xff] }
  0x94   : > { %v9274_v48 = vpop.permute.xlu1 %2655 }
  0x95   : > { %12379 = vst [vmem:[#allocation2_spill] sm:$0xff] %v9274_v48  ;;  %v9292_v15 = vpop.permute.xlu0 %2660 }
  0x96   : > { %3645 = vperm.xlu1 %8432, %v2230_v57   ;;  %3640 = vperm.xlu0 %8431, %v2229_v58   ;;  %12380 = vst [vmem:[#allocation3_spill] sm:$0xff] %v9292_v15  ;;  %v1976_v57 = vld [vmem:[%s12196_s5 + $0x38] sm:$0xff] }
  0x98   : > { %v9287_v10 = vpop.permute.xlu1 %1799 }
  0x99   : > { %v9302_v19 = vpop.permute.xlu0 %1804 }
  0x9a   : > { %3655 = vperm.xlu1 %8432, %v2232_v59   ;;  %3650 = vperm.xlu0 %8431, %v2231_v60   ;;  %v9351_v59 = vld [vmem:[%s12203_s12 + $0x8] sm:$0xff] }
  0x9b   : > { %8006 = vmatprep.subr.mxu0 %v9351_v59 }
  0x9c   : > { %v9300_v17 = vpop.permute.xlu1 %2665 }
  0x9d   : > { %12381 = vst [vmem:[#allocation4_spill] sm:$0xff] %v9300_v17  ;;  %v9318_v31 = vpop.permute.xlu0 %2670 }
  0x9e   : > { %3665 = vperm.xlu1 %8432, %v2234_v62   ;;  %3660 = vperm.xlu0 %8431, %v2233_v63   ;;  %12382 = vst [vmem:[#allocation5_spill] sm:$0xff] %v9318_v31  ;;  %v1979_v63 = vld [vmem:[%s12196_s5 + $0x50] sm:$0xff] }
  0xa0   : > { %v9313_v26 = vpop.permute.xlu1 %1809 }
  0xa1   : > { %v9338_v51 = vpop.permute.xlu0 %1814 }
  0xa2   : > { %3675 = vperm.xlu1 %8432, %v2236_v0   ;;  %3670 = vperm.xlu0 %8431, %v2235_v1  }
  0xa4   : > { %v9332_v46 = vpop.permute.xlu1 %2675 }
  0xa5   : > { %12386 = vst [vmem:[#allocation9_spill] sm:$0xff] %v9332_v46 }
  0xa6   : > { %3685 = vperm.xlu1 %8432, %v2238_v3   ;;  %3680 = vperm.xlu0 %8431, %v2237_v4   ;;  %v9368_v3 = vpop.permute.xlu0 %2680 }
  0xa7   : > { %12393 = vst [vmem:[#allocation16_spill] sm:$0xff] %v9368_v3 }
  0xa8   : > { %v9363_v0 = vpop.permute.xlu1 %1819 }
  0xaa   : > { %3695 = vperm.xlu1 %8432, %v2240_v5   ;;  %3690 = vperm.xlu0 %8431, %v2239_v6  }
  0xae   : > { %3705 = vperm.xlu1 %8432, %v2242_v7   ;;  %3700 = vperm.xlu0 %8431, %v2241_v8   ;;  %v1981_v8 = vld [vmem:[%s12196_s5 + $0x60] sm:$0xff] }
  0xb2   : > { %3715 = vperm.xlu1 %8432, %v2244_v13   ;;  %3710 = vperm.xlu0 %8431, %v2243_v14   ;;  %v1980_v14 = vld [vmem:[%s12196_s5 + $0x58] sm:$0xff] }
  0xb6   : > { %3725 = vperm.xlu1 %8432, %v2246_v18   ;;  %3720 = vperm.xlu0 %8431, %v2245_v20   ;;  %v9385_v18 = vld [vmem:[%s12203_s12 + $0x10] sm:$0xff] }
  0xb7   : > { %8056 = vmatprep.subr.mxu1 %v9385_v18 }
  0xba   : > { %3735 = vperm.xlu1 %8432, %v2248_v28   ;;  %3730 = vperm.xlu0 %8431, %v2247_v30   ;;  %v9388_v28 = vpop.permute.xlu1 %2685 }
  0xbb   : > { %12397 = vst [vmem:[#allocation20_spill] sm:$0xff] %v9388_v28 }
  0xbe   : > { %3745 = vperm.xlu1 %8432, %v2250_v34   ;;  %3740 = vperm.xlu0 %8431, %v2249_v38   ;;  %v9394_v38 = vpop.permute.xlu0 %1824 }
  0xc2   : > { %3755 = vperm.xlu1 %8432, %v2252_v44   ;;  %3750 = vperm.xlu0 %8431, %v2251_v45   ;;  %v1983_v45 = vld [vmem:[%s12196_s5 + $0x70] sm:$0xff] }
  0xc6   : > { %3765 = vperm.xlu1 %8432, %v2254_v54   ;;  %3760 = vperm.xlu0 %8431, %v2253_v55   ;;  %v1982_v55 = vld [vmem:[%s12196_s5 + $0x68] sm:$0xff] }
  0xca   : > { %3775 = vperm.xlu1 %8432, %v2256_v9   ;;  %3770 = vperm.xlu0 %8431, %v2255_v11  }
  0xce   : > { %2158 = vperm.xlu1 %8432, %v2000_v12   ;;  %2003 = vperm.xlu0 %8431, %v1969_v16  }
  0xd2   : > { %2013 = vperm.xlu1 %8432, %v1971_v21   ;;  %2008 = vperm.xlu0 %8431, %v1970_v22   ;;  %v1985_v21 = vld [vmem:[%s12196_s5 + $0x80] sm:$0xff]  ;;  %v9413_v22 = vpop.permute.xlu1 %1829 }
  0xd4   : > { %v7710_v27 = vpop.f32.mrf.mxu0  ;;  %v7760_v32 = vpop.f32.mrf.mxu1 }
  0xd5   : > { %v9320_v33 = vadd.f32 %v7760_v32, %v7710_v27  ;;  %v1984_v27 = vld [vmem:[%s12196_s5 + $0x78] sm:$0xff] }
  0xd6   : > { %2023 = vperm.xlu1 %8432, %v1973_v23   ;;  %v9322_v36 = vpop.f32.mrf.mxu0  ;;  %2018 = vperm.xlu0 %8431, %v1972_v29   ;;  %v9324_v37 = vpop.f32.mrf.mxu1 }
  0xd7   : > { %12383 = vst [vmem:[#allocation6_spill] sm:$0xff] %v9320_v33  ;;  %12384 = vst [vmem:[#allocation7_spill] sm:$0xff] %v9322_v36  ;;  %v9418_v29 = vpop.permute.xlu0 %2690 }
  0xd8   : > { %12385 = vst [vmem:[#allocation8_spill] sm:$0xff] %v9324_v37  ;;  %v7713_v41 = vpop.f32.mrf.mxu0  ;;  %v7763_v43 = vpop.f32.mrf.mxu1  ;;  %12404 = vst [vmem:[#allocation27_spill] sm:$0xff] %v9418_v29 }
  0xd9   : > { %v9334_v47 = vadd.f32 %v7763_v43, %v7713_v41  ;;  %v1987_v43 = vld [vmem:[%s12196_s5 + $0x90] sm:$0xff] }
  0xda   : > { %2033 = vperm.xlu1 %8432, %v1975_v39   ;;  %v9336_v49 = vpop.f32.mrf.mxu0  ;;  %2028 = vperm.xlu0 %8431, %v1974_v42   ;;  %v9340_v52 = vpop.f32.mrf.mxu1 }
  0xdb   : > { %12387 = vst [vmem:[#allocation10_spill] sm:$0xff] %v9334_v47  ;;  %12388 = vst [vmem:[#allocation11_spill] sm:$0xff] %v9336_v49 }
  0xdc   : > { %12389 = vst [vmem:[#allocation12_spill] sm:$0xff] %v9340_v52  ;;  %v7716_v56 = vpop.f32.mrf.mxu0  ;;  %v7766_v58 = vpop.f32.mrf.mxu1 }
  0xdd   : > { %v9353_v60 = vadd.f32 %v7766_v58, %v7716_v56  ;;  %v1986_v56 = vld [vmem:[%s12196_s5 + $0x88] sm:$0xff]  ;;  %v9432_v58 = vpop.permute.xlu1 %2695 }
  0xde   : > { %2043 = vperm.xlu1 %8432, %v1977_v53   ;;  %v9355_v61 = vpop.f32.mrf.mxu0  ;;  %2038 = vperm.xlu0 %8431, %v1976_v57   ;;  %v9358_v62 = vpop.f32.mrf.mxu1  ;;  %12408 = vst [vmem:[#allocation31_spill] sm:$0xff] %v9432_v58 }
  0xdf   : > { %12390 = vst [vmem:[#allocation13_spill] sm:$0xff] %v9353_v60  ;;  %12391 = vst [vmem:[#allocation14_spill] sm:$0xff] %v9355_v61 }
  0xe0   : > { %12392 = vst [vmem:[#allocation15_spill] sm:$0xff] %v9358_v62  ;;  %v7719_v1 = vpop.f32.mrf.mxu0  ;;  %v7769_v4 = vpop.f32.mrf.mxu1 }
  0xe1   : > { %v9370_v5 = vadd.f32 %v7769_v4, %v7719_v1 }
  0xe2   : > { %2053 = vperm.xlu1 %8432, %v1979_v63   ;;  %v9372_v6 = vpop.f32.mrf.mxu0  ;;  %2048 = vperm.xlu0 %8431, %v1978_v2   ;;  %v9374_v7 = vpop.f32.mrf.mxu1 }
  0xe3   : > { %12394 = vst [vmem:[#allocation17_spill] sm:$0xff] %v9370_v5  ;;  %12395 = vst [vmem:[#allocation18_spill] sm:$0xff] %v9372_v6  ;;  %v9438_v2 = vpop.permute.xlu0 %1834 }
  0xe4   : > { %12396 = vst [vmem:[#allocation19_spill] sm:$0xff] %v9374_v7  ;;  %v7722_v13 = vpop.f32.mrf.mxu0  ;;  %v7772_v20 = vpop.f32.mrf.mxu1 }
  0xe5   : > { %v9390_v30 = vadd.f32 %v7772_v20, %v7722_v13 }
  0xe6   : > { %2063 = vperm.xlu1 %8432, %v1981_v8   ;;  %v9392_v34 = vpop.f32.mrf.mxu0  ;;  %2058 = vperm.xlu0 %8431, %v1980_v14   ;;  %v9396_v44 = vpop.f32.mrf.mxu1  ;;  %v1989_v8 = vld [vmem:[%s12196_s5 + $0xa0] sm:$0xff]  ;;  %v1988_v14 = vld [vmem:[%s12196_s5 + $0x98] sm:$0xff] }
  0xe7   : > { %12398 = vst [vmem:[#allocation21_spill] sm:$0xff] %v9390_v30  ;;  %12399 = vst [vmem:[#allocation22_spill] sm:$0xff] %v9392_v34 }
  0xe8   : > { %12400 = vst [vmem:[#allocation23_spill] sm:$0xff] %v9396_v44  ;;  %v7725_v54 = vpop.f32.mrf.mxu0  ;;  %v7775_v9 = vpop.f32.mrf.mxu1 }
  0xe9   : > { %v9404_v11 = vadd.f32 %v7775_v9, %v7725_v54  ;;  %v1991_v9 = vld [vmem:[%s12196_s5 + $0xb0] sm:$0xff] }
  0xea   : > { %2073 = vperm.xlu1 %8432, %v1983_v45   ;;  %v9406_v12 = vpop.f32.mrf.mxu0  ;;  %2068 = vperm.xlu0 %8431, %v1982_v55   ;;  %v9408_v16 = vpop.f32.mrf.mxu1 }
  0xeb   : > { %12401 = vst [vmem:[#allocation24_spill] sm:$0xff] %v9404_v11  ;;  %12402 = vst [vmem:[#allocation25_spill] sm:$0xff] %v9406_v12 }
  0xec   : > { %12403 = vst [vmem:[#allocation26_spill] sm:$0xff] %v9408_v16  ;;  %v7728_v23 = vpop.f32.mrf.mxu0  ;;  %v7778_v32 = vpop.f32.mrf.mxu1 }
  0xed   : > { %v9420_v39 = vadd.f32 %v7778_v32, %v7728_v23  ;;  %v9462_v32 = vpop.permute.xlu0 %2700 }
  0xee   : > { %2083 = vperm.xlu1 %8432, %v1985_v21   ;;  %v9422_v41 = vpop.f32.mrf.mxu0  ;;  %2078 = vperm.xlu0 %8431, %v1984_v27   ;;  %v9424_v42 = vpop.f32.mrf.mxu1  ;;  %v1990_v27 = vld [vmem:[%s12196_s5 + $0xa8] sm:$0xff]  ;;  %12415 = vst [vmem:[#allocation38_spill] sm:$0xff] %v9462_v32 }
  0xef   : > { %12405 = vst [vmem:[#allocation28_spill] sm:$0xff] %v9420_v39  ;;  %12406 = vst [vmem:[#allocation29_spill] sm:$0xff] %v9422_v41  ;;  %v9457_v21 = vpop.permute.xlu1 %1839 }
  0xf0   : > { %12407 = vst [vmem:[#allocation30_spill] sm:$0xff] %v9424_v42  ;;  %v7731_v53 = vpop.f32.mrf.mxu0  ;;  %v7781_v57 = vpop.f32.mrf.mxu1 }
  0xf1   : > { %v9434_v63 = vadd.f32 %v7781_v57, %v7731_v53 }
  0xf2   : > { %2093 = vperm.xlu1 %8432, %v1987_v43   ;;  %v9436_v1 = vpop.f32.mrf.mxu0  ;;  %2088 = vperm.xlu0 %8431, %v1986_v56   ;;  %v9440_v4 = vpop.f32.mrf.mxu1 }
  0xf3   : > { %12409 = vst [vmem:[#allocation32_spill] sm:$0xff] %v9434_v63  ;;  %12410 = vst [vmem:[#allocation33_spill] sm:$0xff] %v9436_v1 }
  0xf4   : > { %12411 = vst [vmem:[#allocation34_spill] sm:$0xff] %v9440_v4  ;;  %v7734_v13 = vpop.f32.mrf.mxu0  ;;  %v7784_v20 = vpop.f32.mrf.mxu1 }
  0xf5   : > { %v9448_v45 = vadd.f32 %v7784_v20, %v7734_v13 }
  0xf6   : > { %2103 = vperm.xlu1 %8432, %v1989_v8   ;;  %v9450_v54 = vpop.f32.mrf.mxu0  ;;  %2098 = vperm.xlu0 %8431, %v1988_v14   ;;  %v9452_v55 = vpop.f32.mrf.mxu1  ;;  %v1993_v8 = vld [vmem:[%s12196_s5 + $0xc0] sm:$0xff]  ;;  %v1992_v14 = vld [vmem:[%s12196_s5 + $0xb8] sm:$0xff] }
  0xf7   : > { %12412 = vst [vmem:[#allocation35_spill] sm:$0xff] %v9448_v45  ;;  %12413 = vst [vmem:[#allocation36_spill] sm:$0xff] %v9450_v54  ;;  %v9476_v45 = vpop.permute.xlu1 %2705 }
  0xf8   : > { %12414 = vst [vmem:[#allocation37_spill] sm:$0xff] %v9452_v55  ;;  %v7737_v23 = vpop.f32.mrf.mxu0  ;;  %v7787_v43 = vpop.f32.mrf.mxu1  ;;  %12419 = vst [vmem:[#allocation42_spill] sm:$0xff] %v9476_v45 }
  0xf9   : > { %v9464_v53 = vadd.f32 %v7787_v43, %v7737_v23 }
  0xfa   : > { %2113 = vperm.xlu1 %8432, %v1991_v9   ;;  %v9466_v56 = vpop.f32.mrf.mxu0  ;;  %2108 = vperm.xlu0 %8431, %v1990_v27   ;;  %v9468_v57 = vpop.f32.mrf.mxu1 }
  0xfb   : > { %12416 = vst [vmem:[#allocation39_spill] sm:$0xff] %v9464_v53  ;;  %12417 = vst [vmem:[#allocation40_spill] sm:$0xff] %v9466_v56  ;;  %v9482_v27 = vpop.permute.xlu0 %1844  ;;  %v1995_v53 = vld [vmem:[%s12196_s5 + $0xd0] sm:$0xff]  ;;  %v1994_v56 = vld [vmem:[%s12196_s5 + $0xc8] sm:$0xff] }
  0xfc   : > { %12418 = vst [vmem:[#allocation41_spill] sm:$0xff] %v9468_v57  ;;  %v7740_v13 = vpop.f32.mrf.mxu0  ;;  %v7790_v20 = vpop.f32.mrf.mxu1 }
  0xfd   : > { %v9478_v23 = vadd.f32 %v7790_v20, %v7740_v13 }
  0xfe   : > { %2123 = vperm.xlu1 %8432, %v1993_v8   ;;  %v9480_v9 = vpop.f32.mrf.mxu0  ;;  %2118 = vperm.xlu0 %8431, %v1992_v14   ;;  %v9484_v43 = vpop.f32.mrf.mxu1  ;;  %v1997_v14 = vld [vmem:[%s12196_s5 + $0xe0] sm:$0xff] }
  0xff   : > { %12420 = vst [vmem:[#allocation43_spill] sm:$0xff] %v9478_v23  ;;  %12421 = vst [vmem:[#allocation44_spill] sm:$0xff] %v9480_v9  ;;  %v9501_v23 = vpop.permute.xlu1 %1849  ;;  %v1996_v9 = vld [vmem:[%s12196_s5 + $0xd8] sm:$0xff]  ;;  %v9506_v54 = vpop.permute.xlu0 %2710 }
 0x100   : > { %12422 = vst [vmem:[#allocation45_spill] sm:$0xff] %v9484_v43  ;;  %v7743_v57 = vpop.f32.mrf.mxu0  ;;  %v7793_v55 = vpop.f32.mrf.mxu1  ;;  %12426 = vst [vmem:[#allocation49_spill] sm:$0xff] %v9506_v54 }
 0x101   : > { %v9492_v13 = vadd.f32 %v7793_v55, %v7743_v57 }
 0x102   : > { %2133 = vperm.xlu1 %8432, %v1995_v53   ;;  %v9494_v8 = vpop.f32.mrf.mxu0  ;;  %2128 = vperm.xlu0 %8431, %v1994_v56   ;;  %v9496_v20 = vpop.f32.mrf.mxu1 }
 0x103   : > { %12423 = vst [vmem:[#allocation46_spill] sm:$0xff] %v9492_v13  ;;  %12424 = vst [vmem:[#allocation47_spill] sm:$0xff] %v9494_v8  ;;  %v1999_v13 = vld [vmem:[%s12196_s5 + $0xf0] sm:$0xff]  ;;  %v1998_v8 = vld [vmem:[%s12196_s5 + $0xe8] sm:$0xff]  ;;  %v9520_v4 = vpop.permute.xlu1 %2715 }
 0x104   : > { %12425 = vst [vmem:[#allocation48_spill] sm:$0xff] %v9496_v20  ;;  %v7746_v43 = vpop.f32.mrf.mxu0  ;;  %v7796_v55 = vpop.f32.mrf.mxu1  ;;  %12430 = vst [vmem:[#allocation53_spill] sm:$0xff] %v9520_v4 }
 0x105   : > { %v9508_v53 = vadd.f32 %v7796_v55, %v7746_v43 }
 0x106   : > { %2143 = vperm.xlu1 %8432, %v1997_v14   ;;  %v9510_v56 = vpop.f32.mrf.mxu0  ;;  %2138 = vperm.xlu0 %8431, %v1996_v9   ;;  %v9512_v57 = vpop.f32.mrf.mxu1 }
 0x107   : > { %12427 = vst [vmem:[#allocation50_spill] sm:$0xff] %v9508_v53  ;;  %12428 = vst [vmem:[#allocation51_spill] sm:$0xff] %v9510_v56  ;;  %v9526_v9 = vpop.permute.xlu0 %1854 }
 0x108   : > { %12429 = vst [vmem:[#allocation52_spill] sm:$0xff] %v9512_v57  ;;  %v7749_v20 = vpop.f32.mrf.mxu0  ;;  %v7799_v63 = vpop.f32.mrf.mxu1 }
 0x109   : > { %v9522_v43 = vadd.f32 %v7799_v63, %v7749_v20 }
 0x10a   : > { %2153 = vperm.xlu1 %8432, %v1999_v13   ;;  %v9524_v14 = vpop.f32.mrf.mxu0  ;;  %2148 = vperm.xlu0 %8431, %v1998_v8   ;;  %v9528_v55 = vpop.f32.mrf.mxu1 }
 0x10b   : > { %12431 = vst [vmem:[#allocation54_spill] sm:$0xff] %v9522_v43  ;;  %12432 = vst [vmem:[#allocation55_spill] sm:$0xff] %v9524_v14  ;;  %v9542_v16 = vpop.permute.xlu0 %2720 }
 0x10c   : > { %12433 = vst [vmem:[#allocation56_spill] sm:$0xff] %v9528_v55  ;;  %v7752_v53 = vpop.f32.mrf.mxu0  ;;  %v7802_v57 = vpop.f32.mrf.mxu1  ;;  %12440 = vst [vmem:[#allocation63_spill] sm:$0xff] %v9542_v16 }
 0x10d   : > { %v9530_v56 = vadd.f32 %v7802_v57, %v7752_v53  ;;  %v9547_v53 = vld [vmem:[%s12202_s11] ss:$0 sm:$0xff] }
 0x10e   : > { %v9532_v1 = vpop.f32.mrf.mxu0  ;;  %v9534_v39 = vpop.f32.mrf.mxu1 }
 0x10f   : > { %12434 = vst [vmem:[#allocation57_spill] sm:$0xff] %v9530_v56  ;;  %12435 = vst [vmem:[#allocation58_spill] sm:$0xff] %v9532_v1 }
 0x110   : > { %12436 = vst [vmem:[#allocation59_spill] sm:$0xff] %v9534_v39  ;;  %v7755_v42 = vpop.f32.mrf.mxu0  ;;  %v7805_v41 = vpop.f32.mrf.mxu1 }
 0x111   : > { %v9536_v63 = vadd.f32 %v7805_v41, %v7755_v42 }
 0x112   : > { %v9538_v13 = vpop.f32.mrf.mxu0  ;;  %v9540_v20 = vpop.f32.mrf.mxu1 }
 0x113   : > { %12437 = vst [vmem:[#allocation60_spill] sm:$0xff] %v9536_v63  ;;  %12438 = vst [vmem:[#allocation61_spill] sm:$0xff] %v9538_v13 }
 0x114   : > { %12439 = vst [vmem:[#allocation62_spill] sm:$0xff] %v9540_v20  ;;  %v7810_v43 = vpop.f32.mrf.mxu0  ;;  %v7860_v8 = vpop.f32.mrf.mxu1 }
 0x115   : > { %v1553_v55 = vadd.f32 %v7860_v8, %v7810_v43  ;;  %v9552_v20 = vpop.permute.xlu1 %1859 }
 0x116   : > { %v1322_v14 = vpop.f32.mrf.mxu0  ;;  %v1547_v11 = vpop.f32.mrf.mxu1 }
 0x117   : > { %v1548_v57 = vadd.f32 %v1547_v11, %v1322_v14  ;;  %v9555_v13 = vadd.f32 %v9547_v53, %v1553_v55  ;;  %v9562_v11 = vld [vmem:[%s12203_s12 + $0x18] sm:$0xff] }
 0x118   : > { %v7813_v56 = vpop.f32.mrf.mxu0  ;;  %v7863_v41 = vpop.f32.mrf.mxu1 }
 0x119   : > { %v9550_v42 = vadd.f32 %v9547_v53, %v1548_v57  ;;  %12442 = vst [vmem:[#allocation65_spill] sm:$0xff] %v9555_v13  ;;  %v1563_v43 = vadd.f32 %v7863_v41, %v7813_v56  ;;  %v9566_v57 = vpop.permute.xlu0 %1864  ;;  %v9578_v44 = vpop.permute.xlu1 %2725 }
 0x11a   : > { %v1332_v63 = vpop.f32.mrf.mxu0  ;;  %v1557_v8 = vpop.f32.mrf.mxu1  ;;  %12443 = vst [vmem:[#allocation66_spill] sm:$0xff] %v9566_v57  ;;  %12445 = vst [vmem:[#allocation68_spill] sm:$0xff] %v9578_v44 }
 0x11b   : > { %12441 = vst [vmem:[#allocation64_spill] sm:$0xff] %v9550_v42  ;;  %v1558_v39 = vadd.f32 %v1557_v8, %v1332_v63  ;;  %7908 = vmatprep.mubr.msk.f32.mxu0 %vm620_vm0, %v9550_v42  ;;  %v9573_v63 = vadd.f32 %v9547_v53, %v1563_v43 }
 0x11c   : > { %v7816_v1 = vpop.f32.mrf.mxu0  ;;  %v7866_v14 = vpop.f32.mrf.mxu1  ;;  %7909 = vmatmul.mubr.msk.f32.vlgmr.msra.gmra.mxu0 %vm620_vm0, %v9555_v13 }
 0x11d   : > { %v9569_v55 = vadd.f32 %v9547_v53, %v1558_v39  ;;  %8007 = vmatpush3.msra.mxu0 %v9351_v59  ;;  %v1573_v41 = vadd.f32 %v7866_v14, %v7816_v1  ;;  %v9597_v60 = vpop.permute.xlu1 %1869 }
 0x11e   : > { %v1342_v56 = vpop.f32.mrf.mxu0  ;;  %v1567_v8 = vpop.f32.mrf.mxu1  ;;  %8106 = vmatprep.subr.mxu0 %v9562_v11  ;;  %12447 = vst [vmem:[#allocation70_spill] sm:$0xff] %v9597_v60 }
 0x11f   : > { %12444 = vst [vmem:[#allocation67_spill] sm:$0xff] %v9569_v55  ;;  %v1568_v12 = vadd.f32 %v1567_v8, %v1342_v56  ;;  %7911 = vmatprep.mubr.msk.f32.mxu0 %vm620_vm0, %v9569_v55  ;;  %v9586_v1 = vadd.f32 %v9547_v53, %v1573_v41  ;;  %v9588_v56 = vpop.permute.xlu0 %2730 }
 0x120   : > { %v7819_v30 = vpop.f32.mrf.mxu0  ;;  %v7869_v34 = vpop.f32.mrf.mxu1  ;;  %7912 = vmatmul.mubr.msk.f32.gmra.mxu0 %vm620_vm0, %v9573_v63  ;;  %12446 = vst [vmem:[#allocation69_spill] sm:$0xff] %v9588_v56 }
 0x121   : > { %v9583_v59 = vadd.f32 %v9547_v53, %v1568_v12  ;;  %v1583_v43 = vadd.f32 %v7869_v34, %v7819_v30  ;;  %v9616_v52 = vpop.permute.xlu1 %2735 }
 0x122   : > { %v1352_v39 = vpop.f32.mrf.mxu0  ;;  %v1577_v14 = vpop.f32.mrf.mxu1  ;;  %12450 = vst [vmem:[#allocation73_spill] sm:$0xff] %v9616_v52 }
 0x123   : > { %v1578_v8 = vadd.f32 %v1577_v14, %v1352_v39  ;;  %7914 = vmatprep.mubr.msk.f32.mxu0 %vm620_vm0, %v9583_v59  ;;  %v9600_v30 = vadd.f32 %v9547_v53, %v1583_v43  ;;  %v9606_v61 = vpop.permute.xlu0 %1874 }
 0x124   : > { %v7822_v5 = vpop.f32.mrf.mxu0  ;;  %v7872_v7 = vpop.f32.mrf.mxu1  ;;  %7915 = vmatmul.mubr.msk.f32.gmra.mxu0 %vm620_vm0, %v9586_v1  ;;  %12448 = vst [vmem:[#allocation71_spill] sm:$0xff] %v9606_v61 }
 0x125   : > { %v9595_v12 = vadd.f32 %v9547_v53, %v1578_v8  ;;  %v1593_v34 = vadd.f32 %v7872_v7, %v7822_v5  ;;  %v9635_v56 = vpop.permute.xlu1 %1879 }
 0x126   : > { %v1362_v6 = vpop.f32.mrf.mxu0  ;;  %v1587_v41 = vpop.f32.mrf.mxu1  ;;  %12455 = vst [vmem:[#allocation78_spill] sm:$0xff] %v9635_v56 }
 0x127   : > { %v1588_v39 = vadd.f32 %v1587_v41, %v1362_v6  ;;  %7917 = vmatprep.mubr.msk.f32.mxu0 %vm620_vm0, %v9595_v12  ;;  %v9612_v43 = vadd.f32 %v9547_v53, %v1593_v34 }
 0x128   : > { %v7825_v14 = vpop.f32.mrf.mxu0  ;;  %v7875_v62 = vpop.f32.mrf.mxu1  ;;  %7918 = vmatmul.mubr.msk.f32.gmra.mxu0 %vm620_vm0, %v9600_v30 }
 0x129   : > { %v9609_v8 = vadd.f32 %v9547_v53, %v1588_v39  ;;  %12449 = vst [vmem:[#allocation72_spill] sm:$0xff] %v9612_v43  ;;  %v1603_v5 = vadd.f32 %v7875_v62, %v7825_v14  ;;  %v9654_v44 = vpop.permute.xlu1 %2745 }
 0x12a   : > { %v1372_v47 = vpop.f32.mrf.mxu0  ;;  %v1597_v7 = vpop.f32.mrf.mxu1  ;;  %12460 = vst [vmem:[#allocation83_spill] sm:$0xff] %v9654_v44 }
 0x12b   : > { %v1598_v6 = vadd.f32 %v1597_v7, %v1372_v47  ;;  %7920 = vmatprep.mubr.msk.f32.mxu0 %vm620_vm0, %v9609_v8  ;;  %v9624_v34 = vadd.f32 %v9547_v53, %v1603_v5  ;;  %v9626_v47 = vpop.permute.xlu0 %2740 }
 0x12c   : > { %v7828_v41 = vpop.f32.mrf.mxu0  ;;  %v7878_v49 = vpop.f32.mrf.mxu1  ;;  %7921 = vmatmul.mubr.msk.f32.gmra.mxu0 %vm620_vm0, %v9612_v43  ;;  %12453 = vst [vmem:[#allocation76_spill] sm:$0xff] %v9626_v47 }
 0x12d   : > { %v9621_v39 = vadd.f32 %v9547_v53, %v1598_v6  ;;  %12452 = vst [vmem:[#allocation75_spill] sm:$0xff] %v9624_v34  ;;  %v1613_v62 = vadd.f32 %v7878_v49, %v7828_v41  ;;  %v9673_v60 = vpop.permute.xlu1 %1889 }
 0x12e   : > { %v1382_v33 = vpop.f32.mrf.mxu0  ;;  %v1607_v14 = vpop.f32.mrf.mxu1  ;;  %12465 = vst [vmem:[#allocation88_spill] sm:$0xff] %v9673_v60 }
 0x12f   : > { %12451 = vst [vmem:[#allocation74_spill] sm:$0xff] %v9621_v39  ;;  %v1608_v7 = vadd.f32 %v1607_v14, %v1382_v33  ;;  %7923 = vmatprep.mubr.msk.f32.mxu0 %vm620_vm0, %v9621_v39  ;;  %v9638_v49 = vadd.f32 %v9547_v53, %v1613_v62  ;;  %v9644_v61 = vpop.permute.xlu0 %1884 }
 0x130   : > { %v7831_v37 = vpop.f32.mrf.mxu0  ;;  %v7881_v36 = vpop.f32.mrf.mxu1  ;;  %7924 = vmatmul.mubr.msk.f32.gmra.mxu0 %vm620_vm0, %v9624_v34  ;;  %12457 = vst [vmem:[#allocation80_spill] sm:$0xff] %v9644_v61 }
 0x131   : > { %v9633_v6 = vadd.f32 %v9547_v53, %v1608_v7  ;;  %12456 = vst [vmem:[#allocation79_spill] sm:$0xff] %v9638_v49  ;;  %v1623_v5 = vadd.f32 %v7881_v36, %v7831_v37 }
 0x132   : > { %v1392_v52 = vpop.f32.mrf.mxu0  ;;  %v1617_v41 = vpop.f32.mrf.mxu1 }
 0x133   : > { %12454 = vst [vmem:[#allocation77_spill] sm:$0xff] %v9633_v6  ;;  %v1618_v33 = vadd.f32 %v1617_v41, %v1392_v52  ;;  %7926 = vmatprep.mubr.msk.f32.mxu0 %vm620_vm0, %v9633_v6  ;;  %v9650_v62 = vadd.f32 %v9547_v53, %v1623_v5 }
 0x134   : > { %v7834_v14 = vpop.f32.mrf.mxu0  ;;  %v7884_v47 = vpop.f32.mrf.mxu1  ;;  %7927 = vmatmul.mubr.msk.f32.gmra.mxu0 %vm620_vm0, %v9638_v49 }
 0x135   : > { %v9647_v7 = vadd.f32 %v9547_v53, %v1618_v33  ;;  %12459 = vst [vmem:[#allocation82_spill] sm:$0xff] %v9650_v62  ;;  %v1633_v36 = vadd.f32 %v7884_v47, %v7834_v14 }
 0x136   : > { %v1402_v56 = vpop.f32.mrf.mxu0  ;;  %v1627_v37 = vpop.f32.mrf.mxu1 }
 0x137   : > { %12458 = vst [vmem:[#allocation81_spill] sm:$0xff] %v9647_v7  ;;  %v1628_v52 = vadd.f32 %v1627_v37, %v1402_v56  ;;  %7929 = vmatprep.mubr.msk.f32.mxu0 %vm620_vm0, %v9647_v7  ;;  %v9662_v5 = vadd.f32 %v9547_v53, %v1633_v36  ;;  %v9664_v56 = vpop.permute.xlu0 %2750 }
 0x138   : > { %v7837_v41 = vpop.f32.mrf.mxu0  ;;  %v7887_v16 = vpop.f32.mrf.mxu1  ;;  %7930 = vmatmul.mubr.msk.f32.gmra.mxu0 %vm620_vm0, %v9650_v62  ;;  %12463 = vst [vmem:[#allocation86_spill] sm:$0xff] %v9664_v56 }
 0x139   : > { %v9659_v33 = vadd.f32 %v9547_v53, %v1628_v52  ;;  %12462 = vst [vmem:[#allocation85_spill] sm:$0xff] %v9662_v5  ;;  %v1643_v47 = vadd.f32 %v7887_v16, %v7837_v41 }
 0x13a   : > { %v1412_v61 = vpop.f32.mrf.mxu0  ;;  %v1637_v14 = vpop.f32.mrf.mxu1 }
 0x13b   : > { %12461 = vst [vmem:[#allocation84_spill] sm:$0xff] %v9659_v33  ;;  %v1638_v37 = vadd.f32 %v1637_v14, %v1412_v61  ;;  %7932 = vmatprep.mubr.msk.f32.mxu0 %vm620_vm0, %v9659_v33  ;;  %v9676_v16 = vadd.f32 %v9547_v53, %v1643_v47 }
 0x13c   : > { %v7840_v44 = vpop.f32.mrf.mxu0  ;;  %v7890_v57 = vpop.f32.mrf.mxu1  ;;  %7933 = vmatmul.mubr.msk.f32.gmra.mxu0 %vm620_vm0, %v9662_v5 }
 0x13d   : > { %v9671_v52 = vadd.f32 %v9547_v53, %v1638_v37  ;;  %12466 = vst [vmem:[#allocation89_spill] sm:$0xff] %v9676_v16  ;;  %v1653_v36 = vadd.f32 %v7890_v57, %v7840_v44  ;;  %v9682_v5 = vpop.permute.xlu0 %1894 }
 0x13e   : > { %v1422_v62 = vpop.f32.mrf.mxu0  ;;  %v1647_v41 = vpop.f32.mrf.mxu1  ;;  %12467 = vst [vmem:[#allocation90_spill] sm:$0xff] %v9682_v5 }
 0x13f   : > { %12464 = vst [vmem:[#allocation87_spill] sm:$0xff] %v9671_v52  ;;  %v1648_v61 = vadd.f32 %v1647_v41, %v1422_v62  ;;  %7935 = vmatprep.mubr.msk.f32.mxu0 %vm620_vm0, %v9671_v52  ;;  %v9688_v47 = vadd.f32 %v9547_v53, %v1653_v36  ;;  %v9692_v52 = vpop.permute.xlu1 %2755 }
 0x140   : > { %v7843_v14 = vpop.f32.mrf.mxu0  ;;  %v7893_v56 = vpop.f32.mrf.mxu1  ;;  %7936 = vmatmul.mubr.msk.f32.gmra.mxu0 %vm620_vm0, %v9676_v16  ;;  %12470 = vst [vmem:[#allocation93_spill] sm:$0xff] %v9692_v52 }
 0x141   : > { %v9685_v37 = vadd.f32 %v9547_v53, %v1648_v61  ;;  %12469 = vst [vmem:[#allocation92_spill] sm:$0xff] %v9688_v47  ;;  %v1663_v44 = vadd.f32 %v7893_v56, %v7843_v14 }
 0x142   : > { %v1432_v60 = vpop.f32.mrf.mxu0  ;;  %v1657_v57 = vpop.f32.mrf.mxu1 }
 0x143   : > { %12468 = vst [vmem:[#allocation91_spill] sm:$0xff] %v9685_v37  ;;  %v1658_v62 = vadd.f32 %v1657_v57, %v1432_v60  ;;  %7938 = vmatprep.mubr.msk.f32.mxu0 %vm620_vm0, %v9685_v37  ;;  %v9700_v36 = vadd.f32 %v9547_v53, %v1663_v44  ;;  %v9702_v60 = vpop.permute.xlu0 %2760  ;;  %v9711_v37 = vpop.permute.xlu1 %1899 }
 0x144   : > { %v7846_v41 = vpop.f32.mrf.mxu0  ;;  %v7896_v33 = vpop.f32.mrf.mxu1  ;;  %7939 = vmatmul.mubr.msk.f32.gmra.mxu0 %vm620_vm0, %v9688_v47  ;;  %12473 = vst [vmem:[#allocation96_spill] sm:$0xff] %v9702_v60  ;;  %12475 = vst [vmem:[#allocation98_spill] sm:$0xff] %v9711_v37 }
 0x145   : > { %v9697_v61 = vadd.f32 %v9547_v53, %v1658_v62  ;;  %12472 = vst [vmem:[#allocation95_spill] sm:$0xff] %v9700_v36  ;;  %v1673_v56 = vadd.f32 %v7896_v33, %v7846_v41 }
 0x146   : > { %v1442_v5 = vpop.f32.mrf.mxu0  ;;  %v1667_v14 = vpop.f32.mrf.mxu1 }
 0x147   : > { %12471 = vst [vmem:[#allocation94_spill] sm:$0xff] %v9697_v61  ;;  %v1668_v57 = vadd.f32 %v1667_v14, %v1442_v5  ;;  %7941 = vmatprep.mubr.msk.f32.mxu0 %vm620_vm0, %v9697_v61  ;;  %v9714_v33 = vadd.f32 %v9547_v53, %v1673_v56 }
 0x148   : > { %v7849_v52 = vpop.f32.mrf.mxu0  ;;  %v7899_v16 = vpop.f32.mrf.mxu1  ;;  %7942 = vmatmul.mubr.msk.f32.gmra.mxu0 %vm620_vm0, %v9700_v36 }
 0x149   : > { %v9709_v62 = vadd.f32 %v9547_v53, %v1668_v57  ;;  %12476 = vst [vmem:[#allocation99_spill] sm:$0xff] %v9714_v33  ;;  %v1683_v44 = vadd.f32 %v7899_v16, %v7849_v52  ;;  %v9720_v36 = vpop.permute.xlu0 %1904 }
 0x14a   : > { %v1452_v47 = vpop.f32.mrf.mxu0  ;;  %v1677_v41 = vpop.f32.mrf.mxu1  ;;  %12477 = vst [vmem:[#allocation100_spill] sm:$0xff] %v9720_v36 }
 0x14b   : > { %12474 = vst [vmem:[#allocation97_spill] sm:$0xff] %v9709_v62  ;;  %v1678_v5 = vadd.f32 %v1677_v41, %v1452_v47  ;;  %7944 = vmatprep.mubr.msk.f32.mxu0 %vm620_vm0, %v9709_v62  ;;  %v9726_v56 = vadd.f32 %v9547_v53, %v1683_v44  ;;  %v9730_v41 = vpop.permute.xlu1 %2765 }
 0x14c   : > { %v7852_v14 = vpop.f32.mrf.mxu0  ;;  %v7902_v60 = vpop.f32.mrf.mxu1  ;;  %7945 = vmatmul.mubr.msk.f32.gmra.mxu0 %vm620_vm0, %v9714_v33  ;;  %12480 = vst [vmem:[#allocation103_spill] sm:$0xff] %v9730_v41 }
 0x14d   : > { %v9723_v57 = vadd.f32 %v9547_v53, %v1678_v5  ;;  %12479 = vst [vmem:[#allocation102_spill] sm:$0xff] %v9726_v56  ;;  %v1693_v16 = vadd.f32 %v7902_v60, %v7852_v14  ;;  %v9737_v4 = vpop.permute.xlu0 %2770  ;;  %v2618_v60 = vlaneseq }
 0x14e   : > { %v1462_v37 = vpop.f32.mrf.mxu0  ;;  %v1687_v52 = vpop.f32.mrf.mxu1  ;;  %12482 = vst [vmem:[#allocation105_spill] sm:$0xff] %v9737_v4 }
 0x14f   : > { %12478 = vst [vmem:[#allocation101_spill] sm:$0xff] %v9723_v57  ;;  %7947 = vmatprep.mubr.msk.f32.mxu0 %vm620_vm0, %v9723_v57  ;;  %v1688_v62 = vadd.f32 %v1687_v52, %v1462_v37  ;;  %v9740_v14 = vadd.f32 %v9547_v53, %v1693_v16  ;;  %v9758_v16 = vshrl.u32 %v2618_v60, 7 }
 0x150   : > { %v7855_v47 = vpop.f32.mrf.mxu0  ;;  %v7905_v61 = vpop.f32.mrf.mxu1  ;;  %7948 = vmatmul.mubr.msk.f32.gmra.mxu0 %vm620_vm0, %v9726_v56 }
 0x151   : > { %v1703_v33 = vadd.f32 %v7905_v61, %v7855_v47  ;;  %v9735_v36 = vadd.f32 %v9547_v53, %v1688_v62  ;;  %12483 = vst [vmem:[#allocation106_spill] sm:$0xff] %v9740_v14  ;;  %v9753_v62 = vpop.permute.xlu1 %1909  ;;  %v9766_v47 = vmul.f32 %v9266_v40, %v9740_v14  ;;  %vm2620_vm1 = vcmp.lt.s32.totalorder %v9758_v16, 1 }
 0x152   : > { %v1472_v5 = vpop.f32.mrf.mxu0  ;;  %v1697_v44 = vpop.f32.mrf.mxu1  ;;  %vm3585_vm2 = vcmp.lt.s32.totalorder %v9758_v16, 7 }
 0x153   : > { %12481 = vst [vmem:[#allocation104_spill] sm:$0xff] %v9735_v36  ;;  %v9743_v57 = vadd.f32 %v9547_v53, %v1703_v33  ;;  %v1698_v37 = vadd.f32 %v1697_v44, %v1472_v5  ;;  %7950 = vmatprep.mubr.msk.f32.mxu0 %vm620_vm0, %v9735_v36  ;;  %v9762_v33 = vmul.f32 %v9261_v35, %v9550_v42  ;;  %12486 = vst [vmem:[#allocation109_spill] sm:$0xff] %v9766_v47  ;;  %v9778_v5 = vpop.permute.xlu0 %1914 }
 0x154   : > { %7951 = vmatmul.mubr.msk.f32.gmra.mxu0 %vm620_vm0, %v9740_v14  ;;  %v12253_v44 = vrot.slane %v9766_v47, 7 }
 0x155   : > { %12484 = vst [vmem:[#allocation107_spill] sm:$0xff] %v9743_v57  ;;  %v9749_v61 = vmul.f32 %v9248_v24, %v9743_v57  ;;  %v9756_v52 = vadd.f32 %v9547_v53, %v1698_v37  ;;  %v9776_v53 = vmul.f32 %v9287_v10, %v9569_v55  ;;  %v2588_v10 = vrot.slane %v9762_v33, 7  ;;  %v9793_v60 = vpop.permute.xlu1 %2775 }
 0x156   : > { %12488 = vst [vmem:[#allocation111_spill] sm:$0xff] %v9793_v60  ;;  %v9809_v55 = vmul.f32 %v9313_v26, %v9583_v59 }
 0x157   : > { %12485 = vst [vmem:[#allocation108_spill] sm:$0xff] %v9756_v52  ;;  %7953 = vmatprep.mubr.msk.f32.mxu0 %vm620_vm0, %v9756_v52  ;;  %v9772_v24 = vmul.f32 %v9250_v25, %v9756_v52  ;;  %v2587_v35 = vrot.slane %v9749_v61, 7  ;;  %v9788_v25 = vmul.f32 %v9276_v50, %v9555_v13  ;;  %v2590_v14 = vrot.slane %v9776_v53, 7 }
 0x158   : > { %7954 = vmatmul.mubr.msk.f32.gmra.mxu0 %vm620_vm0, %v9743_v57 }
 0x159   : > { %12487 = vst [vmem:[#allocation110_spill] sm:$0xff] %v9772_v24  ;;  %v2586_v40 = vrot.slane %v9772_v24, 7  ;;  %8008 = vmatprep.mubr.msk.f32.mxu0 %vm620_vm0, %v9772_v24  ;;  %v2650_v13 = vsel %vm2620_vm1, %v2587_v35, %v2588_v10  ;;  %v9814_v24 = vld [vmem:[%s12203_s12 + $0x28] sm:$0xff] }
 0x15a   : > { %12489 = vst [vmem:[#allocation112_spill] sm:$0xff] %v9814_v24  ;;  %v2815_v26 = vmul.f32 %v9300_v17, %v2650_v13  ;;  %v2592_v13 = vrot.slane %v9809_v55, 7 }
 0x15b   : > { %v2651_v37 = vsel %vm2620_vm1, %v2586_v40, %v2587_v35  ;;  %v2652_v50 = vsel %vm2620_vm1, %v12253_v44, %v2586_v40  ;;  %v2589_v40 = vrot.slane %v9788_v25, 7  ;;  %v9824_v35 = vpop.permute.xlu0 %2780 }
 0x15c   : > { %8009 = vmatmul.mubr.msk.f32.vlgmr.msra.gmra.mxu0 %vm620_vm0, %v9749_v61  ;;  %v2814_v52 = vmul.f32 %v9292_v15, %v2651_v37  ;;  %v2813_v47 = vmul.f32 %v9274_v48, %v2652_v50  ;;  %v9822_v37 = vmul.f32 %v9302_v19, %v9573_v63  ;;  %12490 = vst [vmem:[#allocation113_spill] sm:$0xff] %v9824_v35  ;;  %v9834_v50 = vld [vmem:[%s12203_s12 + $0x20] sm:$0xff] }
 0x15d   : > { %8011 = vmatprep.mubr.msk.f32.mxu0 %vm620_vm0, %v9762_v33  ;;  %8107 = vmatpush3.msra.mxu0 %v9562_v11  ;;  %v2649_v44 = vsel %vm2620_vm1, %v2588_v10, %v2589_v40  ;;  %12491 = vst [vmem:[#allocation114_spill] sm:$0xff] %v9834_v50  ;;  %v2648_v19 = vsel %vm2620_vm1, %v2589_v40, %v2590_v14 }
 0x15e   : > { %7958 = vmatprep.mubr.msk.f32.mxu1 %vm620_vm0, %v2813_v47  ;;  %8206 = vmatprep.subr.mxu0 %v9814_v24  ;;  %v9845_v11 = vmul.f32 %v9363_v0, %v9595_v12  ;;  %v9847_v47 = vpop.permute.xlu1 %1919  ;;  %v9854_v10 = vmul.f32 %v9338_v51, %v9586_v1  ;;  %v2816_v40 = vmul.f32 %v9318_v31, %v2649_v44 }
 0x15f   : > { %7959 = vmatmul.mubr.msk.f32.vlgmr.msra.gmra.mxu1 %vm620_vm0, %v2814_v52  ;;  %v2591_v52 = vrot.slane %v9822_v37, 7  ;;  %v2817_v0 = vmul.f32 %v9332_v46, %v2648_v19  ;;  %v9863_v24 = vpop.permute.xlu0 %1924  ;;  %v9873_v44 = vmul.f32 %v9413_v22, %v9609_v8  ;;  %v9881_v19 = vmul.f32 %v9394_v38, %v9600_v30 }
 0x160   : > { %8012 = vmatmul.mubr.msk.f32.gmra.mxu0 %vm620_vm0, %v9788_v25  ;;  %8057 = vmatpush3.msra.mxu1 %v9385_v18 }
 0x161   : > { %7961 = vmatprep.mubr.msk.f32.mxu1 %vm620_vm0, %v2815_v26  ;;  %8014 = vmatprep.mubr.msk.f32.mxu0 %vm620_vm0, %v9776_v53  ;;  %v2647_v18 = vsel %vm2620_vm1, %v2590_v14, %v2591_v52  ;;  %v2646_v51 = vsel %vm2620_vm1, %v2591_v52, %v2592_v13  ;;  %v2594_v26 = vrot.slane %v9845_v11, 7  ;;  %12492 = vst [vmem:[#allocation115_spill] sm:$0xff] %v9873_v44  ;;  %v2593_v14 = vrot.slane %v9854_v10, 7 }
 0x162   : > { %8156 = vmatprep.subr.mxu1 %v9834_v50  ;;  %v9884_v52 = vpop.permute.xlu1 %2785  ;;  %v2819_v50 = vmul.f32 %v9388_v28, %v2646_v51  ;;  %v2596_v38 = vrot.slane %v9873_v44, 7  ;;  %v9905_v51 = vmul.f32 %v9438_v2, %v9612_v43  ;;  %v9921_v43 = vmul.f32 %v9501_v23, %v9633_v6 }
 0x163   : > { %7962 = vmatmul.mubr.msk.f32.gmra.mxu1 %vm620_vm0, %v2816_v40  ;;  %v2818_v40 = vmul.f32 %v9368_v3, %v2647_v18  ;;  %12493 = vst [vmem:[#allocation116_spill] sm:$0xff] %v9884_v52  ;;  %v2645_v22 = vsel %vm2620_vm1, %v2592_v13, %v2593_v14  ;;  %v9897_v18 = vmul.f32 %v9457_v21, %v9621_v39  ;;  %v2595_v13 = vrot.slane %v9881_v19, 7 }
 0x164   : > { %8015 = vmatmul.mubr.msk.f32.gmra.mxu0 %vm620_vm0, %v9822_v37  ;;  %7964 = vmatprep.mubr.msk.f32.mxu1 %vm620_vm0, %v2817_v0  ;;  %v2644_v0 = vsel %vm2620_vm1, %v2593_v14, %v2594_v26  ;;  %12495 = vst [vmem:[#allocation118_spill] sm:$0xff] %v9905_v51  ;;  %v2820_v14 = vmul.f32 %v9418_v29, %v2645_v22  ;;  %12497 = vst [vmem:[#allocation120_spill] sm:$0xff] %v9921_v43 }
 0x165   : > { %8017 = vmatprep.mubr.msk.f32.mxu0 %vm620_vm0, %v9809_v55  ;;  %12494 = vst [vmem:[#allocation117_spill] sm:$0xff] %v9897_v18  ;;  %v2821_v28 = vmul.f32 %v9432_v58, %v2644_v0  ;;  %v2643_v21 = vsel %vm2620_vm1, %v2594_v26, %v2595_v13  ;;  %v2598_v2 = vrot.slane %v9897_v18, 7  ;;  %v2597_v26 = vrot.slane %v9905_v51, 7  ;;  %v12529_v58 = vld [vmem:[#allocation83_spill] sm:$0xff] }
 0x166   : > { %v9923_v22 = vpop.permute.xlu1 %1929  ;;  %v9931_v0 = vmul.f32 %v9482_v27, %v9624_v34  ;;  %v2600_v27 = vrot.slane %v9921_v43, 7 }
 0x167   : > { %7965 = vmatmul.mubr.msk.f32.gmra.mxu1 %vm620_vm0, %v2818_v40  ;;  %v9907_v40 = vpop.permute.xlu0 %2790  ;;  %v2641_v23 = vsel %vm2620_vm1, %v2596_v38, %v2597_v26 }
 0x168   : > { %8018 = vmatmul.mubr.msk.f32.gmra.mxu0 %vm620_vm0, %v9854_v10  ;;  %7967 = vmatprep.mubr.msk.f32.mxu1 %vm620_vm0, %v2819_v50  ;;  %12496 = vst [vmem:[#allocation119_spill] sm:$0xff] %v9907_v40  ;;  %v2642_v50 = vsel %vm2620_vm1, %v2595_v13, %v2596_v38  ;;  %12498 = vst [vmem:[#allocation121_spill] sm:$0xff] %v9931_v0  ;;  %v2822_v13 = vmul.f32 %v9462_v32, %v2643_v21  ;;  %v2599_v38 = vrot.slane %v9931_v0, 7 }
 0x169   : > { %8020 = vmatprep.mubr.msk.f32.mxu0 %vm620_vm0, %v9845_v11  ;;  %v9947_v21 = vmul.f32 %v9552_v20, %v9647_v7  ;;  %v12505_v7 = vld [vmem:[#allocation70_spill] sm:$0xff] }
 0x16a   : > { %v2639_v20 = vsel %vm2620_vm1, %v2598_v2, %v2599_v38 }
 0x16b   : > { %7968 = vmatmul.mubr.msk.f32.gmra.mxu1 %vm620_vm0, %v2820_v14  ;;  %v2823_v14 = vmul.f32 %v9476_v45, %v2642_v50  ;;  %v9937_v6 = vpop.permute.xlu0 %2795  ;;  %12500 = vst [vmem:[#allocation123_spill] sm:$0xff] %v9947_v21  ;;  %v9955_v50 = vmul.f32 %v9526_v9, %v9638_v49  ;;  %v12503_v45 = vld [vmem:[#allocation53_spill] sm:$0xff]  ;;  %v2602_v9 = vrot.slane %v9947_v21, 7  ;;  %v12504_v49 = vld [vmem:[#allocation84_spill] sm:$0xff] }
 0x16c   : > { %8021 = vmatmul.mubr.msk.f32.gmra.mxu0 %vm620_vm0, %v9881_v19  ;;  %7970 = vmatprep.mubr.msk.f32.mxu1 %vm620_vm0, %v2821_v28  ;;  %12499 = vst [vmem:[#allocation122_spill] sm:$0xff] %v9937_v6  ;;  %v2640_v28 = vsel %vm2620_vm1, %v2597_v26, %v2598_v2  ;;  %v9958_v26 = vpop.permute.xlu1 %2800 }
 0x16d   : > { %8023 = vmatprep.mubr.msk.f32.mxu0 %vm620_vm0, %v9873_v44  ;;  %12501 = vst [vmem:[#allocation124_spill] sm:$0xff] %v9955_v50  ;;  %12502 = vst [vmem:[#allocation125_spill] sm:$0xff] %v9958_v26  ;;  %v2825_v32 = vmul.f32 %v12503_v45, %v2640_v28  ;;  %v2601_v2 = vrot.slane %v9955_v50, 7  ;;  %v12507_v28 = vld [vmem:[#allocation82_spill] sm:$0xff] }
 0x16f   : > { %7971 = vmatmul.mubr.msk.f32.gmra.mxu1 %vm620_vm0, %v2822_v13  ;;  %v2824_v13 = vmul.f32 %v9506_v54, %v2641_v23  ;;  %v9971_v23 = vmul.f32 %v12505_v7, %v12504_v49  ;;  %v9981_v54 = vpop.permute.xlu0 %2805  ;;  %v2637_v7 = vsel %vm2620_vm1, %v2600_v27, %v2601_v2  ;;  %v12514_v49 = vld [vmem:[#allocation78_spill] sm:$0xff] }
 0x170   : > { %8024 = vmatmul.mubr.msk.f32.gmra.mxu0 %vm620_vm0, %v9905_v51  ;;  %7973 = vmatprep.mubr.msk.f32.mxu1 %vm620_vm0, %v2823_v14  ;;  %v2638_v14 = vsel %vm2620_vm1, %v2599_v38, %v2600_v27  ;;  %12510 = vst [vmem:[#allocation126_spill] sm:$0xff] %v9981_v54  ;;  %v12511_v38 = vld [vmem:[#allocation63_spill] sm:$0xff]  ;;  %v12516_v27 = vld [vmem:[#allocation85_spill] sm:$0xff] }
 0x171   : > { %8026 = vmatprep.mubr.msk.f32.mxu0 %vm620_vm0, %v9897_v18  ;;  %12506 = vst [vmem:[#allocation70_spill] sm:$0xff] %v9971_v23  ;;  %v12512_v18 = vld [vmem:[#allocation68_spill] sm:$0xff] }
 0x172   : > { %v2827_v51 = vmul.f32 %v12512_v18, %v2638_v14  ;;  %v12517_v14 = vld [vmem:[#allocation71_spill] sm:$0xff] }
 0x173   : > { %7974 = vmatmul.mubr.msk.f32.gmra.mxu1 %vm620_vm0, %v2824_v13  ;;  %v12508_v13 = vld [vmem:[#allocation66_spill] sm:$0xff]  ;;  %v10005_v18 = vmul.f32 %v12517_v14, %v12516_v27  ;;  %v12522_v27 = vld [vmem:[#allocation91_spill] sm:$0xff] }
 0x174   : > { %8027 = vmatmul.mubr.msk.f32.gmra.mxu0 %vm620_vm0, %v9931_v0  ;;  %7976 = vmatprep.mubr.msk.f32.mxu1 %vm620_vm0, %v2825_v32  ;;  %v9979_v45 = vmul.f32 %v12508_v13, %v12507_v28  ;;  %v2826_v0 = vmul.f32 %v12511_v38, %v2639_v20  ;;  %v2636_v32 = vsel %vm2620_vm1, %v2601_v2, %v2602_v9  ;;  %v2604_v13 = vrot.slane %v9971_v23, 7  ;;  %v12513_v28 = vld [vmem:[#allocation87_spill] sm:$0xff]  ;;  %v9997_v20 = vpop.permute.xlu1 %2810  ;;  %v12519_v2 = vld [vmem:[#allocation69_spill] sm:$0xff] }
 0x175   : > { %8029 = vmatprep.mubr.msk.f32.mxu0 %vm620_vm0, %v9921_v43  ;;  %v9995_v43 = vmul.f32 %v12514_v49, %v12513_v28  ;;  %12515 = vst [vmem:[#allocation78_spill] sm:$0xff] %v9997_v20  ;;  %12518 = vst [vmem:[#allocation71_spill] sm:$0xff] %v10005_v18  ;;  %v2828_v38 = vmul.f32 %v12519_v2, %v2637_v7  ;;  %v10011_v28 = vpop.permute.xlu0 %3620 }
 0x176   : > { %12509 = vst [vmem:[#allocation66_spill] sm:$0xff] %v9979_v45  ;;  %12521 = vst [vmem:[#allocation127_spill] sm:$0xff] %v10011_v28 }
 0x177   : > { %7977 = vmatmul.mubr.msk.f32.gmra.mxu1 %vm620_vm0, %v2826_v0  ;;  %v2603_v0 = vrot.slane %v9979_v45, 7  ;;  %v2606_v14 = vrot.slane %v9995_v43, 7 }
 0x178   : > { %8030 = vmatmul.mubr.msk.f32.gmra.mxu0 %vm620_vm0, %v9955_v50  ;;  %7979 = vmatprep.mubr.msk.f32.mxu1 %vm620_vm0, %v2827_v51  ;;  %v12520_v50 = vld [vmem:[#allocation73_spill] sm:$0xff] }
 0x179   : > { %8032 = vmatprep.mubr.msk.f32.mxu0 %vm620_vm0, %v9947_v21  ;;  %v2829_v34 = vmul.f32 %v12520_v50, %v2636_v32  ;;  %v2635_v49 = vsel %vm2620_vm1, %v2602_v9, %v2603_v0  ;;  %v2634_v51 = vsel %vm2620_vm1, %v2603_v0, %v2604_v13  ;;  %v12523_v21 = vld [vmem:[#allocation88_spill] sm:$0xff]  ;;  %v2605_v9 = vrot.slane %v10005_v18, 7  ;;  %v10032_v0 = vpop.permute.xlu1 %3625 }
 0x17a   : > { %v10021_v7 = vmul.f32 %v12523_v21, %v12522_v27  ;;  %v12525_v32 = vld [vmem:[#allocation80_spill] sm:$0xff]  ;;  %v2831_v29 = vmul.f32 %v12529_v58, %v2634_v51  ;;  %v12531_v27 = vld [vmem:[#allocation98_spill] sm:$0xff] }
 0x17b   : > { %7980 = vmatmul.mubr.msk.f32.gmra.mxu1 %vm620_vm0, %v2828_v38  ;;  %v12524_v38 = vld [vmem:[#allocation89_spill] sm:$0xff]  ;;  %12528 = vst [vmem:[#allocation80_spill] sm:$0xff] %v10032_v0  ;;  %v2633_v21 = vsel %vm2620_vm1, %v2604_v13, %v2605_v9  ;;  %v12533_v51 = vld [vmem:[#allocation90_spill] sm:$0xff] }
 0x17c   : > { %8033 = vmatmul.mubr.msk.f32.gmra.mxu0 %vm620_vm0, %v9979_v45  ;;  %7982 = vmatprep.mubr.msk.f32.mxu1 %vm620_vm0, %v2829_v34  ;;  %v10029_v50 = vmul.f32 %v12525_v32, %v12524_v38  ;;  %v12527_v45 = vld [vmem:[#allocation76_spill] sm:$0xff]  ;;  %v2632_v34 = vsel %vm2620_vm1, %v2605_v9, %v2606_v14  ;;  %v2608_v32 = vrot.slane %v10021_v7, 7  ;;  %v12530_v38 = vld [vmem:[#allocation94_spill] sm:$0xff] }
 0x17d   : > { %8035 = vmatprep.mubr.msk.f32.mxu0 %vm620_vm0, %v9971_v23  ;;  %v2830_v2 = vmul.f32 %v12527_v45, %v2635_v49  ;;  %v10045_v49 = vmul.f32 %v12531_v27, %v12530_v38  ;;  %v12536_v9 = vld [vmem:[#allocation86_spill] sm:$0xff]  ;;  %v12537_v23 = vld [vmem:[#allocation93_spill] sm:$0xff] }
 0x17e   : > { %12526 = vst [vmem:[#allocation88_spill] sm:$0xff] %v10029_v50  ;;  %v2607_v13 = vrot.slane %v10029_v50, 7  ;;  %v2832_v45 = vmul.f32 %v12536_v9, %v2633_v21  ;;  %v2833_v44 = vmul.f32 %v12537_v23, %v2632_v34  ;;  %v10071_v21 = vpop.permute.xlu1 %3635  ;;  %v12541_v34 = vld [vmem:[#allocation100_spill] sm:$0xff] }
 0x17f   : > { %7983 = vmatmul.mubr.msk.f32.gmra.mxu1 %vm620_vm0, %v2830_v2  ;;  %v12532_v2 = vld [vmem:[#allocation92_spill] sm:$0xff]  ;;  %12539 = vst [vmem:[#allocation128_spill] sm:$0xff] %v10071_v21 }
 0x180   : > { %8036 = vmatmul.mubr.msk.f32.gmra.mxu0 %vm620_vm0, %v10005_v18  ;;  %7985 = vmatprep.mubr.msk.f32.mxu1 %vm620_vm0, %v2831_v29  ;;  %v10053_v58 = vmul.f32 %v12533_v51, %v12532_v2  ;;  %v10055_v18 = vpop.permute.xlu0 %3630  ;;  %v2631_v27 = vsel %vm2620_vm1, %v2606_v14, %v2607_v13  ;;  %v2630_v29 = vsel %vm2620_vm1, %v2607_v13, %v2608_v32  ;;  %v2610_v51 = vrot.slane %v10045_v49, 7  ;;  %v12538_v2 = vld [vmem:[#allocation97_spill] sm:$0xff]  ;;  %v12540_v14 = vld [vmem:[#allocation95_spill] sm:$0xff]  ;;  %v12542_v13 = vld [vmem:[#allocation96_spill] sm:$0xff] }
 0x181   : > { %8038 = vmatprep.mubr.msk.f32.mxu0 %vm620_vm0, %v9995_v43  ;;  %12535 = vst [vmem:[#allocation90_spill] sm:$0xff] %v10055_v18  ;;  %v10069_v38 = vmul.f32 %v9753_v62, %v12538_v2  ;;  %v10079_v23 = vmul.f32 %v12541_v34, %v12540_v14  ;;  %v2835_v9 = vmul.f32 %v9730_v41, %v2630_v29  ;;  %v12544_v14 = vld [vmem:[#allocation101_spill] sm:$0xff] }
 0x182   : > { %12534 = vst [vmem:[#allocation98_spill] sm:$0xff] %v10053_v58 }
 0x183   : > { %7986 = vmatmul.mubr.msk.f32.gmra.mxu1 %vm620_vm0, %v2832_v45  ;;  %v2609_v45 = vrot.slane %v10053_v58, 7  ;;  %v2612_v34 = vrot.slane %v10069_v38, 7 }
 0x184   : > { %8039 = vmatmul.mubr.msk.f32.gmra.mxu0 %vm620_vm0, %v10029_v50  ;;  %7988 = vmatprep.mubr.msk.f32.mxu1 %vm620_vm0, %v2833_v44  ;;  %v2834_v50 = vmul.f32 %v12542_v13, %v2631_v27  ;;  %v10085_v2 = vpop.permute.xlu0 %3640  ;;  %v10095_v27 = vmul.f32 %v9847_v47, %v12544_v14 }
 0x185   : > { %8041 = vmatprep.mubr.msk.f32.mxu0 %vm620_vm0, %v10021_v7  ;;  %v2629_v62 = vsel %vm2620_vm1, %v2608_v32, %v2609_v45  ;;  %12543 = vst [vmem:[#allocation100_spill] sm:$0xff] %v10085_v2  ;;  %v2628_v44 = vsel %vm2620_vm1, %v2609_v45, %v2610_v51  ;;  %v2611_v32 = vrot.slane %v10079_v23, 7  ;;  %v10106_v45 = vpop.permute.xlu1 %3645 }
 0x186   : > { %v2836_v41 = vmul.f32 %v9737_v4, %v2629_v62  ;;  %v10119_v62 = vmul.f32 %v9923_v22, %v9735_v36 }
 0x187   : > { %7989 = vmatmul.mubr.msk.f32.gmra.mxu1 %vm620_vm0, %v2834_v50  ;;  %v12545_v50 = vld [vmem:[#allocation99_spill] sm:$0xff]  ;;  %v2627_v47 = vsel %vm2620_vm1, %v2610_v51, %v2611_v32 }
 0x188   : > { %8042 = vmatmul.mubr.msk.f32.gmra.mxu0 %vm620_vm0, %v10053_v58  ;;  %7991 = vmatprep.mubr.msk.f32.mxu1 %vm620_vm0, %v2835_v9  ;;  %v10103_v29 = vmul.f32 %v9778_v5, %v12545_v50  ;;  %12547 = vst [vmem:[#allocation99_spill] sm:$0xff] %v10106_v45  ;;  %v2837_v58 = vmul.f32 %v9793_v60, %v2628_v44  ;;  %v2614_v5 = vrot.slane %v10095_v27, 7  ;;  %12548 = vst [vmem:[#allocation129_spill] sm:$0xff] %v10119_v62  ;;  %v10129_v44 = vpop.permute.xlu0 %3650 }
 0x189   : > { %8044 = vmatprep.mubr.msk.f32.mxu0 %vm620_vm0, %v10045_v49  ;;  %v2626_v9 = vsel %vm2620_vm1, %v2611_v32, %v2612_v34  ;;  %12550 = vst [vmem:[#allocation131_spill] sm:$0xff] %v10129_v44  ;;  %v2838_v32 = vmul.f32 %v9824_v35, %v2627_v47  ;;  %v10142_v36 = vpop.permute.xlu1 %3655 }
 0x18a   : > { %12546 = vst [vmem:[#allocation101_spill] sm:$0xff] %v10103_v29  ;;  %v2613_v51 = vrot.slane %v10103_v29, 7  ;;  %v2839_v60 = vmul.f32 %v9884_v52, %v2626_v9  ;;  %12551 = vst [vmem:[#allocation132_spill] sm:$0xff] %v10142_v36  ;;  %v4164_v9 = vrot.slane %v9550_v42, 7  ;;  %v12555_v42 = vld [vmem:[#allocation67_spill] sm:$0xff] }
 0x18b   : > { %7992 = vmatmul.mubr.msk.f32.gmra.mxu1 %vm620_vm0, %v2836_v41  ;;  %v10127_v41 = vmul.f32 %v9863_v24, %v9726_v56  ;;  %v2616_v24 = vrot.slane %v10119_v62, 7  ;;  %v12553_v56 = vld [vmem:[#allocation110_spill] sm:$0xff] }
 0x18c   : > { %8045 = vmatmul.mubr.msk.f32.gmra.mxu0 %vm620_vm0, %v10079_v23  ;;  %7994 = vmatprep.mubr.msk.f32.mxu1 %vm620_vm0, %v2837_v58  ;;  %v2625_v22 = vsel %vm2620_vm1, %v2612_v34, %v2613_v51  ;;  %v2624_v58 = vsel %vm2620_vm1, %v2613_v51, %v2614_v5  ;;  %v10153_v52 = vpop.permute.xlu0 %3660 }
 0x18d   : > { %8047 = vmatprep.mubr.msk.f32.mxu0 %vm620_vm0, %v10069_v38  ;;  %12549 = vst [vmem:[#allocation130_spill] sm:$0xff] %v10127_v41  ;;  %v2615_v34 = vrot.slane %v10127_v41, 7  ;;  %v2840_v47 = vmul.f32 %v9907_v40, %v2625_v22  ;;  %12552 = vst [vmem:[#allocation133_spill] sm:$0xff] %v10153_v52  ;;  %v12554_v22 = vrot.slane %v9743_v57, 7 }
 0x18f   : > { %7995 = vmatmul.mubr.msk.f32.gmra.mxu1 %vm620_vm0, %v2838_v32  ;;  %v2841_v32 = vmul.f32 %v9937_v6, %v2624_v58  ;;  %v2623_v51 = vsel %vm2620_vm1, %v2614_v5, %v2615_v34  ;;  %v4227_v58 = vsel %vm2620_vm1, %v12554_v22, %v4164_v9  ;;  %v4166_v6 = vrot.slane %v12555_v42, 7  ;;  %v12556_v5 = vld [vmem:[#allocation65_spill] sm:$0xff] }
 0x190   : > { %8048 = vmatmul.mubr.msk.f32.gmra.mxu0 %vm620_vm0, %v10103_v29  ;;  %7997 = vmatprep.mubr.msk.f32.mxu1 %vm620_vm0, %v2839_v60  ;;  %v2622_v60 = vsel %vm2620_vm1, %v2615_v34, %v2616_v24  ;;  %v4165_v40 = vrot.slane %v12556_v5, 7  ;;  %v3554_v34 = vrot.slane %v9749_v61, 1  ;;  %v10173_v29 = vpop.permute.xlu1 %3665  ;;  %v4228_v42 = vmul.f32 %v4227_v58, %v9274_v48  ;;  %v12558_v5 = vld [vmem:[#allocation109_spill] sm:$0xff] }
 0x191   : > { %8050 = vmatprep.mubr.msk.f32.mxu0 %vm620_vm0, %v10095_v27  ;;  %12557 = vst [vmem:[#allocation110_spill] sm:$0xff] %v10173_v29  ;;  %v2843_v57 = vmul.f32 %v9981_v54, %v2622_v60  ;;  %v12560_v61 = vrot.slane %v12553_v56, 1  ;;  %v10197_v60 = vpop.permute.xlu0 %3670  ;;  %v3556_v58 = vrot.slane %v9788_v25, 1  ;;  %v4170_v25 = vrot.slane %v9595_v12, 7 }
 0x192   : > { %v4226_v22 = vsel %vm2620_vm1, %v4164_v9, %v4165_v40  ;;  %v4225_v9 = vsel %vm2620_vm1, %v4165_v40, %v4166_v6  ;;  %12561 = vst [vmem:[#allocation109_spill] sm:$0xff] %v10197_v60 }
 0x193   : > { %7998 = vmatmul.mubr.msk.f32.gmra.mxu1 %vm620_vm0, %v2840_v47  ;;  %v2842_v47 = vmul.f32 %v9958_v26, %v2623_v51  ;;  %v3616_v51 = vsel %vm3585_vm2, %v12560_v61, %v3554_v34 }
 0x194   : > { %8051 = vmatmul.mubr.msk.f32.gmra.mxu0 %vm620_vm0, %v10127_v41  ;;  %8000 = vmatprep.mubr.msk.f32.mxu1 %vm620_vm0, %v2841_v32  ;;  %v12559_v32 = vrot.slane %v12558_v5, 7 }
 0x195   : > { %8053 = vmatprep.mubr.msk.f32.mxu0 %vm620_vm0, %v10119_v62  ;;  %v3555_v62 = vrot.slane %v9762_v33, 1  ;;  %v4168_v33 = vrot.slane %v9583_v59, 7 }
 0x196   : > { %v2621_v41 = vsel %vm2620_vm1, %v2616_v24, %v12559_v32  ;;  %v4167_v24 = vrot.slane %v9573_v63, 7  ;;  %v4229_v32 = vmul.f32 %v4226_v22, %v9292_v15  ;;  %v4169_v22 = vrot.slane %v9586_v1, 7 }
 0x197   : > { %8001 = vmatmul.mubr.msk.f32.gmra.mxu1 %vm620_vm0, %v2842_v47  ;;  %v3557_v47 = vrot.slane %v9776_v53, 1  ;;  %v2844_v61 = vmul.f32 %v9997_v20, %v2621_v41  ;;  %v3615_v40 = vsel %vm3585_vm2, %v3554_v34, %v3555_v62  ;;  %v3614_v53 = vsel %vm3585_vm2, %v3555_v62, %v3556_v58  ;;  %v10217_v41 = vld [vmem:[%s12203_s12 + $0x38] sm:$0xff]  ;;  %v10219_v34 = vpop.permute.xlu1 %3675 }
 0x198   : > { %8054 = vmatmul.mubr.msk.f32.gmra.mxu0 %vm620_vm0, %v12558_v5  ;;  %8003 = vmatprep.mubr.msk.f32.mxu1 %vm620_vm0, %v2843_v57  ;;  %v3778_v57 = vmul.f32 %v10011_v28, %v3616_v51  ;;  %v4224_v48 = vsel %vm2620_vm1, %v4166_v6, %v4167_v24  ;;  %12562 = vst [vmem:[#allocation134_spill] sm:$0xff] %v10219_v34  ;;  %v3558_v62 = vrot.slane %v9822_v37, 1  ;;  %v10239_v37 = vld [vmem:[%s12203_s12 + $0x30] sm:$0xff] }
 0x199   : > { %8108 = vmatprep.mubr.msk.f32.mxu0 %vm620_vm0, %v4228_v42  ;;  %v4230_v42 = vmul.f32 %v4225_v9, %v9300_v17  ;;  %v4223_v6 = vsel %vm2620_vm1, %v4167_v24, %v4168_v33  ;;  %v3779_v51 = vmul.f32 %v10032_v0, %v3615_v40  ;;  %v4231_v9 = vmul.f32 %v4224_v48, %v9318_v31  ;;  %v10242_v48 = vpop.permute.xlu0 %3680 }
 0x19a   : > { %v3780_v17 = vmul.f32 %v10055_v18, %v3614_v53  ;;  %v4222_v24 = vsel %vm2620_vm1, %v4168_v33, %v4169_v22  ;;  %v4221_v33 = vsel %vm2620_vm1, %v4169_v22, %v4170_v25  ;;  %v4172_v40 = vrot.slane %v9609_v8, 7 }
 0x19b   : > { %8004 = vmatmul.mubr.msk.f32.gmra.mxu1 %vm620_vm0, %v2844_v61  ;;  %v3559_v61 = vrot.slane %v9809_v55, 1  ;;  %v4232_v55 = vmul.f32 %v4223_v6, %v9332_v46  ;;  %v4171_v53 = vrot.slane %v9600_v30, 7  ;;  %v10261_v22 = vpop.permute.xlu1 %3685 }
 0x19c   : > { %8109 = vmatmul.mubr.msk.f32.vlgmr.msra.gmra.mxu0 %vm620_vm0, %v4229_v32  ;;  %8058 = vmatprep.mubr.msk.f32.mxu1 %vm620_vm0, %v3778_v57  ;;  %v12563_v32 = vld [vmem:[#allocation112_spill] sm:$0xff]  ;;  %v3613_v57 = vsel %vm3585_vm2, %v3556_v58, %v3557_v47  ;;  %v3612_v58 = vsel %vm3585_vm2, %v3557_v47, %v3558_v62  ;;  %v4233_v47 = vmul.f32 %v4222_v24, %v9368_v3  ;;  %v4174_v24 = vrot.slane %v9621_v39, 7  ;;  %v12572_v3 = vld [vmem:[#allocation31_spill] sm:$0xff]  ;;  %v12579_v39 = vld [vmem:[#allocation42_spill] sm:$0xff] }
 0x19d   : > { %8111 = vmatprep.mubr.msk.f32.mxu0 %vm620_vm0, %v4230_v42  ;;  %8207 = vmatpush3.msra.mxu0 %v12563_v32  ;;  %12564 = vst [vmem:[#allocation112_spill] sm:$0xff] %v10242_v48  ;;  %v12565_v42 = vld [vmem:[#allocation114_spill] sm:$0xff]  ;;  %v3781_v6 = vmul.f32 %v10071_v21, %v3613_v57  ;;  %v3782_v32 = vmul.f32 %v10085_v2, %v3612_v58  ;;  %v10279_v58 = vpop.permute.xlu0 %3690 }
 0x19e   : > { %8306 = vmatprep.subr.mxu0 %v10217_v41  ;;  %12566 = vst [vmem:[#allocation114_spill] sm:$0xff] %v10261_v22  ;;  %v3611_v46 = vsel %vm3585_vm2, %v3558_v62, %v3559_v61  ;;  %v4219_v57 = vsel %vm2620_vm1, %v4171_v53, %v4172_v40  ;;  %v12568_v62 = vld [vmem:[#allocation72_spill] sm:$0xff] }
 0x19f   : > { %8059 = vmatmul.mubr.msk.f32.vlgmr.msra.gmra.mxu1 %vm620_vm0, %v3779_v51  ;;  %v3560_v51 = vrot.slane %v9854_v10, 1  ;;  %12569 = vst [vmem:[#allocation72_spill] sm:$0xff] %v10279_v58  ;;  %v4236_v31 = vmul.f32 %v4219_v57, %v12572_v3  ;;  %v12576_v57 = vld [vmem:[#allocation118_spill] sm:$0xff]  ;;  %v12577_v3 = vld [vmem:[#allocation117_spill] sm:$0xff] }
 0x1a0   : > { %8112 = vmatmul.mubr.msk.f32.gmra.mxu0 %vm620_vm0, %v4231_v9  ;;  %8157 = vmatpush3.msra.mxu1 %v12565_v42  ;;  %v3561_v9 = vrot.slane %v9845_v11, 1  ;;  %v12567_v42 = vld [vmem:[#allocation20_spill] sm:$0xff]  ;;  %v4220_v11 = vsel %vm2620_vm1, %v4170_v25, %v4171_v53  ;;  %v3562_v25 = vrot.slane %v9881_v19, 1 }
 0x1a1   : > { %8061 = vmatprep.mubr.msk.f32.mxu1 %vm620_vm0, %v3780_v17  ;;  %8114 = vmatprep.mubr.msk.f32.mxu0 %vm620_vm0, %v4232_v55  ;;  %v4234_v17 = vmul.f32 %v4221_v33, %v12567_v42  ;;  %v3610_v10 = vsel %vm3585_vm2, %v3559_v61, %v3560_v51  ;;  %v4173_v55 = vrot.slane %v12568_v62, 7  ;;  %v12570_v33 = vld [vmem:[#allocation115_spill] sm:$0xff] }
 0x1a2   : > { %8256 = vmatprep.subr.mxu1 %v10239_v37  ;;  %v12571_v61 = vld [vmem:[#allocation27_spill] sm:$0xff]  ;;  %v3784_v53 = vmul.f32 %v10129_v44, %v3610_v10  ;;  %v3608_v19 = vsel %vm3585_vm2, %v3561_v9, %v3562_v25 }
 0x1a3   : > { %8062 = vmatmul.mubr.msk.f32.gmra.mxu1 %vm620_vm0, %v3781_v6  ;;  %v3563_v6 = vrot.slane %v12570_v33, 1  ;;  %v4235_v42 = vmul.f32 %v4220_v11, %v12571_v61  ;;  %v12573_v11 = vld [vmem:[#allocation77_spill] sm:$0xff]  ;;  %v10298_v33 = vpop.permute.xlu1 %3695 }
 0x1a4   : > { %8115 = vmatmul.mubr.msk.f32.gmra.mxu0 %vm620_vm0, %v4233_v47  ;;  %8064 = vmatprep.mubr.msk.f32.mxu1 %vm620_vm0, %v3782_v32  ;;  %v3783_v47 = vmul.f32 %v10106_v45, %v3611_v46  ;;  %v3609_v32 = vsel %vm3585_vm2, %v3560_v51, %v3561_v9  ;;  %v4217_v46 = vsel %vm2620_vm1, %v4173_v55, %v4174_v24  ;;  %v4176_v10 = vrot.slane %v12573_v11, 7  ;;  %v12575_v51 = vld [vmem:[#allocation75_spill] sm:$0xff]  ;;  %v12578_v9 = vld [vmem:[#allocation38_spill] sm:$0xff] }
 0x1a5   : > { %8117 = vmatprep.mubr.msk.f32.mxu0 %vm620_vm0, %v4234_v17  ;;  %v4218_v17 = vsel %vm2620_vm1, %v4172_v40, %v4173_v55  ;;  %12574 = vst [vmem:[#allocation115_spill] sm:$0xff] %v10298_v33  ;;  %v4175_v40 = vrot.slane %v12575_v51, 7  ;;  %v3785_v61 = vmul.f32 %v10142_v36, %v3609_v32  ;;  %v3786_v55 = vmul.f32 %v10153_v52, %v3608_v19  ;;  %v12587_v51 = vld [vmem:[#allocation53_spill] sm:$0xff] }
 0x1a6   : > { %v4237_v15 = vmul.f32 %v4218_v17, %v12578_v9  ;;  %v4238_v11 = vmul.f32 %v4217_v46, %v12579_v39  ;;  %v3607_v44 = vsel %vm3585_vm2, %v3562_v25, %v3563_v6  ;;  %v12581_v17 = vld [vmem:[#allocation81_spill] sm:$0xff]  ;;  %v12582_v25 = vld [vmem:[#allocation79_spill] sm:$0xff]  ;;  %v12584_v39 = vld [vmem:[#allocation120_spill] sm:$0xff] }
 0x1a7   : > { %8065 = vmatmul.mubr.msk.f32.gmra.mxu1 %vm620_vm0, %v3783_v47  ;;  %v3564_v47 = vrot.slane %v12576_v57, 1  ;;  %v4215_v32 = vsel %vm2620_vm1, %v4175_v40, %v4176_v10  ;;  %v4178_v19 = vrot.slane %v12581_v17, 7  ;;  %v12583_v46 = vld [vmem:[#allocation121_spill] sm:$0xff] }
 0x1a8   : > { %8118 = vmatmul.mubr.msk.f32.gmra.mxu0 %vm620_vm0, %v4235_v42  ;;  %8067 = vmatprep.mubr.msk.f32.mxu1 %vm620_vm0, %v3784_v53  ;;  %v3565_v42 = vrot.slane %v12577_v3, 1  ;;  %v10313_v53 = vpop.permute.xlu0 %3700  ;;  %v3566_v57 = vrot.slane %v12583_v46, 1  ;;  %v12585_v9 = vld [vmem:[#allocation49_spill] sm:$0xff]  ;;  %v4240_v17 = vmul.f32 %v4215_v32, %v12587_v51  ;;  %v12592_v51 = vld [vmem:[#allocation123_spill] sm:$0xff] }
 0x1a9   : > { %8120 = vmatprep.mubr.msk.f32.mxu0 %vm620_vm0, %v4236_v31  ;;  %v4216_v31 = vsel %vm2620_vm1, %v4174_v24, %v4175_v40  ;;  %12580 = vst [vmem:[#allocation118_spill] sm:$0xff] %v10313_v53  ;;  %v3606_v3 = vsel %vm3585_vm2, %v3563_v6, %v3564_v47  ;;  %v4177_v24 = vrot.slane %v12582_v25, 7  ;;  %v10329_v6 = vpop.permute.xlu1 %3705  ;;  %v12594_v25 = vld [vmem:[#allocation68_spill] sm:$0xff] }
 0x1aa   : > { %v4239_v52 = vmul.f32 %v4216_v31, %v12585_v9  ;;  %12586 = vst [vmem:[#allocation117_spill] sm:$0xff] %v10329_v6  ;;  %v3788_v40 = vmul.f32 %v10197_v60, %v3606_v3  ;;  %v12588_v31 = vld [vmem:[#allocation84_spill] sm:$0xff] }
 0x1ab   : > { %8068 = vmatmul.mubr.msk.f32.gmra.mxu1 %vm620_vm0, %v3785_v61  ;;  %v3567_v61 = vrot.slane %v12584_v39, 1  ;;  %v3604_v39 = vsel %vm3585_vm2, %v3565_v42, %v3566_v57  ;;  %v4180_v3 = vrot.slane %v12588_v31, 7 }
 0x1ac   : > { %8121 = vmatmul.mubr.msk.f32.gmra.mxu0 %vm620_vm0, %v4237_v15  ;;  %8070 = vmatprep.mubr.msk.f32.mxu1 %vm620_vm0, %v3786_v55  ;;  %v3787_v15 = vmul.f32 %v10173_v29, %v3607_v44  ;;  %v3605_v55 = vsel %vm3585_vm2, %v3564_v47, %v3565_v42  ;;  %v4213_v44 = vsel %vm2620_vm1, %v4177_v24, %v4178_v19  ;;  %v12589_v47 = vld [vmem:[#allocation82_spill] sm:$0xff]  ;;  %v10347_v46 = vpop.permute.xlu0 %3710  ;;  %v12593_v42 = vld [vmem:[#allocation63_spill] sm:$0xff] }
 0x1ad   : > { %8123 = vmatprep.mubr.msk.f32.mxu0 %vm620_vm0, %v4238_v11  ;;  %v4214_v11 = vsel %vm2620_vm1, %v4176_v10, %v4177_v24  ;;  %v4179_v32 = vrot.slane %v12589_v47, 7  ;;  %12590 = vst [vmem:[#allocation121_spill] sm:$0xff] %v10347_v46  ;;  %v12591_v10 = vld [vmem:[#allocation124_spill] sm:$0xff]  ;;  %v3789_v9 = vmul.f32 %v10219_v34, %v3605_v55  ;;  %v3790_v24 = vmul.f32 %v10242_v48, %v3604_v39  ;;  %v12601_v47 = vld [vmem:[#allocation73_spill] sm:$0xff] }
 0x1ae   : > { %v4241_v60 = vmul.f32 %v4214_v11, %v12593_v42  ;;  %v4242_v31 = vmul.f32 %v4213_v44, %v12594_v25  ;;  %v12595_v11 = vld [vmem:[#allocation87_spill] sm:$0xff]  ;;  %v12598_v44 = vld [vmem:[#allocation70_spill] sm:$0xff]  ;;  %v12599_v25 = vld [vmem:[#allocation69_spill] sm:$0xff] }
 0x1af   : > { %8071 = vmatmul.mubr.msk.f32.gmra.mxu1 %vm620_vm0, %v3787_v15  ;;  %v3568_v15 = vrot.slane %v12591_v10, 1  ;;  %v4211_v55 = vsel %vm2620_vm1, %v4179_v32, %v4180_v3  ;;  %v4182_v39 = vrot.slane %v12595_v11, 7  ;;  %v10366_v10 = vpop.permute.xlu1 %3715 }
 0x1b0   : > { %8124 = vmatmul.mubr.msk.f32.gmra.mxu0 %vm620_vm0, %v4239_v52  ;;  %8073 = vmatprep.mubr.msk.f32.mxu1 %vm620_vm0, %v3788_v40  ;;  %v3569_v52 = vrot.slane %v12592_v51, 1  ;;  %v3603_v40 = vsel %vm3585_vm2, %v3566_v57, %v3567_v61  ;;  %12596 = vst [vmem:[#allocation120_spill] sm:$0xff] %v10366_v10  ;;  %v12597_v57 = vld [vmem:[#allocation85_spill] sm:$0xff]  ;;  %v4244_v11 = vmul.f32 %v4211_v55, %v12601_v47  ;;  %v12606_v47 = vld [vmem:[#allocation71_spill] sm:$0xff] }
 0x1b1   : > { %8126 = vmatprep.mubr.msk.f32.mxu0 %vm620_vm0, %v4240_v17  ;;  %v4212_v17 = vsel %vm2620_vm1, %v4178_v19, %v4179_v32  ;;  %v3602_v51 = vsel %vm3585_vm2, %v3567_v61, %v3568_v15  ;;  %v4181_v19 = vrot.slane %v12597_v57, 7  ;;  %v12600_v61 = vld [vmem:[#allocation66_spill] sm:$0xff] }
 0x1b2   : > { %v4243_v42 = vmul.f32 %v4212_v17, %v12599_v25  ;;  %v3570_v48 = vrot.slane %v12600_v61, 1  ;;  %v3792_v32 = vmul.f32 %v10279_v58, %v3602_v51  ;;  %v3601_v34 = vsel %vm3585_vm2, %v3568_v15, %v3569_v52  ;;  %v12603_v51 = vld [vmem:[#allocation91_spill] sm:$0xff]  ;;  %v12604_v15 = vld [vmem:[#allocation89_spill] sm:$0xff]  ;;  %v12605_v61 = vld [vmem:[#allocation76_spill] sm:$0xff] }
 0x1b3   : > { %8074 = vmatmul.mubr.msk.f32.gmra.mxu1 %vm620_vm0, %v3789_v9  ;;  %v3571_v9 = vrot.slane %v12598_v44, 1  ;;  %v4209_v17 = vsel %vm2620_vm1, %v4181_v19, %v4182_v39  ;;  %v4184_v55 = vrot.slane %v12603_v51, 7  ;;  %v3573_v44 = vrot.slane %v9995_v43, 1  ;;  %v12608_v58 = vld [vmem:[#allocation83_spill] sm:$0xff] }
 0x1b4   : > { %8127 = vmatmul.mubr.msk.f32.gmra.mxu0 %vm620_vm0, %v4241_v60  ;;  %8076 = vmatprep.mubr.msk.f32.mxu1 %vm620_vm0, %v3790_v24  ;;  %v3791_v60 = vmul.f32 %v10261_v22, %v3603_v40  ;;  %v10381_v24 = vpop.permute.xlu0 %3720  ;;  %v3600_v40 = vsel %vm3585_vm2, %v3569_v52, %v3570_v48  ;;  %v3572_v25 = vrot.slane %v12606_v47, 1  ;;  %v10397_v52 = vpop.permute.xlu1 %3725  ;;  %v4246_v51 = vmul.f32 %v4209_v17, %v12608_v58  ;;  %v12609_v47 = vld [vmem:[#allocation94_spill] sm:$0xff] }
 0x1b5   : > { %8129 = vmatprep.mubr.msk.f32.mxu0 %vm620_vm0, %v4242_v31  ;;  %v4210_v31 = vsel %vm2620_vm1, %v4180_v3, %v4181_v19  ;;  %12602 = vst [vmem:[#allocation124_spill] sm:$0xff] %v10381_v24  ;;  %v4183_v3 = vrot.slane %v12604_v15, 7  ;;  %12607 = vst [vmem:[#allocation123_spill] sm:$0xff] %v10397_v52  ;;  %v3794_v19 = vmul.f32 %v10313_v53, %v3600_v40  ;;  %v12614_v53 = vld [vmem:[#allocation93_spill] sm:$0xff] }
 0x1b6   : > { %v3598_v43 = vsel %vm3585_vm2, %v3571_v9, %v3572_v25 }
 0x1b7   : > { %8077 = vmatmul.mubr.msk.f32.gmra.mxu1 %vm620_vm0, %v3791_v60  ;;  %v3793_v60 = vmul.f32 %v10298_v33, %v3601_v34  ;;  %v4207_v34 = vsel %vm2620_vm1, %v4183_v3, %v4184_v55 }
 0x1b8   : > { %8130 = vmatmul.mubr.msk.f32.gmra.mxu0 %vm620_vm0, %v4243_v42  ;;  %8079 = vmatprep.mubr.msk.f32.mxu1 %vm620_vm0, %v3792_v32  ;;  %v4245_v42 = vmul.f32 %v4210_v31, %v12605_v61  ;;  %v3599_v32 = vsel %vm3585_vm2, %v3570_v48, %v3571_v9  ;;  %v4186_v31 = vrot.slane %v12609_v47, 7  ;;  %v12610_v48 = vld [vmem:[#allocation92_spill] sm:$0xff]  ;;  %v10415_v17 = vpop.permute.xlu0 %3730  ;;  %v4248_v47 = vmul.f32 %v4207_v34, %v12614_v53 }
 0x1b9   : > { %8132 = vmatprep.mubr.msk.f32.mxu0 %vm620_vm0, %v4244_v11  ;;  %v4208_v11 = vsel %vm2620_vm1, %v4182_v39, %v4183_v3  ;;  %v4185_v40 = vrot.slane %v12610_v48, 7  ;;  %12611 = vst [vmem:[#allocation85_spill] sm:$0xff] %v10415_v17  ;;  %v3575_v39 = vrot.slane %v10021_v7, 1  ;;  %v12613_v9 = vld [vmem:[#allocation88_spill] sm:$0xff]  ;;  %v3796_v3 = vmul.f32 %v10347_v46, %v3598_v43 }
 0x1ba   : > { %v3574_v61 = vrot.slane %v12613_v9, 1  ;;  %v10434_v9 = vpop.permute.xlu1 %3735  ;;  %v3577_v34 = vrot.slane %v10045_v49, 1 }
 0x1bb   : > { %8080 = vmatmul.mubr.msk.f32.gmra.mxu1 %vm620_vm0, %v3793_v60  ;;  %v3795_v60 = vmul.f32 %v10329_v6, %v3599_v32  ;;  %v4205_v32 = vsel %vm2620_vm1, %v4185_v40, %v4186_v31  ;;  %12616 = vst [vmem:[#allocation70_spill] sm:$0xff] %v10434_v9 }
 0x1bc   : > { %8133 = vmatmul.mubr.msk.f32.gmra.mxu0 %vm620_vm0, %v4245_v42  ;;  %8082 = vmatprep.mubr.msk.f32.mxu1 %vm620_vm0, %v3794_v19  ;;  %v12612_v42 = vld [vmem:[#allocation86_spill] sm:$0xff]  ;;  %v3597_v19 = vsel %vm3585_vm2, %v3572_v25, %v3573_v44  ;;  %v3596_v7 = vsel %vm3585_vm2, %v3573_v44, %v3574_v61  ;;  %v12617_v25 = vld [vmem:[#allocation95_spill] sm:$0xff]  ;;  %v3595_v46 = vsel %vm3585_vm2, %v3574_v61, %v3575_v39  ;;  %v4189_v61 = vrot.slane %v12545_v50, 7 }
 0x1bd   : > { %8135 = vmatprep.mubr.msk.f32.mxu0 %vm620_vm0, %v4246_v51  ;;  %v4247_v58 = vmul.f32 %v4208_v11, %v12612_v42  ;;  %v4206_v51 = vsel %vm2620_vm1, %v4184_v55, %v4185_v40  ;;  %v12615_v11 = vld [vmem:[#allocation97_spill] sm:$0xff]  ;;  %v4187_v55 = vrot.slane %v12617_v25, 7  ;;  %v12618_v44 = vld [vmem:[#allocation98_spill] sm:$0xff]  ;;  %v3798_v40 = vmul.f32 %v10381_v24, %v3596_v7  ;;  %v12619_v42 = vld [vmem:[#allocation103_spill] sm:$0xff] }
 0x1be   : > { %v4188_v43 = vrot.slane %v12615_v11, 7  ;;  %v3576_v53 = vrot.slane %v12618_v44, 1  ;;  %v4250_v11 = vmul.f32 %v4205_v32, %v12619_v42  ;;  %v3799_v7 = vmul.f32 %v10397_v52, %v3595_v46  ;;  %v12623_v46 = vld [vmem:[#allocation104_spill] sm:$0xff] }
 0x1bf   : > { %8083 = vmatmul.mubr.msk.f32.gmra.mxu1 %vm620_vm0, %v3795_v60  ;;  %v4249_v60 = vmul.f32 %v4206_v51, %v12542_v13  ;;  %v4190_v51 = vrot.slane %v12544_v14, 7 }
 0x1c0   : > { %8136 = vmatmul.mubr.msk.f32.gmra.mxu0 %vm620_vm0, %v4247_v58  ;;  %8085 = vmatprep.mubr.msk.f32.mxu1 %vm620_vm0, %v3796_v3  ;;  %v3797_v58 = vmul.f32 %v10366_v10, %v3597_v19  ;;  %v10449_v3 = vpop.permute.xlu0 %3740  ;;  %v3594_v49 = vsel %vm3585_vm2, %v3575_v39, %v3576_v53  ;;  %v4203_v19 = vsel %vm2620_vm1, %v4187_v55, %v4188_v43  ;;  %v10465_v39 = vpop.permute.xlu1 %3745 }
 0x1c1   : > { %8138 = vmatprep.mubr.msk.f32.mxu0 %vm620_vm0, %v4248_v47  ;;  %v4204_v47 = vsel %vm2620_vm1, %v4186_v31, %v4187_v55  ;;  %12620 = vst [vmem:[#allocation66_spill] sm:$0xff] %v10449_v3  ;;  %v3579_v31 = vrot.slane %v10069_v38, 1  ;;  %12621 = vst [vmem:[#allocation71_spill] sm:$0xff] %v10465_v39  ;;  %v3800_v55 = vmul.f32 %v10415_v17, %v3594_v49 }
 0x1c2   : > { %v4251_v32 = vmul.f32 %v4204_v47, %v9737_v4  ;;  %v4192_v47 = vrot.slane %v12623_v46, 7  ;;  %v12627_v4 = vld [vmem:[#allocation116_spill] sm:$0xff]  ;;  %v12634_v46 = vld [vmem:[#allocation122_spill] sm:$0xff] }
 0x1c3   : > { %8086 = vmatmul.mubr.msk.f32.gmra.mxu1 %vm620_vm0, %v3797_v58  ;;  %v3578_v58 = vrot.slane %v10079_v23, 1  ;;  %v4201_v23 = vsel %vm2620_vm1, %v4189_v61, %v4190_v51 }
 0x1c4   : > { %8139 = vmatmul.mubr.msk.f32.gmra.mxu0 %vm620_vm0, %v4249_v60  ;;  %8088 = vmatprep.mubr.msk.f32.mxu1 %vm620_vm0, %v3798_v40  ;;  %v12622_v60 = vld [vmem:[#allocation111_spill] sm:$0xff]  ;;  %v3593_v40 = vsel %vm3585_vm2, %v3576_v53, %v3577_v34  ;;  %v12624_v53 = vld [vmem:[#allocation102_spill] sm:$0xff]  ;;  %v4254_v42 = vmul.f32 %v4201_v23, %v12627_v4  ;;  %v12631_v23 = vld [vmem:[#allocation129_spill] sm:$0xff] }
 0x1c5   : > { %8141 = vmatprep.mubr.msk.f32.mxu0 %vm620_vm0, %v4250_v11  ;;  %v4252_v44 = vmul.f32 %v4203_v19, %v12622_v60  ;;  %v4202_v11 = vsel %vm2620_vm1, %v4188_v43, %v4189_v61  ;;  %v3592_v38 = vsel %vm3585_vm2, %v3577_v34, %v3578_v58  ;;  %v4191_v49 = vrot.slane %v12624_v53, 7  ;;  %v10483_v19 = vpop.permute.xlu0 %3750  ;;  %v12626_v34 = vld [vmem:[#allocation101_spill] sm:$0xff]  ;;  %v12632_v4 = vld [vmem:[#allocation119_spill] sm:$0xff] }
 0x1c6   : > { %12625 = vst [vmem:[#allocation88_spill] sm:$0xff] %v10483_v19  ;;  %v3581_v43 = vrot.slane %v10095_v27, 1  ;;  %v3580_v60 = vrot.slane %v12626_v34, 1  ;;  %v3802_v61 = vmul.f32 %v10449_v3, %v3592_v38  ;;  %v10502_v34 = vpop.permute.xlu1 %3755 }
 0x1c7   : > { %8089 = vmatmul.mubr.msk.f32.gmra.mxu1 %vm620_vm0, %v3799_v7  ;;  %v3801_v7 = vmul.f32 %v10434_v9, %v3593_v40  ;;  %v4199_v40 = vsel %vm2620_vm1, %v4191_v49, %v4192_v47  ;;  %12629 = vst [vmem:[#allocation95_spill] sm:$0xff] %v10502_v34 }
 0x1c8   : > { %8142 = vmatmul.mubr.msk.f32.gmra.mxu0 %vm620_vm0, %v4251_v32  ;;  %8091 = vmatprep.mubr.msk.f32.mxu1 %vm620_vm0, %v3800_v55  ;;  %v4253_v32 = vmul.f32 %v4202_v11, %v9824_v35  ;;  %v3591_v55 = vsel %vm3585_vm2, %v3578_v58, %v3579_v31  ;;  %v3590_v27 = vsel %vm3585_vm2, %v3579_v31, %v3580_v60  ;;  %v12628_v11 = vld [vmem:[#allocation108_spill] sm:$0xff]  ;;  %v12630_v58 = vld [vmem:[#allocation106_spill] sm:$0xff] }
 0x1c9   : > { %8144 = vmatprep.mubr.msk.f32.mxu0 %vm620_vm0, %v4252_v44  ;;  %v4200_v44 = vsel %vm2620_vm1, %v4190_v51, %v4191_v49  ;;  %v4194_v38 = vrot.slane %v12628_v11, 7  ;;  %v4193_v51 = vrot.slane %v12630_v58, 7  ;;  %v12633_v31 = vld [vmem:[#allocation130_spill] sm:$0xff]  ;;  %v3804_v49 = vmul.f32 %v10483_v19, %v3590_v27  ;;  %v12636_v27 = vld [vmem:[#allocation64_spill] sm:$0xff] }
 0x1ca   : > { %v4255_v35 = vmul.f32 %v4200_v44, %v12632_v4  ;;  %v3582_v13 = vrot.slane %v12633_v31, 1  ;;  %v4256_v11 = vmul.f32 %v4199_v40, %v12634_v46  ;;  %v3589_v3 = vsel %vm3585_vm2, %v3580_v60, %v3581_v43  ;;  %v12637_v60 = vld [vmem:[#allocation65_spill] sm:$0xff] }
 0x1cb   : > { %8092 = vmatmul.mubr.msk.f32.gmra.mxu1 %vm620_vm0, %v3801_v7  ;;  %v3583_v7 = vrot.slane %v12631_v23, 1  ;;  %v4197_v44 = vsel %vm2620_vm1, %v4193_v51, %v4194_v38  ;;  %v12638_v23 = vld [vmem:[#allocation67_spill] sm:$0xff]  ;;  %v3584_v46 = vrot.slane %v12558_v5, 1 }
 0x1cc   : > { %8145 = vmatmul.mubr.msk.f32.gmra.mxu0 %vm620_vm0, %v4253_v32  ;;  %8094 = vmatprep.mubr.msk.f32.mxu1 %vm620_vm0, %v3802_v61  ;;  %v3803_v32 = vmul.f32 %v10465_v39, %v3591_v55  ;;  %v10517_v61 = vpop.permute.xlu0 %3760  ;;  %v3588_v55 = vsel %vm3585_vm2, %v3581_v43, %v3582_v13  ;;  %v4874_v31 = vrot.slane %v12638_v23, 1  ;;  %v10533_v43 = vpop.permute.xlu1 %3765  ;;  %v4258_v40 = vmul.f32 %v4197_v44, %v9981_v54 }
 0x1cd   : > { %8147 = vmatprep.mubr.msk.f32.mxu0 %vm620_vm0, %v4254_v42  ;;  %v4198_v42 = vsel %vm2620_vm1, %v4192_v47, %v4193_v51  ;;  %12635 = vst [vmem:[#allocation98_spill] sm:$0xff] %v10517_v61  ;;  %v4873_v47 = vrot.slane %v12637_v60, 1  ;;  %12639 = vst [vmem:[#allocation102_spill] sm:$0xff] %v10533_v43  ;;  %v3806_v51 = vmul.f32 %v10517_v61, %v3588_v55 }
 0x1ce   : > { %v3586_v5 = vsel %vm3585_vm2, %v3583_v7, %v3584_v46 }
 0x1cf   : > { %8095 = vmatmul.mubr.msk.f32.gmra.mxu1 %vm620_vm0, %v3803_v32  ;;  %v3805_v32 = vmul.f32 %v10502_v34, %v3589_v3  ;;  %v12642_v3 = vrot.slane %v12636_v27, 1  ;;  %v4933_v55 = vsel %vm3585_vm2, %v4873_v47, %v4874_v31 }
 0x1d0   : > { %8148 = vmatmul.mubr.msk.f32.gmra.mxu0 %vm620_vm0, %v4255_v35  ;;  %8097 = vmatprep.mubr.msk.f32.mxu1 %vm620_vm0, %v3804_v49  ;;  %v4257_v35 = vmul.f32 %v4198_v42, %v9958_v26  ;;  %v3587_v49 = vsel %vm3585_vm2, %v3582_v13, %v3583_v7  ;;  %v10553_v13 = vpop.permute.xlu0 %3770  ;;  %v4875_v7 = vrot.slane %v9573_v63, 1 }
 0x1d1   : > { %8150 = vmatprep.mubr.msk.f32.mxu0 %vm620_vm0, %v4256_v11  ;;  %v12640_v11 = vld [vmem:[#allocation107_spill] sm:$0xff]  ;;  %v4934_v42 = vsel %vm3585_vm2, %v12642_v3, %v4873_v47  ;;  %12643 = vst [vmem:[#allocation101_spill] sm:$0xff] %v10553_v13  ;;  %v3808_v44 = vmul.f32 %v10553_v13, %v3586_v5  ;;  %v10571_v47 = vpop.permute.xlu1 %3775 }
 0x1d2   : > { %v12641_v4 = vrot.slane %v12640_v11, 7  ;;  %12645 = vst [vmem:[#allocation106_spill] sm:$0xff] %v10571_v47 }
 0x1d3   : > { %8098 = vmatmul.mubr.msk.f32.gmra.mxu1 %vm620_vm0, %v3805_v32  ;;  %v4936_v32 = vmul.f32 %v4934_v42, %v10011_v28  ;;  %v4877_v42 = vrot.slane %v9586_v1, 1  ;;  %v12659_v28 = vld [vmem:[#allocation81_spill] sm:$0xff] }
 0x1d4   : > { %v4196_v19 = vsel %vm2620_vm1, %v4194_v38, %v12641_v4  ;;  %8151 = vmatmul.mubr.msk.f32.gmra.mxu0 %vm620_vm0, %v4257_v35  ;;  %8100 = vmatprep.mubr.msk.f32.mxu1 %vm620_vm0, %v3806_v51  ;;  %v3807_v4 = vmul.f32 %v10533_v43, %v3587_v49  ;;  %v12644_v35 = vrot.slane %v12553_v56, 1  ;;  %v4876_v51 = vrot.slane %v9583_v59, 1 }
 0x1d5   : > { %8153 = vmatprep.mubr.msk.f32.mxu0 %vm620_vm0, %v4258_v40  ;;  %v4259_v38 = vmul.f32 %v4196_v19, %v9997_v20  ;;  %v4932_v19 = vsel %vm3585_vm2, %v4874_v31, %v4875_v7  ;;  %v4937_v56 = vmul.f32 %v4933_v55, %v10032_v0  ;;  %v4878_v31 = vrot.slane %v9595_v12, 1  ;;  %v10677_v54 = vpop.permute.xlu1 %2158 }
 0x1d6   : > { %v3617_v40 = vsel %vm3585_vm2, %v3584_v46, %v12644_v35  ;;  %v4938_v5 = vmul.f32 %v4932_v19, %v10055_v18  ;;  %v4931_v3 = vsel %vm3585_vm2, %v4875_v7, %v4876_v51  ;;  %v4879_v7 = vrot.slane %v9600_v30, 1  ;;  %v12658_v18 = vld [vmem:[#allocation109_spill] sm:$0xff] }
 0x1d7   : > { %8101 = vmatmul.mubr.msk.f32.gmra.mxu1 %vm620_vm0, %v3807_v4  ;;  %v3809_v49 = vmul.f32 %v10571_v47, %v3617_v40  ;;  %v4939_v55 = vmul.f32 %v4931_v3, %v10071_v21  ;;  %v4880_v35 = vrot.slane %v9609_v8, 1  ;;  %v10604_v40 = vld [vmem:[%s12203_s12 + $0x40] sm:$0xff]  ;;  %v12648_v3 = vld [vmem:[#allocation131_spill] sm:$0xff]  ;;  %v12654_v21 = vld [vmem:[#allocation77_spill] sm:$0xff] }
 0x1d8   : > { %8154 = vmatmul.mubr.msk.f32.gmra.mxu0 %vm620_vm0, %v4259_v38  ;;  %8103 = vmatprep.mubr.msk.f32.mxu1 %vm620_vm0, %v3808_v44  ;;  %v4930_v38 = vsel %vm3585_vm2, %v4876_v51, %v4877_v42 }
 0x1d9   : > { %8208 = vmatprep.mubr.msk.f32.mxu0 %vm620_vm0, %v4936_v32  ;;  %v4929_v32 = vsel %vm3585_vm2, %v4877_v42, %v4878_v31  ;;  %v4940_v51 = vmul.f32 %v4930_v38, %v10085_v2 }
 0x1db   : > { %8104 = vmatmul.mubr.msk.f32.gmra.mxu1 %vm620_vm0, %v3809_v49  ;;  %v4881_v49 = vrot.slane %v12568_v62, 1 }
 0x1dc   : > { %v10577_v46 = vpop.f32.mrf.mxu0  ;;  %8209 = vmatmul.mubr.msk.f32.vlgmr.msra.gmra.mxu0 %vm620_vm0, %v4937_v56  ;;  %8158 = vmatprep.mubr.msk.f32.mxu1 %vm620_vm0, %v12636_v27  ;;  %v4941_v56 = vmul.f32 %v4929_v32, %v10106_v45  ;;  %v12653_v45 = vld [vmem:[#allocation133_spill] sm:$0xff] }
 0x1dd   : > { %8211 = vmatprep.mubr.msk.f32.mxu0 %vm620_vm0, %v4938_v5  ;;  %8307 = vmatpush3.msra.mxu0 %v10217_v41  ;;  %v4928_v41 = vsel %vm3585_vm2, %v4878_v31, %v4879_v7  ;;  %v12649_v31 = vld [vmem:[#allocation74_spill] sm:$0xff] }
 0x1de   : > { %v10589_v4 = vpop.f32.mrf.mxu0  ;;  %v4942_v42 = vmul.f32 %v4928_v41, %v12648_v3  ;;  %v4882_v38 = vrot.slane %v12649_v31, 1 }
 0x1df   : > { %8159 = vmatmul.mubr.msk.f32.vlgmr.msra.gmra.mxu1 %vm620_vm0, %v12637_v60 }
 0x1e0   : > { %v10596_v44 = vpop.f32.mrf.mxu0  ;;  %8212 = vmatmul.mubr.msk.f32.gmra.mxu0 %vm620_vm0, %v4939_v55  ;;  %8257 = vmatpush3.msra.mxu1 %v10239_v37  ;;  %v4927_v37 = vsel %vm3585_vm2, %v4879_v7, %v4880_v35  ;;  %v4926_v55 = vsel %vm3585_vm2, %v4880_v35, %v4881_v49  ;;  %v12651_v7 = vld [vmem:[#allocation75_spill] sm:$0xff]  ;;  %v4884_v35 = vrot.slane %v12654_v21, 1 }
 0x1e1   : > { %8161 = vmatprep.mubr.msk.f32.mxu1 %vm620_vm0, %v12638_v23  ;;  %8214 = vmatprep.mubr.msk.f32.mxu0 %vm620_vm0, %v4940_v51  ;;  %v4943_v51 = vmul.f32 %v4927_v37, %v10142_v36  ;;  %v4883_v41 = vrot.slane %v12651_v7, 1  ;;  %v4944_v2 = vmul.f32 %v4926_v55, %v12653_v45 }
 0x1e2   : > { %v10615_v19 = vpop.f32.mrf.mxu0  ;;  %8356 = vmatprep.subr.mxu1 %v10604_v40 }
 0x1e3   : > { %12646 = vst [vmem:[#allocation129_spill] sm:$0xff] %v10615_v19  ;;  %8162 = vmatmul.mubr.msk.f32.gmra.mxu1 %vm620_vm0, %v9573_v63 }
 0x1e4   : > { %v10621_v5 = vpop.f32.mrf.mxu0  ;;  %8215 = vmatmul.mubr.msk.f32.gmra.mxu0 %vm620_vm0, %v4941_v56  ;;  %8164 = vmatprep.mubr.msk.f32.mxu1 %vm620_vm0, %v9583_v59  ;;  %v4925_v56 = vsel %vm3585_vm2, %v4881_v49, %v4882_v38  ;;  %v12656_v49 = vld [vmem:[#allocation79_spill] sm:$0xff] }
 0x1e5   : > { %12647 = vst [vmem:[#allocation130_spill] sm:$0xff] %v10621_v5  ;;  %8217 = vmatprep.mubr.msk.f32.mxu0 %vm620_vm0, %v4942_v42  ;;  %v4924_v42 = vsel %vm3585_vm2, %v4882_v38, %v4883_v41  ;;  %v4945_v55 = vmul.f32 %v4925_v56, %v10173_v29  ;;  %v4885_v45 = vrot.slane %v12656_v49, 1  ;;  %v4886_v38 = vrot.slane %v12659_v28, 1  ;;  %v10668_v56 = vpop.permute.xlu0 %2003  ;;  %v12662_v29 = vld [vmem:[#allocation82_spill] sm:$0xff] }
 0x1e6   : > { %v10635_v32 = vpop.f32.mrf.mxu0  ;;  %v4946_v0 = vmul.f32 %v4924_v42, %v12658_v18  ;;  %v4887_v20 = vrot.slane %v12662_v29, 1 }
 0x1e7   : > { %12650 = vst [vmem:[#allocation64_spill] sm:$0xff] %v10635_v32  ;;  %8165 = vmatmul.mubr.msk.f32.gmra.mxu1 %vm620_vm0, %v9586_v1 }
 0x1e8   : > { %v10639_v3 = vpop.f32.mrf.mxu0  ;;  %8218 = vmatmul.mubr.msk.f32.gmra.mxu0 %vm620_vm0, %v4943_v51  ;;  %8167 = vmatprep.mubr.msk.f32.mxu1 %vm620_vm0, %v9595_v12  ;;  %v4923_v51 = vsel %vm3585_vm2, %v4883_v41, %v4884_v35  ;;  %v12661_v41 = vld [vmem:[#allocation134_spill] sm:$0xff] }
 0x1e9   : > { %12652 = vst [vmem:[#allocation65_spill] sm:$0xff] %v10639_v3  ;;  %8220 = vmatprep.mubr.msk.f32.mxu0 %vm620_vm0, %v4944_v2  ;;  %v4922_v2 = vsel %vm3585_vm2, %v4884_v35, %v4885_v45  ;;  %v4947_v18 = vmul.f32 %v4923_v51, %v12661_v41  ;;  %v4921_v35 = vsel %vm3585_vm2, %v4885_v45, %v4886_v38  ;;  %v4889_v45 = vrot.slane %v12597_v57, 1 }
 0x1ea   : > { %v10653_v37 = vpop.f32.mrf.mxu0 }
 0x1eb   : > { %12655 = vst [vmem:[#allocation67_spill] sm:$0xff] %v10653_v37  ;;  %8168 = vmatmul.mubr.msk.f32.gmra.mxu1 %vm620_vm0, %v9600_v30  ;;  %v12665_v37 = vld [vmem:[#allocation84_spill] sm:$0xff] }
 0x1ec   : > { %v10657_v36 = vpop.f32.mrf.mxu0  ;;  %8221 = vmatmul.mubr.msk.f32.gmra.mxu0 %vm620_vm0, %v4945_v55  ;;  %8170 = vmatprep.mubr.msk.f32.mxu1 %vm620_vm0, %v9609_v8  ;;  %v12664_v55 = vld [vmem:[#allocation112_spill] sm:$0xff]  ;;  %v4888_v3 = vrot.slane %v12665_v37, 1 }
 0x1ed   : > { %12657 = vst [vmem:[#allocation107_spill] sm:$0xff] %v10657_v36  ;;  %8223 = vmatprep.mubr.msk.f32.mxu0 %vm620_vm0, %v4946_v0  ;;  %v4948_v36 = vmul.f32 %v4922_v2, %v12664_v55  ;;  %v4920_v0 = vsel %vm3585_vm2, %v4886_v38, %v4887_v20  ;;  %v4949_v2 = vmul.f32 %v4921_v35, %v10261_v22  ;;  %v10697_v55 = vpop.permute.xlu0 %2008  ;;  %v10710_v35 = vpop.permute.xlu1 %2013 }
 0x1ee   : > { %v10673_v42 = vpop.f32.mrf.mxu0  ;;  %v4919_v38 = vsel %vm3585_vm2, %v4887_v20, %v4888_v3 }
 0x1ef   : > { %12660 = vst [vmem:[#allocation74_spill] sm:$0xff] %v10673_v42  ;;  %8171 = vmatmul.mubr.msk.f32.gmra.mxu1 %vm620_vm0, %v12568_v62  ;;  %v12669_v42 = vld [vmem:[#allocation87_spill] sm:$0xff]  ;;  %v4951_v20 = vmul.f32 %v4919_v38, %v10298_v33 }
 0x1f0   : > { %v10679_v26 = vpop.f32.mrf.mxu0  ;;  %8224 = vmatmul.mubr.msk.f32.gmra.mxu0 %vm620_vm0, %v4947_v18  ;;  %8173 = vmatprep.mubr.msk.f32.mxu1 %vm620_vm0, %v12649_v31  ;;  %v4890_v32 = vrot.slane %v12669_v42, 1 }
 0x1f1   : > { %12663 = vst [vmem:[#allocation75_spill] sm:$0xff] %v10679_v26  ;;  %8226 = vmatprep.mubr.msk.f32.mxu0 %vm620_vm0, %v4948_v36  ;;  %v12668_v26 = vld [vmem:[#allocation72_spill] sm:$0xff]  ;;  %v4918_v36 = vsel %vm3585_vm2, %v4888_v3, %v4889_v45  ;;  %v10730_v38 = vpop.permute.xlu0 %2018  ;;  %v10739_v33 = vpop.permute.xlu1 %2023 }
 0x1f2   : > { %v10693_v51 = vpop.f32.mrf.mxu0  ;;  %v4950_v18 = vmul.f32 %v4920_v0, %v12668_v26  ;;  %v4891_v26 = vrot.slane %v12604_v15, 1  ;;  %v4917_v3 = vsel %vm3585_vm2, %v4889_v45, %v4890_v32 }
 0x1f3   : > { %12666 = vst [vmem:[#allocation77_spill] sm:$0xff] %v10693_v51  ;;  %8174 = vmatmul.mubr.msk.f32.gmra.mxu1 %vm620_vm0, %v12651_v7  ;;  %v12673_v51 = vld [vmem:[#allocation91_spill] sm:$0xff]  ;;  %v4953_v45 = vmul.f32 %v4917_v3, %v10329_v6 }
 0x1f4   : > { %v10699_v41 = vpop.f32.mrf.mxu0  ;;  %8227 = vmatmul.mubr.msk.f32.gmra.mxu0 %vm620_vm0, %v4949_v2  ;;  %8176 = vmatprep.mubr.msk.f32.mxu1 %vm620_vm0, %v12654_v21  ;;  %v4892_v5 = vrot.slane %v12673_v51, 1 }
 0x1f5   : > { %12667 = vst [vmem:[#allocation81_spill] sm:$0xff] %v10699_v41  ;;  %8229 = vmatprep.mubr.msk.f32.mxu0 %vm620_vm0, %v4950_v18  ;;  %v12672_v41 = vld [vmem:[#allocation118_spill] sm:$0xff]  ;;  %v4916_v18 = vsel %vm3585_vm2, %v4890_v32, %v4891_v26 }
 0x1f6   : > { %v10715_v0 = vpop.f32.mrf.mxu0  ;;  %v4952_v2 = vmul.f32 %v4918_v36, %v12672_v41  ;;  %v4893_v41 = vrot.slane %v12610_v48, 1  ;;  %v4915_v32 = vsel %vm3585_vm2, %v4891_v26, %v4892_v5  ;;  %v4895_v26 = vrot.slane %v12617_v25, 1 }
 0x1f7   : > { %12670 = vst [vmem:[#allocation82_spill] sm:$0xff] %v10715_v0  ;;  %8177 = vmatmul.mubr.msk.f32.gmra.mxu1 %vm620_vm0, %v12656_v49  ;;  %v12677_v49 = vld [vmem:[#allocation94_spill] sm:$0xff] }
 0x1f8   : > { %v10719_v22 = vpop.f32.mrf.mxu0  ;;  %8230 = vmatmul.mubr.msk.f32.gmra.mxu0 %vm620_vm0, %v4951_v20  ;;  %8179 = vmatprep.mubr.msk.f32.mxu1 %vm620_vm0, %v12659_v28  ;;  %v12676_v20 = vld [vmem:[#allocation121_spill] sm:$0xff]  ;;  %v4894_v19 = vrot.slane %v12677_v49, 1 }
 0x1f9   : > { %12671 = vst [vmem:[#allocation84_spill] sm:$0xff] %v10719_v22  ;;  %8232 = vmatprep.mubr.msk.f32.mxu0 %vm620_vm0, %v4952_v2  ;;  %v4954_v0 = vmul.f32 %v4916_v18, %v12676_v20  ;;  %v4914_v2 = vsel %vm3585_vm2, %v4892_v5, %v4893_v41  ;;  %v4955_v18 = vmul.f32 %v4915_v32, %v10366_v10  ;;  %v10759_v20 = vpop.permute.xlu0 %2028  ;;  %v10772_v32 = vpop.permute.xlu1 %2033 }
 0x1fa   : > { %v10735_v36 = vpop.f32.mrf.mxu0  ;;  %v4913_v5 = vsel %vm3585_vm2, %v4893_v41, %v4894_v19 }
 0x1fb   : > { %12674 = vst [vmem:[#allocation87_spill] sm:$0xff] %v10735_v36  ;;  %8180 = vmatmul.mubr.msk.f32.gmra.mxu1 %vm620_vm0, %v12662_v29  ;;  %v4957_v41 = vmul.f32 %v4913_v5, %v10397_v52 }
 0x1fc   : > { %v10741_v22 = vpop.f32.mrf.mxu0  ;;  %8233 = vmatmul.mubr.msk.f32.gmra.mxu0 %vm620_vm0, %v4953_v45  ;;  %8182 = vmatprep.mubr.msk.f32.mxu1 %vm620_vm0, %v12665_v37  ;;  %v4956_v45 = vmul.f32 %v4914_v2, %v10381_v24  ;;  %v4897_v24 = vrot.slane %v12545_v50, 1 }
 0x1fd   : > { %12675 = vst [vmem:[#allocation91_spill] sm:$0xff] %v10741_v22  ;;  %8235 = vmatprep.mubr.msk.f32.mxu0 %vm620_vm0, %v4954_v0  ;;  %v12680_v22 = vld [vmem:[#allocation97_spill] sm:$0xff]  ;;  %v4912_v0 = vsel %vm3585_vm2, %v4894_v19, %v4895_v26  ;;  %v10792_v5 = vpop.permute.xlu0 %2038  ;;  %v10801_v52 = vpop.permute.xlu1 %2043 }
 0x1fe   : > { %v10755_v3 = vpop.f32.mrf.mxu0  ;;  %v4896_v36 = vrot.slane %v12680_v22, 1 }
 0x1ff   : > { %12678 = vst [vmem:[#allocation94_spill] sm:$0xff] %v10755_v3  ;;  %8183 = vmatmul.mubr.msk.f32.gmra.mxu1 %vm620_vm0, %v12597_v57  ;;  %v12686_v3 = vld [vmem:[#allocation104_spill] sm:$0xff] }
 0x200   : > { %v10761_v6 = vpop.f32.mrf.mxu0  ;;  %8236 = vmatmul.mubr.msk.f32.gmra.mxu0 %vm620_vm0, %v4955_v18  ;;  %8185 = vmatprep.mubr.msk.f32.mxu1 %vm620_vm0, %v12669_v42  ;;  %v4958_v18 = vmul.f32 %v4912_v0, %v10415_v17  ;;  %v4911_v19 = vsel %vm3585_vm2, %v4895_v26, %v4896_v36  ;;  %v4899_v17 = vrot.slane %v12624_v53, 1 }
 0x201   : > { %12679 = vst [vmem:[#allocation135_spill] sm:$0xff] %v10761_v6  ;;  %8238 = vmatprep.mubr.msk.f32.mxu0 %vm620_vm0, %v4956_v45  ;;  %v4898_v6 = vrot.slane %v12544_v14, 1  ;;  %v4910_v45 = vsel %vm3585_vm2, %v4896_v36, %v4897_v24  ;;  %v4959_v26 = vmul.f32 %v4911_v19, %v10434_v9 }
 0x202   : > { %v10777_v2 = vpop.f32.mrf.mxu0 }
 0x203   : > { %12681 = vst [vmem:[#allocation97_spill] sm:$0xff] %v10777_v2  ;;  %8186 = vmatmul.mubr.msk.f32.gmra.mxu1 %vm620_vm0, %v12604_v15  ;;  %v4909_v36 = vsel %vm3585_vm2, %v4897_v24, %v4898_v6  ;;  %v4900_v15 = vrot.slane %v12686_v3, 1  ;;  %v4901_v24 = vrot.slane %v12630_v58, 1 }
 0x204   : > { %v10781_v10 = vpop.f32.mrf.mxu0  ;;  %8239 = vmatmul.mubr.msk.f32.gmra.mxu0 %vm620_vm0, %v4957_v41  ;;  %8188 = vmatprep.mubr.msk.f32.mxu1 %vm620_vm0, %v12673_v51  ;;  %v12685_v41 = vld [vmem:[#allocation66_spill] sm:$0xff] }
 0x205   : > { %12682 = vst [vmem:[#allocation136_spill] sm:$0xff] %v10781_v10  ;;  %8241 = vmatprep.mubr.msk.f32.mxu0 %vm620_vm0, %v4958_v18  ;;  %v4960_v2 = vmul.f32 %v4910_v45, %v12685_v41  ;;  %v4908_v18 = vsel %vm3585_vm2, %v4898_v6, %v4899_v17  ;;  %v4961_v45 = vmul.f32 %v4909_v36, %v10465_v39  ;;  %v10821_v41 = vpop.permute.xlu0 %2048  ;;  %v10834_v36 = vpop.permute.xlu1 %2053 }
 0x206   : > { %v10797_v0 = vpop.f32.mrf.mxu0  ;;  %v4907_v6 = vsel %vm3585_vm2, %v4899_v17, %v4900_v15 }
 0x207   : > { %12683 = vst [vmem:[#allocation137_spill] sm:$0xff] %v10797_v0  ;;  %8189 = vmatmul.mubr.msk.f32.gmra.mxu1 %vm620_vm0, %v12610_v48  ;;  %v12689_v0 = vld [vmem:[#allocation108_spill] sm:$0xff]  ;;  %v4963_v17 = vmul.f32 %v4907_v6, %v10502_v34  ;;  %v10959_v34 = vmul.f32 %v10792_v5, %v12568_v62 }
 0x208   : > { %v10803_v10 = vpop.f32.mrf.mxu0  ;;  %8242 = vmatmul.mubr.msk.f32.gmra.mxu0 %vm620_vm0, %v4959_v26  ;;  %8191 = vmatprep.mubr.msk.f32.mxu1 %vm620_vm0, %v12677_v49  ;;  %v4902_v48 = vrot.slane %v12689_v0, 1 }
 0x209   : > { %12684 = vst [vmem:[#allocation138_spill] sm:$0xff] %v10803_v10  ;;  %8244 = vmatprep.mubr.msk.f32.mxu0 %vm620_vm0, %v4960_v2  ;;  %v12688_v10 = vld [vmem:[#allocation88_spill] sm:$0xff]  ;;  %v4906_v2 = vsel %vm3585_vm2, %v4900_v15, %v4901_v24 }
 0x20a   : > { %v10817_v19 = vpop.f32.mrf.mxu0  ;;  %v4962_v26 = vmul.f32 %v4908_v18, %v12688_v10  ;;  %v4903_v10 = vrot.slane %v12640_v11, 1  ;;  %v4905_v15 = vsel %vm3585_vm2, %v4901_v24, %v4902_v48 }
 0x20b   : > { %8192 = vmatmul.mubr.msk.f32.gmra.mxu1 %vm620_vm0, %v12617_v25 }
 0x20c   : > { %v10823_v9 = vpop.f32.mrf.mxu0  ;;  %8245 = vmatmul.mubr.msk.f32.gmra.mxu0 %vm620_vm0, %v4961_v45  ;;  %8194 = vmatprep.mubr.msk.f32.mxu1 %vm620_vm0, %v12680_v22  ;;  %v4964_v45 = vmul.f32 %v4906_v2, %v10517_v61  ;;  %v4904_v6 = vsel %vm3585_vm2, %v4902_v48, %v4903_v10  ;;  %v10861_v2 = vpop.permute.xlu0 %2058  ;;  %v12692_v48 = vrot.slane %v12636_v27, 1 }
 0x20d   : > { %12687 = vst [vmem:[#allocation104_spill] sm:$0xff] %v10823_v9  ;;  %8247 = vmatprep.mubr.msk.f32.mxu0 %vm620_vm0, %v4962_v26  ;;  %v10850_v9 = vmul.f32 %v10677_v54, %v12637_v60  ;;  %v10854_v26 = vmul.f32 %v10668_v56, %v12638_v23  ;;  %v4965_v60 = vmul.f32 %v4905_v15, %v10533_v43  ;;  %v10873_v56 = vpop.permute.xlu1 %2063 }
 0x20e   : > { %v10839_v18 = vpop.f32.mrf.mxu0  ;;  %v10871_v23 = vmul.f32 %v10697_v55, %v9573_v63  ;;  %v4966_v24 = vmul.f32 %v4904_v6, %v10553_v13  ;;  %v10884_v15 = vmul.f32 %v10710_v35, %v9583_v59  ;;  %v10900_v59 = vmul.f32 %v10730_v38, %v9586_v1 }
 0x20f   : > { %12690 = vst [vmem:[#allocation108_spill] sm:$0xff] %v10850_v9  ;;  %12691 = vst [vmem:[#allocation139_spill] sm:$0xff] %v10854_v26  ;;  %8195 = vmatmul.mubr.msk.f32.gmra.mxu1 %vm620_vm0, %v12545_v50  ;;  %v12366_v61 = vrot.slane %v10850_v9, 7  ;;  %v10937_v43 = vmul.f32 %v10772_v32, %v9609_v8  ;;  %v12701_v8 = vld [vmem:[#allocation3_spill] sm:$0xff] }
 0x210   : > { %v10843_v39 = vpop.f32.mrf.mxu0  ;;  %8248 = vmatmul.mubr.msk.f32.gmra.mxu0 %vm620_vm0, %v4963_v17  ;;  %8197 = vmatprep.mubr.msk.f32.mxu1 %vm620_vm0, %v12544_v14  ;;  %v4935_v17 = vsel %vm3585_vm2, %v4903_v10, %v12692_v48  ;;  %v5323_v6 = vrot.slane %v10871_v23, 7  ;;  %v10902_v35 = vpop.permute.xlu0 %2068  ;;  %v5324_v48 = vrot.slane %v10884_v15, 7 }
 0x211   : > { %8250 = vmatprep.mubr.msk.f32.mxu0 %vm620_vm0, %v4964_v45  ;;  %v5322_v45 = vrot.slane %v10854_v26, 7  ;;  %v4967_v55 = vmul.f32 %v4935_v17, %v10571_v47  ;;  %v10918_v38 = vpop.permute.xlu1 %2073  ;;  %v5328_v9 = vrot.slane %v10937_v43, 7 }
 0x212   : > { %v10866_v54 = vpop.f32.mrf.mxu0 }
 0x213   : > { %8198 = vmatmul.mubr.msk.f32.gmra.mxu1 %vm620_vm0, %v12624_v53  ;;  %v5385_v1 = vsel %vm2620_vm1, %v12366_v61, %v5322_v45  ;;  %v5384_v17 = vsel %vm2620_vm1, %v5322_v45, %v5323_v6  ;;  %v12699_v61 = vld [vmem:[#allocation2_spill] sm:$0xff] }
 0x214   : > { %v10888_v63 = vpop.f32.mrf.mxu0  ;;  %8251 = vmatmul.mubr.msk.f32.gmra.mxu0 %vm620_vm0, %v4965_v60  ;;  %8200 = vmatprep.mubr.msk.f32.mxu1 %vm620_vm0, %v12686_v3  ;;  %v10907_v60 = vmul.f32 %v10739_v33, %v9595_v12  ;;  %v10926_v12 = vmul.f32 %v10759_v20, %v9600_v30  ;;  %v5386_v47 = vmul.f32 %v5385_v1, %v12699_v61  ;;  %v10942_v30 = vld [vmem:[%s12205_s14] ss:$0 sm:$0xff]  ;;  %v10950_v45 = vpop.permute.xlu0 %2078 }
 0x215   : > { %12693 = vst [vmem:[#allocation140_spill] sm:$0xff] %v10888_v63  ;;  %8253 = vmatprep.mubr.msk.f32.mxu0 %vm620_vm0, %v4966_v24  ;;  %12700 = vst [vmem:[#allocation2_spill] sm:$0xff] %v10937_v43  ;;  %v5383_v61 = vsel %vm2620_vm1, %v5323_v6, %v5324_v48  ;;  %v5387_v32 = vmul.f32 %v5384_v17, %v12701_v8  ;;  %v10963_v6 = vpop.permute.xlu1 %2083  ;;  %v10971_v17 = vmul.f32 %v10801_v52, %v12649_v31  ;;  %v12703_v52 = vld [vmem:[#allocation5_spill] sm:$0xff] }
 0x216   : > { %v10894_v10 = vpop.f32.mrf.mxu0  ;;  %12695 = vst [vmem:[#allocation142_spill] sm:$0xff] %v10907_v60  ;;  %12697 = vst [vmem:[#allocation144_spill] sm:$0xff] %v10926_v12  ;;  %v5326_v13 = vrot.slane %v10907_v60, 7  ;;  %v5327_v1 = vrot.slane %v10926_v12, 7 }
 0x217   : > { %12694 = vst [vmem:[#allocation141_spill] sm:$0xff] %v10894_v10  ;;  %8201 = vmatmul.mubr.msk.f32.gmra.mxu1 %vm620_vm0, %v12630_v58  ;;  %v12702_v10 = vld [vmem:[#allocation4_spill] sm:$0xff] }
 0x218   : > { %v10911_v24 = vpop.f32.mrf.mxu0  ;;  %8254 = vmatmul.mubr.msk.f32.gmra.mxu0 %vm620_vm0, %v4967_v55  ;;  %8203 = vmatprep.mubr.msk.f32.mxu1 %vm620_vm0, %v12689_v0  ;;  %v5325_v55 = vrot.slane %v10900_v59, 7  ;;  %v5388_v63 = vmul.f32 %v5383_v61, %v12702_v10  ;;  %v5329_v61 = vrot.slane %v10959_v34, 7 }
 0x219   : > { %12696 = vst [vmem:[#allocation143_spill] sm:$0xff] %v10911_v24  ;;  %8308 = vmatprep.mubr.msk.f32.mxu0 %vm620_vm0, %v10854_v26 }
 0x21a   : > { %v10928_v33 = vpop.f32.mrf.mxu0  ;;  %v5382_v24 = vsel %vm2620_vm1, %v5324_v48, %v5325_v55  ;;  %v5381_v5 = vsel %vm2620_vm1, %v5325_v55, %v5326_v13  ;;  %v5380_v48 = vsel %vm2620_vm1, %v5326_v13, %v5327_v1 }
 0x21b   : > { %12698 = vst [vmem:[#allocation145_spill] sm:$0xff] %v10928_v33  ;;  %8204 = vmatmul.mubr.msk.f32.gmra.mxu1 %vm620_vm0, %v12640_v11  ;;  %v5389_v31 = vmul.f32 %v5382_v24, %v12703_v52  ;;  %v12704_v24 = vld [vmem:[#allocation9_spill] sm:$0xff]  ;;  %v5330_v52 = vrot.slane %v10971_v17, 7 }
 0x21c   : > { %v8010_v20 = vpop.f32.mrf.mxu0  ;;  %8309 = vmatmul.mubr.msk.f32.vlgmr.msra.gmra.mxu0 %vm620_vm0, %v10871_v23  ;;  %8258 = vmatprep.mubr.msk.f32.mxu1 %vm620_vm0, %v5386_v47  ;;  %v2433_v47 = vadd.f32 %v10577_v46, %v10942_v30  ;;  %v2428_v46 = vadd.f32 %v10942_v30, %v10589_v4 }
 0x21d   : > { %8311 = vmatprep.mubr.msk.f32.mxu0 %vm620_vm0, %v10884_v15 }
 0x21e   : > { %v3362_v33 = vpop.f32.mrf.mxu0 }
 0x21f   : > { %v7960_v8 = vpop.f32.mrf.mxu1  ;;  %8259 = vmatmul.mubr.msk.f32.vlgmr.msra.gmra.mxu1 %vm620_vm0, %v5387_v32  ;;  %v10988_v32 = vmul.f32 %v10821_v41, %v12651_v7  ;;  %v11002_v7 = vmul.f32 %v10834_v36, %v12654_v21  ;;  %v12707_v36 = vld [vmem:[#allocation16_spill] sm:$0xff] }
 0x220   : > { %v8013_v62 = vpop.f32.mrf.mxu0  ;;  %8312 = vmatmul.mubr.msk.f32.gmra.mxu0 %vm620_vm0, %v10900_v59  ;;  %v3168_v10 = vadd.f32 %v7960_v8, %v2433_v47  ;;  %8357 = vmatpush3.msra.mxu1 %v10604_v40  ;;  %v10992_v47 = vpop.permute.xlu0 %2088  ;;  %v2443_v40 = vadd.f32 %v10596_v44, %v10942_v30  ;;  %v5390_v8 = vmul.f32 %v5381_v5, %v12704_v24  ;;  %v12708_v24 = vld [vmem:[#allocation79_spill] sm:$0xff] }
 0x221   : > { %8261 = vmatprep.mubr.msk.f32.mxu1 %vm620_vm0, %v5388_v63  ;;  %v3008_v55 = vpop.f32.mrf.mxu1  ;;  %8314 = vmatprep.mubr.msk.f32.mxu0 %vm620_vm0, %v10907_v60  ;;  %v5379_v44 = vsel %vm2620_vm1, %v5327_v1, %v5328_v9  ;;  %v5331_v1 = vrot.slane %v10988_v32, 7 }
 0x222   : > { %v3372_v4 = vpop.f32.mrf.mxu0  ;;  %v3167_v63 = vadd.f32 %v3008_v55, %v2428_v46  ;;  %v10997_v13 = vadd.f32 %v8010_v20, %v3168_v10  ;;  %v11009_v46 = vpop.permute.xlu1 %2093  ;;  %v12706_v20 = vld [vmem:[#allocation129_spill] sm:$0xff]  ;;  %v5378_v55 = vsel %vm2620_vm1, %v5328_v9, %v5329_v61  ;;  %v11034_v9 = vmul.f32 %v10873_v56, %v12659_v28  ;;  %v12714_v56 = vld [vmem:[#allocation27_spill] sm:$0xff] }
 0x223   : > { %v7963_v41 = vpop.f32.mrf.mxu1  ;;  %8262 = vmatmul.mubr.msk.f32.gmra.mxu1 %vm620_vm0, %v5389_v31  ;;  %v2438_v5 = vadd.f32 %v10942_v30, %v12706_v20  ;;  %v5391_v31 = vmul.f32 %v5380_v48, %v12707_v36  ;;  %v5332_v48 = vrot.slane %v11002_v7, 7 }
 0x224   : > { %12705 = vst [vmem:[#allocation3_spill] sm:$0xff] %v10997_v13  ;;  %v8016_v60 = vpop.f32.mrf.mxu0  ;;  %8315 = vmatmul.mubr.msk.f32.gmra.mxu0 %vm620_vm0, %v10926_v12  ;;  %v3170_v10 = vadd.f32 %v7963_v41, %v2443_v40  ;;  %8264 = vmatprep.mubr.msk.f32.mxu1 %vm620_vm0, %v5390_v8  ;;  %v11016_v21 = vadd.f32 %v3362_v33, %v3167_v63  ;;  %v12709_v8 = vld [vmem:[#allocation130_spill] sm:$0xff]  ;;  %12711 = vst [vmem:[#allocation4_spill] sm:$0xff] %v11034_v9 }
 0x225   : > { %8317 = vmatprep.mubr.msk.f32.mxu0 %vm620_vm0, %v10937_v43  ;;  %v11024_v13 = vmul.f32 %v10861_v2, %v12708_v24  ;;  %v3018_v20 = vpop.f32.mrf.mxu1  ;;  %v2453_v41 = vadd.f32 %v12709_v8, %v10942_v30  ;;  %v12710_v43 = vld [vmem:[#allocation20_spill] sm:$0xff]  ;;  %v11041_v24 = vpop.permute.xlu0 %2098 }
 0x226   : > { %v3382_v40 = vpop.f32.mrf.mxu0  ;;  %v3169_v12 = vadd.f32 %v3018_v20, %v2438_v5  ;;  %v5392_v33 = vmul.f32 %v5379_v44, %v12710_v43  ;;  %v11029_v63 = vadd.f32 %v8013_v62, %v3170_v10  ;;  %v5377_v5 = vsel %vm2620_vm1, %v5329_v61, %v5330_v52  ;;  %v12712_v43 = vld [vmem:[#allocation64_spill] sm:$0xff] }
 0x227   : > { %v7966_v36 = vpop.f32.mrf.mxu1  ;;  %8265 = vmatmul.mubr.msk.f32.gmra.mxu1 %vm620_vm0, %v5391_v31  ;;  %v2448_v62 = vadd.f32 %v10942_v30, %v12712_v43  ;;  %v5393_v10 = vmul.f32 %v5378_v55, %v12714_v56  ;;  %v5376_v31 = vsel %vm2620_vm1, %v5330_v52, %v5331_v1  ;;  %v5333_v61 = vrot.slane %v11024_v13, 7 }
 0x228   : > { %v8019_v2 = vpop.f32.mrf.mxu0  ;;  %8318 = vmatmul.mubr.msk.f32.gmra.mxu0 %vm620_vm0, %v10959_v34  ;;  %v3172_v44 = vadd.f32 %v7966_v36, %v2453_v41  ;;  %8267 = vmatprep.mubr.msk.f32.mxu1 %vm620_vm0, %v5392_v33  ;;  %v11048_v28 = vadd.f32 %v3372_v4, %v3169_v12  ;;  %v11056_v20 = vmul.f32 %v10902_v35, %v12662_v29  ;;  %v11058_v36 = vpop.permute.xlu1 %2103  ;;  %v12715_v33 = vld [vmem:[#allocation65_spill] sm:$0xff]  ;;  %v12716_v4 = vld [vmem:[#allocation31_spill] sm:$0xff]  ;;  %v5334_v52 = vrot.slane %v11034_v9, 7 }
 0x229   : > { %8320 = vmatprep.mubr.msk.f32.mxu0 %vm620_vm0, %v10971_v17  ;;  %v3028_v8 = vpop.f32.mrf.mxu1  ;;  %v2463_v43 = vadd.f32 %v12715_v33, %v10942_v30  ;;  %v11068_v56 = vmul.f32 %v10918_v38, %v12665_v37  ;;  %v12720_v38 = vld [vmem:[#allocation38_spill] sm:$0xff] }
 0x22a   : > { %12713 = vst [vmem:[#allocation5_spill] sm:$0xff] %v11048_v28  ;;  %v3392_v41 = vpop.f32.mrf.mxu0  ;;  %v3171_v12 = vadd.f32 %v3028_v8, %v2448_v62  ;;  %v5394_v28 = vmul.f32 %v5377_v5, %v12716_v4  ;;  %v11063_v55 = vadd.f32 %v8016_v60, %v3172_v44  ;;  %v5375_v62 = vsel %vm2620_vm1, %v5331_v1, %v5332_v48  ;;  %v12718_v8 = vld [vmem:[#allocation67_spill] sm:$0xff] }
 0x22b   : > { %v7969_v29 = vpop.f32.mrf.mxu1  ;;  %8268 = vmatmul.mubr.msk.f32.gmra.mxu1 %vm620_vm0, %v5393_v10  ;;  %v2458_v60 = vadd.f32 %v10942_v30, %v12718_v8  ;;  %v5395_v44 = vmul.f32 %v5376_v31, %v12720_v38  ;;  %v5374_v10 = vsel %vm2620_vm1, %v5332_v48, %v5333_v61  ;;  %v5335_v33 = vrot.slane %v11056_v20, 7 }
 0x22c   : > { %12717 = vst [vmem:[#allocation9_spill] sm:$0xff] %v11063_v55  ;;  %v8022_v35 = vpop.f32.mrf.mxu0  ;;  %8321 = vmatmul.mubr.msk.f32.gmra.mxu0 %vm620_vm0, %v10988_v32  ;;  %v3174_v5 = vadd.f32 %v7969_v29, %v2463_v43  ;;  %8270 = vmatprep.mubr.msk.f32.mxu1 %vm620_vm0, %v5394_v28  ;;  %v11080_v37 = vadd.f32 %v3382_v40, %v3171_v12  ;;  %v11090_v29 = vpop.permute.xlu0 %2108  ;;  %v12721_v28 = vld [vmem:[#allocation107_spill] sm:$0xff]  ;;  %v12722_v12 = vld [vmem:[#allocation42_spill] sm:$0xff]  ;;  %v5336_v48 = vrot.slane %v11068_v56, 7 }
 0x22d   : > { %8323 = vmatprep.mubr.msk.f32.mxu0 %vm620_vm0, %v11002_v7  ;;  %v11088_v1 = vmul.f32 %v10950_v45, %v12597_v57  ;;  %v3038_v4 = vpop.f32.mrf.mxu1  ;;  %v2473_v8 = vadd.f32 %v12721_v28, %v10942_v30  ;;  %v11100_v38 = vmul.f32 %v10963_v6, %v12669_v42  ;;  %v12726_v6 = vld [vmem:[#allocation49_spill] sm:$0xff]  ;;  %v5372_v28 = vsel %vm2620_vm1, %v5334_v52, %v5335_v33 }
 0x22e   : > { %12719 = vst [vmem:[#allocation129_spill] sm:$0xff] %v11080_v37  ;;  %v3402_v43 = vpop.f32.mrf.mxu0  ;;  %v3173_v40 = vadd.f32 %v3038_v4, %v2458_v60  ;;  %v5396_v37 = vmul.f32 %v5375_v62, %v12722_v12  ;;  %v11095_v31 = vadd.f32 %v8019_v2, %v3174_v5  ;;  %v5373_v60 = vsel %vm2620_vm1, %v5333_v61, %v5334_v52  ;;  %v11107_v4 = vpop.permute.xlu1 %2113  ;;  %v12724_v2 = vld [vmem:[#allocation74_spill] sm:$0xff]  ;;  %v12727_v12 = vld [vmem:[#allocation89_spill] sm:$0xff] }
 0x22f   : > { %v7972_v57 = vpop.f32.mrf.mxu1  ;;  %8271 = vmatmul.mubr.msk.f32.gmra.mxu1 %vm620_vm0, %v5395_v44  ;;  %v2468_v62 = vadd.f32 %v10942_v30, %v12724_v2  ;;  %v5397_v44 = vmul.f32 %v5374_v10, %v12726_v6  ;;  %v5337_v61 = vrot.slane %v11088_v1, 7  ;;  %v5338_v10 = vrot.slane %v11100_v38, 7 }
 0x230   : > { %12723 = vst [vmem:[#allocation16_spill] sm:$0xff] %v11095_v31  ;;  %v8025_v45 = vpop.f32.mrf.mxu0  ;;  %8324 = vmatmul.mubr.msk.f32.gmra.mxu0 %vm620_vm0, %v11024_v13  ;;  %v3176_v5 = vadd.f32 %v7972_v57, %v2473_v8  ;;  %8273 = vmatprep.mubr.msk.f32.mxu1 %vm620_vm0, %v5396_v37  ;;  %v11114_v42 = vadd.f32 %v3392_v41, %v3173_v40  ;;  %v12728_v37 = vld [vmem:[#allocation75_spill] sm:$0xff] }
 0x231   : > { %8326 = vmatprep.mubr.msk.f32.mxu0 %vm620_vm0, %v11034_v9  ;;  %v11122_v31 = vmul.f32 %v10992_v47, %v12727_v12  ;;  %v3048_v2 = vpop.f32.mrf.mxu1  ;;  %v2483_v57 = vadd.f32 %v12728_v37, %v10942_v30  ;;  %v12729_v9 = vld [vmem:[#allocation53_spill] sm:$0xff]  ;;  %v11132_v52 = vmul.f32 %v11009_v46, %v12673_v51  ;;  %v2119_v12 = vpop.permute.xlu0 %2118  ;;  %v12734_v46 = vld [vmem:[#allocation63_spill] sm:$0xff] }
 0x232   : > { %12725 = vst [vmem:[#allocation79_spill] sm:$0xff] %v11114_v42  ;;  %v3412_v8 = vpop.f32.mrf.mxu0  ;;  %v3175_v55 = vadd.f32 %v3048_v2, %v2468_v62  ;;  %v5398_v41 = vmul.f32 %v5373_v60, %v12729_v9  ;;  %v11127_v40 = vadd.f32 %v8022_v35, %v3176_v5  ;;  %v5371_v62 = vsel %vm2620_vm1, %v5335_v33, %v5336_v48  ;;  %v12732_v9 = vld [vmem:[#allocation77_spill] sm:$0xff]  ;;  %v12735_v33 = vld [vmem:[#allocation92_spill] sm:$0xff] }
 0x233   : > { %12731 = vst [vmem:[#allocation20_spill] sm:$0xff] %v11132_v52  ;;  %v7975_v6 = vpop.f32.mrf.mxu1  ;;  %8274 = vmatmul.mubr.msk.f32.gmra.mxu1 %vm620_vm0, %v5397_v44  ;;  %v2478_v35 = vadd.f32 %v10942_v30, %v12732_v9  ;;  %v5399_v5 = vmul.f32 %v5372_v28, %v12734_v46  ;;  %v5370_v44 = vsel %vm2620_vm1, %v5336_v48, %v5337_v61  ;;  %v5339_v2 = vrot.slane %v11122_v31, 7 }
 0x234   : > { %12730 = vst [vmem:[#allocation130_spill] sm:$0xff] %v11127_v40  ;;  %v8028_v47 = vpop.f32.mrf.mxu0  ;;  %8327 = vmatmul.mubr.msk.f32.gmra.mxu0 %vm620_vm0, %v11056_v20  ;;  %v3178_v60 = vadd.f32 %v7975_v6, %v2483_v57  ;;  %8276 = vmatprep.mubr.msk.f32.mxu1 %vm620_vm0, %v5398_v41  ;;  %v11144_v51 = vadd.f32 %v3402_v43, %v3175_v55  ;;  %v2124_v6 = vpop.permute.xlu1 %2123  ;;  %v12736_v41 = vld [vmem:[#allocation81_spill] sm:$0xff]  ;;  %v12737_v55 = vld [vmem:[#allocation68_spill] sm:$0xff]  ;;  %v5340_v28 = vrot.slane %v11132_v52, 7 }
 0x235   : > { %8329 = vmatprep.mubr.msk.f32.mxu0 %vm620_vm0, %v11068_v56  ;;  %v11152_v37 = vmul.f32 %v11041_v24, %v12735_v33  ;;  %v3058_v9 = vpop.f32.mrf.mxu1  ;;  %v2493_v40 = vadd.f32 %v12736_v41, %v10942_v30  ;;  %v5400_v43 = vmul.f32 %v5371_v62, %v12737_v55  ;;  %v11162_v48 = vmul.f32 %v11058_v36, %v12677_v49  ;;  %v12738_v33 = vld [vmem:[#allocation82_spill] sm:$0xff]  ;;  %v12740_v36 = vld [vmem:[#allocation69_spill] sm:$0xff]  ;;  %v2129_v55 = vpop.permute.xlu0 %2128 }
 0x236   : > { %12733 = vst [vmem:[#allocation64_spill] sm:$0xff] %v11144_v51  ;;  %v3422_v57 = vpop.f32.mrf.mxu0  ;;  %v3177_v42 = vadd.f32 %v3058_v9, %v2478_v35  ;;  %v11157_v51 = vadd.f32 %v8025_v45, %v3178_v60  ;;  %v5369_v35 = vsel %vm2620_vm1, %v5337_v61, %v5338_v10  ;;  %v2488_v45 = vadd.f32 %v10942_v30, %v12738_v33 }
 0x237   : > { %v7978_v46 = vpop.f32.mrf.mxu1  ;;  %8277 = vmatmul.mubr.msk.f32.gmra.mxu1 %vm620_vm0, %v5399_v5  ;;  %v5401_v60 = vmul.f32 %v5370_v44, %v12740_v36  ;;  %v5368_v5 = vsel %vm2620_vm1, %v5338_v10, %v5339_v2  ;;  %v5341_v9 = vrot.slane %v11152_v37, 7  ;;  %v11182_v61 = vmul.f32 %v11090_v29, %v12617_v25 }
 0x238   : > { %v8031_v24 = vpop.f32.mrf.mxu0  ;;  %8330 = vmatmul.mubr.msk.f32.gmra.mxu0 %vm620_vm0, %v11088_v1  ;;  %v3180_v62 = vadd.f32 %v7978_v46, %v2493_v40  ;;  %8279 = vmatprep.mubr.msk.f32.mxu1 %vm620_vm0, %v5400_v43  ;;  %v11174_v49 = vadd.f32 %v3412_v8, %v3177_v42  ;;  %v12741_v43 = vld [vmem:[#allocation84_spill] sm:$0xff]  ;;  %v12742_v42 = vld [vmem:[#allocation73_spill] sm:$0xff]  ;;  %v5342_v44 = vrot.slane %v11162_v48, 7  ;;  %v11192_v10 = vmul.f32 %v11107_v4, %v12680_v22 }
 0x239   : > { %8332 = vmatprep.mubr.msk.f32.mxu0 %vm620_vm0, %v11100_v38  ;;  %v3068_v41 = vpop.f32.mrf.mxu1  ;;  %v2503_v46 = vadd.f32 %v12741_v43, %v10942_v30  ;;  %v5402_v8 = vmul.f32 %v5369_v35, %v12742_v42  ;;  %v5367_v29 = vsel %vm2620_vm1, %v5339_v2, %v5340_v28  ;;  %v12744_v35 = vld [vmem:[#allocation87_spill] sm:$0xff]  ;;  %v12745_v4 = vld [vmem:[#allocation76_spill] sm:$0xff]  ;;  %v5343_v43 = vrot.slane %v11182_v61, 7 }
 0x23a   : > { %12739 = vst [vmem:[#allocation27_spill] sm:$0xff] %v11174_v49  ;;  %v3432_v40 = vpop.f32.mrf.mxu0  ;;  %v3179_v33 = vadd.f32 %v3068_v41, %v2488_v45  ;;  %v11187_v49 = vadd.f32 %v8028_v47, %v3180_v62  ;;  %v2134_v45 = vpop.permute.xlu1 %2133  ;;  %v2498_v47 = vadd.f32 %v10942_v30, %v12744_v35  ;;  %v5366_v41 = vsel %vm2620_vm1, %v5340_v28, %v5341_v9 }
 0x23b   : > { %v7981_v36 = vpop.f32.mrf.mxu1  ;;  %8280 = vmatmul.mubr.msk.f32.gmra.mxu1 %vm620_vm0, %v5401_v60  ;;  %v5403_v60 = vmul.f32 %v5368_v5, %v12745_v4  ;;  %v11211_v2 = vmul.f32 %v2119_v12, %v12545_v50  ;;  %v5344_v5 = vrot.slane %v11192_v10, 7  ;;  %v5365_v12 = vsel %vm2620_vm1, %v5341_v9, %v5342_v44  ;;  %v12749_v4 = vld [vmem:[#allocation94_spill] sm:$0xff] }
 0x23c   : > { %12743 = vst [vmem:[#allocation65_spill] sm:$0xff] %v11187_v49  ;;  %v8034_v25 = vpop.f32.mrf.mxu0  ;;  %8333 = vmatmul.mubr.msk.f32.gmra.mxu0 %vm620_vm0, %v11122_v31  ;;  %v3182_v62 = vadd.f32 %v7981_v36, %v2503_v46  ;;  %8282 = vmatprep.mubr.msk.f32.mxu1 %vm620_vm0, %v5402_v8  ;;  %v11204_v22 = vadd.f32 %v3422_v57, %v3179_v33  ;;  %v12746_v46 = vld [vmem:[#allocation91_spill] sm:$0xff] }
 0x23d   : > { %8335 = vmatprep.mubr.msk.f32.mxu0 %vm620_vm0, %v11132_v52  ;;  %v3078_v42 = vpop.f32.mrf.mxu1  ;;  %v2513_v8 = vadd.f32 %v12746_v46, %v10942_v30  ;;  %v12747_v49 = vld [vmem:[#allocation83_spill] sm:$0xff]  ;;  %v11220_v33 = vmul.f32 %v2124_v6, %v12544_v14  ;;  %v12750_v6 = vld [vmem:[#allocation86_spill] sm:$0xff]  ;;  %v11239_v9 = vmul.f32 %v2129_v55, %v12624_v53  ;;  %v5363_v55 = vsel %vm2620_vm1, %v5343_v43, %v5344_v5 }
 0x23e   : > { %v3442_v35 = vpop.f32.mrf.mxu0  ;;  %v3181_v36 = vadd.f32 %v3078_v42, %v2498_v47  ;;  %v5404_v52 = vmul.f32 %v5367_v29, %v12747_v49  ;;  %v11216_v57 = vadd.f32 %v8031_v24, %v3182_v62  ;;  %v2139_v47 = vpop.permute.xlu0 %2138  ;;  %v2508_v24 = vadd.f32 %v10942_v30, %v12749_v4 }
 0x23f   : > { %v7984_v28 = vpop.f32.mrf.mxu1  ;;  %8283 = vmatmul.mubr.msk.f32.gmra.mxu1 %vm620_vm0, %v5403_v60  ;;  %v5405_v29 = vmul.f32 %v5366_v41, %v12750_v6  ;;  %v5364_v62 = vsel %vm2620_vm1, %v5342_v44, %v5343_v43  ;;  %v5345_v60 = vrot.slane %v11211_v2, 7  ;;  %v5346_v41 = vrot.slane %v11220_v33, 7 }
 0x240   : > { %12748 = vst [vmem:[#allocation31_spill] sm:$0xff] %v11216_v57  ;;  %v8037_v50 = vpop.f32.mrf.mxu0  ;;  %8336 = vmatmul.mubr.msk.f32.gmra.mxu0 %vm620_vm0, %v11152_v37  ;;  %v3184_v49 = vadd.f32 %v7984_v28, %v2513_v8  ;;  %8285 = vmatprep.mubr.msk.f32.mxu1 %vm620_vm0, %v5404_v52  ;;  %v11232_v14 = vadd.f32 %v3432_v40, %v3181_v36  ;;  %v2144_v8 = vpop.permute.xlu1 %2143  ;;  %v12751_v52 = vld [vmem:[#allocation135_spill] sm:$0xff]  ;;  %v12752_v57 = vld [vmem:[#allocation93_spill] sm:$0xff] }
 0x241   : > { %8338 = vmatprep.mubr.msk.f32.mxu0 %vm620_vm0, %v11162_v48  ;;  %v3088_v42 = vpop.f32.mrf.mxu1  ;;  %v2523_v28 = vadd.f32 %v12751_v52, %v10942_v30  ;;  %v5406_v40 = vmul.f32 %v5365_v12, %v12752_v57  ;;  %v11248_v44 = vmul.f32 %v2134_v45, %v12686_v3  ;;  %v12756_v45 = vld [vmem:[#allocation96_spill] sm:$0xff]  ;;  %v11267_v43 = vmul.f32 %v2139_v47, %v12630_v58 }
 0x242   : > { %v3452_v46 = vpop.f32.mrf.mxu0  ;;  %v3183_v4 = vadd.f32 %v3088_v42, %v2508_v24  ;;  %v11244_v36 = vadd.f32 %v8034_v25, %v3184_v49  ;;  %v12754_v24 = vld [vmem:[#allocation97_spill] sm:$0xff]  ;;  %v5407_v12 = vmul.f32 %v5364_v62, %v12756_v45  ;;  %v5362_v49 = vsel %vm2620_vm1, %v5344_v5, %v5345_v60 }
 0x243   : > { %v7987_v6 = vpop.f32.mrf.mxu1  ;;  %8286 = vmatmul.mubr.msk.f32.gmra.mxu1 %vm620_vm0, %v5405_v29  ;;  %v2518_v57 = vadd.f32 %v10942_v30, %v12754_v24  ;;  %v5347_v29 = vrot.slane %v11239_v9, 7  ;;  %v5348_v62 = vrot.slane %v11248_v44, 7  ;;  %v11276_v5 = vmul.f32 %v2144_v8, %v12689_v0  ;;  %v12761_v8 = vld [vmem:[#allocation105_spill] sm:$0xff] }
 0x244   : > { %12753 = vst [vmem:[#allocation67_spill] sm:$0xff] %v11244_v36  ;;  %v8040_v53 = vpop.f32.mrf.mxu0  ;;  %8339 = vmatmul.mubr.msk.f32.gmra.mxu0 %vm620_vm0, %v11182_v61  ;;  %v3186_v25 = vadd.f32 %v7987_v6, %v2523_v28  ;;  %8288 = vmatprep.mubr.msk.f32.mxu1 %vm620_vm0, %v5406_v40  ;;  %v11260_v3 = vadd.f32 %v3442_v35, %v3183_v4  ;;  %v2149_v28 = vpop.permute.xlu0 %2148  ;;  %v12757_v40 = vld [vmem:[#allocation136_spill] sm:$0xff]  ;;  %v12758_v36 = vld [vmem:[#allocation103_spill] sm:$0xff] }
 0x245   : > { %8341 = vmatprep.mubr.msk.f32.mxu0 %vm620_vm0, %v11192_v10  ;;  %v3098_v42 = vpop.f32.mrf.mxu1  ;;  %v2533_v6 = vadd.f32 %v12757_v40, %v10942_v30  ;;  %v5408_v35 = vmul.f32 %v5363_v55, %v12758_v36  ;;  %v5361_v47 = vsel %vm2620_vm1, %v5345_v60, %v5346_v41  ;;  %v5409_v55 = vmul.f32 %v5362_v49, %v12761_v8 }
 0x246   : > { %12755 = vst [vmem:[#allocation38_spill] sm:$0xff] %v11260_v3  ;;  %v3462_v52 = vpop.f32.mrf.mxu0  ;;  %v3185_v24 = vadd.f32 %v3098_v42, %v2518_v57  ;;  %v11272_v4 = vadd.f32 %v8037_v50, %v3186_v25  ;;  %v2154_v57 = vpop.permute.xlu1 %2153  ;;  %v12760_v42 = vld [vmem:[#allocation137_spill] sm:$0xff]  ;;  %v5360_v25 = vsel %vm2620_vm1, %v5346_v41, %v5347_v29  ;;  %v11295_v60 = vmul.f32 %v2149_v28, %v12640_v11 }
 0x247   : > { %v7990_v45 = vpop.f32.mrf.mxu1  ;;  %8289 = vmatmul.mubr.msk.f32.gmra.mxu1 %vm620_vm0, %v5407_v12  ;;  %v2528_v50 = vadd.f32 %v10942_v30, %v12760_v42  ;;  %v5349_v12 = vrot.slane %v11267_v43, 7  ;;  %v5350_v49 = vrot.slane %v11276_v5, 7  ;;  %v5359_v28 = vsel %vm2620_vm1, %v5347_v29, %v5348_v62 }
 0x248   : > { %12759 = vst [vmem:[#allocation107_spill] sm:$0xff] %v11272_v4  ;;  %v8043_v58 = vpop.f32.mrf.mxu0  ;;  %8342 = vmatmul.mubr.msk.f32.gmra.mxu0 %vm620_vm0, %v11211_v2  ;;  %v3188_v36 = vadd.f32 %v7990_v45, %v2533_v6  ;;  %8291 = vmatprep.mubr.msk.f32.mxu1 %vm620_vm0, %v5408_v35  ;;  %v11288_v0 = vadd.f32 %v3452_v46, %v3185_v24  ;;  %v12762_v6 = vld [vmem:[#allocation138_spill] sm:$0xff]  ;;  %v12763_v4 = vld [vmem:[#allocation111_spill] sm:$0xff] }
 0x249   : > { %8344 = vmatprep.mubr.msk.f32.mxu0 %vm620_vm0, %v11220_v33  ;;  %v3108_v40 = vpop.f32.mrf.mxu1  ;;  %v2543_v35 = vadd.f32 %v12762_v6, %v10942_v30  ;;  %v5410_v3 = vmul.f32 %v5361_v47, %v12763_v4  ;;  %v11304_v24 = vmul.f32 %v2154_v57, %v12636_v27  ;;  %v2538_v4 = vadd.f32 %v10942_v30, %v10817_v19  ;;  %v12764_v47 = vld [vmem:[#allocation113_spill] sm:$0xff]  ;;  %v12766_v6 = vld [vmem:[#allocation116_spill] sm:$0xff] }
 0x24a   : > { %v3472_v42 = vpop.f32.mrf.mxu0  ;;  %v3187_v45 = vadd.f32 %v3108_v40, %v2528_v50  ;;  %v11300_v46 = vadd.f32 %v8040_v53, %v3188_v36  ;;  %v5411_v57 = vmul.f32 %v5360_v25, %v12764_v47  ;;  %v5358_v50 = vsel %vm2620_vm1, %v5348_v62, %v5349_v12 }
 0x24b   : > { %v7993_v41 = vpop.f32.mrf.mxu1  ;;  %8292 = vmatmul.mubr.msk.f32.gmra.mxu1 %vm620_vm0, %v5409_v55  ;;  %v5351_v36 = vrot.slane %v11295_v60, 7  ;;  %v12765_v55 = vld [vmem:[#allocation104_spill] sm:$0xff]  ;;  %v5357_v62 = vsel %vm2620_vm1, %v5349_v12, %v5350_v49  ;;  %v2563_v12 = vadd.f32 %v10843_v39, %v10942_v30  ;;  %v2558_v39 = vadd.f32 %v10942_v30, %v10866_v54 }
 0x24c   : > { %v8046_v11 = vpop.f32.mrf.mxu0  ;;  %8345 = vmatmul.mubr.msk.f32.gmra.mxu0 %vm620_vm0, %v11239_v9  ;;  %v3190_v53 = vadd.f32 %v7993_v41, %v2543_v35  ;;  %8294 = vmatprep.mubr.msk.f32.mxu1 %vm620_vm0, %v5410_v3  ;;  %v11316_v27 = vadd.f32 %v3462_v52, %v3187_v45  ;;  %v2553_v19 = vadd.f32 %v12765_v55, %v10942_v30  ;;  %v5352_v52 = vrot.slane %v11304_v24, 7 }
 0x24d   : > { %8347 = vmatprep.mubr.msk.f32.mxu0 %vm620_vm0, %v11248_v44  ;;  %v3118_v8 = vpop.f32.mrf.mxu1  ;;  %v5412_v3 = vmul.f32 %v5359_v28, %v12766_v6  ;;  %v2548_v41 = vadd.f32 %v10942_v30, %v10839_v18  ;;  %v12767_v28 = vld [vmem:[#allocation119_spill] sm:$0xff]  ;;  %v5356_v47 = vsel %vm2620_vm1, %v5350_v49, %v5351_v36  ;;  %v12768_v18 = vld [vmem:[#allocation122_spill] sm:$0xff] }
 0x24e   : > { %v3482_v29 = vpop.f32.mrf.mxu0  ;;  %v3189_v40 = vadd.f32 %v3118_v8, %v2538_v4  ;;  %v11325_v35 = vadd.f32 %v8043_v58, %v3190_v53  ;;  %v5413_v53 = vmul.f32 %v5358_v50, %v12767_v28  ;;  %v5355_v49 = vsel %vm2620_vm1, %v5351_v36, %v5352_v52 }
 0x24f   : > { %v7996_v45 = vpop.f32.mrf.mxu1  ;;  %8295 = vmatmul.mubr.msk.f32.gmra.mxu1 %vm620_vm0, %v5411_v57 }
 0x250   : > { %v8049_v25 = vpop.f32.mrf.mxu0  ;;  %8348 = vmatmul.mubr.msk.f32.gmra.mxu0 %vm620_vm0, %v11267_v43  ;;  %v3192_v4 = vadd.f32 %v7996_v45, %v2553_v19  ;;  %8297 = vmatprep.mubr.msk.f32.mxu1 %vm620_vm0, %v5412_v3  ;;  %v11338_v58 = vadd.f32 %v3472_v42, %v3189_v40  ;;  %v5414_v19 = vmul.f32 %v5357_v62, %v12768_v18  ;;  %v6127_v3 = vrot.slane %v10871_v23, 1  ;;  %v12770_v62 = vld [vmem:[#allocation108_spill] sm:$0xff] }
 0x251   : > { %8350 = vmatprep.mubr.msk.f32.mxu0 %vm620_vm0, %v11276_v5  ;;  %v3128_v57 = vpop.f32.mrf.mxu1  ;;  %v6128_v40 = vrot.slane %v10884_v15, 1 }
 0x252   : > { %v3492_v8 = vpop.f32.mrf.mxu0  ;;  %v3191_v55 = vadd.f32 %v3128_v57, %v2548_v41  ;;  %v11346_v6 = vadd.f32 %v8046_v11, %v3192_v4  ;;  %v12771_v41 = vrot.slane %v12770_v62, 7  ;;  %v12772_v4 = vld [vmem:[#allocation125_spill] sm:$0xff]  ;;  %v12773_v57 = vld [vmem:[#allocation140_spill] sm:$0xff] }
 0x253   : > { %v7999_v45 = vpop.f32.mrf.mxu1  ;;  %8298 = vmatmul.mubr.msk.f32.gmra.mxu1 %vm620_vm0, %v5413_v53  ;;  %v5415_v28 = vmul.f32 %v5356_v47, %v12772_v4 }
 0x254   : > { %v8052_v42 = vpop.f32.mrf.mxu0  ;;  %8351 = vmatmul.mubr.msk.f32.gmra.mxu0 %vm620_vm0, %v11295_v60  ;;  %v3194_v50 = vadd.f32 %v7999_v45, %v2563_v12  ;;  %8300 = vmatprep.mubr.msk.f32.mxu1 %vm620_vm0, %v5414_v19  ;;  %v11359_v23 = vadd.f32 %v3482_v29, %v3191_v55  ;;  %v5354_v36 = vsel %vm2620_vm1, %v5352_v52, %v12771_v41  ;;  %v12774_v19 = vld [vmem:[#allocation126_spill] sm:$0xff]  ;;  %v6129_v45 = vrot.slane %v10900_v59, 1  ;;  %v12777_v41 = vld [vmem:[#allocation141_spill] sm:$0xff] }
 0x255   : > { %8353 = vmatprep.mubr.msk.f32.mxu0 %vm620_vm0, %v11304_v24  ;;  %v3138_v54 = vpop.f32.mrf.mxu1  ;;  %v2573_v12 = vadd.f32 %v12773_v57, %v10942_v30  ;;  %v5416_v29 = vmul.f32 %v5355_v49, %v12774_v19  ;;  %v12776_v52 = vrot.slane %v10854_v26, 1  ;;  %v6187_v59 = vsel %vm3585_vm2, %v6127_v3, %v6128_v40  ;;  %v12781_v26 = vld [vmem:[#allocation143_spill] sm:$0xff] }
 0x256   : > { %12769 = vst [vmem:[#allocation42_spill] sm:$0xff] %v11359_v23  ;;  %v3502_v53 = vpop.f32.mrf.mxu0  ;;  %v3193_v18 = vadd.f32 %v3138_v54, %v2558_v39  ;;  %v11371_v55 = vadd.f32 %v8049_v25, %v3194_v50  ;;  %v2568_v39 = vadd.f32 %v10942_v30, %v12777_v41  ;;  %v12779_v50 = vld [vmem:[#allocation142_spill] sm:$0xff]  ;;  %v12782_v23 = vld [vmem:[#allocation127_spill] sm:$0xff] }
 0x257   : > { %v8002_v15 = vpop.f32.mrf.mxu1  ;;  %8301 = vmatmul.mubr.msk.f32.gmra.mxu1 %vm620_vm0, %v5415_v28  ;;  %v6188_v47 = vsel %vm3585_vm2, %v12776_v52, %v6127_v3  ;;  %v6130_v4 = vrot.slane %v12779_v50, 1  ;;  %v12780_v28 = vld [vmem:[#allocation78_spill] sm:$0xff]  ;;  %v2583_v52 = vadd.f32 %v12781_v26, %v10942_v30 }
 0x258   : > { %12775 = vst [vmem:[#allocation74_spill] sm:$0xff] %v11371_v55  ;;  %v8055_v11 = vpop.f32.mrf.mxu0  ;;  %8354 = vmatmul.mubr.msk.f32.gmra.mxu0 %vm620_vm0, %v12770_v62  ;;  %v3196_v49 = vadd.f32 %v8002_v15, %v2573_v12  ;;  %8303 = vmatprep.mubr.msk.f32.mxu1 %vm620_vm0, %v5416_v29  ;;  %v11384_v25 = vadd.f32 %v3492_v8, %v3193_v18  ;;  %v12784_v29 = vld [vmem:[#allocation144_spill] sm:$0xff] }
 0x259   : > { %v5417_v54 = vmul.f32 %v5354_v36, %v12780_v28  ;;  %v3148_v57 = vpop.f32.mrf.mxu1  ;;  %v6190_v41 = vmul.f32 %v6188_v47, %v12782_v23  ;;  %v6131_v8 = vrot.slane %v12784_v29, 1  ;;  %v6186_v15 = vsel %vm3585_vm2, %v6128_v40, %v6129_v45  ;;  %v12785_v36 = vld [vmem:[#allocation145_spill] sm:$0xff]  ;;  %v12786_v23 = vld [vmem:[#allocation80_spill] sm:$0xff] }
 0x25a   : > { %12778 = vst [vmem:[#allocation49_spill] sm:$0xff] %v11384_v25  ;;  %v3512_v19 = vpop.f32.mrf.mxu0  ;;  %v3195_v55 = vadd.f32 %v3148_v57, %v2568_v39  ;;  %v11393_v12 = vadd.f32 %v8052_v42, %v3196_v49  ;;  %v2578_v50 = vadd.f32 %v10942_v30, %v12785_v36  ;;  %v6191_v42 = vmul.f32 %v6187_v59, %v12786_v23  ;;  %v12789_v59 = vld [vmem:[#allocation3_spill] sm:$0xff] }
 0x25b   : > { %v8005_v18 = vpop.f32.mrf.mxu1  ;;  %8304 = vmatmul.mubr.msk.f32.gmra.mxu1 %vm620_vm0, %v5417_v54  ;;  %v6185_v47 = vsel %vm3585_vm2, %v6129_v45, %v6130_v4  ;;  %v12787_v54 = vld [vmem:[#allocation2_spill] sm:$0xff]  ;;  %v6133_v30 = vrot.slane %v10959_v34, 1 }
 0x25c   : > { %12783 = vst [vmem:[#allocation89_spill] sm:$0xff] %v11393_v12  ;;  %v8110_v3 = vpop.f32.mrf.mxu0  ;;  %v3198_v28 = vadd.f32 %v8005_v18, %v2583_v52  ;;  %8358 = vmatprep.mubr.msk.f32.mxu1 %vm620_vm0, %v6190_v41  ;;  %v11402_v26 = vadd.f32 %v3502_v53, %v3195_v55  ;;  %v6132_v57 = vrot.slane %v12787_v54, 1  ;;  %v12788_v12 = vld [vmem:[#allocation90_spill] sm:$0xff]  ;;  %v6184_v55 = vsel %vm3585_vm2, %v6130_v4, %v6131_v8  ;;  %v12790_v18 = vld [vmem:[#allocation128_spill] sm:$0xff] }
 0x25d   : > { %v3158_v39 = vpop.f32.mrf.mxu1  ;;  %v6192_v40 = vmul.f32 %v6186_v15, %v12788_v12  ;;  %v6193_v36 = vmul.f32 %v6185_v47, %v12790_v18 }
 0x25e   : > { %v4423_v49 = vpop.f32.mrf.mxu0  ;;  %v3197_v29 = vadd.f32 %v3158_v39, %v2578_v50  ;;  %v11409_v25 = vadd.f32 %v8055_v11, %v3198_v28  ;;  %v6134_v11 = vrot.slane %v10971_v17, 1  ;;  %v6183_v34 = vsel %vm3585_vm2, %v6131_v8, %v6132_v57  ;;  %v12791_v28 = vld [vmem:[#allocation100_spill] sm:$0xff] }
 0x25f   : > { %v8060_v52 = vpop.f32.mrf.mxu1  ;;  %8359 = vmatmul.mubr.msk.f32.vlgmr.msra.gmra.mxu1 %vm620_vm0, %v6191_v42  ;;  %v6194_v23 = vmul.f32 %v6184_v55, %v12791_v28  ;;  %v6135_v42 = vrot.slane %v10988_v32, 1  ;;  %v6182_v17 = vsel %vm3585_vm2, %v6132_v57, %v6133_v30  ;;  %v12797_v28 = vld [vmem:[#allocation4_spill] sm:$0xff] }
 0x260   : > { %v8113_v53 = vpop.f32.mrf.mxu0  ;;  %v4133_v45 = vadd.f32 %v8060_v52, %v12789_v59  ;;  %8361 = vmatprep.mubr.msk.f32.mxu1 %vm620_vm0, %v6192_v40  ;;  %v11417_v41 = vadd.f32 %v3512_v19, %v3197_v29  ;;  %v6136_v40 = vrot.slane %v11002_v7, 1  ;;  %v12793_v52 = vld [vmem:[#allocation5_spill] sm:$0xff]  ;;  %v12794_v59 = vld [vmem:[#allocation131_spill] sm:$0xff] }
 0x261   : > { %v3973_v12 = vpop.f32.mrf.mxu1 }
 0x262   : > { %v4433_v15 = vpop.f32.mrf.mxu0  ;;  %v4132_v50 = vadd.f32 %v3973_v12, %v11016_v21  ;;  %v11425_v4 = vadd.f32 %v8110_v3, %v4133_v45  ;;  %v12792_v21 = vld [vmem:[#allocation99_spill] sm:$0xff]  ;;  %v6181_v3 = vsel %vm3585_vm2, %v6133_v30, %v6134_v11  ;;  %v6196_v45 = vmul.f32 %v6182_v17, %v12794_v59  ;;  %v12795_v30 = vld [vmem:[#allocation9_spill] sm:$0xff] }
 0x263   : > { %v8063_v39 = vpop.f32.mrf.mxu1  ;;  %8362 = vmatmul.mubr.msk.f32.gmra.mxu1 %vm620_vm0, %v6193_v36  ;;  %v6195_v54 = vmul.f32 %v6183_v34, %v12792_v21  ;;  %v6180_v36 = vsel %vm3585_vm2, %v6134_v11, %v6135_v42  ;;  %v12796_v34 = vld [vmem:[#allocation132_spill] sm:$0xff]  ;;  %v12798_v17 = vld [vmem:[#allocation129_spill] sm:$0xff] }
 0x264   : > { %v8116_v19 = vpop.f32.mrf.mxu0  ;;  %v4135_v47 = vadd.f32 %v8063_v39, %v11029_v63  ;;  %8364 = vmatprep.mubr.msk.f32.mxu1 %vm620_vm0, %v6194_v23  ;;  %v11433_v8 = vadd.f32 %v4423_v49, %v4132_v50  ;;  %v6137_v63 = vrot.slane %v11024_v13, 1  ;;  %v6197_v50 = vmul.f32 %v6181_v3, %v12796_v34  ;;  %v12799_v21 = vld [vmem:[#allocation133_spill] sm:$0xff] }
 0x265   : > { %v3983_v29 = vpop.f32.mrf.mxu1  ;;  %v6179_v13 = vsel %vm3585_vm2, %v6135_v42, %v6136_v40 }
 0x266   : > { %v4443_v32 = vpop.f32.mrf.mxu0  ;;  %v4134_v55 = vadd.f32 %v3983_v29, %v12793_v52  ;;  %v11441_v57 = vadd.f32 %v8113_v53, %v4135_v47  ;;  %v6138_v53 = vrot.slane %v12797_v28, 1  ;;  %v6139_v29 = vrot.slane %v11056_v20, 1 }
 0x267   : > { %v8066_v18 = vpop.f32.mrf.mxu1  ;;  %8365 = vmatmul.mubr.msk.f32.gmra.mxu1 %vm620_vm0, %v6195_v54  ;;  %v6198_v54 = vmul.f32 %v6180_v36, %v12799_v21  ;;  %v6178_v3 = vsel %vm3585_vm2, %v6136_v40, %v6137_v63  ;;  %v12805_v21 = vld [vmem:[#allocation134_spill] sm:$0xff] }
 0x268   : > { %v8119_v49 = vpop.f32.mrf.mxu0  ;;  %v4137_v12 = vadd.f32 %v8066_v18, %v12795_v30  ;;  %8367 = vmatprep.mubr.msk.f32.mxu1 %vm620_vm0, %v6196_v45  ;;  %v11449_v7 = vadd.f32 %v4433_v15, %v4134_v55  ;;  %v12800_v55 = vld [vmem:[#allocation16_spill] sm:$0xff]  ;;  %v12801_v45 = vld [vmem:[#allocation110_spill] sm:$0xff]  ;;  %v6140_v30 = vrot.slane %v11068_v56, 1 }
 0x269   : > { %v3993_v23 = vpop.f32.mrf.mxu1  ;;  %v6199_v18 = vmul.f32 %v6179_v13, %v12801_v45  ;;  %v6176_v13 = vsel %vm3585_vm2, %v6138_v53, %v6139_v29  ;;  %v12807_v45 = vld [vmem:[#allocation112_spill] sm:$0xff] }
 0x26a   : > { %v4453_v39 = vpop.f32.mrf.mxu0  ;;  %v4136_v47 = vadd.f32 %v3993_v23, %v12798_v17  ;;  %v11457_v11 = vadd.f32 %v8116_v19, %v4137_v12  ;;  %v6177_v19 = vsel %vm3585_vm2, %v6137_v63, %v6138_v53  ;;  %v12802_v12 = vld [vmem:[#allocation79_spill] sm:$0xff]  ;;  %v6141_v23 = vrot.slane %v11088_v1, 1  ;;  %v12804_v63 = vld [vmem:[#allocation130_spill] sm:$0xff] }
 0x26b   : > { %v8069_v52 = vpop.f32.mrf.mxu1  ;;  %8368 = vmatmul.mubr.msk.f32.gmra.mxu1 %vm620_vm0, %v6197_v50  ;;  %v12803_v50 = vld [vmem:[#allocation109_spill] sm:$0xff]  ;;  %v6175_v1 = vsel %vm3585_vm2, %v6139_v29, %v6140_v30 }
 0x26c   : > { %v8122_v15 = vpop.f32.mrf.mxu0  ;;  %v4139_v59 = vadd.f32 %v8069_v52, %v12800_v55  ;;  %8370 = vmatprep.mubr.msk.f32.mxu1 %vm620_vm0, %v6198_v54  ;;  %v11465_v42 = vadd.f32 %v4443_v32, %v4136_v47  ;;  %v6200_v28 = vmul.f32 %v6178_v3, %v12803_v50  ;;  %v6201_v54 = vmul.f32 %v6177_v19, %v12805_v21  ;;  %v12806_v55 = vld [vmem:[#allocation64_spill] sm:$0xff] }
 0x26d   : > { %v4003_v36 = vpop.f32.mrf.mxu1  ;;  %v12811_v21 = vld [vmem:[#allocation72_spill] sm:$0xff] }
 0x26e   : > { %v4463_v20 = vpop.f32.mrf.mxu0  ;;  %v4138_v34 = vadd.f32 %v4003_v36, %v12802_v12  ;;  %v11473_v40 = vadd.f32 %v8119_v49, %v4139_v59  ;;  %v6142_v49 = vrot.slane %v11100_v38, 1  ;;  %v6143_v36 = vrot.slane %v11122_v31, 1 }
 0x26f   : > { %v8072_v17 = vpop.f32.mrf.mxu1  ;;  %8371 = vmatmul.mubr.msk.f32.gmra.mxu1 %vm620_vm0, %v6199_v18  ;;  %v6202_v18 = vmul.f32 %v6176_v13, %v12807_v45  ;;  %v6174_v38 = vsel %vm3585_vm2, %v6140_v30, %v6141_v23  ;;  %v12813_v45 = vld [vmem:[#allocation115_spill] sm:$0xff] }
 0x270   : > { %v8125_v32 = vpop.f32.mrf.mxu0  ;;  %v4141_v47 = vadd.f32 %v8072_v17, %v12804_v63  ;;  %8373 = vmatprep.mubr.msk.f32.mxu1 %vm620_vm0, %v6200_v28  ;;  %v11481_v56 = vadd.f32 %v4453_v39, %v4138_v34  ;;  %v12808_v34 = vld [vmem:[#allocation114_spill] sm:$0xff]  ;;  %v12809_v17 = vld [vmem:[#allocation20_spill] sm:$0xff]  ;;  %v12810_v63 = vld [vmem:[#allocation27_spill] sm:$0xff] }
 0x271   : > { %v4013_v52 = vpop.f32.mrf.mxu1  ;;  %v6203_v50 = vmul.f32 %v6175_v1, %v12808_v34  ;;  %v6144_v13 = vrot.slane %v12809_v17, 1  ;;  %v6172_v1 = vsel %vm3585_vm2, %v6142_v49, %v6143_v36  ;;  %v12814_v34 = vld [vmem:[#allocation118_spill] sm:$0xff] }
 0x272   : > { %v4473_v3 = vpop.f32.mrf.mxu0  ;;  %v4140_v59 = vadd.f32 %v4013_v52, %v12806_v55  ;;  %v11489_v53 = vadd.f32 %v8122_v15, %v4141_v47  ;;  %v6173_v15 = vsel %vm3585_vm2, %v6141_v23, %v6142_v49  ;;  %v12812_v23 = vld [vmem:[#allocation65_spill] sm:$0xff] }
 0x273   : > { %v8075_v12 = vpop.f32.mrf.mxu1  ;;  %8374 = vmatmul.mubr.msk.f32.gmra.mxu1 %vm620_vm0, %v6201_v54  ;;  %v6204_v54 = vmul.f32 %v6174_v38, %v12811_v21 }
 0x274   : > { %v8128_v39 = vpop.f32.mrf.mxu0  ;;  %v4143_v19 = vadd.f32 %v8075_v12, %v11157_v51  ;;  %8376 = vmatprep.mubr.msk.f32.mxu1 %vm620_vm0, %v6202_v18  ;;  %v11497_v29 = vadd.f32 %v4463_v20, %v4140_v59  ;;  %v6145_v51 = vrot.slane %v11152_v37, 1  ;;  %v6205_v18 = vmul.f32 %v6173_v15, %v12813_v45  ;;  %v12815_v15 = vld [vmem:[#allocation31_spill] sm:$0xff] }
 0x275   : > { %v4023_v28 = vpop.f32.mrf.mxu1  ;;  %v6171_v37 = vsel %vm3585_vm2, %v6143_v36, %v6144_v13 }
 0x276   : > { %v4483_v31 = vpop.f32.mrf.mxu0  ;;  %v4142_v47 = vadd.f32 %v4023_v28, %v12810_v63  ;;  %v11505_v30 = vadd.f32 %v8125_v32, %v4143_v19  ;;  %v6146_v32 = vrot.slane %v11162_v48, 1  ;;  %v6147_v28 = vrot.slane %v11182_v61, 1 }
 0x277   : > { %v8078_v52 = vpop.f32.mrf.mxu1  ;;  %8377 = vmatmul.mubr.msk.f32.gmra.mxu1 %vm620_vm0, %v6203_v50  ;;  %v6206_v50 = vmul.f32 %v6172_v1, %v12814_v34  ;;  %v6170_v48 = vsel %vm3585_vm2, %v6144_v13, %v6145_v51  ;;  %v12817_v1 = vld [vmem:[#allocation121_spill] sm:$0xff] }
 0x278   : > { %v8131_v20 = vpop.f32.mrf.mxu0  ;;  %v4145_v55 = vadd.f32 %v8078_v52, %v12812_v23  ;;  %8379 = vmatprep.mubr.msk.f32.mxu1 %vm620_vm0, %v6204_v54  ;;  %v11513_v59 = vadd.f32 %v4473_v3, %v4142_v47  ;;  %v6148_v54 = vrot.slane %v11192_v10, 1  ;;  %v6208_v23 = vmul.f32 %v6170_v48, %v12817_v1  ;;  %v12821_v48 = vld [vmem:[#allocation124_spill] sm:$0xff] }
 0x279   : > { %v4033_v12 = vpop.f32.mrf.mxu1 }
 0x27a   : > { %v4493_v38 = vpop.f32.mrf.mxu0  ;;  %v4144_v19 = vadd.f32 %v4033_v12, %v11204_v22  ;;  %v11521_v49 = vadd.f32 %v8128_v39, %v4145_v55  ;;  %v12816_v22 = vld [vmem:[#allocation117_spill] sm:$0xff]  ;;  %v6169_v39 = vsel %vm3585_vm2, %v6145_v51, %v6146_v32  ;;  %v6149_v55 = vrot.slane %v11211_v2, 1  ;;  %v12818_v51 = vld [vmem:[#allocation67_spill] sm:$0xff] }
 0x27b   : > { %v8081_v17 = vpop.f32.mrf.mxu1  ;;  %8380 = vmatmul.mubr.msk.f32.gmra.mxu1 %vm620_vm0, %v6205_v18  ;;  %v6207_v47 = vmul.f32 %v6171_v37, %v12816_v22  ;;  %v6168_v18 = vsel %vm3585_vm2, %v6146_v32, %v6147_v28  ;;  %v6167_v2 = vsel %vm3585_vm2, %v6147_v28, %v6148_v54 }
 0x27c   : > { %v8134_v3 = vpop.f32.mrf.mxu0  ;;  %v4147_v63 = vadd.f32 %v8081_v17, %v12815_v15  ;;  %8382 = vmatprep.mubr.msk.f32.mxu1 %vm620_vm0, %v6206_v50  ;;  %v11529_v36 = vadd.f32 %v4483_v31, %v4144_v19  ;;  %v12820_v50 = vld [vmem:[#allocation38_spill] sm:$0xff]  ;;  %v6210_v15 = vmul.f32 %v6168_v18, %v12821_v48  ;;  %v12824_v18 = vld [vmem:[#allocation85_spill] sm:$0xff] }
 0x27d   : > { %v4043_v21 = vpop.f32.mrf.mxu1  ;;  %v12826_v48 = vld [vmem:[#allocation66_spill] sm:$0xff] }
 0x27e   : > { %v4503_v61 = vpop.f32.mrf.mxu0  ;;  %v4146_v52 = vadd.f32 %v4043_v21, %v11232_v14  ;;  %v11537_v13 = vadd.f32 %v8131_v20, %v4147_v63  ;;  %v12819_v14 = vld [vmem:[#allocation120_spill] sm:$0xff]  ;;  %v6150_v20 = vrot.slane %v11220_v33, 1  ;;  %v6151_v63 = vrot.slane %v11239_v9, 1  ;;  %v12823_v21 = vld [vmem:[#allocation123_spill] sm:$0xff] }
 0x27f   : > { %v8084_v45 = vpop.f32.mrf.mxu1  ;;  %8383 = vmatmul.mubr.msk.f32.gmra.mxu1 %vm620_vm0, %v6207_v47  ;;  %v6209_v37 = vmul.f32 %v6169_v39, %v12819_v14  ;;  %v6166_v33 = vsel %vm3585_vm2, %v6148_v54, %v6149_v55  ;;  %v12822_v47 = vld [vmem:[#allocation107_spill] sm:$0xff] }
 0x280   : > { %v8137_v31 = vpop.f32.mrf.mxu0  ;;  %v4149_v12 = vadd.f32 %v8084_v45, %v12818_v51  ;;  %8385 = vmatprep.mubr.msk.f32.mxu1 %vm620_vm0, %v6208_v23  ;;  %v11545_v10 = vadd.f32 %v4493_v38, %v4146_v52  ;;  %v6211_v52 = vmul.f32 %v6167_v2, %v12823_v21  ;;  %v6152_v23 = vrot.slane %v11248_v44, 1 }
 0x281   : > { %v4053_v19 = vpop.f32.mrf.mxu1  ;;  %v6212_v51 = vmul.f32 %v6166_v33, %v12824_v18  ;;  %v6156_v21 = vrot.slane %v11304_v24, 1  ;;  %v6157_v24 = vrot.slane %v12770_v62, 1 }
 0x282   : > { %v4513_v34 = vpop.f32.mrf.mxu0  ;;  %v4148_v17 = vadd.f32 %v4053_v19, %v12820_v50  ;;  %v11553_v32 = vadd.f32 %v8134_v3, %v4149_v12  ;;  %v6165_v3 = vsel %vm3585_vm2, %v6149_v55, %v6150_v20  ;;  %v6153_v12 = vrot.slane %v11267_v43, 1 }
 0x283   : > { %v8087_v22 = vpop.f32.mrf.mxu1  ;;  %8386 = vmatmul.mubr.msk.f32.gmra.mxu1 %vm620_vm0, %v6209_v37  ;;  %v6164_v37 = vsel %vm3585_vm2, %v6150_v20, %v6151_v63  ;;  %v6163_v43 = vsel %vm3585_vm2, %v6151_v63, %v6152_v23  ;;  %v6158_v62 = vsel %vm3585_vm2, %v6156_v21, %v6157_v24 }
 0x284   : > { %v8140_v38 = vpop.f32.mrf.mxu0  ;;  %v4151_v39 = vadd.f32 %v8087_v22, %v12822_v47  ;;  %8388 = vmatprep.mubr.msk.f32.mxu1 %vm620_vm0, %v6210_v15  ;;  %v11561_v28 = vadd.f32 %v4503_v61, %v4148_v17  ;;  %v6214_v15 = vmul.f32 %v6164_v37, %v12826_v48 }
 0x285   : > { %v4063_v1 = vpop.f32.mrf.mxu1 }
 0x286   : > { %v4523_v9 = vpop.f32.mrf.mxu0  ;;  %v4150_v45 = vadd.f32 %v4063_v1, %v11288_v0  ;;  %v11569_v54 = vadd.f32 %v8137_v31, %v4151_v39  ;;  %v12825_v0 = vld [vmem:[#allocation70_spill] sm:$0xff]  ;;  %v6154_v31 = vrot.slane %v11276_v5, 1  ;;  %v6162_v5 = vsel %vm3585_vm2, %v6152_v23, %v6153_v12 }
 0x287   : > { %v8090_v14 = vpop.f32.mrf.mxu1  ;;  %8389 = vmatmul.mubr.msk.f32.gmra.mxu1 %vm620_vm0, %v6211_v52  ;;  %v6213_v19 = vmul.f32 %v6165_v3, %v12825_v0  ;;  %v12828_v3 = vld [vmem:[#allocation88_spill] sm:$0xff] }
 0x288   : > { %v8143_v61 = vpop.f32.mrf.mxu0  ;;  %v4153_v55 = vadd.f32 %v8090_v14, %v11300_v46  ;;  %8391 = vmatprep.mubr.msk.f32.mxu1 %vm620_vm0, %v6212_v51  ;;  %v11577_v44 = vadd.f32 %v4513_v34, %v4150_v45  ;;  %v6155_v46 = vrot.slane %v11295_v60, 1  ;;  %v6216_v1 = vmul.f32 %v6162_v5, %v12828_v3 }
 0x289   : > { %v4073_v2 = vpop.f32.mrf.mxu1 }
 0x28a   : > { %v4533_v50 = vpop.f32.mrf.mxu0  ;;  %v4152_v17 = vadd.f32 %v4073_v2, %v11316_v27  ;;  %v11585_v20 = vadd.f32 %v8140_v38, %v4153_v55  ;;  %v12827_v27 = vld [vmem:[#allocation71_spill] sm:$0xff]  ;;  %v6161_v38 = vsel %vm3585_vm2, %v6153_v12, %v6154_v31  ;;  %v6160_v45 = vsel %vm3585_vm2, %v6154_v31, %v6155_v46  ;;  %v12830_v55 = vld [vmem:[#allocation42_spill] sm:$0xff] }
 0x28b   : > { %v8093_v22 = vpop.f32.mrf.mxu1  ;;  %8392 = vmatmul.mubr.msk.f32.gmra.mxu1 %vm620_vm0, %v6213_v19  ;;  %v6215_v47 = vmul.f32 %v6163_v43, %v12827_v27  ;;  %v6159_v37 = vsel %vm3585_vm2, %v6155_v46, %v6156_v21  ;;  %v12831_v19 = vld [vmem:[#allocation98_spill] sm:$0xff] }
 0x28c   : > { %v8146_v34 = vpop.f32.mrf.mxu0  ;;  %v4155_v33 = vadd.f32 %v8093_v22, %v11325_v35  ;;  %8394 = vmatprep.mubr.msk.f32.mxu1 %vm620_vm0, %v6214_v15  ;;  %v11593_v63 = vadd.f32 %v4523_v9, %v4152_v17  ;;  %v6218_v2 = vmul.f32 %v6160_v45, %v12831_v19  ;;  %v12832_v43 = vld [vmem:[#allocation74_spill] sm:$0xff] }
 0x28d   : > { %v4083_v39 = vpop.f32.mrf.mxu1  ;;  %v12833_v15 = vld [vmem:[#allocation102_spill] sm:$0xff] }
 0x28e   : > { %v4543_v60 = vpop.f32.mrf.mxu0  ;;  %v4154_v52 = vadd.f32 %v4083_v39, %v11338_v58  ;;  %v11601_v23 = vadd.f32 %v8143_v61, %v4155_v33  ;;  %v12829_v58 = vld [vmem:[#allocation95_spill] sm:$0xff]  ;;  %v6219_v46 = vmul.f32 %v6159_v37, %v12833_v15  ;;  %v12837_v39 = vld [vmem:[#allocation101_spill] sm:$0xff] }
 0x28f   : > { %v8096_v35 = vpop.f32.mrf.mxu1  ;;  %8395 = vmatmul.mubr.msk.f32.gmra.mxu1 %vm620_vm0, %v6215_v47  ;;  %v6217_v12 = vmul.f32 %v6161_v38, %v12829_v58  ;;  %v12834_v33 = vld [vmem:[#allocation139_spill] sm:$0xff]  ;;  %v12836_v47 = vld [vmem:[#allocation49_spill] sm:$0xff] }
 0x290   : > { %v8149_v9 = vpop.f32.mrf.mxu0  ;;  %v4157_v18 = vadd.f32 %v8096_v35, %v11346_v6  ;;  %8397 = vmatprep.mubr.msk.f32.mxu1 %vm620_vm0, %v6216_v1  ;;  %v11608_v51 = vadd.f32 %v4533_v50, %v4154_v52  ;;  %v6220_v52 = vmul.f32 %v6158_v62, %v12837_v39  ;;  %v12838_v1 = vld [vmem:[#allocation89_spill] sm:$0xff] }
 0x291   : > { %v4093_v14 = vpop.f32.mrf.mxu1 }
 0x292   : > { %v4553_v61 = vpop.f32.mrf.mxu0  ;;  %v4156_v0 = vadd.f32 %v4093_v14, %v12830_v55  ;;  %v11616_v31 = vadd.f32 %v8146_v34, %v4157_v18  ;;  %v12835_v34 = vrot.slane %v12834_v33, 1  ;;  %v12839_v18 = vld [vmem:[#allocation106_spill] sm:$0xff] }
 0x293   : > { %v8099_v6 = vpop.f32.mrf.mxu1  ;;  %8398 = vmatmul.mubr.msk.f32.gmra.mxu1 %vm620_vm0, %v6217_v12 }
 0x294   : > { %v8152_v50 = vpop.f32.mrf.mxu0  ;;  %v4159_v17 = vadd.f32 %v8099_v6, %v12832_v43  ;;  %8400 = vmatprep.mubr.msk.f32.mxu1 %vm620_vm0, %v6218_v2  ;;  %v11623_v48 = vadd.f32 %v4543_v60, %v4156_v0  ;;  %v6189_v27 = vsel %vm3585_vm2, %v6157_v24, %v12835_v34 }
 0x295   : > { %v4103_v22 = vpop.f32.mrf.mxu1  ;;  %v6221_v58 = vmul.f32 %v6189_v27, %v12839_v18 }
 0x296   : > { %v4563_v5 = vpop.f32.mrf.mxu0  ;;  %v4158_v38 = vadd.f32 %v4103_v22, %v12836_v47  ;;  %v11632_v21 = vadd.f32 %v8149_v9, %v4159_v17 }
 0x297   : > { %v8102_v3 = vpop.f32.mrf.mxu1  ;;  %8401 = vmatmul.mubr.msk.f32.gmra.mxu1 %vm620_vm0, %v6219_v46 }
 0x298   : > { %v8155_v60 = vpop.f32.mrf.mxu0  ;;  %v4161_v35 = vadd.f32 %v8102_v3, %v12838_v1  ;;  %8403 = vmatprep.mubr.msk.f32.mxu1 %vm620_vm0, %v6220_v52  ;;  %v11637_v45 = vadd.f32 %v4553_v61, %v4158_v38 }
 0x299   : > { %v4113_v16 = vpop.f32.mrf.mxu1 }
 0x29a   : > { %v4573_v24 = vpop.f32.mrf.mxu0  ;;  %v4160_v12 = vadd.f32 %v4113_v16, %v11402_v26  ;;  %v11641_v14 = vadd.f32 %v8152_v50, %v4161_v35 }
 0x29b   : > { %v8105_v9 = vpop.f32.mrf.mxu1  ;;  %8404 = vmatmul.mubr.msk.f32.gmra.mxu1 %vm620_vm0, %v6221_v58 }
 0x29c   : > { %v11644_v37 = vpop.f32.mrf.mxu0  ;;  %v4163_v55 = vadd.f32 %v8105_v9, %v11409_v25  ;;  %v11647_v0 = vadd.f32 %v4563_v5, %v4160_v12 }
 0x29d   : > { %v4123_v19 = vpop.f32.mrf.mxu1 }
 0x29e   : > { %v11649_v61 = vpop.f32.mrf.mxu0  ;;  %v4162_v2 = vadd.f32 %v4123_v19, %v11417_v41  ;;  %v11652_v6 = vadd.f32 %v8155_v60, %v4163_v55 }
 0x29f   : > { %v8160_v62 = vpop.f32.mrf.mxu1 }
 0x2a0   : > { %v11654_v26 = vpop.f32.mrf.mxu0  ;;  %v11657_v50 = vadd.f32 %v8160_v62, %v11425_v4  ;;  %v11659_v43 = vadd.f32 %v4573_v24, %v4162_v2 }
 0x2a1   : > { %v4681_v17 = vpop.f32.mrf.mxu1 }
 0x2a2   : > { %v11661_v15 = vpop.f32.mrf.mxu0  ;;  %v11664_v25 = vadd.f32 %v4681_v17, %v11433_v8 }
 0x2a3   : > { %v8163_v46 = vpop.f32.mrf.mxu1 }
 0x2a4   : > { %v11666_v22 = vpop.f32.mrf.mxu0  ;;  %v11669_v41 = vadd.f32 %v8163_v46, %v11441_v57 }
 0x2a5   : > { %v4691_v5 = vpop.f32.mrf.mxu1 }
 0x2a6   : > { %v11671_v33 = vpop.f32.mrf.mxu0  ;;  %v11674_v4 = vadd.f32 %v4691_v5, %v11449_v7 }
 0x2a7   : > { %v8166_v34 = vpop.f32.mrf.mxu1 }
 0x2a8   : > { %v11676_v27 = vpop.f32.mrf.mxu0  ;;  %v11679_v47 = vadd.f32 %v8166_v34, %v11457_v11 }
 0x2a9   : > { %v4701_v8 = vpop.f32.mrf.mxu1 }
 0x2aa   : > { %v11681_v38 = vpop.f32.mrf.mxu0  ;;  %v11684_v39 = vadd.f32 %v4701_v8, %v11465_v42 }
 0x2ab   : > { %v8169_v57 = vpop.f32.mrf.mxu1 }
 0x2ac   : > { %v11686_v52 = vpop.f32.mrf.mxu0  ;;  %v11689_v3 = vadd.f32 %v8169_v57, %v11473_v40 }
 0x2ad   : > { %v4711_v7 = vpop.f32.mrf.mxu1 }
 0x2ae   : > { %v11691_v60 = vpop.f32.mrf.mxu0  ;;  %v11694_v1 = vadd.f32 %v4711_v7, %v11481_v56 }
 0x2af   : > { %v8172_v11 = vpop.f32.mrf.mxu1 }
 0x2b0   : > { %v11696_v35 = vpop.f32.mrf.mxu0  ;;  %v11699_v18 = vadd.f32 %v8172_v11, %v11489_v53 }
 0x2b1   : > { %v4721_v42 = vpop.f32.mrf.mxu1 }
 0x2b2   : > { %v11701_v58 = vpop.f32.mrf.mxu0  ;;  %v11704_v16 = vadd.f32 %v4721_v42, %v11497_v29 }
 0x2b3   : > { %v8175_v40 = vpop.f32.mrf.mxu1 }
 0x2b4   : > { %v11706_v24 = vpop.f32.mrf.mxu0  ;;  %v11709_v12 = vadd.f32 %v8175_v40, %v11505_v30 }
 0x2b5   : > { %v4731_v56 = vpop.f32.mrf.mxu1 }
 0x2b6   : > { %v11711_v9 = vpop.f32.mrf.mxu0  ;;  %v11714_v55 = vadd.f32 %v4731_v56, %v11513_v59 }
 0x2b7   : > { %v8178_v53 = vpop.f32.mrf.mxu1 }
 0x2b8   : > { %v11716_v19 = vpop.f32.mrf.mxu0  ;;  %v11719_v2 = vadd.f32 %v8178_v53, %v11521_v49 }
 0x2b9   : > { %12840 = vst [vmem:[#allocation75_spill] sm:$0xff] %v11716_v19  ;;  %v4741_v29 = vpop.f32.mrf.mxu1 }
 0x2ba   : > { %v11721_v62 = vpop.f32.mrf.mxu0  ;;  %v11724_v17 = vadd.f32 %v4741_v29, %v11529_v36 }
 0x2bb   : > { %12841 = vst [vmem:[#allocation53_spill] sm:$0xff] %v11721_v62  ;;  %v8181_v30 = vpop.f32.mrf.mxu1 }
 0x2bc   : > { %v11726_v46 = vpop.f32.mrf.mxu0  ;;  %v11729_v5 = vadd.f32 %v8181_v30, %v11537_v13 }
 0x2bd   : > { %12842 = vst [vmem:[#allocation77_spill] sm:$0xff] %v11726_v46  ;;  %v4751_v59 = vpop.f32.mrf.mxu1 }
 0x2be   : > { %12843 = vst [vmem:[#allocation63_spill] sm:$0xff] %v11729_v5  ;;  %v11731_v34 = vpop.f32.mrf.mxu0  ;;  %v11734_v8 = vadd.f32 %v4751_v59, %v11545_v10 }
 0x2bf   : > { %12844 = vst [vmem:[#allocation92_spill] sm:$0xff] %v11731_v34  ;;  %v8184_v49 = vpop.f32.mrf.mxu1 }
 0x2c0   : > { %12845 = vst [vmem:[#allocation81_spill] sm:$0xff] %v11734_v8  ;;  %v11736_v57 = vpop.f32.mrf.mxu0  ;;  %v11739_v7 = vadd.f32 %v8184_v49, %v11553_v32 }
 0x2c1   : > { %12846 = vst [vmem:[#allocation68_spill] sm:$0xff] %v11736_v57  ;;  %v4761_v36 = vpop.f32.mrf.mxu1 }
 0x2c2   : > { %12847 = vst [vmem:[#allocation82_spill] sm:$0xff] %v11739_v7  ;;  %v11741_v11 = vpop.f32.mrf.mxu0  ;;  %v11744_v42 = vadd.f32 %v4761_v36, %v11561_v28 }
 0x2c3   : > { %12848 = vst [vmem:[#allocation69_spill] sm:$0xff] %v11741_v11  ;;  %v8187_v13 = vpop.f32.mrf.mxu1 }
 0x2c4   : > { %12849 = vst [vmem:[#allocation84_spill] sm:$0xff] %v11744_v42  ;;  %v11746_v40 = vpop.f32.mrf.mxu0  ;;  %v11749_v56 = vadd.f32 %v8187_v13, %v11569_v54 }
 0x2c5   : > { %12850 = vst [vmem:[#allocation73_spill] sm:$0xff] %v11746_v40  ;;  %v4771_v10 = vpop.f32.mrf.mxu1 }
 0x2c6   : > { %12851 = vst [vmem:[#allocation87_spill] sm:$0xff] %v11749_v56  ;;  %v11751_v53 = vpop.f32.mrf.mxu0  ;;  %v11754_v29 = vadd.f32 %v4771_v10, %v11577_v44 }
 0x2c7   : > { %12852 = vst [vmem:[#allocation76_spill] sm:$0xff] %v11751_v53  ;;  %v8190_v32 = vpop.f32.mrf.mxu1 }
 0x2c8   : > { %12853 = vst [vmem:[#allocation91_spill] sm:$0xff] %v11754_v29  ;;  %v11756_v30 = vpop.f32.mrf.mxu0  ;;  %v11759_v59 = vadd.f32 %v8190_v32, %v11585_v20 }
 0x2c9   : > { %12854 = vst [vmem:[#allocation83_spill] sm:$0xff] %v11756_v30  ;;  %v4781_v28 = vpop.f32.mrf.mxu1 }
 0x2ca   : > { %12855 = vst [vmem:[#allocation94_spill] sm:$0xff] %v11759_v59  ;;  %v11761_v49 = vpop.f32.mrf.mxu0  ;;  %v11764_v36 = vadd.f32 %v4781_v28, %v11593_v63 }
 0x2cb   : > { %12856 = vst [vmem:[#allocation86_spill] sm:$0xff] %v11761_v49  ;;  %v8193_v54 = vpop.f32.mrf.mxu1 }
 0x2cc   : > { %12857 = vst [vmem:[#allocation135_spill] sm:$0xff] %v11764_v36  ;;  %v11766_v13 = vpop.f32.mrf.mxu0  ;;  %v11769_v53 = vadd.f32 %v8193_v54, %v11601_v23 }
 0x2cd   : > { %12858 = vst [vmem:[#allocation93_spill] sm:$0xff] %v11766_v13  ;;  %v4791_v44 = vpop.f32.mrf.mxu1 }
 0x2ce   : > { %12859 = vst [vmem:[#allocation97_spill] sm:$0xff] %v11769_v53  ;;  %v11771_v10 = vpop.f32.mrf.mxu0  ;;  %v11774_v30 = vadd.f32 %v4791_v44, %v11608_v51 }
 0x2cf   : > { %12860 = vst [vmem:[#allocation96_spill] sm:$0xff] %v11771_v10  ;;  %v8196_v20 = vpop.f32.mrf.mxu1 }
 0x2d0   : > { %12861 = vst [vmem:[#allocation136_spill] sm:$0xff] %v11774_v30  ;;  %v11776_v32 = vpop.f32.mrf.mxu0  ;;  %v11779_v49 = vadd.f32 %v8196_v20, %v11616_v31 }
 0x2d1   : > { %12862 = vst [vmem:[#allocation103_spill] sm:$0xff] %v11776_v32  ;;  %v4801_v63 = vpop.f32.mrf.mxu1 }
 0x2d2   : > { %12863 = vst [vmem:[#allocation137_spill] sm:$0xff] %v11779_v49  ;;  %v11781_v28 = vpop.f32.mrf.mxu0  ;;  %v11784_v13 = vadd.f32 %v4801_v63, %v11623_v48 }
 0x2d3   : > { %12864 = vst [vmem:[#allocation105_spill] sm:$0xff] %v11781_v28  ;;  %v8199_v23 = vpop.f32.mrf.mxu1 }
 0x2d4   : > { %12865 = vst [vmem:[#allocation138_spill] sm:$0xff] %v11784_v13  ;;  %v11786_v54 = vpop.f32.mrf.mxu0  ;;  %v11789_v10 = vadd.f32 %v8199_v23, %v11632_v21 }
 0x2d5   : > { %12866 = vst [vmem:[#allocation111_spill] sm:$0xff] %v11786_v54  ;;  %v4811_v51 = vpop.f32.mrf.mxu1 }
 0x2d6   : > { %12867 = vst [vmem:[#allocation113_spill] sm:$0xff] %v11789_v10  ;;  %v11791_v44 = vpop.f32.mrf.mxu0  ;;  %v11794_v32 = vadd.f32 %v4811_v51, %v11637_v45 }
 0x2d7   : > { %12868 = vst [vmem:[#allocation104_spill] sm:$0xff] %v11791_v44  ;;  %v8202_v31 = vpop.f32.mrf.mxu1 }
 0x2d8   : > { %12869 = vst [vmem:[#allocation116_spill] sm:$0xff] %v11794_v32  ;;  %v11796_v20 = vpop.f32.mrf.mxu0  ;;  %v11799_v28 = vadd.f32 %v8202_v31, %v11641_v14 }
 0x2d9   : > { %12870 = vst [vmem:[#allocation119_spill] sm:$0xff] %v11796_v20  ;;  %v4821_v48 = vpop.f32.mrf.mxu1 }
 0x2da   : > { %12871 = vst [vmem:[#allocation122_spill] sm:$0xff] %v11799_v28  ;;  %v11802_v63 = vadd.f32 %v4821_v48, %v11647_v0  ;;  %v11804_v54 = vpop.f32.mrf.mxu0 }
 0x2db   : > { %12873 = vst [vmem:[#allocation125_spill] sm:$0xff] %v11804_v54  ;;  %v8205_v21 = vpop.f32.mrf.mxu1 }
 0x2dc   : > { %12872 = vst [vmem:[#allocation108_spill] sm:$0xff] %v11802_v63  ;;  %v11807_v23 = vadd.f32 %v8205_v21, %v11652_v6  ;;  %v8310_v51 = vpop.f32.mrf.mxu0 }
 0x2dd   : > { %v4831_v44 = vpop.f32.mrf.mxu1 }
 0x2de   : > { %12874 = vst [vmem:[#allocation140_spill] sm:$0xff] %v11807_v23  ;;  %v11810_v45 = vadd.f32 %v4831_v44, %v11659_v43  ;;  %v5935_v10 = vpop.f32.mrf.mxu0 }
 0x2df   : > { %v8260_v32 = vpop.f32.mrf.mxu1 }
 0x2e0   : > { %12875 = vst [vmem:[#allocation126_spill] sm:$0xff] %v11810_v45  ;;  %v11812_v28 = vpop.f32.mrf.mxu0 }
 0x2e1   : > { %v5581_v20 = vpop.f32.mrf.mxu1 }
 0x2e2   : > { %v11816_v54 = vpop.f32.mrf.mxu0 }
 0x2e3   : > { %v8263_v14 = vpop.f32.mrf.mxu1 }
 0x2e4   : > { %v11822_v21 = vpop.f32.mrf.mxu0 }
 0x2e5   : > { %v5591_v31 = vpop.f32.mrf.mxu1 }
 0x2e6   : > { %v11828_v45 = vpop.f32.mrf.mxu0 }
 0x2e7   : > { %v8266_v0 = vpop.f32.mrf.mxu1 }
 0x2e8   : > { %v11834_v49 = vpop.f32.mrf.mxu0 }
 0x2e9   : > { %v11814_v48 = vpop.f32.mrf.mxu1 }
 0x2ea   : > { %v11840_v36 = vpop.f32.mrf.mxu0 }
 0x2eb   : > { %v11818_v63 = vpop.f32.mrf.mxu1 }
 0x2ec   : > { %v11846_v11 = vpop.f32.mrf.mxu0 }
 0x2ed   : > { %v11820_v6 = vpop.f32.mrf.mxu1 }
 0x2ee   : > { %v11852_v56 = vpop.f32.mrf.mxu0 }
 0x2ef   : > { %v11824_v43 = vpop.f32.mrf.mxu1 }
 0x2f0   : > { %v11858_v46 = vpop.f32.mrf.mxu0 }
 0x2f1   : > { %v11826_v44 = vpop.f32.mrf.mxu1 }
 0x2f3   : > { %v11830_v23 = vpop.f32.mrf.mxu1 }
 0x2f5   : > { %v11832_v13 = vpop.f32.mrf.mxu1 }
 0x2f7   : > { %v11836_v30 = vpop.f32.mrf.mxu1 }
 0x2f9   : > { %v11838_v53 = vpop.f32.mrf.mxu1 }
 0x2fb   : > { %v11842_v40 = vpop.f32.mrf.mxu1 }
 0x2fc   : > { %12876 = vst [vmem:[#allocation141_spill] sm:$0xff] %v11842_v40  ;;  %v11864_v40 = vpop.f32.mrf.mxu0 }
 0x2fd   : > { %v11844_v59 = vpop.f32.mrf.mxu1 }
 0x2fe   : > { %12877 = vst [vmem:[#allocation142_spill] sm:$0xff] %v11844_v59 }
 0x2ff   : > { %v11848_v29 = vpop.f32.mrf.mxu1 }
 0x300   : > { %12878 = vst [vmem:[#allocation78_spill] sm:$0xff] %v11848_v29  ;;  %v11870_v29 = vpop.f32.mrf.mxu0 }
 0x301   : > { %v11850_v57 = vpop.f32.mrf.mxu1  ;;  %12886 = vst [vmem:[#allocation3_spill] sm:$0xff] %v11870_v29 }
 0x302   : > { %12879 = vst [vmem:[#allocation143_spill] sm:$0xff] %v11850_v57 }
 0x303   : > { %v11854_v34 = vpop.f32.mrf.mxu1 }
 0x304   : > { %12880 = vst [vmem:[#allocation127_spill] sm:$0xff] %v11854_v34  ;;  %v11876_v34 = vpop.f32.mrf.mxu0 }
 0x305   : > { %v11856_v42 = vpop.f32.mrf.mxu1  ;;  %12889 = vst [vmem:[#allocation99_spill] sm:$0xff] %v11876_v34 }
 0x306   : > { %12881 = vst [vmem:[#allocation144_spill] sm:$0xff] %v11856_v42 }
 0x307   : > { %v11860_v7 = vpop.f32.mrf.mxu1 }
 0x308   : > { %12882 = vst [vmem:[#allocation145_spill] sm:$0xff] %v11860_v7  ;;  %v11882_v7 = vpop.f32.mrf.mxu0 }
 0x309   : > { %v11862_v62 = vpop.f32.mrf.mxu1  ;;  %12892 = vst [vmem:[#allocation9_spill] sm:$0xff] %v11882_v7 }
 0x30a   : > { %12883 = vst [vmem:[#allocation80_spill] sm:$0xff] %v11862_v62 }
 0x30b   : > { %v11866_v59 = vpop.f32.mrf.mxu1 }
 0x30c   : > { %12884 = vst [vmem:[#allocation2_spill] sm:$0xff] %v11866_v59  ;;  %v5291_v59 = vadd.f32 %v11644_v37, %v11657_v50  ;;  %v5292_v37 = vadd.f32 %v11661_v15, %v11674_v4  ;;  %v5294_v4 = vadd.f32 %v11671_v33, %v11684_v39 }
 0x30d   : > { %v11868_v8 = vpop.f32.mrf.mxu1 }
 0x30e   : > { %12885 = vst [vmem:[#allocation90_spill] sm:$0xff] %v11868_v8  ;;  %v5741_v29 = vadd.f32 %v8260_v32, %v5291_v59  ;;  %v12898_v59 = vld [vmem:[#allocation8_spill] sm:$0xff]  ;;  %v5744_v39 = vadd.f32 %v11814_v48, %v5294_v4 }
 0x30f   : > { %v11872_v57 = vpop.f32.mrf.mxu1 }
 0x310   : > { %12887 = vst [vmem:[#allocation128_spill] sm:$0xff] %v11872_v57  ;;  %v5290_v57 = vadd.f32 %v11649_v61, %v11664_v25  ;;  %v6095_v50 = vadd.f32 %v8310_v51, %v5741_v29  ;;  %v11905_v61 = vld [vmem:[%s12199_s8] ss:$0 sm:$0xff]  ;;  %v12897_v25 = vld [vmem:[#allocation7_spill] sm:$0xff] }
 0x311   : > { %v11874_v19 = vpop.f32.mrf.mxu1  ;;  %v1057_v32 = vadd.f32 %v12898_v59, %v12897_v25  ;;  %v12899_v51 = vld [vmem:[#allocation6_spill] sm:$0xff] }
 0x312   : > { %12888 = vst [vmem:[#allocation100_spill] sm:$0xff] %v11874_v19  ;;  %v11892_v19 = vpop.f32.mrf.mxu0  ;;  %v12902_v59 = vld [vmem:[#allocation10_spill] sm:$0xff] }
 0x313   : > { %v11878_v42 = vpop.f32.mrf.mxu1 }
 0x314   : > { %12890 = vst [vmem:[#allocation5_spill] sm:$0xff] %v11878_v42  ;;  %v5740_v42 = vadd.f32 %v5581_v20, %v5290_v57  ;;  %v5295_v57 = vadd.f32 %v11666_v22, %v11679_v47  ;;  %v1222_v22 = vadd.f32 %v11905_v61, %v1057_v32  ;;  %v12900_v47 = vld [vmem:[#allocation11_spill] sm:$0xff]  ;;  %v5296_v32 = vadd.f32 %v11681_v38, %v11694_v1 }
 0x315   : > { %v11880_v5 = vpop.f32.mrf.mxu1 }
 0x316   : > { %12891 = vst [vmem:[#allocation131_spill] sm:$0xff] %v11880_v5  ;;  %v5293_v5 = vadd.f32 %v11654_v26, %v11669_v41  ;;  %v11911_v26 = vpop.f32.mrf.mxu0  ;;  %v5745_v15 = vadd.f32 %v8266_v0, %v5295_v57  ;;  %v1225_v57 = vadd.f32 %v11905_v61, %v12902_v59  ;;  %v12908_v59 = vld [vmem:[#allocation17_spill] sm:$0xff] }
 0x317   : > { %v11884_v62 = vpop.f32.mrf.mxu1 }
 0x318   : > { %12893 = vst [vmem:[#allocation132_spill] sm:$0xff] %v11884_v62  ;;  %v5743_v62 = vadd.f32 %v8263_v14, %v5293_v5  ;;  %v5742_v5 = vadd.f32 %v5591_v31, %v5292_v37  ;;  %v6094_v14 = vadd.f32 %v5935_v10, %v5740_v42  ;;  %v12901_v42 = vld [vmem:[#allocation12_spill] sm:$0xff]  ;;  %v5297_v10 = vadd.f32 %v11676_v27, %v11689_v3  ;;  %v11931_v31 = vpop.f32.mrf.mxu0 }
 0x319   : > { %v11888_v8 = vpop.f32.mrf.mxu1  ;;  %v1067_v33 = vadd.f32 %v12901_v42, %v12900_v47  ;;  %v6099_v48 = vadd.f32 %v11822_v21, %v5745_v15  ;;  %v6098_v21 = vadd.f32 %v11828_v45, %v5744_v39  ;;  %v12906_v39 = vld [vmem:[#allocation18_spill] sm:$0xff] }
 0x31a   : > { %12894 = vst [vmem:[#allocation4_spill] sm:$0xff] %v11888_v8  ;;  %v6097_v25 = vadd.f32 %v11812_v28, %v5743_v62  ;;  %v5747_v27 = vadd.f32 %v11818_v63, %v5297_v10  ;;  %v11947_v38 = vpop.f32.mrf.mxu0  ;;  %v5746_v63 = vadd.f32 %v11820_v6, %v5296_v32  ;;  %v12907_v10 = vld [vmem:[#allocation19_spill] sm:$0xff] }
 0x31b   : > { %v11894_v34 = vpop.f32.mrf.mxu1 }
 0x31c   : > { %12895 = vst [vmem:[#allocation129_spill] sm:$0xff] %v11894_v34  ;;  %v6101_v42 = vadd.f32 %v11834_v49, %v5747_v27  ;;  %v6100_v49 = vadd.f32 %v11840_v36, %v5746_v63 }
 0x31d   : > { %v11898_v7 = vpop.f32.mrf.mxu1 }
 0x31e   : > { %12896 = vst [vmem:[#allocation133_spill] sm:$0xff] %v11898_v7  ;;  %v1223_v7 = vadd.f32 %v11905_v61, %v12899_v51  ;;  %v12905_v51 = vld [vmem:[#allocation13_spill] sm:$0xff] }
 0x31f   : > { %v8360_v41 = vpop.f32.mrf.mxu1 }
 0x320   : > { %v6545_v20 = vadd.f32 %v8360_v41, %v6095_v50  ;;  %v6096_v50 = vadd.f32 %v11816_v54, %v5742_v5  ;;  %v12903_v54 = vld [vmem:[#allocation14_spill] sm:$0xff]  ;;  %v12904_v5 = vld [vmem:[#allocation15_spill] sm:$0xff] }
 0x321   : > { %v6385_v29 = vpop.f32.mrf.mxu1 }
 0x322   : > { %v6577_v34 = vmax.f32 %v6545_v20, 0.0  ;;  %v6544_v8 = vadd.f32 %v6385_v29, %v6094_v14  ;;  %v1077_v20 = vadd.f32 %v12904_v5, %v12903_v54  ;;  %v5299_v14 = vadd.f32 %v11686_v52, %v11699_v18 }
 0x323   : > { %v8363_v62 = vpop.f32.mrf.mxu1  ;;  %v5298_v52 = vadd.f32 %v11691_v60, %v11704_v16  ;;  %v11967_v60 = vpop.f32.mrf.mxu0 }
 0x324   : > { %v6609_v28 = vadd.f32 %v6577_v34, %v1223_v7  ;;  %v6576_v0 = vmax.f32 %v6544_v8, 0.0  ;;  %v6547_v37 = vadd.f32 %v8363_v62, %v6097_v25  ;;  %v1224_v7 = vadd.f32 %v11905_v61, %v1067_v33 }
 0x325   : > { %v6395_v41 = vpop.f32.mrf.mxu1  ;;  %v1227_v25 = vadd.f32 %v11905_v61, %v12905_v51  ;;  %v1226_v33 = vadd.f32 %v11905_v61, %v1077_v20  ;;  %v1087_v62 = vadd.f32 %v12907_v10, %v12906_v39  ;;  %v12913_v51 = vld [vmem:[#allocation26_spill] sm:$0xff]  ;;  %v12917_v39 = vld [vmem:[#allocation81_spill] sm:$0xff] }
 0x326   : > { %6641 = vst.msk [vmem:[%s11923_s24 + $0x8] sm:$0xff] %vm620_vm0, %v6609_v28  ;;  %v6608_v3 = vadd.f32 %v6576_v0, %v1222_v22  ;;  %v6579_v34 = vmax.f32 %v6547_v37, 0.0  ;;  %v6546_v8 = vadd.f32 %v6395_v41, %v6096_v50  ;;  %v5749_v22 = vadd.f32 %v11824_v43, %v5299_v14  ;;  %v12911_v14 = vld [vmem:[#allocation21_spill] sm:$0xff] }
 0x327   : > { %v8366_v1 = vpop.f32.mrf.mxu1  ;;  %v5748_v28 = vadd.f32 %v11826_v44, %v5298_v52  ;;  %v5301_v43 = vadd.f32 %v11696_v35, %v11709_v12  ;;  %v5300_v44 = vadd.f32 %v11701_v58, %v11714_v55  ;;  %v1228_v36 = vadd.f32 %v11905_v61, %v1087_v62  ;;  %v11985_v58 = vpop.f32.mrf.mxu0  ;;  %v12915_v52 = vld [vmem:[#allocation75_spill] sm:$0xff]  ;;  %v12918_v10 = vld [vmem:[#allocation53_spill] sm:$0xff] }
 0x328   : > { %6640 = vst.msk [vmem:[%s11923_s24] sm:$0xff] %vm620_vm0, %v6608_v3  ;;  %v6611_v15 = vadd.f32 %v6579_v34, %v1225_v57  ;;  %v6578_v4 = vmax.f32 %v6546_v8, 0.0  ;;  %v6549_v29 = vadd.f32 %v8366_v1, %v6099_v48  ;;  %v1229_v57 = vadd.f32 %v11905_v61, %v12908_v59  ;;  %v12909_v3 = vld [vmem:[#allocation22_spill] sm:$0xff]  ;;  %v12910_v34 = vld [vmem:[#allocation23_spill] sm:$0xff]  ;;  %v12921_v59 = vld [vmem:[#allocation29_spill] sm:$0xff] }
 0x329   : > { %v6405_v18 = vpop.f32.mrf.mxu1  ;;  %v6103_v35 = vadd.f32 %v11846_v11, %v5749_v22  ;;  %v5751_v12 = vadd.f32 %v11830_v23, %v5301_v43  ;;  %v1097_v8 = vadd.f32 %v12910_v34, %v12909_v3  ;;  %v6102_v11 = vadd.f32 %v11852_v56, %v5748_v28  ;;  %v12919_v28 = vld [vmem:[#allocation3_spill] sm:$0xff]  ;;  %v12926_v3 = vld [vmem:[#allocation142_spill] sm:$0xff] }
 0x32a   : > { %6643 = vst.msk [vmem:[%s11923_s24 + $0x18] sm:$0xff] %vm620_vm0, %v6611_v15  ;;  %v6610_v45 = vadd.f32 %v6578_v4, %v1224_v7  ;;  %v6581_v47 = vmax.f32 %v6549_v29, 0.0  ;;  %v6548_v6 = vadd.f32 %v6405_v18, %v6098_v21  ;;  %v5303_v7 = vadd.f32 %v11706_v24, %v11719_v2  ;;  %v12912_v29 = vld [vmem:[#allocation25_spill] sm:$0xff] }
 0x32b   : > { %v8369_v16 = vpop.f32.mrf.mxu1  ;;  %v5750_v23 = vadd.f32 %v11832_v13, %v5300_v44  ;;  %v1231_v1 = vadd.f32 %v11905_v61, %v12911_v14  ;;  %v5302_v24 = vadd.f32 %v11711_v9, %v11724_v17  ;;  %v6105_v15 = vadd.f32 %v11858_v46, %v5751_v12  ;;  %v12005_v9 = vpop.f32.mrf.mxu0  ;;  %v12930_v14 = vld [vmem:[#allocation92_spill] sm:$0xff] }
 0x32c   : > { %6642 = vst.msk [vmem:[%s11923_s24 + $0x10] sm:$0xff] %vm620_vm0, %v6610_v45  ;;  %v6613_v0 = vadd.f32 %v6581_v47, %v1227_v25  ;;  %v6580_v37 = vmax.f32 %v6548_v6, 0.0  ;;  %v6551_v50 = vadd.f32 %v8369_v16, %v6101_v42  ;;  %v5753_v21 = vadd.f32 %v11836_v30, %v5303_v7  ;;  %v12914_v30 = vld [vmem:[#allocation63_spill] sm:$0xff]  ;;  %v12916_v42 = vld [vmem:[#allocation24_spill] sm:$0xff]  ;;  %v12920_v16 = vld [vmem:[#allocation141_spill] sm:$0xff] }
 0x32d   : > { %v6415_v32 = vpop.f32.mrf.mxu1  ;;  %v1230_v4 = vadd.f32 %v11905_v61, %v1097_v8  ;;  %v1107_v25 = vadd.f32 %v12913_v51, %v12912_v29  ;;  %v5752_v22 = vadd.f32 %v11838_v53, %v5302_v24  ;;  %v5305_v18 = vadd.f32 %v12915_v52, %v12914_v30  ;;  %v12933_v29 = vld [vmem:[#allocation34_spill] sm:$0xff]  ;;  %v12935_v30 = vld [vmem:[#allocation87_spill] sm:$0xff]  ;;  %v12936_v52 = vld [vmem:[#allocation68_spill] sm:$0xff] }
 0x32e   : > { %6645 = vst.msk [vmem:[%s11923_s24 + $0x28] sm:$0xff] %vm620_vm0, %v6613_v0  ;;  %v6612_v41 = vadd.f32 %v6580_v37, %v1226_v33  ;;  %v6583_v48 = vmax.f32 %v6551_v50, 0.0  ;;  %v6550_v27 = vadd.f32 %v6415_v32, %v6100_v49  ;;  %v6104_v46 = vadd.f32 %v11864_v40, %v5750_v23  ;;  %v12923_v32 = vld [vmem:[#allocation82_spill] sm:$0xff] }
 0x32f   : > { %v8372_v55 = vpop.f32.mrf.mxu1  ;;  %v1233_v33 = vadd.f32 %v11905_v61, %v12916_v42  ;;  %v5304_v53 = vadd.f32 %v12918_v10, %v12917_v39  ;;  %v6107_v43 = vadd.f32 %v12919_v28, %v5753_v21  ;;  %v5755_v0 = vadd.f32 %v12920_v16, %v5305_v18  ;;  %v12938_v10 = vld [vmem:[#allocation91_spill] sm:$0xff] }
 0x330   : > { %6644 = vst.msk [vmem:[%s11923_s24 + $0x20] sm:$0xff] %vm620_vm0, %v6612_v41  ;;  %v6615_v54 = vadd.f32 %v6583_v48, %v1229_v57  ;;  %v6582_v5 = vmax.f32 %v6550_v27, 0.0  ;;  %v6553_v20 = vadd.f32 %v8372_v55, %v6103_v35  ;;  %v1232_v40 = vadd.f32 %v11905_v61, %v1107_v25  ;;  %v12922_v57 = vld [vmem:[#allocation30_spill] sm:$0xff]  ;;  %v12924_v35 = vld [vmem:[#allocation77_spill] sm:$0xff]  ;;  %v12023_v41 = vpop.f32.mrf.mxu0  ;;  %v12925_v27 = vld [vmem:[#allocation99_spill] sm:$0xff] }
 0x331   : > { %v6425_v2 = vpop.f32.mrf.mxu1  ;;  %v1117_v44 = vadd.f32 %v12922_v57, %v12921_v59  ;;  %v5307_v12 = vadd.f32 %v12924_v35, %v12923_v32  ;;  %v5754_v34 = vadd.f32 %v12926_v3, %v5304_v53  ;;  %v12934_v25 = vld [vmem:[#allocation143_spill] sm:$0xff]  ;;  %v5309_v18 = vadd.f32 %v12936_v52, %v12935_v30  ;;  %v12939_v53 = vld [vmem:[#allocation69_spill] sm:$0xff] }
 0x332   : > { %6647 = vst.msk [vmem:[%s11923_s24 + $0x38] sm:$0xff] %vm620_vm0, %v6615_v54  ;;  %v6614_v56 = vadd.f32 %v6582_v5, %v1228_v36  ;;  %v6585_v63 = vmax.f32 %v6553_v20, 0.0  ;;  %v6552_v13 = vadd.f32 %v6425_v2, %v6102_v11  ;;  %v6106_v36 = vadd.f32 %v12925_v27, %v5752_v22  ;;  %v12927_v11 = vld [vmem:[#allocation28_spill] sm:$0xff]  ;;  %v12928_v54 = vld [vmem:[#allocation78_spill] sm:$0xff]  ;;  %v12940_v16 = vld [vmem:[#allocation127_spill] sm:$0xff] }
 0x333   : > { %v8375_v17 = vpop.f32.mrf.mxu1  ;;  %v1235_v23 = vadd.f32 %v11905_v61, %v12927_v11  ;;  %v5757_v5 = vadd.f32 %v12928_v54, %v5307_v12  ;;  %v12929_v20 = vld [vmem:[#allocation84_spill] sm:$0xff]  ;;  %v6108_v42 = vadd.f32 %v11892_v19, %v5754_v34  ;;  %v12942_v59 = vld [vmem:[#allocation37_spill] sm:$0xff]  ;;  %v12948_v54 = vld [vmem:[#allocation135_spill] sm:$0xff] }
 0x334   : > { %6646 = vst.msk [vmem:[%s11923_s24 + $0x30] sm:$0xff] %vm620_vm0, %v6614_v56  ;;  %v6617_v45 = vadd.f32 %v6585_v63, %v1231_v1  ;;  %v6584_v47 = vmax.f32 %v6552_v13, 0.0  ;;  %v6555_v6 = vadd.f32 %v8375_v17, %v6105_v15  ;;  %v5306_v1 = vadd.f32 %v12930_v14, %v12929_v20  ;;  %v12931_v63 = vld [vmem:[#allocation9_spill] sm:$0xff]  ;;  %v12043_v17 = vpop.f32.mrf.mxu0  ;;  %v12945_v27 = vld [vmem:[#allocation144_spill] sm:$0xff] }
 0x335   : > { %v6435_v62 = vpop.f32.mrf.mxu1  ;;  %v6109_v13 = vadd.f32 %v12931_v63, %v5755_v0  ;;  %v1234_v15 = vadd.f32 %v11905_v61, %v1117_v44  ;;  %v5759_v0 = vadd.f32 %v12940_v16, %v5309_v18  ;;  %v12943_v44 = vld [vmem:[#allocation94_spill] sm:$0xff]  ;;  %v12944_v32 = vld [vmem:[#allocation73_spill] sm:$0xff] }
 0x336   : > { %6649 = vst.msk [vmem:[%s11923_s24 + $0x48] sm:$0xff] %vm620_vm0, %v6617_v45  ;;  %v6616_v37 = vadd.f32 %v6584_v47, %v1230_v4  ;;  %v6587_v50 = vmax.f32 %v6555_v6, 0.0  ;;  %v6554_v49 = vadd.f32 %v6435_v62, %v6104_v46  ;;  %v12932_v4 = vld [vmem:[#allocation33_spill] sm:$0xff]  ;;  %v5756_v22 = vadd.f32 %v12934_v25, %v5306_v1  ;;  %v12061_v12 = vpop.f32.mrf.mxu0 }
 0x337   : > { %v8378_v48 = vpop.f32.mrf.mxu1  ;;  %v1127_v51 = vadd.f32 %v12933_v29, %v12932_v4  ;;  %v5308_v62 = vadd.f32 %v12939_v53, %v12938_v10  ;;  %v5311_v35 = vadd.f32 %v12944_v32, %v12943_v44  ;;  %v12947_v11 = vld [vmem:[#allocation145_spill] sm:$0xff]  ;;  %v12958_v53 = vld [vmem:[#allocation2_spill] sm:$0xff] }
 0x338   : > { %6648 = vst.msk [vmem:[%s11923_s24 + $0x40] sm:$0xff] %vm620_vm0, %v6616_v37  ;;  %v6619_v8 = vadd.f32 %v6587_v50, %v1233_v33  ;;  %v6586_v7 = vmax.f32 %v6554_v49, 0.0  ;;  %v6557_v55 = vadd.f32 %v8378_v48, %v6107_v43  ;;  %v12937_v33 = vld [vmem:[#allocation32_spill] sm:$0xff]  ;;  %v6111_v43 = vadd.f32 %v11911_v26, %v5757_v5  ;;  %v12951_v63 = vld [vmem:[#allocation41_spill] sm:$0xff]  ;;  %v12963_v44 = vld [vmem:[#allocation90_spill] sm:$0xff] }
 0x339   : > { %v6445_v21 = vpop.f32.mrf.mxu1  ;;  %v1237_v39 = vadd.f32 %v11905_v61, %v12937_v33  ;;  %v1236_v19 = vadd.f32 %v11905_v61, %v1127_v51  ;;  %v6110_v26 = vadd.f32 %v11931_v31, %v5756_v22  ;;  %v12949_v5 = vld [vmem:[#allocation76_spill] sm:$0xff]  ;;  %v12953_v29 = vld [vmem:[#allocation97_spill] sm:$0xff]  ;;  %v12954_v51 = vld [vmem:[#allocation83_spill] sm:$0xff]  ;;  %v6055_v22 = vpop.f32.mrf.mxu0 }
 0x33a   : > { %6651 = vst.msk [vmem:[%s11923_s24 + $0x58] sm:$0xff] %vm620_vm0, %v6619_v8  ;;  %v6618_v24 = vadd.f32 %v6586_v7, %v1232_v40  ;;  %v6589_v2 = vmax.f32 %v6557_v55, 0.0  ;;  %v6556_v56 = vadd.f32 %v6445_v21, %v6106_v36  ;;  %v12941_v40 = vld [vmem:[#allocation36_spill] sm:$0xff]  ;;  %v5758_v36 = vadd.f32 %v12945_v27, %v5308_v62  ;;  %v12946_v7 = vld [vmem:[#allocation35_spill] sm:$0xff] }
 0x33b   : > { %v8381_v45 = vpop.f32.mrf.mxu1  ;;  %v1137_v57 = vadd.f32 %v12942_v59, %v12941_v40  ;;  %v1239_v55 = vadd.f32 %v11905_v61, %v12946_v7  ;;  %v5310_v20 = vadd.f32 %v12949_v5, %v12948_v54  ;;  %v5313_v25 = vadd.f32 %v12954_v51, %v12953_v29  ;;  %v8349_v59 = vpop.f32.mrf.mxu0  ;;  %v12964_v27 = vld [vmem:[#allocation43_spill] sm:$0xff]  ;;  %v12967_v7 = vld [vmem:[#allocation96_spill] sm:$0xff] }
 0x33c   : > { %6650 = vst.msk [vmem:[%s11923_s24 + $0x50] sm:$0xff] %vm620_vm0, %v6618_v24  ;;  %v6621_v47 = vadd.f32 %v6589_v2, %v1235_v23  ;;  %v6588_v6 = vmax.f32 %v6556_v56, 0.0  ;;  %v6559_v46 = vadd.f32 %v8381_v45, %v6109_v13  ;;  %v5761_v23 = vadd.f32 %v12947_v11, %v5311_v35  ;;  %v12950_v56 = vld [vmem:[#allocation40_spill] sm:$0xff] }
 0x33d   : > { %v6455_v28 = vpop.f32.mrf.mxu1  ;;  %v6113_v24 = vadd.f32 %v11947_v38, %v5759_v0  ;;  %v1238_v2 = vadd.f32 %v11905_v61, %v1137_v57  ;;  %v1147_v13 = vadd.f32 %v12951_v63, %v12950_v56  ;;  %v6112_v38 = vadd.f32 %v11967_v60, %v5758_v36  ;;  %v12959_v0 = vld [vmem:[#allocation44_spill] sm:$0xff]  ;;  %v12971_v56 = vld [vmem:[#allocation113_spill] sm:$0xff]  ;;  %v12972_v63 = vld [vmem:[#allocation103_spill] sm:$0xff] }
 0x33e   : > { %6653 = vst.msk [vmem:[%s11923_s24 + $0x68] sm:$0xff] %vm620_vm0, %v6621_v47  ;;  %v6620_v37 = vadd.f32 %v6588_v6, %v1234_v15  ;;  %v6591_v50 = vmax.f32 %v6559_v46, 0.0  ;;  %v6558_v49 = vadd.f32 %v6455_v28, %v6108_v42  ;;  %v12952_v15 = vld [vmem:[#allocation80_spill] sm:$0xff]  ;;  %v12955_v47 = vld [vmem:[#allocation39_spill] sm:$0xff]  ;;  %v12957_v42 = vld [vmem:[#allocation86_spill] sm:$0xff]  ;;  %v6115_v10 = vadd.f32 %v11985_v58, %v5761_v23 }
 0x33f   : > { %v8384_v48 = vpop.f32.mrf.mxu1  ;;  %v5760_v4 = vadd.f32 %v12952_v15, %v5310_v20  ;;  %v1241_v6 = vadd.f32 %v11905_v61, %v12955_v47  ;;  %v12956_v46 = vld [vmem:[#allocation136_spill] sm:$0xff]  ;;  %v5763_v62 = vadd.f32 %v12958_v53, %v5313_v25  ;;  %v1240_v60 = vadd.f32 %v11905_v61, %v1147_v13  ;;  %v12973_v25 = vld [vmem:[#allocation46_spill] sm:$0xff] }
 0x340   : > { %6652 = vst.msk [vmem:[%s11923_s24 + $0x60] sm:$0xff] %vm620_vm0, %v6620_v37  ;;  %v6623_v3 = vadd.f32 %v6591_v50, %v1237_v39  ;;  %v6590_v34 = vmax.f32 %v6558_v49, 0.0  ;;  %v6561_v8 = vadd.f32 %v8384_v48, %v6111_v43  ;;  %v5312_v33 = vadd.f32 %v12957_v42, %v12956_v46  ;;  %v12960_v37 = vld [vmem:[#allocation45_spill] sm:$0xff]  ;;  %v12978_v53 = vld [vmem:[#allocation52_spill] sm:$0xff] }
 0x341   : > { %v6465_v14 = vpop.f32.mrf.mxu1  ;;  %v1157_v50 = vadd.f32 %v12960_v37, %v12959_v0  ;;  %v12961_v49 = vld [vmem:[#allocation137_spill] sm:$0xff]  ;;  %v6114_v58 = vadd.f32 %v12005_v9, %v5760_v4  ;;  %v1243_v36 = vadd.f32 %v11905_v61, %v12964_v27  ;;  %v6117_v5 = vadd.f32 %v12023_v41, %v5763_v62 }
 0x342   : > { %6655 = vst.msk [vmem:[%s11923_s24 + $0x78] sm:$0xff] %vm620_vm0, %v6623_v3  ;;  %v6622_v31 = vadd.f32 %v6590_v34, %v1236_v19  ;;  %v6593_v1 = vmax.f32 %v6561_v8, 0.0  ;;  %v6560_v21 = vadd.f32 %v6465_v14, %v6110_v26  ;;  %v12962_v19 = vld [vmem:[#allocation93_spill] sm:$0xff]  ;;  %v5762_v32 = vadd.f32 %v12963_v44, %v5312_v33  ;;  %v12965_v3 = vld [vmem:[#allocation128_spill] sm:$0xff]  ;;  %v12966_v8 = vld [vmem:[#allocation138_spill] sm:$0xff] }
 0x343   : > { %v8387_v30 = vpop.f32.mrf.mxu1  ;;  %v5315_v40 = vadd.f32 %v12962_v19, %v12961_v49  ;;  %v1242_v20 = vadd.f32 %v11905_v61, %v1157_v50  ;;  %v12968_v14 = vld [vmem:[#allocation47_spill] sm:$0xff]  ;;  %v5317_v13 = vadd.f32 %v12972_v63, %v12971_v56  ;;  %v12983_v44 = vld [vmem:[#allocation132_spill] sm:$0xff] }
 0x344   : > { %6654 = vst.msk [vmem:[%s11923_s24 + $0x70] sm:$0xff] %vm620_vm0, %v6622_v31  ;;  %v6625_v52 = vadd.f32 %v6593_v1, %v1239_v55  ;;  %v6592_v18 = vmax.f32 %v6560_v21, 0.0  ;;  %v6563_v45 = vadd.f32 %v8387_v30, %v6113_v24  ;;  %v5314_v55 = vadd.f32 %v12967_v7, %v12966_v8  ;;  %v12969_v31 = vld [vmem:[#allocation48_spill] sm:$0xff]  ;;  %v12986_v7 = vld [vmem:[#allocation55_spill] sm:$0xff] }
 0x345   : > { %v6475_v39 = vpop.f32.mrf.mxu1  ;;  %v5765_v34 = vadd.f32 %v12965_v3, %v5315_v40  ;;  %v1167_v1 = vadd.f32 %v12969_v31, %v12968_v14  ;;  %v12970_v21 = vld [vmem:[#allocation100_spill] sm:$0xff]  ;;  %v6116_v41 = vadd.f32 %v12043_v17, %v5762_v32  ;;  %v1245_v30 = vadd.f32 %v11905_v61, %v12973_v25 }
 0x346   : > { %6657 = vst.msk [vmem:[%s11923_s24 + $0x88] sm:$0xff] %vm620_vm0, %v6625_v52  ;;  %v6624_v28 = vadd.f32 %v6592_v18, %v1238_v2  ;;  %v6595_v43 = vmax.f32 %v6563_v45, 0.0  ;;  %v6562_v16 = vadd.f32 %v6475_v39, %v6112_v38  ;;  %v5764_v24 = vadd.f32 %v12970_v21, %v5314_v55  ;;  %v6065_v2 = vpop.f32.mrf.mxu0  ;;  %v12974_v52 = vld [vmem:[#allocation116_spill] sm:$0xff]  ;;  %v12975_v18 = vld [vmem:[#allocation105_spill] sm:$0xff] }
 0x347   : > { %v8390_v57 = vpop.f32.mrf.mxu1  ;;  %v5316_v45 = vadd.f32 %v12975_v18, %v12974_v52  ;;  %v6119_v47 = vadd.f32 %v12061_v12, %v5765_v34  ;;  %v1244_v17 = vadd.f32 %v11905_v61, %v1167_v1  ;;  %v12981_v12 = vld [vmem:[#allocation131_spill] sm:$0xff]  ;;  %v12987_v55 = vld [vmem:[#allocation56_spill] sm:$0xff] }
 0x348   : > { %6656 = vst.msk [vmem:[%s11923_s24 + $0x80] sm:$0xff] %vm620_vm0, %v6624_v28  ;;  %v6627_v35 = vadd.f32 %v6595_v43, %v1241_v6  ;;  %v6594_v48 = vmax.f32 %v6562_v16, 0.0  ;;  %v6565_v26 = vadd.f32 %v8390_v57, %v6115_v10  ;;  %v12976_v6 = vld [vmem:[#allocation5_spill] sm:$0xff]  ;;  %v12977_v10 = vld [vmem:[#allocation51_spill] sm:$0xff]  ;;  %v8352_v28 = vpop.f32.mrf.mxu0  ;;  %v12979_v43 = vld [vmem:[#allocation122_spill] sm:$0xff]  ;;  %v6118_v37 = vadd.f32 %v6055_v22, %v5764_v24 }
 0x349   : > { %v6485_v11 = vpop.f32.mrf.mxu1  ;;  %v5767_v46 = vadd.f32 %v12976_v6, %v5317_v13  ;;  %v1177_v62 = vadd.f32 %v12978_v53, %v12977_v10  ;;  %v12980_v16 = vld [vmem:[#allocation111_spill] sm:$0xff]  ;;  %v5766_v50 = vadd.f32 %v12981_v12, %v5316_v45  ;;  %v12982_v57 = vld [vmem:[#allocation50_spill] sm:$0xff] }
 0x34a   : > { %6659 = vst.msk [vmem:[%s11923_s24 + $0x98] sm:$0xff] %vm620_vm0, %v6627_v35  ;;  %v6626_v9 = vadd.f32 %v6594_v48, %v1240_v60  ;;  %v6597_v23 = vmax.f32 %v6565_v26, 0.0  ;;  %v6564_v54 = vadd.f32 %v6485_v11, %v6114_v58  ;;  %v5319_v60 = vadd.f32 %v12980_v16, %v12979_v43  ;;  %v12984_v35 = vld [vmem:[#allocation108_spill] sm:$0xff]  ;;  %v12992_v13 = vld [vmem:[#allocation126_spill] sm:$0xff] }
 0x34b   : > { %v8393_v15 = vpop.f32.mrf.mxu1  ;;  %v1247_v58 = vadd.f32 %v11905_v61, %v12982_v57  ;;  %v12985_v48 = vld [vmem:[#allocation104_spill] sm:$0xff]  ;;  %v6121_v34 = vadd.f32 %v8349_v59, %v5767_v46  ;;  %v1246_v8 = vadd.f32 %v11905_v61, %v1177_v62  ;;  %v1187_v11 = vadd.f32 %v12987_v55, %v12986_v7  ;;  %v12991_v59 = vld [vmem:[#allocation54_spill] sm:$0xff]  ;;  %v12998_v62 = vld [vmem:[#allocation57_spill] sm:$0xff] }
 0x34c   : > { %6658 = vst.msk [vmem:[%s11923_s24 + $0x90] sm:$0xff] %vm620_vm0, %v6626_v9  ;;  %v6629_v4 = vadd.f32 %v6597_v23, %v1243_v36  ;;  %v6596_v29 = vmax.f32 %v6564_v54, 0.0  ;;  %v6567_v51 = vadd.f32 %v8393_v15, %v6117_v5  ;;  %v5769_v32 = vadd.f32 %v12983_v44, %v5319_v60  ;;  %v6075_v9 = vpop.f32.mrf.mxu0  ;;  %v12988_v23 = vld [vmem:[#allocation4_spill] sm:$0xff]  ;;  %v12993_v15 = vld [vmem:[#allocation125_spill] sm:$0xff] }
 0x34d   : > { %v6495_v38 = vpop.f32.mrf.mxu1  ;;  %v5318_v26 = vadd.f32 %v12985_v48, %v12984_v35  ;;  %v12989_v5 = vld [vmem:[#allocation140_spill] sm:$0xff]  ;;  %v6120_v56 = vadd.f32 %v6065_v2, %v5766_v50  ;;  %v1249_v63 = vadd.f32 %v11905_v61, %v12991_v59  ;;  %v1248_v45 = vadd.f32 %v11905_v61, %v1187_v11  ;;  %v12995_v2 = vld [vmem:[#allocation58_spill] sm:$0xff]  ;;  %v12999_v50 = vld [vmem:[#allocation61_spill] sm:$0xff] }
 0x34e   : > { %6661 = vst.msk [vmem:[%s11923_s24 + $0xa8] sm:$0xff] %vm620_vm0, %v6629_v4  ;;  %v6628_v42 = vadd.f32 %v6596_v29, %v1242_v20  ;;  %v6599_v33 = vmax.f32 %v6567_v51, 0.0  ;;  %v6566_v39 = vadd.f32 %v6495_v38, %v6116_v41  ;;  %v12990_v20 = vld [vmem:[#allocation119_spill] sm:$0xff]  ;;  %v5320_v4 = vadd.f32 %v12993_v15, %v12992_v13  ;;  %v12994_v41 = vld [vmem:[#allocation129_spill] sm:$0xff]  ;;  %v8355_v6 = vpop.f32.mrf.mxu0 }
 0x34f   : > { %v8396_v0 = vpop.f32.mrf.mxu1  ;;  %v5768_v54 = vadd.f32 %v12988_v23, %v5318_v26  ;;  %v5321_v14 = vadd.f32 %v12990_v20, %v12989_v5  ;;  %v6123_v51 = vadd.f32 %v8352_v28, %v5769_v32  ;;  %v12996_v38 = vld [vmem:[#allocation59_spill] sm:$0xff]  ;;  %v1251_v28 = vadd.f32 %v11905_v61, %v12998_v62  ;;  %v13001_v26 = vld [vmem:[#allocation60_spill] sm:$0xff] }
 0x350   : > { %6660 = vst.msk [vmem:[%s11923_s24 + $0xa0] sm:$0xff] %vm620_vm0, %v6628_v42  ;;  %v6631_v49 = vadd.f32 %v6599_v33, %v1245_v30  ;;  %v6598_v19 = vmax.f32 %v6566_v39, 0.0  ;;  %v6569_v40 = vadd.f32 %v8396_v0, %v6119_v47  ;;  %v1197_v47 = vadd.f32 %v12996_v38, %v12995_v2  ;;  %v12997_v33 = vld [vmem:[#allocation133_spill] sm:$0xff] }
 0x351   : > { %v6505_v27 = vpop.f32.mrf.mxu1  ;;  %v5771_v25 = vadd.f32 %v12994_v41, %v5321_v14  ;;  %v6122_v42 = vadd.f32 %v6075_v9, %v5768_v54  ;;  %v5770_v39 = vadd.f32 %v12997_v33, %v5320_v4 }
 0x352   : > { %6663 = vst.msk [vmem:[%s11923_s24 + $0xb8] sm:$0xff] %vm620_vm0, %v6631_v49  ;;  %v6630_v22 = vadd.f32 %v6598_v19, %v1244_v17  ;;  %v6601_v36 = vmax.f32 %v6569_v40, 0.0  ;;  %v6568_v3 = vadd.f32 %v6505_v27, %v6118_v37  ;;  %v1250_v12 = vadd.f32 %v11905_v61, %v1197_v47  ;;  %v13000_v49 = vld [vmem:[#allocation62_spill] sm:$0xff]  ;;  %v6085_v40 = vpop.f32.mrf.mxu0 }
 0x353   : > { %v8399_v31 = vpop.f32.mrf.mxu1  ;;  %v6125_v37 = vadd.f32 %v8355_v6, %v5771_v25  ;;  %v1207_v19 = vadd.f32 %v13000_v49, %v12999_v50  ;;  %v6124_v35 = vadd.f32 %v6085_v40, %v5770_v39  ;;  %v1253_v27 = vadd.f32 %v11905_v61, %v13001_v26 }
 0x354   : > { %6662 = vst.msk [vmem:[%s11923_s24 + $0xb0] sm:$0xff] %vm620_vm0, %v6630_v22  ;;  %v6633_v1 = vadd.f32 %v6601_v36, %v1247_v58  ;;  %v6600_v21 = vmax.f32 %v6568_v3, 0.0  ;;  %v6571_v24 = vadd.f32 %v8399_v31, %v6121_v34 }
 0x355   : > { %v6515_v29 = vpop.f32.mrf.mxu1  ;;  %v1252_v34 = vadd.f32 %v11905_v61, %v1207_v19 }
 0x356   : > { %6665 = vst.msk [vmem:[%s11923_s24 + $0xc8] sm:$0xff] %vm620_vm0, %v6633_v1  ;;  %v6632_v30 = vadd.f32 %v6600_v21, %v1246_v8  ;;  %v6603_v52 = vmax.f32 %v6571_v24, 0.0  ;;  %v6570_v18 = vadd.f32 %v6515_v29, %v6120_v56 }
 0x357   : > { %v8402_v46 = vpop.f32.mrf.mxu1 }
 0x358   : > { %6664 = vst.msk [vmem:[%s11923_s24 + $0xc0] sm:$0xff] %vm620_vm0, %v6632_v30  ;;  %v6635_v17 = vadd.f32 %v6603_v52, %v1249_v63  ;;  %v6602_v10 = vmax.f32 %v6570_v18, 0.0  ;;  %v6573_v53 = vadd.f32 %v8402_v46, %v6123_v51 }
 0x359   : > { %v6525_v43 = vpop.f32.mrf.mxu1 }
 0x35a   : > { %6667 = vst.msk [vmem:[%s11923_s24 + $0xd8] sm:$0xff] %vm620_vm0, %v6635_v17  ;;  %v6634_v16 = vadd.f32 %v6602_v10, %v1248_v45  ;;  %v6605_v60 = vmax.f32 %v6573_v53, 0.0  ;;  %v6572_v0 = vadd.f32 %v6525_v43, %v6122_v42 }
 0x35b   : > { %v8405_v57 = vpop.f32.mrf.mxu1 }
 0x35c   : > { %6666 = vst.msk [vmem:[%s11923_s24 + $0xd0] sm:$0xff] %vm620_vm0, %v6634_v16  ;;  %v6637_v58 = vadd.f32 %v6605_v60, %v1251_v28  ;;  %v6604_v44 = vmax.f32 %v6572_v0, 0.0  ;;  %v6575_v32 = vadd.f32 %v8405_v57, %v6125_v37 }
 0x35d   : > { %v6535_v48 = vpop.f32.mrf.mxu1 }
 0x35e   : > { %6669 = vst.msk [vmem:[%s11923_s24 + $0xe8] sm:$0xff] %vm620_vm0, %v6637_v58  ;;  %v6636_v22 = vadd.f32 %v6604_v44, %v1250_v12  ;;  %v6607_v36 = vmax.f32 %v6575_v32, 0.0  ;;  %v6574_v3 = vadd.f32 %v6535_v48, %v6124_v35 }
 0x360   : > { %6668 = vst.msk [vmem:[%s11923_s24 + $0xe0] sm:$0xff] %vm620_vm0, %v6636_v22  ;;  %v6639_v8 = vadd.f32 %v6607_v36, %v1253_v27  ;;  %v6606_v7 = vmax.f32 %v6574_v3, 0.0 }
 0x362   : > { %6671 = vst.msk [vmem:[%s11923_s24 + $0xf8] sm:$0xff] %vm620_vm0, %v6639_v8  ;;  %v6638_v55 = vadd.f32 %v6606_v7, %v1252_v34 }
 0x364   : > { %6670 = vst.msk [vmem:[%s11923_s24 + $0xf0] sm:$0xff] %vm620_vm0, %v6638_v55 }
 0x365 PF: > { %s25_s20 = sadd.s32 1, %s8455_s20   ;;  %s13002_s18 = smov %s8451_s19 }
 0x366   : > { %p22_p5 = scmp.ge.s32.totalorder %s25_s20, 4   ;;  %s13003_s19 = smov %s13005_s21 }
 0x368   :  { %24 = sbr.rel (!%p22_p5) target bundleno = 2 (0x2), region = 113 }

// kernel: ccfm_forward.13
= control target key start
LH: loop header
LB: loop body
LE: loop exit
PB: predicated region body
PF: predicated region fallthrough
CT: control target
= control target key end

     0   :  { %s2636_s0 = inlined_call_operand.vmem [shape: f32[2,16,8], index: 0, kind: input, shape index: {}]   ;;  %s2637_s1 = inlined_call_operand.vmem [shape: f32[2,16,8], index: 1, kind: input, shape index: {}]   ;;  %s2638_s2 = inlined_call_operand.vmem [shape: f32[16,1], index: 2, kind: input, shape index: {}]   ;;  %s2639_s3 = inlined_call_operand.vmem [shape: f32[16,1], index: 3, kind: input, shape index: {}]   ;;  %s2640_s4 = inlined_call_operand.vmem [shape: f32[16,1], index: 4, kind: input, shape index: {}]   ;;  %s2641_s5 = inlined_call_operand.vmem [shape: f32[16,1], index: 5, kind: input, shape index: {}]   ;;  %s2642_s6 = inlined_call_operand.vmem [shape: f32[8,8], index: 6, kind: input, shape index: {}]   ;;  %s2643_s7 = inlined_call_operand.vmem [shape: f32[8,8], index: 7, kind: input, shape index: {}]   ;;  %s2644_s8 = inlined_call_operand.vmem [shape: f32[1,8], index: 8, kind: input, shape index: {}]   ;;  %s2645_s9 = inlined_call_operand.vmem [shape: f32[8,8], index: 9, kind: input, shape index: {}]   ;;  %s2646_s10 = inlined_call_operand.vmem [shape: f32[8,8], index: 10, kind: input, shape index: {}]   ;;  %s2647_s11 = inlined_call_operand.vmem [shape: f32[1,8], index: 11, kind: input, shape index: {}]   ;;  %s2648_s12 = inlined_call_operand.vmem [shape: f32[72,8], index: 12, kind: input, shape index: {}]   ;;  %s2649_s13 = inlined_call_operand.vmem [shape: f32[8,8], index: 13, kind: input, shape index: {}]   ;;  %s2650_s14 = inlined_call_operand.vmem [shape: f32[1,8], index: 14, kind: input, shape index: {}]   ;;  %s2651_s15 = inlined_call_operand.hbm [shape: f32[2,16,8], index: 15, kind: output, shape index: {}]  }
   0x1   :  { %2655 = sst [smem:[#allocation8_spill]] %s2642_s6 }
   0x2   :  { %2656 = sst [smem:[#allocation9_spill]] %s2643_s7 }
   0x3   :  { %2657 = sst [smem:[#allocation10_spill]] %s2645_s9 }
   0x4   :  { %20 = vsyncpa [#allocation3], 0 }
   0x5   :  { %22 = vsyncpa [#allocation3 + $0x1], 0  ;;  %s2337_s18 = smov 0   ;;  %s2339_s19 = smov 0  }
   0x6   :  { %s2341_s20 = smov 0   ;;  %s2343_s21 = smov 0  }
   0x7   :  { %s2345_s22 = smov 0   ;;  %s2347_s23 = smov 0  }
   0x8 LB: > { %2658 = sst [smem:[#allocation5_spill]] %s2231_s18  ;;  %s1954_s24 = sadd.s32 4294967295, %s2251_s23   ;;  %s2251_s23 = sphi %s2347_s23, %s28_s23   ;;  %s2247_s22 = sphi %s2345_s22, %s2668_s22   ;;  %s2243_s21 = sphi %s2343_s21, %s2667_s21   ;;  %s2239_s20 = sphi %s2341_s20, %s2671_s20   ;;  %s2235_s19 = sphi %s2339_s19, %s2670_s19   ;;  %s2231_s18 = sphi %s2337_s18, %s2669_s18  }
   0x9   : > { %2659 = sst [smem:[#allocation6_spill]] %s2247_s22  ;;  %s1955_s25 = sadd.s32 4294967294, %s2251_s23  }
   0xa   : > { %s40_s26 = sadd.s32 1, %s2247_s22  ;;  %s378_s27 = sadd.s32 1, %s2239_s20 }
   0xb   : > { %p42_p0 = scmp.ge.s32.totalorder %s40_s26, 2  ;;  %p388_p1 = scmp.ne.s32.totalorder %s2239_s20, %s2235_s19 }
   0xc   : > { %p389_p2 = scmp.eq.s32.totalorder %s1954_s24, 1  ;;  %p394_p3 = scmp.ne.s32.totalorder %s2235_s19, %s2231_s18 }
   0xd   : > { %s2673_s26 = smov (%p42_p0, %s40_s26), 0  ;;  %p395_p5 = scmp.eq.s32.totalorder %s1955_s25, 1 }
   0xe   : > { %2660 = sst [smem:[#allocation7_spill]] %s2673_s26  ;;  %p2377_p4 = por %p389_p2, %p388_p1 }
   0xf   : > { %s373_s29 = ssub.s32 %s2247_s22, %s2673_s26  ;;  %p1958_p6 = scmp.ge.s32.totalorder %s2251_s23, 1 }
  0x10   : > { %p376_p7 = scmp.eq.s32.totalorder %s373_s29, 0  ;;  %p2384_p8 = por %p395_p5, %p394_p3 }
  0x11   : > { %p478_p9 = scmp.lt.s32.totalorder %s2251_s23, 3 }
  0x12   : > { %s2390_s16 = scalar_select %p376_p7, %s2239_s20, %s378_s27  }
  0x13   : > { %p479_p10 = pnand %p1958_p6, %p478_p9 }
  0x14   : > { %s2663_s7 = sld [smem:[#allocation9_spill]] (!%p479_p10)  ;;  %p540_p11 = scmp.lt.s32.totalorder (!%p479_p10), %s2243_s21, 1 }
  0x15   : > { %482 = sbr.rel (%p479_p10) target bundleno = 481 (0x1e1), region = 80  ;;  %s2664_s6 = sld [smem:[#allocation8_spill]] (!%p479_p10) }
  0x16   : > { %s2665_s9 = sld [smem:[#allocation10_spill]] (!%p479_p10)  ;;  %s2002_s22 = sshll.u32 (!%p479_p10), %s2243_s21, 8 }
  0x17   : > { %s2583_s24 = scalar_lea.hbm (!%p479_p10), %s2651_s15, %s2002_s22 }
  0x1a   : > { %v565_v0 = vld [vmem:[%s2663_s7] sm:$0xff]  ;;  %s541_s17 = scalar_select %p540_p11, %s2243_s21, 1  ;;  %vm566_vm0 = vcmask 64512   ;;  %v2253_v6 = vmov 0   ;;  %v907_v11 = vld [vmem:[%s2640_s4 + $0x8] sm:$0xff]  ;;  %v2456_v20 = vld [vmem:[%s2648_s12 + $0x10] sm:$0xff]  ;;  %v901_v28 = vlaneseq }
  0x1b   : > { %v564_v1 = vld [vmem:[%s2664_s6] sm:$0xff]  ;;  %2045 = vmatprep.subr.mxu0 %v565_v0  ;;  %2173 = vset.pattern.permute.xlu0 %v2253_v6  ;;  %v935_v12 = vld [vmem:[%s2638_s2 + $0x8] sm:$0xff]  ;;  %v1319_v47 = vld [vmem:[%s2648_s12 + $0x18] sm:$0xff] }
  0x1c   : > { %v739_v2 = vld [vmem:[%s2646_s10] sm:$0xff]  ;;  %2050 = vmatprep.subr.mxu1 %v564_v1  ;;  %2046 = vmatpush3.msra.mxu0 %v565_v0  ;;  %s2000_s26 = sshll.u32 %s541_s17, 4  ;;  %v937_v14 = vld [vmem:[%s2639_s3 + $0x8] sm:$0xff]  ;;  %v2470_v38 = vshrl.u32 %v901_v28, 7 }
  0x1d   : > { %v738_v3 = vld [vmem:[%s2665_s9] sm:$0xff]  ;;  %2051 = vmatpush3.msra.mxu1 %v564_v1  ;;  %2055 = vmatprep.subr.mxu0 %v739_v2  ;;  %s557_s27 = scalar_lea.vmem %s2637_s1, %s2000_s26  ;;  %s547_s7 = scalar_lea.vmem %s2636_s0, %s2000_s26  ;;  %v921_v16 = vld [vmem:[%s2641_s5 + $0x8] sm:$0xff] }
  0x1e   : > { %v906_v4 = vld [vmem:[%s2640_s4] sm:$0xff]  ;;  %2060 = vmatprep.subr.mxu1 %v738_v3  ;;  %2174 = vset.pattern.permute.xlu1 %v2253_v6  ;;  %v563_v8 = vld [vmem:[%s557_s27 + $0x8] sm:$0xff]  ;;  %vm903_vm1 = vcmp.lt.s32.totalorder %v2470_v38, 4  ;;  %vm1029_vm2 = vcmp.lt.s32.totalorder %v2470_v38, 1  ;;  %vm1214_vm3 = vcmp.lt.s32.totalorder %v2470_v38, 7  ;;  %s536_s9 = sand.u32 1, %s2235_s19  }
  0x1f   : > { %v934_v5 = vld [vmem:[%s2638_s2] sm:$0xff]  ;;  %910 = vperm.xlu0 %2173, %v906_v4   ;;  %v561_v10 = vld [vmem:[%s547_s7 + $0x8] sm:$0xff]  ;;  %s1959_s18 = sshll.u32 %s536_s9, 4  ;;  %s2591_s21 = scalar_lea.sflag [#allocation3], %s536_s9 }
  0x20   : > { %1034 = vperm.xlu1 %2174, %v934_v5   ;;  %v562_v7 = vld [vmem:[%s557_s27] sm:$0xff]  ;;  %v1128_v18 = vld [vmem:[%s2648_s12 + $0x8] sm:$0xff]  ;;  %s538_s29 = scalar_lea.vmem [#allocation2], %s1959_s18  ;;  %s2254_s18 = smov [#allocation2]  }
  0x21   : > { %v560_v9 = vld [vmem:[%s547_s7] sm:$0xff]  ;;  %2047 = vmatprep.mubr.msk.f32.mxu0 %vm566_vm0, %v562_v7  ;;  %v1487_v59 = vld [vmem:[%s2648_s12 + $0x28] sm:$0xff]  ;;  %s1857_s27 = sshll.u32 %s538_s29, 4  ;;  %s2179_s25 = sshll.u32 %s2254_s18, 4  ;;  %s2585_s27 = int_to_ptr.vmem [resolvable:$true] %s1857_s27  ;;  %s2180_s25 = int_to_ptr.vmem [resolvable:$false] %s2179_s25 }
  0x22   : > { %2052 = vmatprep.mubr.msk.f32.mxu1 %vm566_vm0, %v560_v9  ;;  %2048 = vmatmul.mubr.msk.f32.vlgmr.msra.gmra.mxu0 %vm566_vm0, %v563_v8  ;;  %v936_v13 = vld [vmem:[%s2639_s3] sm:$0xff]  ;;  %s2175_s6 = scalar_lea.vmem %s2585_s27, 256  ;;  %s2181_s26 = scalar_lea.vmem %s2180_s25, 512 }
  0x23   : > { %2053 = vmatmul.mubr.msk.f32.vlgmr.msra.gmra.mxu1 %vm566_vm0, %v561_v10  ;;  %2056 = vmatpush3.msra.mxu0 %v739_v2  ;;  %v920_v15 = vld [vmem:[%s2641_s5] sm:$0xff]  ;;  %p2176_p12 = scmp.ne.s32.totalorder %s2585_s27, %s2175_s6  ;;  %p2182_p1 = scmp.lt.s32.totalorder %s2585_s27, %s2180_s25 }
  0x24   : > { %2061 = vmatpush3.msra.mxu1 %v738_v3  ;;  %2057 = vmatprep.mubr.msk.f32.mxu0 %vm566_vm0, %v562_v7  ;;  %v938_v17 = vld [vmem:[%s2649_s13] sm:$0xff]  ;;  %p2183_p2 = scmp.lt.s32.totalorder %s2181_s26, %s2175_s6 }
  0x25   : > { %2062 = vmatprep.mubr.msk.f32.mxu1 %vm566_vm0, %v560_v9  ;;  %915 = vperm.xlu0 %2173, %v907_v11   ;;  %v1044_v19 = vld [vmem:[%s2648_s12] sm:$0xff]  ;;  %v1661_v9 = vld [vmem:[%s2648_s12 + $0x38] sm:$0xff]  ;;  %p2177_p13 = pnand %p2176_p12, %p2377_p4 }
  0x26   : > { %1039 = vperm.xlu1 %2174, %v935_v12   ;;  %2058 = vmatmul.mubr.msk.f32.vlgmr.msra.gmra.mxu0 %vm566_vm0, %v563_v8  ;;  %v1973_v32 = vld [vmem:[%s2647_s11] ss:$0 sm:$0xff]  ;;  %p2184_p3 = por %p2183_p2, %p2182_p1 }
  0x27   : > { %2063 = vmatmul.mubr.msk.f32.vlgmr.msra.gmra.mxu1 %vm566_vm0, %v561_v10  ;;  %2065 = vmatprep.subr.mxu0 %v938_v17  ;;  %v1751_v28 = vld [vmem:[%s2648_s12 + $0x40] sm:$0xff]  ;;  %p2178_p0 = pneg %p2177_p13 }
  0x28   : > { %2066 = vmatpush3.msra.mxu0 %v938_v17  ;;  %2070 = vmatprep.subr.mxu1 %v1044_v19 }
  0x29   : > { %1219 = vperm.xlu0 %2173, %v936_v13   ;;  %2075 = vmatprep.subr.mxu0 %v1128_v18  ;;  %p2185_p5 = pnand %p2184_p3, %p2178_p0 }
  0x2a   : > { %1224 = vperm.xlu1 %2174, %v937_v14   ;;  %2071 = vmatpush3.msra.mxu1 %v1044_v19 }
  0x2b   : > { %2080 = vmatprep.subr.mxu1 %v2456_v20 }
  0x2d   : > { %924 = vperm.xlu0 %2173, %v920_v15   ;;  %v1403_v15 = vld [vmem:[%s2648_s12 + $0x20] sm:$0xff] }
  0x2e   : > { %929 = vperm.xlu1 %2174, %v921_v16  }
  0x9a   : > { %v911_v21 = vpop.permute.xlu0 %910 }
  0x9b   : > { %v2459_v22 = vpop.permute.xlu1 %1034 }
  0xa0   : > { %v916_v33 = vpop.permute.xlu0 %915 }
  0xa1   : > { %v2468_v35 = vpop.permute.xlu1 %1039 }
  0xa4   : > { %v2489_v48 = vpop.permute.xlu0 %1219 }
  0xa5   : > { %v2478_v42 = vpop.permute.xlu1 %1224 }
  0xa8   : > { %v925_v1 = vpop.permute.xlu0 %924 }
  0xa9   : > { %v930_v61 = vpop.permute.xlu1 %929 }
  0xe2   : > { %v2049_v23 = vpop.f32.mrf.mxu0 }
  0xe3   : > { %v2054_v24 = vpop.f32.mrf.mxu1 }
  0xe4   : > { %v2461_v25 = vadd.f32 %v2054_v24, %v2049_v23  ;;  %v639_v26 = vpop.f32.mrf.mxu0 }
  0xe5   : > { %v720_v27 = vpop.f32.mrf.mxu1 }
  0xe6   : > { %v2463_v29 = vadd.f32 %v720_v27, %v639_v26  ;;  %v2059_v30 = vpop.f32.mrf.mxu0 }
  0xe7   : > { %v2064_v31 = vpop.f32.mrf.mxu1 }
  0xe8   : > { %v887_v34 = vadd.f32 %v2064_v31, %v2059_v30  ;;  %v806_v36 = vpop.f32.mrf.mxu0 }
  0xe9   : > { %v881_v37 = vpop.f32.mrf.mxu1 }
  0xea   : > { %v2472_v39 = vadd.f32 %v1973_v32, %v887_v34  ;;  %v882_v40 = vadd.f32 %v881_v37, %v806_v36 }
  0xec   : > { %v2474_v41 = vadd.f32 %v1973_v32, %v882_v40  ;;  %v900_v44 = vrot.slane %v2472_v39, 4  ;;  %v1314_v46 = vrot.slane %v2472_v39, 7  ;;  %v1482_v55 = vrot.slane %v2472_v39, 1 }
  0xee   : > { %v899_v43 = vrot.slane %v2474_v41, 4  ;;  %2067 = vmatprep.mubr.msk.f32.mxu0 %vm566_vm0, %v2474_v41  ;;  %v1313_v45 = vrot.slane %v2474_v41, 7  ;;  %v1481_v49 = vrot.slane %v2474_v41, 1 }
  0xef   : > { %2068 = vmatmul.mubr.msk.f32.vlgmr.msra.gmra.mxu0 %vm566_vm0, %v2472_v39 }
  0xf0   : > { %v904_v50 = vsel %vm903_vm1, %v899_v43, %v900_v44  ;;  %v905_v51 = vsel %vm903_vm1, %v900_v44, %v899_v43  ;;  %2076 = vmatpush3.msra.mxu0 %v1128_v18  ;;  %v1316_v52 = vsel %vm1029_vm2, %v1314_v46, %v1313_v45  ;;  %v1315_v58 = vsel %vm1029_vm2, %v1313_v45, %v1314_v46 }
  0xf1   : > { %v919_v53 = vmul.f32 %v916_v33, %v904_v50  ;;  %v918_v54 = vmul.f32 %v911_v21, %v905_v51  ;;  %2085 = vmatprep.subr.mxu0 %v1319_v47  ;;  %v1317_v57 = vmul.f32 %v1316_v52, %v2459_v22  ;;  %v1483_v0 = vsel %vm1214_vm3, %v1481_v49, %v1482_v55  ;;  %v1577_v21 = vld [vmem:[%s2648_s12 + $0x30] sm:$0xff] }
  0xf2   : > { %v932_v2 = vmul.f32 %v925_v1, %v904_v50  ;;  %v1318_v4 = vmul.f32 %v1315_v58, %v2468_v35  ;;  %v933_v5 = vmul.f32 %v930_v61, %v905_v51  ;;  %v1485_v8 = vmul.f32 %v1483_v0, %v2489_v48 }
  0xf3   : > { %v1028_v56 = vrot.slane %v919_v53, 7  ;;  %2077 = vmatprep.mubr.msk.f32.mxu0 %vm566_vm0, %v918_v54  ;;  %v1213_v60 = vrot.slane %v919_v53, 1  ;;  %v1027_v62 = vrot.slane %v918_v54, 7  ;;  %v1212_v63 = vrot.slane %v918_v54, 1 }
  0xf4   : > { %2078 = vmatmul.mubr.msk.f32.vlgmr.msra.gmra.mxu0 %vm566_vm0, %v919_v53  ;;  %v1484_v10 = vsel %vm1214_vm3, %v1482_v55, %v1481_v49  ;;  %v1571_v17 = vrot.slane %v932_v2, 7  ;;  %v1572_v18 = vrot.slane %v933_v5, 7  ;;  %v1745_v23 = vrot.slane %v932_v2, 1 }
  0xf5   : > { %2087 = vmatprep.mubr.msk.f32.mxu0 %vm566_vm0, %v1317_v57  ;;  %2086 = vmatpush3.msra.mxu0 %v1319_v47  ;;  %v1030_v3 = vsel %vm1029_vm2, %v1027_v62, %v1028_v56  ;;  %v1031_v6 = vsel %vm1029_vm2, %v1028_v56, %v1027_v62  ;;  %v1215_v12 = vsel %vm1214_vm3, %v1212_v63, %v1213_v60  ;;  %v1746_v24 = vrot.slane %v933_v5, 1 }
  0xf6   : > { %2095 = vmatprep.subr.mxu0 %v1487_v59  ;;  %v1043_v7 = vmul.f32 %v2468_v35, %v1030_v3  ;;  %v1042_v11 = vmul.f32 %v2459_v22, %v1031_v6  ;;  %v1216_v13 = vsel %vm1214_vm3, %v1213_v60, %v1212_v63  ;;  %v1227_v14 = vmul.f32 %v2489_v48, %v1215_v12 }
  0xf7   : > { %v1486_v16 = vmul.f32 %v1484_v10, %v2478_v42  ;;  %v1228_v19 = vmul.f32 %v2478_v42, %v1216_v13  ;;  %v1573_v26 = vsel %vm1029_vm2, %v1571_v17, %v1572_v18  ;;  %v1747_v30 = vsel %vm1214_vm3, %v1745_v23, %v1746_v24 }
  0xf8   : > { %2088 = vmatmul.mubr.msk.f32.vlgmr.msra.gmra.mxu0 %vm566_vm0, %v1318_v4  ;;  %2072 = vmatprep.mubr.msk.f32.mxu1 %vm566_vm0, %v1042_v11  ;;  %v1576_v31 = vmul.f32 %v1573_v26, %v2468_v35  ;;  %v1748_v32 = vsel %vm1214_vm3, %v1746_v24, %v1745_v23  ;;  %v1974_v35 = vld [vmem:[%s2650_s14] ss:$0 sm:$0xff] }
  0xf9   : > { %2097 = vmatprep.mubr.msk.f32.mxu0 %vm566_vm0, %v1485_v8  ;;  %2096 = vmatpush3.msra.mxu0 %v1487_v59  ;;  %v1750_v33 = vmul.f32 %v1748_v32, %v2478_v42 }
  0xfa   : > { %2105 = vmatprep.subr.mxu0 %v1661_v9  ;;  %2073 = vmatmul.mubr.msk.f32.vlgmr.msra.gmra.mxu1 %vm566_vm0, %v1043_v7 }
  0xfb   : > { %2081 = vmatpush3.msra.mxu1 %v2456_v20  ;;  %2082 = vmatprep.mubr.msk.f32.mxu1 %vm566_vm0, %v1227_v14  ;;  %v1574_v20 = vsel %vm1029_vm2, %v1572_v18, %v1571_v17 }
  0xfc   : > { %2090 = vmatprep.subr.mxu1 %v1403_v15  ;;  %2098 = vmatmul.mubr.msk.f32.vlgmr.msra.gmra.mxu0 %vm566_vm0, %v1486_v16  ;;  %v1575_v27 = vmul.f32 %v1574_v20, %v2459_v22  ;;  %v1749_v22 = vmul.f32 %v1747_v30, %v2489_v48 }
  0xfd   : > { %2107 = vmatprep.mubr.msk.f32.mxu0 %vm566_vm0, %v932_v2  ;;  %2106 = vmatpush3.msra.mxu0 %v1661_v9 }
  0xfe   : > { %2083 = vmatmul.mubr.msk.f32.vlgmr.msra.gmra.mxu1 %vm566_vm0, %v1228_v19 }
  0xff   : > { %2091 = vmatpush3.msra.mxu1 %v1403_v15  ;;  %2092 = vmatprep.mubr.msk.f32.mxu1 %vm566_vm0, %v2474_v41 }
 0x100   : > { %2100 = vmatprep.subr.mxu1 %v1577_v21  ;;  %2108 = vmatmul.mubr.msk.f32.vlgmr.msra.gmra.mxu0 %vm566_vm0, %v933_v5  ;;  %v1968_v5 = vld [vmem:[%s2644_s8] ss:$0 sm:$0xff] }
 0x101   : > { %v737_v11 = vadd.f32 %v1968_v5, %v2461_v25  ;;  %v736_v14 = vadd.f32 %v1968_v5, %v2463_v29 }
 0x102   : > { %2093 = vmatmul.mubr.msk.f32.vlgmr.msra.gmra.mxu1 %vm566_vm0, %v2472_v39 }
 0x103   : > { %2101 = vmatpush3.msra.mxu1 %v1577_v21  ;;  %2102 = vmatprep.mubr.msk.f32.mxu1 %vm566_vm0, %v1575_v27 }
 0x104   : > { %2110 = vmatprep.subr.mxu1 %v1751_v28 }
 0x106   : > { %2103 = vmatmul.mubr.msk.f32.vlgmr.msra.gmra.mxu1 %vm566_vm0, %v1576_v31 }
 0x107   : > { %2111 = vmatpush3.msra.mxu1 %v1751_v28  ;;  %2112 = vmatprep.mubr.msk.f32.mxu1 %vm566_vm0, %v1749_v22 }
 0x10a   : > { %2113 = vmatmul.mubr.msk.f32.vlgmr.msra.gmra.mxu1 %vm566_vm0, %v1750_v33 }
 0x1af   : > { %v2069_v34 = vpop.f32.mrf.mxu0 }
 0x1b0   : > { %v1024_v40 = vadd.f32 %v2069_v34, %v1974_v35 }
 0x1b1   : > { %v1018_v36 = vpop.f32.mrf.mxu0 }
 0x1b2   : > { %v1019_v44 = vadd.f32 %v1974_v35, %v1018_v36 }
 0x1b4   : > { %v2079_v37 = vpop.f32.mrf.mxu0 }
 0x1b6   : > { %v1201_v39 = vpop.f32.mrf.mxu0 }
 0x1b8   : > { %v2089_v38 = vpop.f32.mrf.mxu0 }
 0x1ba   : > { %v2074_v41 = vpop.f32.mrf.mxu1  ;;  %v1392_v43 = vpop.f32.mrf.mxu0 }
 0x1bb   : > { %v1127_v45 = vadd.f32 %v2074_v41, %v1024_v40 }
 0x1bc   : > { %v1117_v46 = vpop.f32.mrf.mxu1  ;;  %v2099_v48 = vpop.f32.mrf.mxu0 }
 0x1bd   : > { %v1126_v47 = vadd.f32 %v1117_v46, %v1019_v44  ;;  %v1211_v42 = vadd.f32 %v2079_v37, %v1127_v45 }
 0x1be   : > { %v2084_v49 = vpop.f32.mrf.mxu1  ;;  %v1560_v55 = vpop.f32.mrf.mxu0 }
 0x1bf   : > { %v1312_v50 = vadd.f32 %v2084_v49, %v1211_v42  ;;  %v1210_v51 = vadd.f32 %v1201_v39, %v1126_v47 }
 0x1c0   : > { %v1302_v52 = vpop.f32.mrf.mxu1  ;;  %v2109_v62 = vpop.f32.mrf.mxu0 }
 0x1c1   : > { %v1311_v53 = vadd.f32 %v1302_v52, %v1210_v51  ;;  %v1402_v54 = vadd.f32 %v2089_v38, %v1312_v50 }
 0x1c2   : > { %v2094_v56 = vpop.f32.mrf.mxu1  ;;  %v1734_v6 = vpop.f32.mrf.mxu0 }
 0x1c3   : > { %v1480_v57 = vadd.f32 %v2094_v56, %v1402_v54  ;;  %v1401_v58 = vadd.f32 %v1392_v43, %v1311_v53 }
 0x1c4   : > { %v1470_v59 = vpop.f32.mrf.mxu1 }
 0x1c5   : > { %v1479_v60 = vadd.f32 %v1470_v59, %v1401_v58  ;;  %v1570_v61 = vadd.f32 %v2099_v48, %v1480_v57 }
 0x1c6   : > { %v2104_v63 = vpop.f32.mrf.mxu1 }
 0x1c7   : > { %v1660_v0 = vadd.f32 %v2104_v63, %v1570_v61  ;;  %v1569_v1 = vadd.f32 %v1560_v55, %v1479_v60 }
 0x1c8   : > { %v1650_v2 = vpop.f32.mrf.mxu1 }
 0x1c9   : > { %v1659_v3 = vadd.f32 %v1650_v2, %v1569_v1  ;;  %v1744_v4 = vadd.f32 %v2109_v62, %v1660_v0 }
 0x1ca   : > { %v2114_v7 = vpop.f32.mrf.mxu1 }
 0x1cb   : > { %v1834_v8 = vadd.f32 %v2114_v7, %v1744_v4  ;;  %v1743_v9 = vadd.f32 %v1734_v6, %v1659_v3 }
 0x1cc   : > { %v1824_v10 = vpop.f32.mrf.mxu1 }
 0x1cd   : > { %v1836_v12 = vmax.f32 %v1834_v8, 0.0  ;;  %v1833_v13 = vadd.f32 %v1824_v10, %v1743_v9 }
 0x1cf   : > { %v1838_v15 = vadd.f32 %v1836_v12, %v737_v11  ;;  %v1835_v16 = vmax.f32 %v1833_v13, 0.0 }
 0x1d1   : > { %1840 = vst.msk [vmem:[%s538_s29 + $0x8] sm:$0xff] %vm566_vm0, %v1838_v15  ;;  %v1837_v25 = vadd.f32 %v1835_v16, %v736_v14 }
 0x1d3   : > { %1839 = vst.msk [vmem:[%s538_s29] sm:$0xff] %vm566_vm0, %v1837_v25 }
 0x1d4   : > { %2188 = shalt.err (!%p2185_p5)
}
 0x1d5   : > { %s2189_s9 = scalar_lea.hbm %s2583_s24, 256  ;;  %s2193_s7 = scalar_lea.hbm %s2651_s15, 512 }
 0x1d6   : > { %p2190_p6 = scmp.ne.s32.totalorder %s2583_s24, %s2189_s9  ;;  %p2194_p10 = scmp.lt.s32.totalorder %s2583_s24, %s2651_s15 }
 0x1d7   : > { %p2195_p11 = scmp.lt.s32.totalorder %s2193_s7, %s2189_s9 }
 0x1d8   : > { %p2191_p7 = pnand %p2190_p6, %p2377_p4 }
 0x1d9   : > { %p2196_p12 = por %p2195_p11, %p2194_p10 }
 0x1da   : > { %p2192_p9 = pneg %p2191_p7 }
 0x1dc   : > { %p2197_p13 = pnand %p2196_p12, %p2192_p9 }
 0x1de   : > { %2200 = shalt.err (!%p2197_p13)
}
 0x1df   : > { %s2255_s6 = smov 128   ;;  %s2256_s25 = smov 8  }
 0x1e0   : > { %2115 = dma.vmem_to_hbm [thread:$0]  (%p2377_p4), %s2585_s27, 256, %s2583_s24, %s2591_s21, %s2255_s6, %s2255_s6, %s2256_s25  }
 0x1e1 PF: > { %s2666_s26 = sld [smem:[#allocation5_spill]]  ;;  %p2121_p0 = scmp.ge.s32.totalorder %s2251_s23, 2 }
 0x1e3   : > { %p2118_p1 = pnand %p2121_p0, %p2384_p8 }
 0x1e5   : > { %p2119_p2 = pneg %p2118_p1 }
 0x1e7   : > { %s1872_s22 = sand.u32 1, %s2666_s26  }
 0x1e8   : > { %s1873_s9 = scalar_lea.sflag [#allocation3], %s1872_s22 }
 0x1e9   : > { %2226 = dma.done.wait (%p2119_p2), %s1873_s9, 256  }
 0x1ea   : > { %2228 = vsyncadd (%p2119_p2), %s1873_s9, 4294967040  ;;  %s28_s23 = sadd.s32 1, %s2251_s23   ;;  %s2667_s21 = sld [smem:[#allocation6_spill]] }
 0x1eb   : > { %p25_p3 = scmp.ge.s32.totalorder %s28_s23, 4   ;;  %s2668_s22 = sld [smem:[#allocation7_spill]] }
 0x1ec   : > { %s2669_s18 = smov %s2235_s19  ;;  %s2670_s19 = smov %s2239_s20 }
 0x1ed   : > { %s2671_s20 = smov %s2390_s16  ;;  %27 = sbr.rel (!%p25_p3) target bundleno = 8 (0x8), region = 118 }
 0x1f2   :  { %1878 = vsyncpa [#allocation3], 1 }
 0x1f3   :  { %1880 = vsyncpa [#allocation3 + $0x1], 1 }

</bundles_post_ra>
